<compile_context>
chip_gen: v6e
topology: v6e:2x2x1
jax: 0.10.0
libtpu: 0.0.40
codegen_flags: <defaults>
</compile_context>

<pallas_src>
import math

import jax
import jax.numpy as jnp
from jax.experimental import pallas as pl
from jax.experimental.pallas import tpu as pltpu

LRELU_SLOPE = 0.01   # torch.nn.LeakyReLU default negative_slope
GROUPS = 32          # ResNeXt cardinality (fixed in the reference module)
SE_REDUCTION = 16


def _grouped_to_dense_hwio(w_g, groups):
    """Expand a PyTorch grouped-conv weight (out, in/groups, kh, kw) into an
    equivalent dense HWIO weight (kh, kw, in, out) that is block-diagonal over
    channels.  conv(x, grouped) == conv(x, dense) exactly."""
    out_ch, gin, kh, kw = w_g.shape
    gout = out_ch // groups
    cin = gin * groups
    w = jnp.transpose(w_g, (2, 3, 1, 0))            # (kh, kw, gin, out)
    dense = jnp.zeros((kh, kw, cin, out_ch), w_g.dtype)
    for g in range(groups):
        dense = dense.at[:, :, g * gin:(g + 1) * gin,
                         g * gout:(g + 1) * gout].set(
            w[:, :, :, g * gout:(g + 1) * gout])
    return dense


def init_crm_params(key, ch):
    """PyTorch-default (uniform +-1/sqrt(fan_in)) params for CRM(ch),
    pre-converted to the matmul layouts the kernel expects and stacked over
    the 3 ResNeXt blocks.  Weights are bf16 (MXU operands), biases f32."""
    hc = ch // 2
    assert hc % GROUPS == 0, "ch must be a multiple of 2*32 = 64"
    gin = hc // GROUPS
    sq = max(ch // SE_REDUCTION, 1)

    def uni(k, shape, fan_in):
        bound = 1.0 / math.sqrt(fan_in)
        return jax.random.uniform(k, shape, jnp.float32, -bound, bound)

    cols = {name: [] for name in
            ("w1", "b1", "w2", "b2", "w3", "b3", "w4", "b4", "w5", "b5")}

    for _ in range(3):
        key, k1, k2, k3, k4, k5, k6, k7, k8, k9, k10 = jax.random.split(key, 11)
        # First_conv: Conv2d(ch, hc, 1)
        w1_t = uni(k1, (hc, ch, 1, 1), ch)
        b1 = uni(k2, (hc,), ch)
        # Middle_conv: Conv2d(hc, hc, 3, padding=1, groups=32)
        w2_t = uni(k3, (hc, gin, 3, 3), gin * 9)
        b2 = uni(k4, (hc,), gin * 9)
        # End_conv: Conv2d(hc, ch, 1)
        w3_t = uni(k5, (ch, hc, 1, 1), hc)
        b3 = uni(k6, (ch,), hc)
        # SE: Linear(ch, ch//16) -> ReLU -> Linear(ch//16, ch) -> sigmoid
        w4_t = uni(k7, (sq, ch), ch)
        b4 = uni(k8, (sq,), ch)
        w5_t = uni(k9, (ch, sq), sq)
        b5 = uni(k10, (ch,), sq)

        cols["w1"].append(jnp.transpose(w1_t[:, :, 0, 0]).astype(jnp.bfloat16))
        cols["b1"].append(b1.reshape(1, hc))
        cols["w2"].append(_grouped_to_dense_hwio(w2_t, GROUPS)
                          .reshape(9 * hc, hc).astype(jnp.bfloat16))
        cols["b2"].append(b2.reshape(1, hc))
        cols["w3"].append(jnp.transpose(w3_t[:, :, 0, 0]).astype(jnp.bfloat16))
        cols["b3"].append(b3.reshape(1, ch))
        cols["w4"].append(jnp.transpose(w4_t).astype(jnp.bfloat16))
        cols["b4"].append(b4.reshape(1, sq))
        cols["w5"].append(jnp.transpose(w5_t).astype(jnp.bfloat16))
        cols["b5"].append(b5.reshape(1, ch))

    return {name: jnp.stack(vals, axis=0) for name, vals in cols.items()}


def crm_forward(x_nchw, params):
    """CRM forward.  x_nchw: (N, ch, H, W), ch a multiple of 64."""
    N, C, H, W = x_nchw.shape
    HC = C // 2
    P = H * W

    # NCHW -> (N, H*W, C): channels on the lane axis, one matmul row per pixel.
    x_flat = jnp.transpose(x_nchw, (0, 2, 3, 1)).reshape(N, P, C)

    def crm_kernel(x_ref, w1_ref, b1_ref, w2_ref, b2_ref, w3_ref, b3_ref,
                   w4_ref, b4_ref, w5_ref, b5_ref, o_ref, pad_ref):
        def lrelu(v):
            return jnp.where(v > 0, v, LRELU_SLOPE * v)

        # Zero the padded scratch once; only its interior is rewritten below,
        # so the 1-pixel border stays zero (implements padding=1 in VMEM).
        pad_ref[...] = jnp.zeros_like(pad_ref)

        x = x_ref[0]                                          # (P, C) f32

        for blk in range(3):                                  # 3 ResNeXt blocks
            short = x

            # --- First_conv (1x1, ch -> hc) + LeakyReLU: one MXU matmul ---
            y1 = lrelu(jnp.dot(x.astype(jnp.bfloat16), w1_ref[blk],
                               preferred_element_type=jnp.float32)
                       + b1_ref[blk])                         # (P, HC) f32

            # --- Middle_conv (3x3, groups=32, padding=1) + LeakyReLU ------
            # Grouped conv expanded to a block-diagonal dense weight; run as
            # ONE deep-K matmul (K = 9*HC) over an im2col patch matrix.
            pad_ref[1:H + 1, 1:W + 1, :] = y1.reshape(H, W, HC)
            taps = [pad_ref[dy:dy + H, dx:dx + W, :].reshape(P, HC)
                    for dy in range(3) for dx in range(3)]
            patches = jnp.concatenate(taps, axis=-1).astype(jnp.bfloat16)
            y2 = lrelu(jnp.dot(patches, w2_ref[blk],
                               preferred_element_type=jnp.float32)
                       + b2_ref[blk])                         # (P, HC) f32

            # --- End_conv (1x1, hc -> ch) + LeakyReLU ---------------------
            y3 = lrelu(jnp.dot(y2.astype(jnp.bfloat16), w3_ref[blk],
                               preferred_element_type=jnp.float32)
                       + b3_ref[blk])                         # (P, C) f32

            # --- SE gate: global mean -> FC -> ReLU -> FC -> sigmoid ------
            pooled = jnp.mean(y3, axis=0, keepdims=True)      # (1, C)
            s = jnp.dot(pooled.astype(jnp.bfloat16), w4_ref[blk],
                        preferred_element_type=jnp.float32) + b4_ref[blk]
            s = jnp.maximum(s, 0.0)
            s = jax.nn.sigmoid(
                jnp.dot(s.astype(jnp.bfloat16), w5_ref[blk],
                        preferred_element_type=jnp.float32) + b5_ref[blk])

            # --- channel scaling + residual add ---------------------------
            x = y3 * s + short

        o_ref[0] = x.astype(o_ref.dtype)

    def full_spec(shape):
        return pl.BlockSpec(shape, lambda n, _s=shape: tuple(0 for _ in _s))

    out = pl.pallas_call(
        crm_kernel,
        out_shape=jax.ShapeDtypeStruct((N, P, C), x_flat.dtype),
        grid_spec=pltpu.PrefetchScalarGridSpec(
            num_scalar_prefetch=0,
            grid=(N,),
            in_specs=[
                pl.BlockSpec((1, P, C), lambda n: (n, 0, 0)),
                full_spec(params["w1"].shape), full_spec(params["b1"].shape),
                full_spec(params["w2"].shape), full_spec(params["b2"].shape),
                full_spec(params["w3"].shape), full_spec(params["b3"].shape),
                full_spec(params["w4"].shape), full_spec(params["b4"].shape),
                full_spec(params["w5"].shape), full_spec(params["b5"].shape),
            ],
            out_specs=pl.BlockSpec((1, P, C), lambda n: (n, 0, 0)),
            scratch_shapes=[pltpu.VMEM((H + 2, W + 2, HC), jnp.float32)],
        ),
        compiler_params=pltpu.CompilerParams(
            dimension_semantics=("parallel",),
        ),
    )(x_flat,
      params["w1"], params["b1"], params["w2"], params["b2"],
      params["w3"], params["b3"], params["w4"], params["b4"],
      params["w5"], params["b5"])

    return jnp.transpose(out.reshape(N, H, W, C), (0, 3, 1, 2))


if __name__ == "__main__":
    # groups=32 on the half-channel middle conv forces ch % 64 == 0, so the
    # smallest shape-consistent configuration is ch = 64.
    N, CH, H, W = 2, 64, 16, 16

    key = jax.random.PRNGKey(0)
    key, xk = jax.random.split(key)
    x = jax.random.normal(xk, (N, CH, H, W), jnp.float32)

    params = init_crm_params(key, CH)

    out = jax.jit(crm_forward)(x, params)
    jax.block_until_ready(out)
    assert out.shape == (N, CH, H, W), out.shape
    assert jnp.all(jnp.isfinite(out))
    print("KERNEL_OK")
</pallas_src>

<mosaic_0001>
module attributes {stable_mosaic.version = 11 : i64} {
  func.func @crm_kernel(%arg0: i32, %arg1: memref<1x256x64xf32, #tpu.memory_space<vmem>>, %arg2: memref<3x64x32xbf16, #tpu.memory_space<vmem>>, %arg3: memref<3x1x32xf32, #tpu.memory_space<vmem>>, %arg4: memref<3x288x32xbf16, #tpu.memory_space<vmem>>, %arg5: memref<3x1x32xf32, #tpu.memory_space<vmem>>, %arg6: memref<3x32x64xbf16, #tpu.memory_space<vmem>>, %arg7: memref<3x1x64xf32, #tpu.memory_space<vmem>>, %arg8: memref<3x64x4xbf16, #tpu.memory_space<vmem>>, %arg9: memref<3x1x4xf32, #tpu.memory_space<vmem>>, %arg10: memref<3x4x64xbf16, #tpu.memory_space<vmem>>, %arg11: memref<3x1x64xf32, #tpu.memory_space<vmem>>, %arg12: memref<1x256x64xf32, #tpu.memory_space<vmem>>, %arg13: memref<18x18x32xf32, #tpu.memory_space<vmem>>) attributes {dimension_semantics = [#tpu.dimension_semantics<parallel>], iteration_bounds = array<i64: 2>, scalar_prefetch = 0 : i64, scratch_operands = 1 : i64, tpu.core_type = #tpu.core_type<tc>, window_params = [{transform_indices = @transform_0, window_bounds = array<i64: 1, 256, 64>}, {pipeline_mode = #tpu.pipeline_mode<synchronous>, transform_indices = @transform_1, window_bounds = array<i64: 3, 64, 32>}, {pipeline_mode = #tpu.pipeline_mode<synchronous>, transform_indices = @transform_2, window_bounds = array<i64: 3, 1, 32>}, {pipeline_mode = #tpu.pipeline_mode<synchronous>, transform_indices = @transform_3, window_bounds = array<i64: 3, 288, 32>}, {pipeline_mode = #tpu.pipeline_mode<synchronous>, transform_indices = @transform_4, window_bounds = array<i64: 3, 1, 32>}, {pipeline_mode = #tpu.pipeline_mode<synchronous>, transform_indices = @transform_5, window_bounds = array<i64: 3, 32, 64>}, {pipeline_mode = #tpu.pipeline_mode<synchronous>, transform_indices = @transform_6, window_bounds = array<i64: 3, 1, 64>}, {pipeline_mode = #tpu.pipeline_mode<synchronous>, transform_indices = @transform_7, window_bounds = array<i64: 3, 64, 4>}, {pipeline_mode = #tpu.pipeline_mode<synchronous>, transform_indices = @transform_8, window_bounds = array<i64: 3, 1, 4>}, {pipeline_mode = #tpu.pipeline_mode<synchronous>, transform_indices = @transform_9, window_bounds = array<i64: 3, 4, 64>}, {pipeline_mode = #tpu.pipeline_mode<synchronous>, transform_indices = @transform_10, window_bounds = array<i64: 3, 1, 64>}, {transform_indices = @transform_11, window_bounds = array<i64: 1, 256, 64>}]} {
    %cst = arith.constant 0.000000e+00 : f32
    %0 = vector.broadcast %cst : f32 to vector<18x18x32xf32>
    %c0 = arith.constant 0 : index
    %c0_0 = arith.constant 0 : index
    %c0_1 = arith.constant 0 : index
    %1 = vector.load %arg13[%c0, %c0_0, %c0_1] : memref<18x18x32xf32, #tpu.memory_space<vmem>>, vector<18x18x32xf32>
    tpu.vector_store %arg13[%c0, %c0_0, %c0_1], %0 {strides = array<i32>} : memref<18x18x32xf32, #tpu.memory_space<vmem>>, vector<18x18x32xf32>,
    %c0_2 = arith.constant 0 : index
    %c0_3 = arith.constant 0 : index
    %c0_4 = arith.constant 0 : index
    %2 = vector.load %arg1[%c0_2, %c0_3, %c0_4] : memref<1x256x64xf32, #tpu.memory_space<vmem>>, vector<1x256x64xf32>
    %3 = vector.shape_cast %2 : vector<1x256x64xf32> to vector<256x64xf32>
    %4 = arith.truncf %3 : vector<256x64xf32> to vector<256x64xbf16>
    %c0_5 = arith.constant 0 : index
    %c0_6 = arith.constant 0 : index
    %c0_7 = arith.constant 0 : index
    %5 = vector.load %arg2[%c0_5, %c0_6, %c0_7] : memref<3x64x32xbf16, #tpu.memory_space<vmem>>, vector<1x64x32xbf16>
    %6 = vector.shape_cast %5 : vector<1x64x32xbf16> to vector<64x32xbf16>
    %cst_8 = arith.constant dense<0.000000e+00> : vector<256x32xf32>
    %7 = tpu.matmul %4, %6, %cst_8 {dimension_numbers = #tpu.dot_dimension_numbers<[1], [0], [0], [1], [0, 0, 1, 1], [], []>} : vector<256x64xbf16>, vector<64x32xbf16>, vector<256x32xf32> -> vector<256x32xf32>
    %c0_9 = arith.constant 0 : index
    %c0_10 = arith.constant 0 : index
    %c0_11 = arith.constant 0 : index
    %8 = vector.load %arg3[%c0_9, %c0_10, %c0_11] : memref<3x1x32xf32, #tpu.memory_space<vmem>>, vector<1x1x32xf32>
    %9 = vector.shape_cast %8 : vector<1x1x32xf32> to vector<1x32xf32>
    %10 = vector.broadcast %9 : vector<1x32xf32> to vector<256x32xf32>
    %11 = arith.addf %7, %10 : vector<256x32xf32>
    %cst_12 = arith.constant 0.000000e+00 : f32
    %12 = vector.broadcast %cst_12 : f32 to vector<256x32xf32>
    %13 = arith.cmpf ogt, %11, %12 : vector<256x32xf32>
    %cst_13 = arith.constant 0.00999999977 : f32
    %14 = vector.broadcast %cst_13 : f32 to vector<256x32xf32>
    %15 = arith.mulf %14, %11 : vector<256x32xf32>
    %16 = arith.select %13, %11, %15 : vector<256x32xi1>, vector<256x32xf32>
    %17 = vector.shape_cast %16 : vector<256x32xf32> to vector<16x16x32xf32>
    %c1 = arith.constant 1 : index
    %c1_14 = arith.constant 1 : index
    %c0_15 = arith.constant 0 : index
    %18 = vector.load %arg13[%c1, %c1_14, %c0_15] : memref<18x18x32xf32, #tpu.memory_space<vmem>>, vector<16x16x32xf32>
    tpu.vector_store %arg13[%c1, %c1_14, %c0_15], %17 {strides = array<i32>} : memref<18x18x32xf32, #tpu.memory_space<vmem>>, vector<16x16x32xf32>,
    %c0_16 = arith.constant 0 : index
    %c0_17 = arith.constant 0 : index
    %c0_18 = arith.constant 0 : index
    %19 = vector.load %arg13[%c0_16, %c0_17, %c0_18] : memref<18x18x32xf32, #tpu.memory_space<vmem>>, vector<16x16x32xf32>
    %20 = vector.shape_cast %19 : vector<16x16x32xf32> to vector<256x32xf32>
    %c0_19 = arith.constant 0 : index
    %c1_20 = arith.constant 1 : index
    %c0_21 = arith.constant 0 : index
    %21 = vector.load %arg13[%c0_19, %c1_20, %c0_21] : memref<18x18x32xf32, #tpu.memory_space<vmem>>, vector<16x16x32xf32>
    %22 = vector.shape_cast %21 : vector<16x16x32xf32> to vector<256x32xf32>
    %c0_22 = arith.constant 0 : index
    %c2 = arith.constant 2 : index
    %c0_23 = arith.constant 0 : index
    %23 = vector.load %arg13[%c0_22, %c2, %c0_23] : memref<18x18x32xf32, #tpu.memory_space<vmem>>, vector<16x16x32xf32>
    %24 = vector.shape_cast %23 : vector<16x16x32xf32> to vector<256x32xf32>
    %c1_24 = arith.constant 1 : index
    %c0_25 = arith.constant 0 : index
    %c0_26 = arith.constant 0 : index
    %25 = vector.load %arg13[%c1_24, %c0_25, %c0_26] : memref<18x18x32xf32, #tpu.memory_space<vmem>>, vector<16x16x32xf32>
    %26 = vector.shape_cast %25 : vector<16x16x32xf32> to vector<256x32xf32>
    %c1_27 = arith.constant 1 : index
    %c1_28 = arith.constant 1 : index
    %c0_29 = arith.constant 0 : index
    %27 = vector.load %arg13[%c1_27, %c1_28, %c0_29] : memref<18x18x32xf32, #tpu.memory_space<vmem>>, vector<16x16x32xf32>
    %28 = vector.shape_cast %27 : vector<16x16x32xf32> to vector<256x32xf32>
    %c1_30 = arith.constant 1 : index
    %c2_31 = arith.constant 2 : index
    %c0_32 = arith.constant 0 : index
    %29 = vector.load %arg13[%c1_30, %c2_31, %c0_32] : memref<18x18x32xf32, #tpu.memory_space<vmem>>, vector<16x16x32xf32>
    %30 = vector.shape_cast %29 : vector<16x16x32xf32> to vector<256x32xf32>
    %c2_33 = arith.constant 2 : index
    %c0_34 = arith.constant 0 : index
    %c0_35 = arith.constant 0 : index
    %31 = vector.load %arg13[%c2_33, %c0_34, %c0_35] : memref<18x18x32xf32, #tpu.memory_space<vmem>>, vector<16x16x32xf32>
    %32 = vector.shape_cast %31 : vector<16x16x32xf32> to vector<256x32xf32>
    %c2_36 = arith.constant 2 : index
    %c1_37 = arith.constant 1 : index
    %c0_38 = arith.constant 0 : index
    %33 = vector.load %arg13[%c2_36, %c1_37, %c0_38] : memref<18x18x32xf32, #tpu.memory_space<vmem>>, vector<16x16x32xf32>
    %34 = vector.shape_cast %33 : vector<16x16x32xf32> to vector<256x32xf32>
    %c2_39 = arith.constant 2 : index
    %c2_40 = arith.constant 2 : index
    %c0_41 = arith.constant 0 : index
    %35 = vector.load %arg13[%c2_39, %c2_40, %c0_41] : memref<18x18x32xf32, #tpu.memory_space<vmem>>, vector<16x16x32xf32>
    %36 = vector.shape_cast %35 : vector<16x16x32xf32> to vector<256x32xf32>
    %37 = tpu.concatenate %20, %22, %24, %26, %28, %30, %32, %34, %36 in 1 : vector<256x32xf32>, vector<256x32xf32>, vector<256x32xf32>, vector<256x32xf32>, vector<256x32xf32>, vector<256x32xf32>, vector<256x32xf32>, vector<256x32xf32>, vector<256x32xf32> -> vector<256x288xf32>
    %38 = arith.truncf %37 : vector<256x288xf32> to vector<256x288xbf16>
    %c0_42 = arith.constant 0 : index
    %c0_43 = arith.constant 0 : index
    %c0_44 = arith.constant 0 : index
    %39 = vector.load %arg4[%c0_42, %c0_43, %c0_44] : memref<3x288x32xbf16, #tpu.memory_space<vmem>>, vector<1x288x32xbf16>
    %40 = vector.shape_cast %39 : vector<1x288x32xbf16> to vector<288x32xbf16>
    %cst_45 = arith.constant dense<0.000000e+00> : vector<256x32xf32>
    %41 = tpu.matmul %38, %40, %cst_45 {dimension_numbers = #tpu.dot_dimension_numbers<[1], [0], [0], [1], [0, 0, 1, 1], [], []>} : vector<256x288xbf16>, vector<288x32xbf16>, vector<256x32xf32> -> vector<256x32xf32>
    %c0_46 = arith.constant 0 : index
    %c0_47 = arith.constant 0 : index
    %c0_48 = arith.constant 0 : index
    %42 = vector.load %arg5[%c0_46, %c0_47, %c0_48] : memref<3x1x32xf32, #tpu.memory_space<vmem>>, vector<1x1x32xf32>
    %43 = vector.shape_cast %42 : vector<1x1x32xf32> to vector<1x32xf32>
    %44 = vector.broadcast %43 : vector<1x32xf32> to vector<256x32xf32>
    %45 = arith.addf %41, %44 : vector<256x32xf32>
    %cst_49 = arith.constant 0.000000e+00 : f32
    %46 = vector.broadcast %cst_49 : f32 to vector<256x32xf32>
    %47 = arith.cmpf ogt, %45, %46 : vector<256x32xf32>
    %cst_50 = arith.constant 0.00999999977 : f32
    %48 = vector.broadcast %cst_50 : f32 to vector<256x32xf32>
    %49 = arith.mulf %48, %45 : vector<256x32xf32>
    %50 = arith.select %47, %45, %49 : vector<256x32xi1>, vector<256x32xf32>
    %51 = arith.truncf %50 : vector<256x32xf32> to vector<256x32xbf16>
    %c0_51 = arith.constant 0 : index
    %c0_52 = arith.constant 0 : index
    %c0_53 = arith.constant 0 : index
    %52 = vector.load %arg6[%c0_51, %c0_52, %c0_53] : memref<3x32x64xbf16, #tpu.memory_space<vmem>>, vector<1x32x64xbf16>
    %53 = vector.shape_cast %52 : vector<1x32x64xbf16> to vector<32x64xbf16>
    %cst_54 = arith.constant dense<0.000000e+00> : vector<256x64xf32>
    %54 = tpu.matmul %51, %53, %cst_54 {dimension_numbers = #tpu.dot_dimension_numbers<[1], [0], [0], [1], [0, 0, 1, 1], [], []>} : vector<256x32xbf16>, vector<32x64xbf16>, vector<256x64xf32> -> vector<256x64xf32>
    %c0_55 = arith.constant 0 : index
    %c0_56 = arith.constant 0 : index
    %c0_57 = arith.constant 0 : index
    %55 = vector.load %arg7[%c0_55, %c0_56, %c0_57] : memref<3x1x64xf32, #tpu.memory_space<vmem>>, vector<1x1x64xf32>
    %56 = vector.shape_cast %55 : vector<1x1x64xf32> to vector<1x64xf32>
    %57 = vector.broadcast %56 : vector<1x64xf32> to vector<256x64xf32>
    %58 = arith.addf %54, %57 : vector<256x64xf32>
    %cst_58 = arith.constant 0.000000e+00 : f32
    %59 = vector.broadcast %cst_58 : f32 to vector<256x64xf32>
    %60 = arith.cmpf ogt, %58, %59 : vector<256x64xf32>
    %cst_59 = arith.constant 0.00999999977 : f32
    %61 = vector.broadcast %cst_59 : f32 to vector<256x64xf32>
    %62 = arith.mulf %61, %58 : vector<256x64xf32>
    %63 = arith.select %60, %58, %62 : vector<256x64xi1>, vector<256x64xf32>
    %cst_60 = arith.constant dense<0.000000e+00> : vector<64xf32>
    %64 = vector.multi_reduction <add>, %63, %cst_60 [0] : vector<256x64xf32> to vector<64xf32>
    %65 = vector.shape_cast %64 : vector<64xf32> to vector<1x64xf32>
    %cst_61 = arith.constant 2.560000e+02 : f32
    %66 = vector.broadcast %cst_61 : f32 to vector<1x64xf32>
    %67 = arith.divf %65, %66 : vector<1x64xf32>
    %68 = arith.truncf %67 : vector<1x64xf32> to vector<1x64xbf16>
    %c0_62 = arith.constant 0 : index
    %c0_63 = arith.constant 0 : index
    %c0_64 = arith.constant 0 : index
    %69 = vector.load %arg8[%c0_62, %c0_63, %c0_64] : memref<3x64x4xbf16, #tpu.memory_space<vmem>>, vector<1x64x4xbf16>
    %70 = vector.shape_cast %69 : vector<1x64x4xbf16> to vector<64x4xbf16>
    %cst_65 = arith.constant dense<0.000000e+00> : vector<1x4xf32>
    %71 = tpu.matmul %68, %70, %cst_65 {dimension_numbers = #tpu.dot_dimension_numbers<[1], [0], [0], [1], [0, 0, 1, 1], [], []>} : vector<1x64xbf16>, vector<64x4xbf16>, vector<1x4xf32> -> vector<1x4xf32>
    %c0_66 = arith.constant 0 : index
    %c0_67 = arith.constant 0 : index
    %c0_68 = arith.constant 0 : index
    %72 = vector.load %arg9[%c0_66, %c0_67, %c0_68] : memref<3x1x4xf32, #tpu.memory_space<vmem>>, vector<1x1x4xf32>
    %73 = vector.shape_cast %72 : vector<1x1x4xf32> to vector<1x4xf32>
    %74 = arith.addf %71, %73 : vector<1x4xf32>
    %cst_69 = arith.constant 0.000000e+00 : f32
    %75 = vector.broadcast %cst_69 : f32 to vector<1x4xf32>
    %76 = arith.maximumf %74, %75 : vector<1x4xf32>
    %77 = arith.truncf %76 : vector<1x4xf32> to vector<1x4xbf16>
    %c0_70 = arith.constant 0 : index
    %c0_71 = arith.constant 0 : index
    %c0_72 = arith.constant 0 : index
    %78 = vector.load %arg10[%c0_70, %c0_71, %c0_72] : memref<3x4x64xbf16, #tpu.memory_space<vmem>>, vector<1x4x64xbf16>
    %79 = vector.shape_cast %78 : vector<1x4x64xbf16> to vector<4x64xbf16>
    %cst_73 = arith.constant dense<0.000000e+00> : vector<1x64xf32>
    %80 = tpu.matmul %77, %79, %cst_73 {dimension_numbers = #tpu.dot_dimension_numbers<[1], [0], [0], [1], [0, 0, 1, 1], [], []>} : vector<1x4xbf16>, vector<4x64xbf16>, vector<1x64xf32> -> vector<1x64xf32>
    %c0_74 = arith.constant 0 : index
    %c0_75 = arith.constant 0 : index
    %c0_76 = arith.constant 0 : index
    %81 = vector.load %arg11[%c0_74, %c0_75, %c0_76] : memref<3x1x64xf32, #tpu.memory_space<vmem>>, vector<1x1x64xf32>
    %82 = vector.shape_cast %81 : vector<1x1x64xf32> to vector<1x64xf32>
    %83 = arith.addf %80, %82 : vector<1x64xf32>
    %84 = arith.negf %83 : vector<1x64xf32>
    %85 = math.exp %84 : vector<1x64xf32>
    %cst_77 = arith.constant 1.000000e+00 : f32
    %86 = vector.broadcast %cst_77 : f32 to vector<1x64xf32>
    %87 = arith.addf %86, %85 : vector<1x64xf32>
    %88 = arith.divf %86, %87 : vector<1x64xf32>
    %89 = vector.broadcast %88 : vector<1x64xf32> to vector<256x64xf32>
    %90 = arith.mulf %63, %89 : vector<256x64xf32>
    %91 = arith.addf %90, %3 : vector<256x64xf32>
    %92 = arith.truncf %91 : vector<256x64xf32> to vector<256x64xbf16>
    %c1_78 = arith.constant 1 : index
    %c0_79 = arith.constant 0 : index
    %c0_80 = arith.constant 0 : index
    %93 = vector.load %arg2[%c1_78, %c0_79, %c0_80] : memref<3x64x32xbf16, #tpu.memory_space<vmem>>, vector<1x64x32xbf16>
    %94 = vector.shape_cast %93 : vector<1x64x32xbf16> to vector<64x32xbf16>
    %cst_81 = arith.constant dense<0.000000e+00> : vector<256x32xf32>
    %95 = tpu.matmul %92, %94, %cst_81 {dimension_numbers = #tpu.dot_dimension_numbers<[1], [0], [0], [1], [0, 0, 1, 1], [], []>} : vector<256x64xbf16>, vector<64x32xbf16>, vector<256x32xf32> -> vector<256x32xf32>
    %c1_82 = arith.constant 1 : index
    %c0_83 = arith.constant 0 : index
    %c0_84 = arith.constant 0 : index
    %96 = vector.load %arg3[%c1_82, %c0_83, %c0_84] : memref<3x1x32xf32, #tpu.memory_space<vmem>>, vector<1x1x32xf32>
    %97 = vector.shape_cast %96 : vector<1x1x32xf32> to vector<1x32xf32>
    %98 = vector.broadcast %97 : vector<1x32xf32> to vector<256x32xf32>
    %99 = arith.addf %95, %98 : vector<256x32xf32>
    %cst_85 = arith.constant 0.000000e+00 : f32
    %100 = vector.broadcast %cst_85 : f32 to vector<256x32xf32>
    %101 = arith.cmpf ogt, %99, %100 : vector<256x32xf32>
    %cst_86 = arith.constant 0.00999999977 : f32
    %102 = vector.broadcast %cst_86 : f32 to vector<256x32xf32>
    %103 = arith.mulf %102, %99 : vector<256x32xf32>
    %104 = arith.select %101, %99, %103 : vector<256x32xi1>, vector<256x32xf32>
    %105 = vector.shape_cast %104 : vector<256x32xf32> to vector<16x16x32xf32>
    %c1_87 = arith.constant 1 : index
    %c1_88 = arith.constant 1 : index
    %c0_89 = arith.constant 0 : index
    %106 = vector.load %arg13[%c1_87, %c1_88, %c0_89] : memref<18x18x32xf32, #tpu.memory_space<vmem>>, vector<16x16x32xf32>
    tpu.vector_store %arg13[%c1_87, %c1_88, %c0_89], %105 {strides = array<i32>} : memref<18x18x32xf32, #tpu.memory_space<vmem>>, vector<16x16x32xf32>,
    %c0_90 = arith.constant 0 : index
    %c0_91 = arith.constant 0 : index
    %c0_92 = arith.constant 0 : index
    %107 = vector.load %arg13[%c0_90, %c0_91, %c0_92] : memref<18x18x32xf32, #tpu.memory_space<vmem>>, vector<16x16x32xf32>
    %108 = vector.shape_cast %107 : vector<16x16x32xf32> to vector<256x32xf32>
    %c0_93 = arith.constant 0 : index
    %c1_94 = arith.constant 1 : index
    %c0_95 = arith.constant 0 : index
    %109 = vector.load %arg13[%c0_93, %c1_94, %c0_95] : memref<18x18x32xf32, #tpu.memory_space<vmem>>, vector<16x16x32xf32>
    %110 = vector.shape_cast %109 : vector<16x16x32xf32> to vector<256x32xf32>
    %c0_96 = arith.constant 0 : index
    %c2_97 = arith.constant 2 : index
    %c0_98 = arith.constant 0 : index
    %111 = vector.load %arg13[%c0_96, %c2_97, %c0_98] : memref<18x18x32xf32, #tpu.memory_space<vmem>>, vector<16x16x32xf32>
    %112 = vector.shape_cast %111 : vector<16x16x32xf32> to vector<256x32xf32>
    %c1_99 = arith.constant 1 : index
    %c0_100 = arith.constant 0 : index
    %c0_101 = arith.constant 0 : index
    %113 = vector.load %arg13[%c1_99, %c0_100, %c0_101] : memref<18x18x32xf32, #tpu.memory_space<vmem>>, vector<16x16x32xf32>
    %114 = vector.shape_cast %113 : vector<16x16x32xf32> to vector<256x32xf32>
    %c1_102 = arith.constant 1 : index
    %c1_103 = arith.constant 1 : index
    %c0_104 = arith.constant 0 : index
    %115 = vector.load %arg13[%c1_102, %c1_103, %c0_104] : memref<18x18x32xf32, #tpu.memory_space<vmem>>, vector<16x16x32xf32>
    %116 = vector.shape_cast %115 : vector<16x16x32xf32> to vector<256x32xf32>
    %c1_105 = arith.constant 1 : index
    %c2_106 = arith.constant 2 : index
    %c0_107 = arith.constant 0 : index
    %117 = vector.load %arg13[%c1_105, %c2_106, %c0_107] : memref<18x18x32xf32, #tpu.memory_space<vmem>>, vector<16x16x32xf32>
    %118 = vector.shape_cast %117 : vector<16x16x32xf32> to vector<256x32xf32>
    %c2_108 = arith.constant 2 : index
    %c0_109 = arith.constant 0 : index
    %c0_110 = arith.constant 0 : index
    %119 = vector.load %arg13[%c2_108, %c0_109, %c0_110] : memref<18x18x32xf32, #tpu.memory_space<vmem>>, vector<16x16x32xf32>
    %120 = vector.shape_cast %119 : vector<16x16x32xf32> to vector<256x32xf32>
    %c2_111 = arith.constant 2 : index
    %c1_112 = arith.constant 1 : index
    %c0_113 = arith.constant 0 : index
    %121 = vector.load %arg13[%c2_111, %c1_112, %c0_113] : memref<18x18x32xf32, #tpu.memory_space<vmem>>, vector<16x16x32xf32>
    %122 = vector.shape_cast %121 : vector<16x16x32xf32> to vector<256x32xf32>
    %c2_114 = arith.constant 2 : index
    %c2_115 = arith.constant 2 : index
    %c0_116 = arith.constant 0 : index
    %123 = vector.load %arg13[%c2_114, %c2_115, %c0_116] : memref<18x18x32xf32, #tpu.memory_space<vmem>>, vector<16x16x32xf32>
    %124 = vector.shape_cast %123 : vector<16x16x32xf32> to vector<256x32xf32>
    %125 = tpu.concatenate %108, %110, %112, %114, %116, %118, %120, %122, %124 in 1 : vector<256x32xf32>, vector<256x32xf32>, vector<256x32xf32>, vector<256x32xf32>, vector<256x32xf32>, vector<256x32xf32>, vector<256x32xf32>, vector<256x32xf32>, vector<256x32xf32> -> vector<256x288xf32>
    %126 = arith.truncf %125 : vector<256x288xf32> to vector<256x288xbf16>
    %c1_117 = arith.constant 1 : index
    %c0_118 = arith.constant 0 : index
    %c0_119 = arith.constant 0 : index
    %127 = vector.load %arg4[%c1_117, %c0_118, %c0_119] : memref<3x288x32xbf16, #tpu.memory_space<vmem>>, vector<1x288x32xbf16>
    %128 = vector.shape_cast %127 : vector<1x288x32xbf16> to vector<288x32xbf16>
    %cst_120 = arith.constant dense<0.000000e+00> : vector<256x32xf32>
    %129 = tpu.matmul %126, %128, %cst_120 {dimension_numbers = #tpu.dot_dimension_numbers<[1], [0], [0], [1], [0, 0, 1, 1], [], []>} : vector<256x288xbf16>, vector<288x32xbf16>, vector<256x32xf32> -> vector<256x32xf32>
    %c1_121 = arith.constant 1 : index
    %c0_122 = arith.constant 0 : index
    %c0_123 = arith.constant 0 : index
    %130 = vector.load %arg5[%c1_121, %c0_122, %c0_123] : memref<3x1x32xf32, #tpu.memory_space<vmem>>, vector<1x1x32xf32>
    %131 = vector.shape_cast %130 : vector<1x1x32xf32> to vector<1x32xf32>
    %132 = vector.broadcast %131 : vector<1x32xf32> to vector<256x32xf32>
    %133 = arith.addf %129, %132 : vector<256x32xf32>
    %cst_124 = arith.constant 0.000000e+00 : f32
    %134 = vector.broadcast %cst_124 : f32 to vector<256x32xf32>
    %135 = arith.cmpf ogt, %133, %134 : vector<256x32xf32>
    %cst_125 = arith.constant 0.00999999977 : f32
    %136 = vector.broadcast %cst_125 : f32 to vector<256x32xf32>
    %137 = arith.mulf %136, %133 : vector<256x32xf32>
    %138 = arith.select %135, %133, %137 : vector<256x32xi1>, vector<256x32xf32>
    %139 = arith.truncf %138 : vector<256x32xf32> to vector<256x32xbf16>
    %c1_126 = arith.constant 1 : index
    %c0_127 = arith.constant 0 : index
    %c0_128 = arith.constant 0 : index
    %140 = vector.load %arg6[%c1_126, %c0_127, %c0_128] : memref<3x32x64xbf16, #tpu.memory_space<vmem>>, vector<1x32x64xbf16>
    %141 = vector.shape_cast %140 : vector<1x32x64xbf16> to vector<32x64xbf16>
    %cst_129 = arith.constant dense<0.000000e+00> : vector<256x64xf32>
    %142 = tpu.matmul %139, %141, %cst_129 {dimension_numbers = #tpu.dot_dimension_numbers<[1], [0], [0], [1], [0, 0, 1, 1], [], []>} : vector<256x32xbf16>, vector<32x64xbf16>, vector<256x64xf32> -> vector<256x64xf32>
    %c1_130 = arith.constant 1 : index
    %c0_131 = arith.constant 0 : index
    %c0_132 = arith.constant 0 : index
    %143 = vector.load %arg7[%c1_130, %c0_131, %c0_132] : memref<3x1x64xf32, #tpu.memory_space<vmem>>, vector<1x1x64xf32>
    %144 = vector.shape_cast %143 : vector<1x1x64xf32> to vector<1x64xf32>
    %145 = vector.broadcast %144 : vector<1x64xf32> to vector<256x64xf32>
    %146 = arith.addf %142, %145 : vector<256x64xf32>
    %cst_133 = arith.constant 0.000000e+00 : f32
    %147 = vector.broadcast %cst_133 : f32 to vector<256x64xf32>
    %148 = arith.cmpf ogt, %146, %147 : vector<256x64xf32>
    %cst_134 = arith.constant 0.00999999977 : f32
    %149 = vector.broadcast %cst_134 : f32 to vector<256x64xf32>
    %150 = arith.mulf %149, %146 : vector<256x64xf32>
    %151 = arith.select %148, %146, %150 : vector<256x64xi1>, vector<256x64xf32>
    %cst_135 = arith.constant dense<0.000000e+00> : vector<64xf32>
    %152 = vector.multi_reduction <add>, %151, %cst_135 [0] : vector<256x64xf32> to vector<64xf32>
    %153 = vector.shape_cast %152 : vector<64xf32> to vector<1x64xf32>
    %cst_136 = arith.constant 2.560000e+02 : f32
    %154 = vector.broadcast %cst_136 : f32 to vector<1x64xf32>
    %155 = arith.divf %153, %154 : vector<1x64xf32>
    %156 = arith.truncf %155 : vector<1x64xf32> to vector<1x64xbf16>
    %c1_137 = arith.constant 1 : index
    %c0_138 = arith.constant 0 : index
    %c0_139 = arith.constant 0 : index
    %157 = vector.load %arg8[%c1_137, %c0_138, %c0_139] : memref<3x64x4xbf16, #tpu.memory_space<vmem>>, vector<1x64x4xbf16>
    %158 = vector.shape_cast %157 : vector<1x64x4xbf16> to vector<64x4xbf16>
    %cst_140 = arith.constant dense<0.000000e+00> : vector<1x4xf32>
    %159 = tpu.matmul %156, %158, %cst_140 {dimension_numbers = #tpu.dot_dimension_numbers<[1], [0], [0], [1], [0, 0, 1, 1], [], []>} : vector<1x64xbf16>, vector<64x4xbf16>, vector<1x4xf32> -> vector<1x4xf32>
    %c1_141 = arith.constant 1 : index
    %c0_142 = arith.constant 0 : index
    %c0_143 = arith.constant 0 : index
    %160 = vector.load %arg9[%c1_141, %c0_142, %c0_143] : memref<3x1x4xf32, #tpu.memory_space<vmem>>, vector<1x1x4xf32>
    %161 = vector.shape_cast %160 : vector<1x1x4xf32> to vector<1x4xf32>
    %162 = arith.addf %159, %161 : vector<1x4xf32>
    %cst_144 = arith.constant 0.000000e+00 : f32
    %163 = vector.broadcast %cst_144 : f32 to vector<1x4xf32>
    %164 = arith.maximumf %162, %163 : vector<1x4xf32>
    %165 = arith.truncf %164 : vector<1x4xf32> to vector<1x4xbf16>
    %c1_145 = arith.constant 1 : index
    %c0_146 = arith.constant 0 : index
    %c0_147 = arith.constant 0 : index
    %166 = vector.load %arg10[%c1_145, %c0_146, %c0_147] : memref<3x4x64xbf16, #tpu.memory_space<vmem>>, vector<1x4x64xbf16>
    %167 = vector.shape_cast %166 : vector<1x4x64xbf16> to vector<4x64xbf16>
    %cst_148 = arith.constant dense<0.000000e+00> : vector<1x64xf32>
    %168 = tpu.matmul %165, %167, %cst_148 {dimension_numbers = #tpu.dot_dimension_numbers<[1], [0], [0], [1], [0, 0, 1, 1], [], []>} : vector<1x4xbf16>, vector<4x64xbf16>, vector<1x64xf32> -> vector<1x64xf32>
    %c1_149 = arith.constant 1 : index
    %c0_150 = arith.constant 0 : index
    %c0_151 = arith.constant 0 : index
    %169 = vector.load %arg11[%c1_149, %c0_150, %c0_151] : memref<3x1x64xf32, #tpu.memory_space<vmem>>, vector<1x1x64xf32>
    %170 = vector.shape_cast %169 : vector<1x1x64xf32> to vector<1x64xf32>
    %171 = arith.addf %168, %170 : vector<1x64xf32>
    %172 = arith.negf %171 : vector<1x64xf32>
    %173 = math.exp %172 : vector<1x64xf32>
    %cst_152 = arith.constant 1.000000e+00 : f32
    %174 = vector.broadcast %cst_152 : f32 to vector<1x64xf32>
    %175 = arith.addf %174, %173 : vector<1x64xf32>
    %176 = arith.divf %174, %175 : vector<1x64xf32>
    %177 = vector.broadcast %176 : vector<1x64xf32> to vector<256x64xf32>
    %178 = arith.mulf %151, %177 : vector<256x64xf32>
    %179 = arith.addf %178, %91 : vector<256x64xf32>
    %180 = arith.truncf %179 : vector<256x64xf32> to vector<256x64xbf16>
    %c2_153 = arith.constant 2 : index
    %c0_154 = arith.constant 0 : index
    %c0_155 = arith.constant 0 : index
    %181 = vector.load %arg2[%c2_153, %c0_154, %c0_155] : memref<3x64x32xbf16, #tpu.memory_space<vmem>>, vector<1x64x32xbf16>
    %182 = vector.shape_cast %181 : vector<1x64x32xbf16> to vector<64x32xbf16>
    %cst_156 = arith.constant dense<0.000000e+00> : vector<256x32xf32>
    %183 = tpu.matmul %180, %182, %cst_156 {dimension_numbers = #tpu.dot_dimension_numbers<[1], [0], [0], [1], [0, 0, 1, 1], [], []>} : vector<256x64xbf16>, vector<64x32xbf16>, vector<256x32xf32> -> vector<256x32xf32>
    %c2_157 = arith.constant 2 : index
    %c0_158 = arith.constant 0 : index
    %c0_159 = arith.constant 0 : index
    %184 = vector.load %arg3[%c2_157, %c0_158, %c0_159] : memref<3x1x32xf32, #tpu.memory_space<vmem>>, vector<1x1x32xf32>
    %185 = vector.shape_cast %184 : vector<1x1x32xf32> to vector<1x32xf32>
    %186 = vector.broadcast %185 : vector<1x32xf32> to vector<256x32xf32>
    %187 = arith.addf %183, %186 : vector<256x32xf32>
    %cst_160 = arith.constant 0.000000e+00 : f32
    %188 = vector.broadcast %cst_160 : f32 to vector<256x32xf32>
    %189 = arith.cmpf ogt, %187, %188 : vector<256x32xf32>
    %cst_161 = arith.constant 0.00999999977 : f32
    %190 = vector.broadcast %cst_161 : f32 to vector<256x32xf32>
    %191 = arith.mulf %190, %187 : vector<256x32xf32>
    %192 = arith.select %189, %187, %191 : vector<256x32xi1>, vector<256x32xf32>
    %193 = vector.shape_cast %192 : vector<256x32xf32> to vector<16x16x32xf32>
    %c1_162 = arith.constant 1 : index
    %c1_163 = arith.constant 1 : index
    %c0_164 = arith.constant 0 : index
    %194 = vector.load %arg13[%c1_162, %c1_163, %c0_164] : memref<18x18x32xf32, #tpu.memory_space<vmem>>, vector<16x16x32xf32>
    tpu.vector_store %arg13[%c1_162, %c1_163, %c0_164], %193 {strides = array<i32>} : memref<18x18x32xf32, #tpu.memory_space<vmem>>, vector<16x16x32xf32>,
    %c0_165 = arith.constant 0 : index
    %c0_166 = arith.constant 0 : index
    %c0_167 = arith.constant 0 : index
    %195 = vector.load %arg13[%c0_165, %c0_166, %c0_167] : memref<18x18x32xf32, #tpu.memory_space<vmem>>, vector<16x16x32xf32>
    %196 = vector.shape_cast %195 : vector<16x16x32xf32> to vector<256x32xf32>
    %c0_168 = arith.constant 0 : index
    %c1_169 = arith.constant 1 : index
    %c0_170 = arith.constant 0 : index
    %197 = vector.load %arg13[%c0_168, %c1_169, %c0_170] : memref<18x18x32xf32, #tpu.memory_space<vmem>>, vector<16x16x32xf32>
    %198 = vector.shape_cast %197 : vector<16x16x32xf32> to vector<256x32xf32>
    %c0_171 = arith.constant 0 : index
    %c2_172 = arith.constant 2 : index
    %c0_173 = arith.constant 0 : index
    %199 = vector.load %arg13[%c0_171, %c2_172, %c0_173] : memref<18x18x32xf32, #tpu.memory_space<vmem>>, vector<16x16x32xf32>
    %200 = vector.shape_cast %199 : vector<16x16x32xf32> to vector<256x32xf32>
    %c1_174 = arith.constant 1 : index
    %c0_175 = arith.constant 0 : index
    %c0_176 = arith.constant 0 : index
    %201 = vector.load %arg13[%c1_174, %c0_175, %c0_176] : memref<18x18x32xf32, #tpu.memory_space<vmem>>, vector<16x16x32xf32>
    %202 = vector.shape_cast %201 : vector<16x16x32xf32> to vector<256x32xf32>
    %c1_177 = arith.constant 1 : index
    %c1_178 = arith.constant 1 : index
    %c0_179 = arith.constant 0 : index
    %203 = vector.load %arg13[%c1_177, %c1_178, %c0_179] : memref<18x18x32xf32, #tpu.memory_space<vmem>>, vector<16x16x32xf32>
    %204 = vector.shape_cast %203 : vector<16x16x32xf32> to vector<256x32xf32>
    %c1_180 = arith.constant 1 : index
    %c2_181 = arith.constant 2 : index
    %c0_182 = arith.constant 0 : index
    %205 = vector.load %arg13[%c1_180, %c2_181, %c0_182] : memref<18x18x32xf32, #tpu.memory_space<vmem>>, vector<16x16x32xf32>
    %206 = vector.shape_cast %205 : vector<16x16x32xf32> to vector<256x32xf32>
    %c2_183 = arith.constant 2 : index
    %c0_184 = arith.constant 0 : index
    %c0_185 = arith.constant 0 : index
    %207 = vector.load %arg13[%c2_183, %c0_184, %c0_185] : memref<18x18x32xf32, #tpu.memory_space<vmem>>, vector<16x16x32xf32>
    %208 = vector.shape_cast %207 : vector<16x16x32xf32> to vector<256x32xf32>
    %c2_186 = arith.constant 2 : index
    %c1_187 = arith.constant 1 : index
    %c0_188 = arith.constant 0 : index
    %209 = vector.load %arg13[%c2_186, %c1_187, %c0_188] : memref<18x18x32xf32, #tpu.memory_space<vmem>>, vector<16x16x32xf32>
    %210 = vector.shape_cast %209 : vector<16x16x32xf32> to vector<256x32xf32>
    %c2_189 = arith.constant 2 : index
    %c2_190 = arith.constant 2 : index
    %c0_191 = arith.constant 0 : index
    %211 = vector.load %arg13[%c2_189, %c2_190, %c0_191] : memref<18x18x32xf32, #tpu.memory_space<vmem>>, vector<16x16x32xf32>
    %212 = vector.shape_cast %211 : vector<16x16x32xf32> to vector<256x32xf32>
    %213 = tpu.concatenate %196, %198, %200, %202, %204, %206, %208, %210, %212 in 1 : vector<256x32xf32>, vector<256x32xf32>, vector<256x32xf32>, vector<256x32xf32>, vector<256x32xf32>, vector<256x32xf32>, vector<256x32xf32>, vector<256x32xf32>, vector<256x32xf32> -> vector<256x288xf32>
    %214 = arith.truncf %213 : vector<256x288xf32> to vector<256x288xbf16>
    %c2_192 = arith.constant 2 : index
    %c0_193 = arith.constant 0 : index
    %c0_194 = arith.constant 0 : index
    %215 = vector.load %arg4[%c2_192, %c0_193, %c0_194] : memref<3x288x32xbf16, #tpu.memory_space<vmem>>, vector<1x288x32xbf16>
    %216 = vector.shape_cast %215 : vector<1x288x32xbf16> to vector<288x32xbf16>
    %cst_195 = arith.constant dense<0.000000e+00> : vector<256x32xf32>
    %217 = tpu.matmul %214, %216, %cst_195 {dimension_numbers = #tpu.dot_dimension_numbers<[1], [0], [0], [1], [0, 0, 1, 1], [], []>} : vector<256x288xbf16>, vector<288x32xbf16>, vector<256x32xf32> -> vector<256x32xf32>
    %c2_196 = arith.constant 2 : index
    %c0_197 = arith.constant 0 : index
    %c0_198 = arith.constant 0 : index
    %218 = vector.load %arg5[%c2_196, %c0_197, %c0_198] : memref<3x1x32xf32, #tpu.memory_space<vmem>>, vector<1x1x32xf32>
    %219 = vector.shape_cast %218 : vector<1x1x32xf32> to vector<1x32xf32>
    %220 = vector.broadcast %219 : vector<1x32xf32> to vector<256x32xf32>
    %221 = arith.addf %217, %220 : vector<256x32xf32>
    %cst_199 = arith.constant 0.000000e+00 : f32
    %222 = vector.broadcast %cst_199 : f32 to vector<256x32xf32>
    %223 = arith.cmpf ogt, %221, %222 : vector<256x32xf32>
    %cst_200 = arith.constant 0.00999999977 : f32
    %224 = vector.broadcast %cst_200 : f32 to vector<256x32xf32>
    %225 = arith.mulf %224, %221 : vector<256x32xf32>
    %226 = arith.select %223, %221, %225 : vector<256x32xi1>, vector<256x32xf32>
    %227 = arith.truncf %226 : vector<256x32xf32> to vector<256x32xbf16>
    %c2_201 = arith.constant 2 : index
    %c0_202 = arith.constant 0 : index
    %c0_203 = arith.constant 0 : index
    %228 = vector.load %arg6[%c2_201, %c0_202, %c0_203] : memref<3x32x64xbf16, #tpu.memory_space<vmem>>, vector<1x32x64xbf16>
    %229 = vector.shape_cast %228 : vector<1x32x64xbf16> to vector<32x64xbf16>
    %cst_204 = arith.constant dense<0.000000e+00> : vector<256x64xf32>
    %230 = tpu.matmul %227, %229, %cst_204 {dimension_numbers = #tpu.dot_dimension_numbers<[1], [0], [0], [1], [0, 0, 1, 1], [], []>} : vector<256x32xbf16>, vector<32x64xbf16>, vector<256x64xf32> -> vector<256x64xf32>
    %c2_205 = arith.constant 2 : index
    %c0_206 = arith.constant 0 : index
    %c0_207 = arith.constant 0 : index
    %231 = vector.load %arg7[%c2_205, %c0_206, %c0_207] : memref<3x1x64xf32, #tpu.memory_space<vmem>>, vector<1x1x64xf32>
    %232 = vector.shape_cast %231 : vector<1x1x64xf32> to vector<1x64xf32>
    %233 = vector.broadcast %232 : vector<1x64xf32> to vector<256x64xf32>
    %234 = arith.addf %230, %233 : vector<256x64xf32>
    %cst_208 = arith.constant 0.000000e+00 : f32
    %235 = vector.broadcast %cst_208 : f32 to vector<256x64xf32>
    %236 = arith.cmpf ogt, %234, %235 : vector<256x64xf32>
    %cst_209 = arith.constant 0.00999999977 : f32
    %237 = vector.broadcast %cst_209 : f32 to vector<256x64xf32>
    %238 = arith.mulf %237, %234 : vector<256x64xf32>
    %239 = arith.select %236, %234, %238 : vector<256x64xi1>, vector<256x64xf32>
    %cst_210 = arith.constant dense<0.000000e+00> : vector<64xf32>
    %240 = vector.multi_reduction <add>, %239, %cst_210 [0] : vector<256x64xf32> to vector<64xf32>
    %241 = vector.shape_cast %240 : vector<64xf32> to vector<1x64xf32>
    %cst_211 = arith.constant 2.560000e+02 : f32
    %242 = vector.broadcast %cst_211 : f32 to vector<1x64xf32>
    %243 = arith.divf %241, %242 : vector<1x64xf32>
    %244 = arith.truncf %243 : vector<1x64xf32> to vector<1x64xbf16>
    %c2_212 = arith.constant 2 : index
    %c0_213 = arith.constant 0 : index
    %c0_214 = arith.constant 0 : index
    %245 = vector.load %arg8[%c2_212, %c0_213, %c0_214] : memref<3x64x4xbf16, #tpu.memory_space<vmem>>, vector<1x64x4xbf16>
    %246 = vector.shape_cast %245 : vector<1x64x4xbf16> to vector<64x4xbf16>
    %cst_215 = arith.constant dense<0.000000e+00> : vector<1x4xf32>
    %247 = tpu.matmul %244, %246, %cst_215 {dimension_numbers = #tpu.dot_dimension_numbers<[1], [0], [0], [1], [0, 0, 1, 1], [], []>} : vector<1x64xbf16>, vector<64x4xbf16>, vector<1x4xf32> -> vector<1x4xf32>
    %c2_216 = arith.constant 2 : index
    %c0_217 = arith.constant 0 : index
    %c0_218 = arith.constant 0 : index
    %248 = vector.load %arg9[%c2_216, %c0_217, %c0_218] : memref<3x1x4xf32, #tpu.memory_space<vmem>>, vector<1x1x4xf32>
    %249 = vector.shape_cast %248 : vector<1x1x4xf32> to vector<1x4xf32>
    %250 = arith.addf %247, %249 : vector<1x4xf32>
    %cst_219 = arith.constant 0.000000e+00 : f32
    %251 = vector.broadcast %cst_219 : f32 to vector<1x4xf32>
    %252 = arith.maximumf %250, %251 : vector<1x4xf32>
    %253 = arith.truncf %252 : vector<1x4xf32> to vector<1x4xbf16>
    %c2_220 = arith.constant 2 : index
    %c0_221 = arith.constant 0 : index
    %c0_222 = arith.constant 0 : index
    %254 = vector.load %arg10[%c2_220, %c0_221, %c0_222] : memref<3x4x64xbf16, #tpu.memory_space<vmem>>, vector<1x4x64xbf16>
    %255 = vector.shape_cast %254 : vector<1x4x64xbf16> to vector<4x64xbf16>
    %cst_223 = arith.constant dense<0.000000e+00> : vector<1x64xf32>
    %256 = tpu.matmul %253, %255, %cst_223 {dimension_numbers = #tpu.dot_dimension_numbers<[1], [0], [0], [1], [0, 0, 1, 1], [], []>} : vector<1x4xbf16>, vector<4x64xbf16>, vector<1x64xf32> -> vector<1x64xf32>
    %c2_224 = arith.constant 2 : index
    %c0_225 = arith.constant 0 : index
    %c0_226 = arith.constant 0 : index
    %257 = vector.load %arg11[%c2_224, %c0_225, %c0_226] : memref<3x1x64xf32, #tpu.memory_space<vmem>>, vector<1x1x64xf32>
    %258 = vector.shape_cast %257 : vector<1x1x64xf32> to vector<1x64xf32>
    %259 = arith.addf %256, %258 : vector<1x64xf32>
    %260 = arith.negf %259 : vector<1x64xf32>
    %261 = math.exp %260 : vector<1x64xf32>
    %cst_227 = arith.constant 1.000000e+00 : f32
    %262 = vector.broadcast %cst_227 : f32 to vector<1x64xf32>
    %263 = arith.addf %262, %261 : vector<1x64xf32>
    %264 = arith.divf %262, %263 : vector<1x64xf32>
    %265 = vector.broadcast %264 : vector<1x64xf32> to vector<256x64xf32>
    %266 = arith.mulf %239, %265 : vector<256x64xf32>
    %267 = arith.addf %266, %179 : vector<256x64xf32>
    %c0_228 = arith.constant 0 : index
    %c0_229 = arith.constant 0 : index
    %c0_230 = arith.constant 0 : index
    %268 = vector.load %arg12[%c0_228, %c0_229, %c0_230] : memref<1x256x64xf32, #tpu.memory_space<vmem>>, vector<1x256x64xf32>
    %269 = vector.shape_cast %268 : vector<1x256x64xf32> to vector<256x64xf32>
    %270 = vector.shape_cast %267 : vector<256x64xf32> to vector<1x256x64xf32>
    tpu.vector_store %arg12[%c0_228, %c0_229, %c0_230], %270 {strides = array<i32>} : memref<1x256x64xf32, #tpu.memory_space<vmem>>, vector<1x256x64xf32>,
    return
  }
  func.func @transform_0(%arg0: i32) -> (i32, i32, i32) {
    %c0_i32 = arith.constant 0 : i32
    %c0_i32_0 = arith.constant 0 : i32
    %c0_i32_1 = arith.constant 0 : i32
    return %arg0, %c0_i32, %c0_i32_0 : i32, i32, i32
  }
  func.func @transform_1(%arg0: i32) -> (i32, i32, i32) {
    %c0_i32 = arith.constant 0 : i32
    %c0_i32_0 = arith.constant 0 : i32
    %c0_i32_1 = arith.constant 0 : i32
    %c0_i32_2 = arith.constant 0 : i32
    return %c0_i32, %c0_i32_0, %c0_i32_1 : i32, i32, i32
  }
  func.func @transform_2(%arg0: i32) -> (i32, i32, i32) {
    %c0_i32 = arith.constant 0 : i32
    %c0_i32_0 = arith.constant 0 : i32
    %c0_i32_1 = arith.constant 0 : i32
    %c0_i32_2 = arith.constant 0 : i32
    return %c0_i32, %c0_i32_0, %c0_i32_1 : i32, i32, i32
  }
  func.func @transform_3(%arg0: i32) -> (i32, i32, i32) {
    %c0_i32 = arith.constant 0 : i32
    %c0_i32_0 = arith.constant 0 : i32
    %c0_i32_1 = arith.constant 0 : i32
    %c0_i32_2 = arith.constant 0 : i32
    return %c0_i32, %c0_i32_0, %c0_i32_1 : i32, i32, i32
  }
  func.func @transform_4(%arg0: i32) -> (i32, i32, i32) {
    %c0_i32 = arith.constant 0 : i32
    %c0_i32_0 = arith.constant 0 : i32
    %c0_i32_1 = arith.constant 0 : i32
    %c0_i32_2 = arith.constant 0 : i32
    return %c0_i32, %c0_i32_0, %c0_i32_1 : i32, i32, i32
  }
  func.func @transform_5(%arg0: i32) -> (i32, i32, i32) {
    %c0_i32 = arith.constant 0 : i32
    %c0_i32_0 = arith.constant 0 : i32
    %c0_i32_1 = arith.constant 0 : i32
    %c0_i32_2 = arith.constant 0 : i32
    return %c0_i32, %c0_i32_0, %c0_i32_1 : i32, i32, i32
  }
  func.func @transform_6(%arg0: i32) -> (i32, i32, i32) {
    %c0_i32 = arith.constant 0 : i32
    %c0_i32_0 = arith.constant 0 : i32
    %c0_i32_1 = arith.constant 0 : i32
    %c0_i32_2 = arith.constant 0 : i32
    return %c0_i32, %c0_i32_0, %c0_i32_1 : i32, i32, i32
  }
  func.func @transform_7(%arg0: i32) -> (i32, i32, i32) {
    %c0_i32 = arith.constant 0 : i32
    %c0_i32_0 = arith.constant 0 : i32
    %c0_i32_1 = arith.constant 0 : i32
    %c0_i32_2 = arith.constant 0 : i32
    return %c0_i32, %c0_i32_0, %c0_i32_1 : i32, i32, i32
  }
  func.func @transform_8(%arg0: i32) -> (i32, i32, i32) {
    %c0_i32 = arith.constant 0 : i32
    %c0_i32_0 = arith.constant 0 : i32
    %c0_i32_1 = arith.constant 0 : i32
    %c0_i32_2 = arith.constant 0 : i32
    return %c0_i32, %c0_i32_0, %c0_i32_1 : i32, i32, i32
  }
  func.func @transform_9(%arg0: i32) -> (i32, i32, i32) {
    %c0_i32 = arith.constant 0 : i32
    %c0_i32_0 = arith.constant 0 : i32
    %c0_i32_1 = arith.constant 0 : i32
    %c0_i32_2 = arith.constant 0 : i32
    return %c0_i32, %c0_i32_0, %c0_i32_1 : i32, i32, i32
  }
  func.func @transform_10(%arg0: i32) -> (i32, i32, i32) {
    %c0_i32 = arith.constant 0 : i32
    %c0_i32_0 = arith.constant 0 : i32
    %c0_i32_1 = arith.constant 0 : i32
    %c0_i32_2 = arith.constant 0 : i32
    return %c0_i32, %c0_i32_0, %c0_i32_1 : i32, i32, i32
  }
  func.func @transform_11(%arg0: i32) -> (i32, i32, i32) {
    %c0_i32 = arith.constant 0 : i32
    %c0_i32_0 = arith.constant 0 : i32
    %c0_i32_1 = arith.constant 0 : i32
    return %arg0, %c0_i32, %c0_i32_0 : i32, i32, i32
  }
}

</mosaic_0001>

<bundles_post_ra>
// kernel: crm_forward.1
= control target key start
LH: loop header
LB: loop body
LE: loop exit
PB: predicated region body
PF: predicated region fallthrough
CT: control target
= control target key end

     0   :  { %s16495_s0 = inlined_call_operand.vmem [shape: f32[2,256,64], index: 0, kind: input, shape index: {}]   ;;  %s16496_s1 = inlined_call_operand.vmem [shape: bf16[3,64,32], index: 1, kind: input, shape index: {}]   ;;  %s16497_s2 = inlined_call_operand.vmem [shape: f32[3,1,32], index: 2, kind: input, shape index: {}]   ;;  %s16498_s3 = inlined_call_operand.vmem [shape: bf16[3,288,32], index: 3, kind: input, shape index: {}]   ;;  %s16499_s4 = inlined_call_operand.vmem [shape: f32[3,1,32], index: 4, kind: input, shape index: {}]   ;;  %s16500_s5 = inlined_call_operand.vmem [shape: bf16[3,32,64], index: 5, kind: input, shape index: {}]   ;;  %s16501_s6 = inlined_call_operand.vmem [shape: f32[3,1,64], index: 6, kind: input, shape index: {}]   ;;  %s16502_s7 = inlined_call_operand.vmem [shape: bf16[3,64,4], index: 7, kind: input, shape index: {}]   ;;  %s16503_s8 = inlined_call_operand.vmem [shape: f32[3,1,4], index: 8, kind: input, shape index: {}]   ;;  %s16504_s9 = inlined_call_operand.vmem [shape: bf16[3,4,64], index: 9, kind: input, shape index: {}]   ;;  %s16505_s10 = inlined_call_operand.vmem [shape: f32[3,1,64], index: 10, kind: input, shape index: {}]   ;;  %s16506_s11 = inlined_call_operand.hbm [shape: f32[2,256,64], index: 11, kind: output, shape index: {}]  }
   0x1   :  { %16556 = sst [smem:[#allocation28_spill]] %s16495_s0 }
   0x2   :  { %16557 = sst [smem:[#allocation29_spill]] %s16496_s1 }
   0x3   :  { %16 = vsyncpa [#allocation4], 0 }
   0x4   :  { %18 = vsyncpa [#allocation4 + $0x1], 0  ;;  %s12423_s17 = smov 0   ;;  %s12425_s18 = smov 0  }
   0x5   :  { %s12427_s19 = smov 0   ;;  %s12429_s20 = smov 0  }
   0x6 LB: > { %s12444_s21 = sadd.s32 4294967295, %s12353_s20   ;;  %s9369_s22 = sadd.s32 4294967294, %s12353_s20   ;;  %s12353_s20 = sphi %s12429_s20, %s16653_s20   ;;  %s12349_s19 = sphi %s12427_s19, %s16652_s19   ;;  %s12345_s18 = sphi %s12425_s18, %s16651_s18   ;;  %s12341_s17 = sphi %s12423_s17, %s16650_s17  }
   0x7   : > { %s12448_s23 = sadd.s32 1, %s12353_s20   ;;  %s267_s24 = sadd.s32 1, %s12349_s19 }
   0x8   : > { %s264_s25 = ssub.s32 %s12353_s20, %s12448_s23  ;;  %p277_p0 = scmp.ne.s32.totalorder %s12349_s19, %s12345_s18 }
   0x9   : > { %p265_p1 = scmp.eq.s32.totalorder %s264_s25, 0  ;;  %p278_p2 = scmp.eq.s32.totalorder %s12444_s21, 1 }
   0xa   : > { %p283_p3 = scmp.ne.s32.totalorder %s12345_s18, %s12341_s17  ;;  %p284_p4 = scmp.eq.s32.totalorder %s9369_s22, 1 }
   0xb   : > { %s12459_s26 = scalar_select %p265_p1, %s12349_s19, %s267_s24  }
   0xc   : > { %p12461_p5 = por %p278_p2, %p277_p0  ;;  %p12465_p6 = por %p284_p4, %p283_p3 }
   0xd   : > { %16558 = sst [smem:[#allocation6_spill]] %s12459_s26  ;;  %p9372_p7 = scmp.ge.s32.totalorder %s12353_s20, 1 }
   0xe   : > { %p340_p8 = scmp.lt.s32.totalorder %s12353_s20, 3 }
  0x10   : > { %p341_p9 = pnand %p9372_p7, %p340_p8 }
  0x12   : > { %344 = sbr.rel (%p341_p9) target bundleno = 4270 (0x10ae), region = 64 }
  0x17   : > { %s16561_s1 = sld [smem:[#allocation29_spill]]  ;;  %p380_p10 = scmp.lt.s32.totalorder %s12444_s21, 1  ;;  %vm386_vm0 = vcmask 261120   ;;  %v16513_v3 = vmov 0.0   ;;  %vm529_vm1 = vcmask 523264   ;;  %vm389_vm2 = vcmask 254976  }
  0x18   : > { %s16562_s0 = sld [smem:[#allocation28_spill]]  ;;  %394 = vst.msk [vmem:[#allocation2 + $0x30] sm:$0xff] %vm386_vm0, %v16513_v3  ;;  %395 = vst.msk [vmem:[#allocation2 + $0x38] sm:$0xff] %vm386_vm0, %v16513_v3  ;;  %s16509_s13 = smov 64   ;;  %v12651_v59 = vld [vmem:[%s16498_s3 + $0x88] sm:$0xff]   ;;  %v12658_v60 = vld [vmem:[%s16498_s3 + $0x80] sm:$0xff]  }
  0x19   : > { %s381_s14 = scalar_select %p380_p10, %s12444_s21, 1  ;;  %387 = vst.msk [vmem:[#allocation2] sm:$0xff] %vm386_vm0, %v16513_v3  ;;  %388 = vst.msk [vmem:[#allocation2 + $0x8] sm:$0xff] %vm386_vm0, %v16513_v3  ;;  %v12164_v61 = vld [vmem:[%s16498_s3 + $0x78] sm:$0xff]   ;;  %v12166_v63 = vld [vmem:[%s16498_s3 + $0x70] sm:$0xff]  }
  0x1a   : > { %391 = vst.msk [vmem:[#allocation2 + $0x18] sm:$0xff] %vm386_vm0, %v16513_v3  ;;  %392 = vst.msk [vmem:[#allocation2 + $0x20] sm:$0xff] %vm386_vm0, %v16513_v3  ;;  %9773 = vmatprep.subr.bf16.mxu1 %v12164_v61  ;;  %v12165_v62 = vld [vmem:[%s16498_s3 + $0x38] sm:$0xff]   ;;  %s16511_s24 = smov 96   ;;  %v12177_v61 = vld [vmem:[%s16498_s3 + $0x8] sm:$0xff]   ;;  %s16563_s15 = smov 64  }
  0x1b   : > { %s9751_s22 = sshll.u32 %s381_s14, 8  ;;  %397 = vst.msk [vmem:[#allocation2 + $0x48] sm:$0xff] %vm386_vm0, %v16513_v3  ;;  %398 = vst.msk [vmem:[#allocation2 + $0x50] sm:$0xff] %vm386_vm0, %v16513_v3  ;;  %s16507_s14 = smov 32   ;;  %9774 = vmatpush3.bf16.msra.mxu1 %v12165_v62 }
  0x1c   : > { %400 = vst.msk [vmem:[#allocation2 + $0x60] sm:$0xff] %vm386_vm0, %v16513_v3  ;;  %401 = vst.msk [vmem:[#allocation2 + $0x68] sm:$0xff] %vm386_vm0, %v16513_v3  ;;  %9775 = vmatprep.subr.bf16.mxu1 %v12166_v63  ;;  %s377_s25 = sand.u32 1, %s12345_s18   ;;  %s12360_s12 = smov [#allocation3]  }
  0x1d   : > { %v12158_v0 = vld [vmem:[%s16561_s1 + $0x18] sm:$0xff]   ;;  %v12159_v1 = vld [vmem:[%s16561_s1 + $0x10] sm:$0xff]   ;;  %v12160_v2 = vld [vmem:[%s16561_s1 + $0x8] sm:$0xff]   ;;  %403 = vst.msk [vmem:[#allocation2 + $0x78] sm:$0xff] %vm386_vm0, %v16513_v3  ;;  %s9373_s26 = sshll.u32 %s377_s25, 8 }
  0x1e   : > { %10278 = vmatprep.subr.bf16.mxu0 %v12158_v0  ;;  %s12485_s29 = scalar_lea.vmem %s16562_s0, %s9751_s22  ;;  %404 = vst.msk [vmem:[#allocation2 + $0x80] sm:$0xff] %vm386_vm0, %v16513_v3  ;;  %406 = vst.msk [vmem:[#allocation2 + $0x90] sm:$0xff] %vm386_vm0, %v16513_v3  ;;  %v12161_v7 = vld [vmem:[%s16561_s1] sm:$0xff]   ;;  %s16564_s22 = smov 32  }
  0x1f   : > { %10279 = vmatpush3.bf16.msra.mxu0 %v12158_v0  ;;  %407 = vst.msk [vmem:[#allocation2 + $0x98] sm:$0xff] %vm386_vm0, %v16513_v3  ;;  %409 = vst.msk [vmem:[#allocation2 + $0xa8] sm:$0xff] %vm386_vm0, %v16513_v3  ;;  %v442_v4 = vld [vmem:[%s12485_s29] sm:$0xff]  ;;  %v443_v5 = vld [vmem:[%s12485_s29 + $0x8] sm:$0xff]  ;;  %s16358_s30 = scalar_lea.vmem [#allocation3], %s9373_s26  ;;  %s9752_s0 = sshll.u32 %s12444_s21, 12 }
  0x20   : > { %10280 = vmatprep.subr.bf16.mxu0 %v12159_v1  ;;  %410 = vst.msk [vmem:[#allocation2 + $0xb0] sm:$0xff] %vm386_vm0, %v16513_v3  ;;  %412 = vst.msk [vmem:[#allocation2 + $0xc0] sm:$0xff] %vm386_vm0, %v16513_v3  ;;  %v474_v6 = vpack.c.bf16 %v443_v5, %v442_v4  ;;  %v444_v8 = vld [vmem:[%s12485_s29 + $0x10] sm:$0xff]  ;;  %v445_v9 = vld [vmem:[%s12485_s29 + $0x18] sm:$0xff] }
  0x21   : > { %413 = vst.msk [vmem:[#allocation2 + $0xc8] sm:$0xff] %vm386_vm0, %v16513_v3  ;;  %415 = vst.msk [vmem:[#allocation2 + $0xd8] sm:$0xff] %vm386_vm0, %v16513_v3  ;;  %v446_v10 = vld [vmem:[%s12485_s29 + $0x20] sm:$0xff]  ;;  %v447_v11 = vld [vmem:[%s12485_s29 + $0x28] sm:$0xff]  ;;  %v475_v12 = vpack.c.bf16 %v445_v9, %v444_v8 }
  0x22   : > { %416 = vst.msk [vmem:[#allocation2 + $0xe0] sm:$0xff] %vm386_vm0, %v16513_v3  ;;  %418 = vst.msk [vmem:[#allocation2 + $0xf0] sm:$0xff] %vm386_vm0, %v16513_v3  ;;  %10286 = vmatprep.mubr.msk.bf16.mxu0 %vm529_vm1, %v474_v6  ;;  %v476_v13 = vpack.c.bf16 %v447_v11, %v446_v10  ;;  %v448_v14 = vld [vmem:[%s12485_s29 + $0x30] sm:$0xff]  ;;  %v449_v15 = vld [vmem:[%s12485_s29 + $0x38] sm:$0xff] }
  0x23   : > { %419 = vst.msk [vmem:[#allocation2 + $0xf8] sm:$0xff] %vm386_vm0, %v16513_v3  ;;  %421 = vst.msk [vmem:[#allocation2 + $0x108] sm:$0xff] %vm386_vm0, %v16513_v3  ;;  %10281 = vmatpush3.bf16.msra.mxu0 %v12159_v1  ;;  %v450_v16 = vld [vmem:[%s12485_s29 + $0x40] sm:$0xff]  ;;  %v451_v17 = vld [vmem:[%s12485_s29 + $0x48] sm:$0xff]  ;;  %v477_v18 = vpack.c.bf16 %v449_v15, %v448_v14 }
  0x24   : > { %422 = vst.msk [vmem:[#allocation2 + $0x110] sm:$0xff] %vm386_vm0, %v16513_v3  ;;  %424 = vst.msk [vmem:[#allocation2 + $0x120] sm:$0xff] %vm386_vm0, %v16513_v3  ;;  %10282 = vmatprep.subr.bf16.mxu0 %v12160_v2  ;;  %v478_v19 = vpack.c.bf16 %v451_v17, %v450_v16  ;;  %v452_v20 = vld [vmem:[%s12485_s29 + $0x50] sm:$0xff]  ;;  %v453_v21 = vld [vmem:[%s12485_s29 + $0x58] sm:$0xff] }
  0x25   : > { %425 = vst.msk [vmem:[#allocation2 + $0x128] sm:$0xff] %vm386_vm0, %v16513_v3  ;;  %427 = vst.msk [vmem:[#allocation2 + $0x138] sm:$0xff] %vm386_vm0, %v16513_v3  ;;  %v454_v22 = vld [vmem:[%s12485_s29 + $0x60] sm:$0xff]  ;;  %v455_v23 = vld [vmem:[%s12485_s29 + $0x68] sm:$0xff]  ;;  %v479_v24 = vpack.c.bf16 %v453_v21, %v452_v20 }
  0x26   : > { %428 = vst.msk [vmem:[#allocation2 + $0x140] sm:$0xff] %vm386_vm0, %v16513_v3  ;;  %430 = vst.msk [vmem:[#allocation2 + $0x150] sm:$0xff] %vm386_vm0, %v16513_v3  ;;  %v480_v25 = vpack.c.bf16 %v455_v23, %v454_v22  ;;  %v456_v26 = vld [vmem:[%s12485_s29 + $0x70] sm:$0xff]  ;;  %v457_v27 = vld [vmem:[%s12485_s29 + $0x78] sm:$0xff] }
  0x27   : > { %431 = vst.msk [vmem:[#allocation2 + $0x158] sm:$0xff] %vm386_vm0, %v16513_v3  ;;  %433 = vst.msk [vmem:[#allocation2 + $0x168] sm:$0xff] %vm386_vm0, %v16513_v3  ;;  %10283 = vmatpush3.bf16.msra.mxu0 %v12160_v2  ;;  %v458_v28 = vld [vmem:[%s12485_s29 + $0x80] sm:$0xff]  ;;  %v459_v29 = vld [vmem:[%s12485_s29 + $0x88] sm:$0xff]  ;;  %v481_v30 = vpack.c.bf16 %v457_v27, %v456_v26 }
  0x28   : > { %434 = vst.msk [vmem:[#allocation2 + $0x170] sm:$0xff] %vm386_vm0, %v16513_v3  ;;  %436 = vst.msk [vmem:[#allocation2 + $0x180] sm:$0xff] %vm386_vm0, %v16513_v3  ;;  %10284 = vmatprep.subr.bf16.mxu0 %v12161_v7  ;;  %v482_v31 = vpack.c.bf16 %v459_v29, %v458_v28  ;;  %v460_v32 = vld [vmem:[%s12485_s29 + $0x90] sm:$0xff]  ;;  %v461_v33 = vld [vmem:[%s12485_s29 + $0x98] sm:$0xff] }
  0x29   : > { %437 = vst.msk [vmem:[#allocation2 + $0x188] sm:$0xff] %vm386_vm0, %v16513_v3  ;;  %439 = vst.msk [vmem:[#allocation2 + $0x198] sm:$0xff] %vm386_vm0, %v16513_v3  ;;  %v462_v34 = vld [vmem:[%s12485_s29 + $0xa0] sm:$0xff]  ;;  %v463_v35 = vld [vmem:[%s12485_s29 + $0xa8] sm:$0xff]  ;;  %v483_v36 = vpack.c.bf16 %v461_v33, %v460_v32 }
  0x2a   : > { %440 = vst.msk [vmem:[#allocation2 + $0x1a0] sm:$0xff] %vm386_vm0, %v16513_v3  ;;  %v484_v37 = vpack.c.bf16 %v463_v35, %v462_v34  ;;  %v464_v38 = vld [vmem:[%s12485_s29 + $0xb0] sm:$0xff]  ;;  %v465_v39 = vld [vmem:[%s12485_s29 + $0xb8] sm:$0xff]  ;;  %v466_v40 = vld [vmem:[%s12485_s29 + $0xc0] sm:$0xff] }
  0x2b   : > { %10285 = vmatpush3.bf16.msra.mxu0 %v12161_v7  ;;  %v467_v41 = vld [vmem:[%s12485_s29 + $0xc8] sm:$0xff]  ;;  %v485_v42 = vpack.c.bf16 %v465_v39, %v464_v38  ;;  %v468_v44 = vld [vmem:[%s12485_s29 + $0xd0] sm:$0xff]  ;;  %v469_v45 = vld [vmem:[%s12485_s29 + $0xd8] sm:$0xff]  ;;  %396 = vst.msk [vmem:[#allocation2 + $0x40] sm:$0x3] %vm389_vm2, %v16513_v3 }
  0x2c   : > { %v486_v43 = vpack.c.bf16 %v467_v41, %v466_v40  ;;  %v470_v46 = vld [vmem:[%s12485_s29 + $0xe0] sm:$0xff]  ;;  %v471_v47 = vld [vmem:[%s12485_s29 + $0xe8] sm:$0xff]  ;;  %v487_v48 = vpack.c.bf16 %v469_v45, %v468_v44  ;;  %v472_v50 = vld [vmem:[%s12485_s29 + $0xf0] sm:$0xff]  ;;  %390 = vst.msk [vmem:[#allocation2 + $0x10] sm:$0x3] %vm389_vm2, %v16513_v3  ;;  %10318 = vmatprep.subr.bf16.mxu0 %v12651_v59 }
  0x2d   : > { %v488_v49 = vpack.c.bf16 %v471_v47, %v470_v46  ;;  %v473_v51 = vld [vmem:[%s12485_s29 + $0xf8] sm:$0xff]  ;;  %393 = vst.msk [vmem:[#allocation2 + $0x28] sm:$0x3] %vm389_vm2, %v16513_v3  ;;  %399 = vst.msk [vmem:[#allocation2 + $0x58] sm:$0x3] %vm389_vm2, %v16513_v3  ;;  %v932_v53 = vld [vmem:[#allocation2 + $0x2] sm:$0xff] }
  0x2e   : > { %10287 = vmatmul.mubr.msk.bf16.vlgmr.msra.gmra.mxu0 %vm529_vm1, %v475_v12  ;;  %v489_v52 = vpack.c.bf16 %v473_v51, %v472_v50  ;;  %402 = vst.msk [vmem:[#allocation2 + $0x70] sm:$0x3] %vm389_vm2, %v16513_v3  ;;  %405 = vst.msk [vmem:[#allocation2 + $0x88] sm:$0x3] %vm389_vm2, %v16513_v3  ;;  %v900_v55 = vld [vmem:[#allocation2 + $0x1] sm:$0xff]  ;;  %v12167_v2 = vld [vmem:[%s16498_s3 + $0x30] sm:$0xff]  }
  0x2f   : > { %10290 = vmatprep.mubr.msk.bf16.mxu0 %vm529_vm1, %v476_v13  ;;  %408 = vst.msk [vmem:[#allocation2 + $0xa0] sm:$0x3] %vm389_vm2, %v16513_v3  ;;  %411 = vst.msk [vmem:[#allocation2 + $0xb8] sm:$0x3] %vm389_vm2, %v16513_v3  ;;  %10319 = vmatpush3.bf16.msra.mxu0 %v12651_v59  ;;  %v12674_v0 = vld [vmem:[%s16497_s2] ss:$0 sm:$0xff] }
  0x30   : > { %414 = vst.msk [vmem:[#allocation2 + $0xd0] sm:$0x3] %vm389_vm2, %v16513_v3  ;;  %417 = vst.msk [vmem:[#allocation2 + $0xe8] sm:$0x3] %vm389_vm2, %v16513_v3  ;;  %10320 = vmatprep.subr.bf16.mxu0 %v12658_v60  ;;  %v12168_v5 = vld [vmem:[%s16498_s3 + $0x68] sm:$0xff]   ;;  %9776 = vmatpush3.bf16.msra.mxu1 %v12167_v2  ;;  %v12171_v20 = vld [vmem:[%s16498_s3 + $0x20] sm:$0xff]  }
  0x31   : > { %420 = vst.msk [vmem:[#allocation2 + $0x100] sm:$0x3] %vm389_vm2, %v16513_v3  ;;  %423 = vst.msk [vmem:[#allocation2 + $0x118] sm:$0x3] %vm389_vm2, %v16513_v3  ;;  %9777 = vmatprep.subr.bf16.mxu1 %v12168_v5  ;;  %v12169_v10 = vld [vmem:[%s16498_s3 + $0x28] sm:$0xff]   ;;  %v12172_v28 = vld [vmem:[%s16498_s3 + $0x58] sm:$0xff]  }
  0x32   : > { %426 = vst.msk [vmem:[#allocation2 + $0x130] sm:$0x3] %vm389_vm2, %v16513_v3  ;;  %429 = vst.msk [vmem:[#allocation2 + $0x148] sm:$0x3] %vm389_vm2, %v16513_v3  ;;  %v12174_v38 = vld [vmem:[%s16498_s3 + $0x50] sm:$0xff]  }
  0x33   : > { %432 = vst.msk [vmem:[#allocation2 + $0x160] sm:$0x3] %vm389_vm2, %v16513_v3  ;;  %435 = vst.msk [vmem:[#allocation2 + $0x178] sm:$0x3] %vm389_vm2, %v16513_v3  ;;  %v933_v54 = vld [vmem:[#allocation2 + $0xa] sm:$0xff]  ;;  %10321 = vmatpush3.bf16.msra.mxu0 %v12658_v60 }
  0x34   : > { %438 = vst.msk [vmem:[#allocation2 + $0x190] sm:$0x3] %vm389_vm2, %v16513_v3  ;;  %441 = vst.msk [vmem:[#allocation2 + $0x1a8] sm:$0x3] %vm389_vm2, %v16513_v3  ;;  %v10723_v56 = vpack.i.bf16 %v933_v54, %v932_v53  ;;  %v901_v57 = vld [vmem:[#allocation2 + $0x9] sm:$0xff]  ;;  %9778 = vmatpush3.bf16.msra.mxu1 %v12169_v10 }
  0x35   : > { %v10718_v58 = vpack.i.bf16 %v901_v57, %v900_v55  ;;  %v12175_v41 = vld [vmem:[%s16498_s3 + $0x10] sm:$0xff]  }
  0x36   : > { %10291 = vmatmul.mubr.msk.bf16.gmra.mxu0 %vm529_vm1, %v477_v18  ;;  %10724 = vrot.lane.b32.xlu1 %v10723_v56, %s16509_s13  ;;  %v12170_v18 = vld [vmem:[%s16498_s3 + $0x60] sm:$0xff]  }
  0x37   : > { %10294 = vmatprep.mubr.msk.bf16.mxu0 %vm529_vm1, %v478_v19  ;;  %10719 = vrot.lane.b32.xlu0 %v10718_v58, %s16507_s14  ;;  %v12176_v58 = vld [vmem:[%s16498_s3 + $0x48] sm:$0xff]   ;;  %s12297_s14 = sshll.u32 %s12360_s12, 4  ;;  %s12298_s14 = int_to_ptr.vmem [resolvable:$false] %s12297_s14 }
  0x38   : > { %9779 = vmatprep.subr.bf16.mxu1 %v12170_v18  ;;  %s12299_s13 = scalar_lea.vmem %s12298_s14, 8192 }
  0x39   : > { %9780 = vmatpush3.bf16.msra.mxu1 %v12171_v20 }
  0x3a   : > { %9781 = vmatprep.subr.bf16.mxu1 %v12172_v28 }
  0x3e   : > { %10295 = vmatmul.mubr.msk.bf16.gmra.mxu0 %vm529_vm1, %v479_v24 }
  0x3f   : > { %10298 = vmatprep.mubr.msk.bf16.mxu0 %vm529_vm1, %v480_v25 }
  0x46   : > { %10299 = vmatmul.mubr.msk.bf16.gmra.mxu0 %vm529_vm1, %v481_v30  ;;  %v12173_v30 = vld [vmem:[%s16498_s3 + $0x18] sm:$0xff]  }
  0x47   : > { %10302 = vmatprep.mubr.msk.bf16.mxu0 %vm529_vm1, %v482_v31  ;;  %9782 = vmatpush3.bf16.msra.mxu1 %v12173_v30 }
  0x48   : > { %9783 = vmatprep.subr.bf16.mxu1 %v12174_v38 }
  0x4b   : > { %9784 = vmatpush3.bf16.msra.mxu1 %v12175_v41 }
  0x4c   : > { %9785 = vmatprep.subr.bf16.mxu1 %v12176_v58 }
  0x4e   : > { %10303 = vmatmul.mubr.msk.bf16.gmra.mxu0 %vm529_vm1, %v483_v36 }
  0x4f   : > { %10306 = vmatprep.mubr.msk.bf16.mxu0 %vm529_vm1, %v484_v37  ;;  %9786 = vmatpush3.bf16.msra.mxu1 %v12177_v61 }
  0x56   : > { %10307 = vmatmul.mubr.msk.bf16.gmra.mxu0 %vm529_vm1, %v485_v42 }
  0x57   : > { %10310 = vmatprep.mubr.msk.bf16.mxu0 %vm529_vm1, %v486_v43 }
  0x5e   : > { %10311 = vmatmul.mubr.msk.bf16.gmra.mxu0 %vm529_vm1, %v487_v48 }
  0x5f   : > { %10314 = vmatprep.mubr.msk.bf16.mxu0 %vm529_vm1, %v488_v49 }
  0x66   : > { %10315 = vmatmul.mubr.msk.bf16.gmra.mxu0 %vm529_vm1, %v489_v52 }
  0xee   : > { %v10288_v1 = vpop.f32.mrf.mxu0 }
  0xef   : > { %v621_v4 = vadd.f32 %v10288_v1, %v12674_v0 }
  0xf0   : > { %v612_v6 = vpop.f32.mrf.mxu0 }
  0xf1   : > { %vm741_vm3 = vcmp.gt.f32.partialorder %v621_v4, 0.0  ;;  %v773_v7 = vmul.f32 0.01, %v621_v4  ;;  %v613_v8 = vadd.f32 %v12674_v0, %v612_v6 }
  0xf2   : > { %v10289_v9 = vpop.f32.mrf.mxu0 }
  0xf3   : > { %v805_v11 = vsel %vm741_vm3, %v621_v4, %v773_v7  ;;  %vm739_vm4 = vcmp.gt.f32.partialorder %v613_v8, 0.0  ;;  %v771_v12 = vmul.f32 0.01, %v613_v8  ;;  %v624_v13 = vadd.f32 %v10289_v9, %v12674_v0  ;;  %v12178_v9 = vld [vmem:[%s16498_s3 + $0x40] sm:$0xff]  }
  0xf4   : > { %838 = vst.msk [vmem:[#allocation2 + $0x31] sm:$0xff] %vm386_vm0, %v805_v11  ;;  %v615_v14 = vpop.f32.mrf.mxu0  ;;  %9787 = vmatprep.subr.bf16.mxu1 %v12178_v9 }
  0xf5   : > { %v803_v15 = vsel %vm739_vm4, %v613_v8, %v771_v12  ;;  %vm742_vm5 = vcmp.gt.f32.partialorder %v624_v13, 0.0  ;;  %v774_v16 = vmul.f32 0.01, %v624_v13  ;;  %v616_v17 = vadd.f32 %v12674_v0, %v615_v14  ;;  %v12179_v12 = vld [vmem:[%s16498_s3] sm:$0xff]  }
  0xf6   : > { %836 = vst.msk [vmem:[#allocation2 + $0x19] sm:$0xff] %vm386_vm0, %v803_v15  ;;  %v10292_v19 = vpop.f32.mrf.mxu0  ;;  %9788 = vmatpush3.bf16.msra.mxu1 %v12179_v12 }
  0xf7   : > { %v806_v21 = vsel %vm742_vm5, %v624_v13, %v774_v16  ;;  %vm740_vm6 = vcmp.gt.f32.partialorder %v616_v17, 0.0  ;;  %v772_v22 = vmul.f32 0.01, %v616_v17  ;;  %v637_v23 = vadd.f32 %v10292_v19, %v12674_v0  ;;  %10668 = vmatprep.subr.bf16.mxu1 %v12651_v59 }
  0xf8   : > { %839 = vst.msk [vmem:[#allocation2 + $0x39] sm:$0xff] %vm386_vm0, %v806_v21  ;;  %v628_v24 = vpop.f32.mrf.mxu0 }
  0xf9   : > { %v804_v25 = vsel %vm740_vm6, %v616_v17, %v772_v22  ;;  %vm745_vm7 = vcmp.gt.f32.partialorder %v637_v23, 0.0  ;;  %v777_v26 = vmul.f32 0.01, %v637_v23  ;;  %v629_v27 = vadd.f32 %v12674_v0, %v628_v24 }
  0xfa   : > { %837 = vst.msk [vmem:[#allocation2 + $0x21] sm:$0xff] %vm386_vm0, %v804_v25  ;;  %v10293_v29 = vpop.f32.mrf.mxu0 }
  0xfb   : > { %v809_v31 = vsel %vm745_vm7, %v637_v23, %v777_v26  ;;  %vm743_vm8 = vcmp.gt.f32.partialorder %v629_v27, 0.0  ;;  %v775_v32 = vmul.f32 0.01, %v629_v27  ;;  %v640_v33 = vadd.f32 %v10293_v29, %v12674_v0  ;;  %v12714_v39 = vld [vmem:[#allocation2 + $0x31] sm:$0xff] }
  0xfc   : > { %842 = vst.msk [vmem:[#allocation2 + $0x61] sm:$0xff] %vm386_vm0, %v809_v31  ;;  %v631_v34 = vpop.f32.mrf.mxu0  ;;  %v12725_v50 = vld [vmem:[#allocation2 + $0x30] sm:$0xff] }
  0xfd   : > { %v807_v35 = vsel %vm743_vm8, %v629_v27, %v775_v32  ;;  %vm746_vm9 = vcmp.gt.f32.partialorder %v640_v33, 0.0  ;;  %v778_v36 = vmul.f32 0.01, %v640_v33  ;;  %v632_v37 = vadd.f32 %v12674_v0, %v631_v34 }
  0xfe   : > { %840 = vst.msk [vmem:[#allocation2 + $0x49] sm:$0xff] %vm386_vm0, %v807_v35  ;;  %v10296_v40 = vpop.f32.mrf.mxu0 }
  0xff   : > { %v810_v42 = vsel %vm746_vm9, %v640_v33, %v778_v36  ;;  %vm744_vm10 = vcmp.gt.f32.partialorder %v632_v37, 0.0  ;;  %v776_v43 = vmul.f32 0.01, %v632_v37  ;;  %v1125_v44 = vld [vmem:[#allocation2 + $0x32] sm:$0xff]  ;;  %v1126_v45 = vld [vmem:[#allocation2 + $0x3a] sm:$0xff]  ;;  %v653_v47 = vadd.f32 %v10296_v40, %v12674_v0 }
 0x100   : > { %v12719_v46 = vld [vmem:[#allocation2 + $0x39] sm:$0xff]  ;;  %843 = vst.msk [vmem:[#allocation2 + $0x69] sm:$0xff] %vm386_vm0, %v810_v42  ;;  %v2120_v48 = vpack.c.bf16 %v1126_v45, %v1125_v44  ;;  %v644_v52 = vpop.f32.mrf.mxu0  ;;  %v10738_v1 = vpack.i.bf16 %v1126_v45, %v1125_v44 }
 0x101   : > { %v10733_v49 = vpack.i.bf16 %v12719_v46, %v12714_v39  ;;  %v12727_v51 = vld [vmem:[#allocation2 + $0x38] sm:$0xff]  ;;  %v808_v53 = vsel %vm744_vm10, %v632_v37, %v776_v43  ;;  %vm749_vm11 = vcmp.gt.f32.partialorder %v653_v47, 0.0  ;;  %v781_v55 = vmul.f32 0.01, %v653_v47  ;;  %v1029_v8 = vld [vmem:[#allocation2 + $0x22] sm:$0xff] }
 0x102   : > { %v10728_v54 = vpack.i.bf16 %v12727_v51, %v12725_v50  ;;  %841 = vst.msk [vmem:[#allocation2 + $0x51] sm:$0xff] %vm386_vm0, %v808_v53  ;;  %10322 = vmatprep.mubr.msk.bf16.mxu0 %vm386_vm0, %v2120_v48  ;;  %v645_v56 = vadd.f32 %v12674_v0, %v644_v52  ;;  %v10297_v57 = vpop.f32.mrf.mxu0  ;;  %v1028_v7 = vld [vmem:[#allocation2 + $0x1a] sm:$0xff] }
 0x103   : > { %10734 = vrot.lane.b32.xlu0 %v10733_v49, %s16511_s24  ;;  %v813_v62 = vsel %vm749_vm11, %v653_v47, %v781_v55  ;;  %v656_v63 = vadd.f32 %v10297_v57, %v12674_v0  ;;  %v12756_v16 = vpack.i.bf16 %v1029_v8, %v1028_v7  ;;  %v1065_v29 = vld [vmem:[#allocation2 + $0x60] sm:$0xff]  ;;  %v964_v40 = vld [vmem:[#allocation2 + $0x18] sm:$0xff] }
 0x104   : > { %10729 = vrot.lane.b32.xlu1 %v10728_v54, %s16563_s15  ;;  %846 = vst.msk [vmem:[#allocation2 + $0x91] sm:$0xff] %vm386_vm0, %v813_v62  ;;  %vm747_vm12 = vcmp.gt.f32.partialorder %v645_v56, 0.0  ;;  %v779_v2 = vmul.f32 0.01, %v645_v56  ;;  %v647_v4 = vpop.f32.mrf.mxu0  ;;  %v965_v36 = vld [vmem:[#allocation2 + $0x20] sm:$0xff] }
 0x105   : > { %vm750_vm13 = vcmp.gt.f32.partialorder %v656_v63, 0.0  ;;  %v782_v5 = vmul.f32 0.01, %v656_v63  ;;  %v648_v6 = vadd.f32 %v12674_v0, %v647_v4  ;;  %v1097_v43 = vld [vmem:[#allocation2 + $0x61] sm:$0xff]  ;;  %v10763_v53 = vpack.i.bf16 %v965_v36, %v964_v40  ;;  %v12815_v7 = vld [vmem:[#allocation2 + $0x19] sm:$0xff] }
 0x106   : > { %v811_v10 = vsel %vm747_vm12, %v645_v56, %v779_v2  ;;  %v10300_v11 = vpop.f32.mrf.mxu0  ;;  %v12803_v62 = vld [vmem:[#allocation2 + $0x21] sm:$0xff] }
 0x107   : > { %10739 = vrot.lane.b32.xlu0 %v10738_v1, %s16564_s22  ;;  %844 = vst.msk [vmem:[#allocation2 + $0x79] sm:$0xff] %vm386_vm0, %v811_v10  ;;  %v814_v13 = vsel %vm750_vm13, %v656_v63, %v782_v5  ;;  %vm748_vm14 = vcmp.gt.f32.partialorder %v648_v6, 0.0  ;;  %v780_v14 = vmul.f32 0.01, %v648_v6  ;;  %v669_v15 = vadd.f32 %v10300_v11, %v12674_v0  ;;  %v12758_v17 = vld [vmem:[#allocation2 + $0x62] sm:$0xff]  ;;  %v12760_v18 = vld [vmem:[#allocation2 + $0x6a] sm:$0xff] }
 0x108   : > { %10744 = vrot.lane.b32.xlu1 %v10728_v54, %s16511_s24  ;;  %847 = vst.msk [vmem:[#allocation2 + $0x99] sm:$0xff] %vm386_vm0, %v814_v13  ;;  %v660_v19 = vpop.f32.mrf.mxu0  ;;  %v1066_v23 = vld [vmem:[#allocation2 + $0x68] sm:$0xff]  ;;  %v2126_v28 = vpack.c.bf16 %v12760_v18, %v12758_v17  ;;  %v10768_v10 = vpack.i.bf16 %v12803_v62, %v12815_v7 }
 0x109   : > { %v812_v20 = vsel %vm748_vm14, %v648_v6, %v780_v14  ;;  %v12762_v21 = vld [vmem:[#allocation2 + $0x4a] sm:$0xff]  ;;  %v12764_v22 = vld [vmem:[#allocation2 + $0x52] sm:$0xff]  ;;  %vm753_vm15 = vcmp.gt.f32.partialorder %v669_v15, 0.0  ;;  %v785_v24 = vmul.f32 0.01, %v669_v15  ;;  %v661_v26 = vadd.f32 %v12674_v0, %v660_v19 }
 0x10a   : > { %845 = vst.msk [vmem:[#allocation2 + $0x81] sm:$0xff] %vm386_vm0, %v812_v20  ;;  %v2123_v25 = vpack.c.bf16 %v12764_v22, %v12762_v21  ;;  %v10301_v27 = vpop.f32.mrf.mxu0  ;;  %v12778_v32 = vpack.i.bf16 %v1066_v23, %v1065_v29  ;;  %v1098_v35 = vld [vmem:[#allocation2 + $0x69] sm:$0xff]  ;;  %v12813_v6 = vpack.i.bf16 %v12760_v18, %v12758_v17 }
 0x10b   : > { %10759 = vrot.lane.b32.xlu0 %v12756_v16, %s16564_s22  ;;  %v817_v30 = vsel %vm753_vm15, %v669_v15, %v785_v24  ;;  %v672_v31 = vadd.f32 %v10301_v27, %v12674_v0  ;;  %vm751_vm2 = vcmp.gt.f32.partialorder %v661_v26, 0.0  ;;  %v783_v33 = vmul.f32 0.01, %v661_v26  ;;  %v1064_v11 = vld [vmem:[#allocation2 + $0x50] sm:$0xff]  ;;  %v1063_v17 = vld [vmem:[#allocation2 + $0x48] sm:$0xff] }
 0x10c   : > { %10749 = vrot.lane.b32.xlu1 %v10733_v49, %s16564_s22  ;;  %10323 = vmatmul.mubr.msk.bf16.vlgmr.msra.gmra.mxu0 %vm386_vm0, %v2123_v25  ;;  %850 = vst.msk [vmem:[#allocation2 + $0xc1] sm:$0xff] %vm386_vm0, %v817_v30  ;;  %v663_v34 = vpop.f32.mrf.mxu0  ;;  %v12792_v52 = vpack.i.bf16 %v1098_v35, %v1097_v43  ;;  %v12832_v25 = vpack.i.bf16 %v1064_v11, %v1063_v17  ;;  %v1096_v27 = vld [vmem:[#allocation2 + $0x51] sm:$0xff] }
 0x10d   : > { %10326 = vmatprep.mubr.msk.bf16.mxu0 %vm386_vm0, %v2126_v28  ;;  %vm754_vm3 = vcmp.gt.f32.partialorder %v672_v31, 0.0  ;;  %v786_v37 = vmul.f32 0.01, %v672_v31  ;;  %v664_v38 = vadd.f32 %v12674_v0, %v663_v34  ;;  %v815_v41 = vsel %vm751_vm2, %v661_v26, %v783_v33 }
 0x10e   : > { %v10304_v42 = vpop.f32.mrf.mxu0  ;;  %848 = vst.msk [vmem:[#allocation2 + $0xa9] sm:$0xff] %vm386_vm0, %v815_v41 }
 0x10f   : > { %10779 = vrot.lane.b32.xlu0 %v12778_v32, %s16563_s15  ;;  %v818_v44 = vsel %vm754_vm3, %v672_v31, %v786_v37  ;;  %v12787_v45 = vld [vmem:[#allocation2 + $0x92] sm:$0xff]  ;;  %v12789_v47 = vld [vmem:[#allocation2 + $0x9a] sm:$0xff]  ;;  %vm752_vm4 = vcmp.gt.f32.partialorder %v664_v38, 0.0  ;;  %v784_v48 = vmul.f32 0.01, %v664_v38  ;;  %v685_v49 = vadd.f32 %v10304_v42, %v12674_v0  ;;  %v1095_v37 = vld [vmem:[#allocation2 + $0x49] sm:$0xff] }
 0x110   : > { %10754 = vrot.lane.b32.xlu1 %v10738_v1, %s16563_s15  ;;  %851 = vst.msk [vmem:[#allocation2 + $0xc9] sm:$0xff] %vm386_vm0, %v818_v44  ;;  %v676_v54 = vpop.f32.mrf.mxu0  ;;  %v2132_v57 = vpack.c.bf16 %v12789_v47, %v12787_v45  ;;  %v12850_v41 = vpack.i.bf16 %v1096_v27, %v1095_v37 }
 0x111   : > { %v12795_v55 = vld [vmem:[#allocation2 + $0x7a] sm:$0xff]  ;;  %v12797_v56 = vld [vmem:[#allocation2 + $0x82] sm:$0xff]  ;;  %v816_v58 = vsel %vm752_vm4, %v664_v38, %v784_v48  ;;  %vm757_vm5 = vcmp.gt.f32.partialorder %v685_v49, 0.0  ;;  %v789_v61 = vmul.f32 0.01, %v685_v49  ;;  %v677_v1 = vadd.f32 %v12674_v0, %v676_v54 }
 0x112   : > { %v2129_v63 = vpack.c.bf16 %v12797_v56, %v12795_v55  ;;  %849 = vst.msk [vmem:[#allocation2 + $0xb1] sm:$0xff] %vm386_vm0, %v816_v58  ;;  %v10305_v2 = vpop.f32.mrf.mxu0 }
 0x113   : > { %10784 = vrot.lane.b32.xlu0 %v12792_v52, %s16511_s24  ;;  %v821_v4 = vsel %vm757_vm5, %v685_v49, %v789_v61  ;;  %v688_v5 = vadd.f32 %v10305_v2, %v12674_v0  ;;  %vm755_vm6 = vcmp.gt.f32.partialorder %v677_v1, 0.0  ;;  %v787_v8 = vmul.f32 0.01, %v677_v1 }
 0x114   : > { %10764 = vrot.lane.b32.xlu1 %v10763_v53, %s16511_s24  ;;  %10327 = vmatmul.mubr.msk.bf16.gmra.mxu0 %vm386_vm0, %v2129_v63  ;;  %854 = vst.msk [vmem:[#allocation2 + $0xf1] sm:$0xff] %vm386_vm0, %v821_v4  ;;  %v679_v9 = vpop.f32.mrf.mxu0  ;;  %v12868_v63 = vpack.i.bf16 %v12764_v22, %v12762_v21 }
 0x115   : > { %10330 = vmatprep.mubr.msk.bf16.mxu0 %vm386_vm0, %v2132_v57  ;;  %vm758_vm7 = vcmp.gt.f32.partialorder %v688_v5, 0.0  ;;  %v790_v12 = vmul.f32 0.01, %v688_v5  ;;  %v680_v13 = vadd.f32 %v12674_v0, %v679_v9  ;;  %v819_v14 = vsel %vm755_vm6, %v677_v1, %v787_v8  ;;  %v1069_v1 = vld [vmem:[#allocation2 + $0x90] sm:$0xff] }
 0x116   : > { %v10308_v15 = vpop.f32.mrf.mxu0  ;;  %852 = vst.msk [vmem:[#allocation2 + $0xd9] sm:$0xff] %vm386_vm0, %v819_v14 }
 0x117   : > { %10789 = vrot.lane.b32.xlu0 %v12813_v6, %s16564_s22  ;;  %v822_v18 = vsel %vm758_vm7, %v688_v5, %v790_v12  ;;  %v12827_v19 = vld [vmem:[#allocation2 + $0xc2] sm:$0xff]  ;;  %v12829_v20 = vld [vmem:[#allocation2 + $0xca] sm:$0xff]  ;;  %vm756_vm8 = vcmp.gt.f32.partialorder %v680_v13, 0.0  ;;  %v788_v23 = vmul.f32 0.01, %v680_v13  ;;  %v701_v24 = vadd.f32 %v10308_v15, %v12674_v0 }
 0x118   : > { %10769 = vrot.lane.b32.xlu1 %v10768_v10, %s16564_s22  ;;  %855 = vst.msk [vmem:[#allocation2 + $0xf9] sm:$0xff] %vm386_vm0, %v822_v18  ;;  %v692_v26 = vpop.f32.mrf.mxu0  ;;  %v2138_v30 = vpack.c.bf16 %v12829_v20, %v12827_v19  ;;  %v1101_v18 = vld [vmem:[#allocation2 + $0x91] sm:$0xff]  ;;  %vm1989_vm7 = vcmask 785408  }
 0x119   : > { %v12835_v28 = vld [vmem:[#allocation2 + $0xaa] sm:$0xff]  ;;  %v12837_v29 = vld [vmem:[#allocation2 + $0xb2] sm:$0xff]  ;;  %v820_v31 = vsel %vm756_vm8, %v680_v13, %v788_v23  ;;  %vm761_vm9 = vcmp.gt.f32.partialorder %v701_v24, 0.0  ;;  %v793_v33 = vmul.f32 0.01, %v701_v24  ;;  %v693_v35 = vadd.f32 %v12674_v0, %v692_v26 }
 0x11a   : > { %v2135_v34 = vpack.c.bf16 %v12837_v29, %v12835_v28  ;;  %853 = vst.msk [vmem:[#allocation2 + $0xe1] sm:$0xff] %vm386_vm0, %v820_v31  ;;  %v10309_v36 = vpop.f32.mrf.mxu0  ;;  %v1102_v23 = vld [vmem:[#allocation2 + $0x99] sm:$0xff] }
 0x11b   : > { %10809 = vrot.lane.b32.xlu0 %v12832_v25, %s16563_s15  ;;  %v825_v38 = vsel %vm761_vm9, %v701_v24, %v793_v33  ;;  %v704_v40 = vadd.f32 %v10309_v36, %v12674_v0  ;;  %vm759_vm10 = vcmp.gt.f32.partialorder %v693_v35, 0.0  ;;  %v791_v42 = vmul.f32 0.01, %v693_v35 }
 0x11c   : > { %10774 = vrot.lane.b32.xlu1 %v12756_v16, %s16563_s15  ;;  %10331 = vmatmul.mubr.msk.bf16.gmra.mxu0 %vm386_vm0, %v2135_v34  ;;  %858 = vst.msk [vmem:[#allocation2 + $0x121] sm:$0xff] %vm386_vm0, %v825_v38  ;;  %v695_v43 = vpop.f32.mrf.mxu0  ;;  %v10843_v36 = vpack.i.bf16 %v1102_v23, %v1101_v18  ;;  %v1074_v18 = vld [vmem:[#allocation2 + $0xc8] sm:$0xff] }
 0x11d   : > { %10334 = vmatprep.mubr.msk.bf16.mxu0 %vm386_vm0, %v2138_v30  ;;  %vm762_vm11 = vcmp.gt.f32.partialorder %v704_v40, 0.0  ;;  %v794_v44 = vmul.f32 0.01, %v704_v40  ;;  %v696_v48 = vadd.f32 %v12674_v0, %v695_v43  ;;  %v823_v16 = vsel %vm759_vm10, %v693_v35, %v791_v42 }
 0x11e   : > { %v10312_v49 = vpop.f32.mrf.mxu0  ;;  %856 = vst.msk [vmem:[#allocation2 + $0x109] sm:$0xff] %vm386_vm0, %v823_v16 }
 0x11f   : > { %10814 = vrot.lane.b32.xlu0 %v12850_v41, %s16511_s24  ;;  %v826_v53 = vsel %vm762_vm11, %v704_v40, %v794_v44  ;;  %v12861_v54 = vld [vmem:[#allocation2 + $0xf2] sm:$0xff]  ;;  %v12863_v57 = vld [vmem:[#allocation2 + $0xfa] sm:$0xff]  ;;  %vm760_vm12 = vcmp.gt.f32.partialorder %v696_v48, 0.0  ;;  %v792_v58 = vmul.f32 0.01, %v696_v48  ;;  %v717_v61 = vadd.f32 %v10312_v49, %v12674_v0 }
 0x120   : > { %10794 = vrot.lane.b32.xlu1 %v12778_v32, %s16511_s24  ;;  %859 = vst.msk [vmem:[#allocation2 + $0x129] sm:$0xff] %vm386_vm0, %v826_v53  ;;  %v708_v2 = vpop.f32.mrf.mxu0  ;;  %v1070_v32 = vld [vmem:[#allocation2 + $0x98] sm:$0xff]  ;;  %v2144_v8 = vpack.c.bf16 %v12863_v57, %v12861_v54 }
 0x121   : > { %v12871_v4 = vld [vmem:[#allocation2 + $0xda] sm:$0xff]  ;;  %v12873_v5 = vld [vmem:[#allocation2 + $0xe2] sm:$0xff]  ;;  %v824_v9 = vsel %vm760_vm12, %v696_v48, %v792_v58  ;;  %vm765_vm13 = vcmp.gt.f32.partialorder %v717_v61, 0.0  ;;  %v797_v10 = vmul.f32 0.01, %v717_v61  ;;  %v709_v22 = vadd.f32 %v12674_v0, %v708_v2 }
 0x122   : > { %v2141_v21 = vpack.c.bf16 %v12873_v5, %v12871_v4  ;;  %857 = vst.msk [vmem:[#allocation2 + $0x111] sm:$0xff] %vm386_vm0, %v824_v9  ;;  %v10313_v11 = vpop.f32.mrf.mxu0  ;;  %v12886_v14 = vpack.i.bf16 %v1070_v32, %v1069_v1  ;;  %v10848_v58 = vpack.i.bf16 %v12789_v47, %v12787_v45  ;;  %v1067_v2 = vld [vmem:[#allocation2 + $0x78] sm:$0xff]  ;;  %v1068_v32 = vld [vmem:[#allocation2 + $0x80] sm:$0xff] }
 0x123   : > { %10819 = vrot.lane.b32.xlu0 %v12868_v63, %s16564_s22  ;;  %v829_v12 = vsel %vm765_vm13, %v717_v61, %v797_v10  ;;  %v720_v13 = vadd.f32 %v10313_v11, %v12674_v0  ;;  %vm763_vm14 = vcmp.gt.f32.partialorder %v709_v22, 0.0  ;;  %v795_v15 = vmul.f32 0.01, %v709_v22 }
 0x124   : > { %10799 = vrot.lane.b32.xlu1 %v12792_v52, %s16564_s22  ;;  %10335 = vmatmul.mubr.msk.bf16.gmra.mxu0 %vm386_vm0, %v2141_v21  ;;  %862 = vst.msk [vmem:[#allocation2 + $0x151] sm:$0xff] %vm386_vm0, %v829_v12  ;;  %v711_v17 = vpop.f32.mrf.mxu0  ;;  %v10868_v10 = vpack.i.bf16 %v1068_v32, %v1067_v2  ;;  %v1099_v21 = vld [vmem:[#allocation2 + $0x79] sm:$0xff]  ;;  %v10720_v2 = vpop.permute.xlu0 %10719 }
 0x125   : > { %10338 = vmatprep.mubr.msk.bf16.mxu0 %vm386_vm0, %v2144_v8  ;;  %vm766_vm15 = vcmp.gt.f32.partialorder %v720_v13, 0.0  ;;  %v798_v24 = vmul.f32 0.01, %v720_v13  ;;  %v712_v52 = vadd.f32 %v12674_v0, %v711_v17  ;;  %v827_v26 = vsel %vm763_vm14, %v709_v22, %v795_v15  ;;  %v1100_v22 = vld [vmem:[#allocation2 + $0x81] sm:$0xff]  ;;  %v12980_v32 = vpop.permute.xlu1 %10724 }
 0x126   : > { %v10316_v27 = vpop.f32.mrf.mxu0  ;;  %860 = vst.msk [vmem:[#allocation2 + $0x139] sm:$0xff] %vm386_vm0, %v827_v26  ;;  %v10878_v15 = vpack.i.bf16 %v12797_v56, %v12795_v55  ;;  %v1073_v17 = vld [vmem:[#allocation2 + $0xc0] sm:$0xff]  ;;  %v10908_v55 = vpack.i.bf16 %v12829_v20, %v12827_v19  ;;  %v1071_v56 = vld [vmem:[#allocation2 + $0xa8] sm:$0xff]  ;;  %v10938_v19 = vpack.i.bf16 %v12837_v29, %v12835_v28  ;;  %v1077_v20 = vld [vmem:[#allocation2 + $0xf0] sm:$0xff]  ;;  %v10968_v28 = vpack.i.bf16 %v12863_v57, %v12861_v54 }
 0x127   : > { %10839 = vrot.lane.b32.xlu0 %v12886_v14, %s16563_s15  ;;  %v830_v30 = vsel %vm766_vm15, %v720_v13, %v798_v24  ;;  %v12897_v31 = vld [vmem:[#allocation2 + $0x122] sm:$0xff]  ;;  %v12899_v33 = vld [vmem:[#allocation2 + $0x12a] sm:$0xff]  ;;  %vm764_vm2 = vcmp.gt.f32.partialorder %v712_v52, 0.0  ;;  %v796_v34 = vmul.f32 0.01, %v712_v52  ;;  %v733_v35 = vadd.f32 %v10316_v27, %v12674_v0  ;;  %v1075_v29 = vld [vmem:[#allocation2 + $0xd8] sm:$0xff] }
 0x128   : > { %10804 = vrot.lane.b32.xlu1 %v12813_v6, %s16563_s15  ;;  %863 = vst.msk [vmem:[#allocation2 + $0x159] sm:$0xff] %vm386_vm0, %v830_v30  ;;  %v724_v37 = vpop.f32.mrf.mxu0  ;;  %v2150_v6 = vpack.c.bf16 %v12899_v33, %v12897_v31  ;;  %v10873_v13 = vpack.i.bf16 %v1100_v22, %v1099_v21  ;;  %v10898_v23 = vpack.i.bf16 %v1074_v18, %v1073_v17  ;;  %v1105_v24 = vld [vmem:[#allocation2 + $0xc1] sm:$0xff]  ;;  %v1103_v27 = vld [vmem:[#allocation2 + $0xa9] sm:$0xff]  ;;  %v1104_v30 = vld [vmem:[#allocation2 + $0xb1] sm:$0xff]  ;;  %v10722_v17 = vunpack.i.h.bf16 %v10720_v2 }
 0x129   : > { %v12903_v38 = vld [vmem:[#allocation2 + $0x10a] sm:$0xff]  ;;  %v12905_v40 = vld [vmem:[#allocation2 + $0x112] sm:$0xff]  ;;  %v828_v42 = vsel %vm764_vm2, %v712_v52, %v796_v34  ;;  %vm769_vm3 = vcmp.gt.f32.partialorder %v733_v35, 0.0  ;;  %v801_v43 = vmul.f32 0.01, %v733_v35  ;;  %v725_v48 = vadd.f32 %v12674_v0, %v724_v37  ;;  %v1081_v57 = vld [vmem:[#allocation2 + $0x120] sm:$0xff] }
 0x12a   : > { %v2147_v44 = vpack.c.bf16 %v12905_v40, %v12903_v38  ;;  %861 = vst.msk [vmem:[#allocation2 + $0x141] sm:$0xff] %vm386_vm0, %v828_v42  ;;  %v10317_v16 = vpop.f32.mrf.mxu0  ;;  %v10933_v34 = vpack.i.bf16 %v1104_v30, %v1103_v27  ;;  %v1109_v37 = vld [vmem:[#allocation2 + $0xf1] sm:$0xff]  ;;  %v10998_v54 = vpack.i.bf16 %v12873_v5, %v12871_v4  ;;  %v11028_v5 = vpack.i.bf16 %v12899_v33, %v12897_v31  ;;  %v1111_v22 = vld [vmem:[#allocation2 + $0x109] sm:$0xff] }
 0x12b   : > { %10844 = vrot.lane.b32.xlu0 %v10843_v36, %s16511_s24  ;;  %v833_v49 = vsel %vm769_vm3, %v733_v35, %v801_v43  ;;  %v736_v53 = vadd.f32 %v10317_v16, %v12674_v0  ;;  %vm767_vm4 = vcmp.gt.f32.partialorder %v725_v48, 0.0  ;;  %v799_v61 = vmul.f32 0.01, %v725_v48  ;;  %v1078_v35 = vld [vmem:[#allocation2 + $0xf8] sm:$0xff]  ;;  %v1076_v43 = vld [vmem:[#allocation2 + $0xe0] sm:$0xff] }
 0x12c   : > { %10824 = vrot.lane.b32.xlu1 %v12832_v25, %s16511_s24  ;;  %10339 = vmatmul.mubr.msk.bf16.gmra.mxu0 %vm386_vm0, %v2147_v44  ;;  %866 = vst.msk [vmem:[#allocation2 + $0x181] sm:$0xff] %vm386_vm0, %v833_v49  ;;  %v727_v1 = vpop.f32.mrf.mxu0  ;;  %v10988_v44 = vpack.i.bf16 %v1076_v43, %v1075_v29  ;;  %v1108_v16 = vld [vmem:[#allocation2 + $0xe1] sm:$0xff]  ;;  %v13012_v27 = vpack.i.bf16 %v12905_v40, %v12903_v38  ;;  %v10727_v38 = vunpack.i.h.bf16 %v12980_v32  ;;  %v10726_v40 = vunpack.i.l.bf16 %v12980_v32 }
 0x12d   : > { %10342 = vmatprep.mubr.msk.bf16.mxu0 %vm386_vm0, %v2150_v6  ;;  %vm770_vm5 = vcmp.gt.f32.partialorder %v736_v53, 0.0  ;;  %v802_v8 = vmul.f32 0.01, %v736_v53  ;;  %v728_v25 = vadd.f32 %v12674_v0, %v727_v1  ;;  %v831_v9 = vsel %vm767_vm4, %v725_v48, %v799_v61  ;;  %v1110_v6 = vld [vmem:[#allocation2 + $0xf9] sm:$0xff]  ;;  %v1113_v61 = vld [vmem:[#allocation2 + $0x121] sm:$0xff]  ;;  %v1114_v1 = vld [vmem:[#allocation2 + $0x129] sm:$0xff] }
 0x12e   : > { %864 = vst.msk [vmem:[#allocation2 + $0x169] sm:$0xff] %vm386_vm0, %v831_v9  ;;  %v10963_v42 = vpack.i.bf16 %v1110_v6, %v1109_v37  ;;  %v1107_v48 = vld [vmem:[#allocation2 + $0xd9] sm:$0xff]  ;;  %v1079_v9 = vld [vmem:[#allocation2 + $0x108] sm:$0xff] }
 0x12f   : > { %10849 = vrot.lane.b32.xlu0 %v10848_v58, %s16564_s22  ;;  %v834_v45 = vsel %vm770_vm5, %v736_v53, %v802_v8  ;;  %vm768_vm6 = vcmp.gt.f32.partialorder %v728_v25, 0.0  ;;  %v800_v47 = vmul.f32 0.01, %v728_v25  ;;  %v10993_v49 = vpack.i.bf16 %v1108_v16, %v1107_v48  ;;  %v1082_v53 = vld [vmem:[#allocation2 + $0x128] sm:$0xff]  ;;  %v1118_v48 = vld [vmem:[#allocation2 + $0x159] sm:$0xff] }
 0x130   : > { %10829 = vrot.lane.b32.xlu1 %v12850_v41, %s16564_s22  ;;  %867 = vst.msk [vmem:[#allocation2 + $0x189] sm:$0xff] %vm386_vm0, %v834_v45  ;;  %v11023_v8 = vpack.i.bf16 %v1114_v1, %v1113_v61  ;;  %v1080_v45 = vld [vmem:[#allocation2 + $0x110] sm:$0xff] }
 0x131   : > { %v12928_v11 = vld [vmem:[#allocation2 + $0x13a] sm:$0xff]  ;;  %v12930_v12 = vld [vmem:[#allocation2 + $0x142] sm:$0xff]  ;;  %v832_v0 = vsel %vm768_vm6, %v728_v25, %v800_v47 }
 0x132   : > { %v2153_v41 = vpack.c.bf16 %v12930_v12, %v12928_v11  ;;  %865 = vst.msk [vmem:[#allocation2 + $0x171] sm:$0xff] %vm386_vm0, %v832_v0  ;;  %v1112_v0 = vld [vmem:[#allocation2 + $0x111] sm:$0xff] }
 0x133   : > { %10869 = vrot.lane.b32.xlu0 %v10868_v10, %s16563_s15  ;;  %v12997_v33 = vpack.i.bf16 %v1112_v0, %v1111_v22  ;;  %v1083_v22 = vld [vmem:[#allocation2 + $0x138] sm:$0xff]  ;;  %v1084_v0 = vld [vmem:[#allocation2 + $0x140] sm:$0xff] }
 0x134   : > { %10834 = vrot.lane.b32.xlu1 %v12868_v63, %s16563_s15  ;;  %10343 = vmatmul.mubr.msk.bf16.gmra.mxu0 %vm386_vm0, %v2153_v41  ;;  %v1106_v63 = vld [vmem:[#allocation2 + $0xc9] sm:$0xff] }
 0x135   : > { %v10903_v52 = vpack.i.bf16 %v1106_v63, %v1105_v24 }
 0x137   : > { %10874 = vrot.lane.b32.xlu0 %v10873_v13, %s16511_s24 }
 0x138   : > { %10854 = vrot.lane.b32.xlu1 %v12886_v14, %s16511_s24  ;;  %v1072_v14 = vld [vmem:[#allocation2 + $0xb0] sm:$0xff] }
 0x139   : > { %v10928_v26 = vpack.i.bf16 %v1072_v14, %v1071_v56  ;;  %v869_v56 = vld [vmem:[#allocation2 + $0x8] sm:$0xff]  ;;  %v10721_v14 = vunpack.i.l.bf16 %v10720_v2 }
 0x13a   : > { %v1926_v6 = vsel %vm386_vm0, %v869_v56, %v10722_v17  ;;  %v870_v17 = vld [vmem:[#allocation2 + $0x18] sm:$0xff] }
 0x13b   : > { %10879 = vrot.lane.b32.xlu0 %v10878_v15, %s16564_s22 }
 0x13c   : > { %10859 = vrot.lane.b32.xlu1 %v10843_v36, %s16564_s22  ;;  %v10958_v36 = vpack.i.bf16 %v1078_v35, %v1077_v20 }
 0x13f   : > { %10899 = vrot.lane.b32.xlu0 %v10898_v23, %s16563_s15 }
 0x140   : > { %10864 = vrot.lane.b32.xlu1 %v10848_v58, %s16563_s15  ;;  %v11018_v58 = vpack.i.bf16 %v1082_v53, %v1081_v57  ;;  %v1958_v57 = vsel %vm529_vm1, %v1926_v6, %v10727_v38 }
 0x143   : > { %10904 = vrot.lane.b32.xlu0 %v10903_v52, %s16511_s24 }
 0x144   : > { %10884 = vrot.lane.b32.xlu1 %v10868_v10, %s16511_s24  ;;  %v12990_v10 = vpack.i.bf16 %v1080_v45, %v1079_v9 }
 0x147   : > { %10909 = vrot.lane.b32.xlu0 %v10908_v55, %s16564_s22 }
 0x148   : > { %10889 = vrot.lane.b32.xlu1 %v10873_v13, %s16564_s22 }
 0x14b   : > { %10929 = vrot.lane.b32.xlu0 %v10928_v26, %s16563_s15 }
 0x14c   : > { %10894 = vrot.lane.b32.xlu1 %v10878_v15, %s16563_s15 }
 0x14f   : > { %10934 = vrot.lane.b32.xlu0 %v10933_v34, %s16511_s24 }
 0x150   : > { %10914 = vrot.lane.b32.xlu1 %v10898_v23, %s16511_s24 }
 0x153   : > { %10939 = vrot.lane.b32.xlu0 %v10938_v19, %s16564_s22 }
 0x154   : > { %10919 = vrot.lane.b32.xlu1 %v10903_v52, %s16564_s22 }
 0x157   : > { %10959 = vrot.lane.b32.xlu0 %v10958_v36, %s16563_s15 }
 0x158   : > { %10924 = vrot.lane.b32.xlu1 %v10908_v55, %s16563_s15 }
 0x15b   : > { %10964 = vrot.lane.b32.xlu0 %v10963_v42, %s16511_s24 }
 0x15c   : > { %10944 = vrot.lane.b32.xlu1 %v10928_v26, %s16511_s24 }
 0x15f   : > { %10969 = vrot.lane.b32.xlu0 %v10968_v28, %s16564_s22 }
 0x160   : > { %10949 = vrot.lane.b32.xlu1 %v10933_v34, %s16564_s22 }
 0x163   : > { %10989 = vrot.lane.b32.xlu0 %v10988_v44, %s16563_s15 }
 0x164   : > { %10954 = vrot.lane.b32.xlu1 %v10938_v19, %s16563_s15  ;;  %v868_v19 = vld [vmem:[#allocation2] sm:$0xff] }
 0x167   : > { %10994 = vrot.lane.b32.xlu0 %v10993_v49, %s16511_s24 }
 0x168   : > { %10974 = vrot.lane.b32.xlu1 %v10958_v36, %s16511_s24  ;;  %v1086_v36 = vld [vmem:[#allocation2 + $0x158] sm:$0xff] }
 0x16b   : > { %10999 = vrot.lane.b32.xlu0 %v10998_v54, %s16564_s22 }
 0x16c   : > { %10979 = vrot.lane.b32.xlu1 %v10963_v42, %s16564_s22  ;;  %v1925_v42 = vsel %vm386_vm0, %v868_v19, %v10721_v14 }
 0x16f   : > { %11019 = vrot.lane.b32.xlu0 %v11018_v58, %s16563_s15 }
 0x170   : > { %10984 = vrot.lane.b32.xlu1 %v10968_v28, %s16563_s15 }
 0x173   : > { %11024 = vrot.lane.b32.xlu0 %v11023_v8, %s16511_s24 }
 0x174   : > { %11004 = vrot.lane.b32.xlu1 %v10988_v44, %s16511_s24  ;;  %v1117_v44 = vld [vmem:[#allocation2 + $0x151] sm:$0xff] }
 0x175   : > { %v10735_v4 = vpop.permute.xlu0 %10734 }
 0x176   : > { %v10730_v25 = vpop.permute.xlu1 %10729  ;;  %v10737_v24 = vunpack.i.h.bf16 %v10735_v4  ;;  %v10736_v63 = vunpack.i.l.bf16 %v10735_v4  ;;  %v1055_v4 = vld [vmem:[#allocation2 + $0x15a] sm:$0xff] }
 0x177   : > { %11029 = vrot.lane.b32.xlu0 %v11028_v5, %s16564_s22  ;;  %v10732_v18 = vunpack.i.h.bf16 %v10730_v25  ;;  %v10731_v23 = vunpack.i.l.bf16 %v10730_v25 }
 0x178   : > { %11009 = vrot.lane.b32.xlu1 %v10993_v49, %s16564_s22 }
 0x179   : > { %v12988_v47 = vpop.permute.xlu0 %10739 }
 0x17a   : > { %v12992_v21 = vpop.permute.xlu1 %10744 }
 0x17b   : > { %11049 = vrot.lane.b32.xlu0 %v12990_v10, %s16563_s15 }
 0x17c   : > { %11014 = vrot.lane.b32.xlu1 %v10998_v54, %s16563_s15  ;;  %v1957_v54 = vsel %vm529_vm1, %v1925_v42, %v10726_v40 }
 0x17d   : > { %v10760_v31 = vpop.permute.xlu0 %10759 }
 0x17e   : > { %v12999_v41 = vpop.permute.xlu1 %10749  ;;  %v10762_v13 = vunpack.i.h.bf16 %v10760_v31  ;;  %v10761_v15 = vunpack.i.l.bf16 %v10760_v31  ;;  %v10742_v31 = vunpack.i.h.bf16 %v12988_v47 }
 0x17f   : > { %11054 = vrot.lane.b32.xlu0 %v12997_v33, %s16511_s24 }
 0x180   : > { %11034 = vrot.lane.b32.xlu1 %v11018_v58, %s16511_s24  ;;  %v2022_v52 = vsel %vm386_vm0, %v12815_v7, %v10761_v15  ;;  %v2023_v55 = vsel %vm386_vm0, %v12803_v62, %v10762_v13  ;;  %v1085_v62 = vld [vmem:[#allocation2 + $0x150] sm:$0xff]  ;;  %v13038_v58 = vpack.i.bf16 %v1118_v48, %v1117_v44  ;;  %v10741_v13 = vunpack.i.l.bf16 %v12988_v47 }
 0x181   : > { %v13008_v26 = vpop.permute.xlu0 %10779  ;;  %v2054_v30 = vsel %vm529_vm1, %v2022_v52, %v10731_v23  ;;  %v2055_v34 = vsel %vm529_vm1, %v2023_v55, %v10732_v18  ;;  %v13029_v29 = vpack.i.bf16 %v1086_v36, %v1085_v62  ;;  %v871_v18 = vld [vmem:[#allocation2 + $0x20] sm:$0xff]  ;;  %v13058_v47 = vpack.i.bf16 %v1084_v0, %v1083_v22 }
 0x182   : > { %v13016_v20 = vpop.permute.xlu1 %10754  ;;  %v2086_v7 = vsel %vm1989_vm7, %v2054_v30, %v10736_v63  ;;  %v2087_v35 = vsel %vm1989_vm7, %v2055_v34, %v10737_v24  ;;  %v10746_v55 = vunpack.i.l.bf16 %v12992_v21  ;;  %v12254_v34 = vld [vmem:[%s16498_s3 + $0x80] sm:$0xff]   ;;  %v2024_v19 = vsel %vm386_vm0, %v12714_v39, %v10741_v13  ;;  %v1090_v13 = vld [vmem:[#allocation2 + $0x188] sm:$0xff] }
 0x183   : > { %11059 = vrot.lane.b32.xlu0 %v13012_v27, %s16564_s22  ;;  %v2119_v37 = vpack.c.bf16 %v2087_v35, %v2086_v7  ;;  %v13075_v36 = vld [vmem:[#allocation2 + $0x141] sm:$0xff] }
 0x184   : > { %11039 = vrot.lane.b32.xlu1 %v11023_v8, %s16564_s22  ;;  %v1054_v8 = vld [vmem:[#allocation2 + $0x152] sm:$0xff] }
 0x185   : > { %v13027_v28 = vpop.permute.xlu0 %10784  ;;  %2397 = vmatprep.mubr.bf16.mxu1 %v2119_v37  ;;  %v13046_v45 = vpack.i.bf16 %v1055_v4, %v1054_v8 }
 0x186   : > { %v10765_v43 = vpop.permute.xlu1 %10764 }
 0x187   : > { %v10767_v16 = vunpack.i.h.bf16 %v10765_v43  ;;  %v10766_v49 = vunpack.i.l.bf16 %v10765_v43  ;;  %11079 = vrot.lane.b32.xlu0 %v13029_v29, %s16563_s15 }
 0x188   : > { %11044 = vrot.lane.b32.xlu1 %v11028_v5, %s16563_s15 }
 0x189   : > { %v13036_v53 = vpop.permute.xlu0 %10789  ;;  %v1990_v61 = vsel %vm1989_vm7, %v1957_v54, %v10766_v49  ;;  %v1991_v1 = vsel %vm1989_vm7, %v1958_v57, %v10767_v16  ;;  %v10782_v57 = vunpack.i.h.bf16 %v13008_v26 }
 0x18a   : > { %v10770_v2 = vpop.permute.xlu1 %10769  ;;  %v2118_v32 = vpack.c.bf16 %v1991_v1, %v1990_v61  ;;  %v10781_v61 = vunpack.i.l.bf16 %v13008_v26  ;;  %v1000_v1 = vld [vmem:[#allocation2 + $0x49] sm:$0xff]  ;;  %v11113_v26 = vpack.i.bf16 %v12930_v12, %v12928_v11  ;;  %v10757_v11 = vunpack.i.h.bf16 %v13016_v20 }
 0x18b   : > { %11084 = vrot.lane.b32.xlu0 %v13038_v58, %s16511_s24  ;;  %v10772_v5 = vunpack.i.h.bf16 %v10770_v2  ;;  %v10771_v25 = vunpack.i.l.bf16 %v10770_v2  ;;  %v10787_v2 = vunpack.i.h.bf16 %v13027_v28  ;;  %v10756_v12 = vunpack.i.l.bf16 %v13016_v20 }
 0x18c   : > { %2398 = vmatmul.mubr.bf16.vlgmr.msra.gmra.mxu1 %v2118_v32  ;;  %11064 = vrot.lane.b32.xlu1 %v12990_v10, %s16511_s24  ;;  %v10786_v32 = vunpack.i.l.bf16 %v13027_v28 }
 0x18d   : > { %v10810_v9 = vpop.permute.xlu0 %10809  ;;  %10670 = vmatpush3.bf16.msra.mxu1 %v12651_v59  ;;  %v1927_v52 = vsel %vm386_vm0, %v870_v17, %v10771_v25  ;;  %v1928_v59 = vsel %vm386_vm0, %v871_v18, %v10772_v5 }
 0x18e   : > { %v10775_v15 = vpop.permute.xlu1 %10774  ;;  %10669 = vmatprep.subr.bf16.mxu1 %v12658_v60  ;;  %v10812_v23 = vunpack.i.h.bf16 %v10810_v9  ;;  %v10811_v24 = vunpack.i.l.bf16 %v10810_v9  ;;  %v10747_v60 = vunpack.i.h.bf16 %v12992_v21  ;;  %v13073_v21 = vld [vmem:[#allocation2 + $0x139] sm:$0xff] }
 0x18f   : > { %v10777_v63 = vunpack.i.h.bf16 %v10775_v15  ;;  %v10776_v10 = vunpack.i.l.bf16 %v10775_v15  ;;  %11089 = vrot.lane.b32.xlu0 %v13046_v45, %s16564_s22  ;;  %v11108_v43 = vpack.i.bf16 %v13075_v36, %v13073_v21  ;;  %v10751_v15 = vunpack.i.l.bf16 %v12999_v41 }
 0x190   : > { %11069 = vrot.lane.b32.xlu1 %v12997_v33, %s16564_s22  ;;  %v2025_v33 = vsel %vm386_vm0, %v12719_v46, %v10742_v31  ;;  %v2056_v37 = vsel %vm529_vm1, %v2024_v19, %v10811_v24  ;;  %v1089_v31 = vld [vmem:[#allocation2 + $0x180] sm:$0xff]  ;;  %v13144_v19 = vld [vmem:[#allocation2 + $0x170] sm:$0xff] }
 0x191   : > { %v10815_v56 = vpop.permute.xlu0 %10814  ;;  %v1959_v14 = vsel %vm529_vm1, %v1927_v52, %v10776_v10  ;;  %v1960_v30 = vsel %vm529_vm1, %v1928_v59, %v10777_v63  ;;  %10671 = vmatpush3.bf16.msra.mxu1 %v12254_v34  ;;  %v2057_v39 = vsel %vm529_vm1, %v2025_v33, %v10812_v23  ;;  %v13120_v23 = vpack.i.bf16 %v1090_v13, %v1089_v31  ;;  %v13122_v63 = vld [vmem:[#allocation2 + $0x181] sm:$0xff]  ;;  %v13124_v10 = vld [vmem:[#allocation2 + $0x189] sm:$0xff]  ;;  %v13172_v13 = vld [vmem:[#allocation2 + $0x172] sm:$0xff] }
 0x192   : > { %v10817_v7 = vunpack.i.h.bf16 %v10815_v56  ;;  %v10816_v35 = vunpack.i.l.bf16 %v10815_v56  ;;  %v13071_v62 = vpop.permute.xlu1 %10794  ;;  %10390 = vmatprep.subr.bf16.mxu1 %v16513_v3  ;;  %v1992_v38 = vsel %vm1989_vm7, %v1959_v14, %v10746_v55  ;;  %v1993_v46 = vsel %vm1989_vm7, %v1960_v30, %v10747_v60  ;;  %v13142_v34 = vld [vmem:[#allocation2 + $0x168] sm:$0xff] }
 0x193   : > { %11104 = vrot.lane.b32.xlu0 %v13058_v47, %s16563_s15  ;;  %v2121_v54 = vpack.c.bf16 %v1993_v46, %v1992_v38  ;;  %v10792_v38 = vunpack.i.h.bf16 %v13036_v53  ;;  %v10791_v46 = vunpack.i.l.bf16 %v13036_v53  ;;  %v1003_v53 = vld [vmem:[#allocation2 + $0x69] sm:$0xff] }
 0x194   : > { %11074 = vrot.lane.b32.xlu1 %v13012_v27, %s16563_s15  ;;  %v2088_v40 = vsel %vm1989_vm7, %v2056_v37, %v10816_v35  ;;  %v2089_v6 = vsel %vm1989_vm7, %v2057_v39, %v10817_v7  ;;  %v1001_v27 = vld [vmem:[#allocation2 + $0x51] sm:$0xff]  ;;  %v11148_v35 = vpack.i.bf16 %v13144_v19, %v13142_v34  ;;  %v13150_v37 = vld [vmem:[#allocation2 + $0x169] sm:$0xff] }
 0x195   : > { %v10820_v42 = vpop.permute.xlu0 %10819  ;;  %v2122_v44 = vpack.c.bf16 %v2089_v6, %v2088_v40  ;;  %v13152_v39 = vld [vmem:[#allocation2 + $0x171] sm:$0xff]  ;;  %v874_v6 = vld [vmem:[#allocation2 + $0x48] sm:$0xff] }
 0x196   : > { %v10822_v48 = vunpack.i.h.bf16 %v10820_v42  ;;  %v10821_v16 = vunpack.i.l.bf16 %v10820_v42  ;;  %v13090_v49 = vpop.permute.xlu1 %10799  ;;  %v875_v42 = vld [vmem:[#allocation2 + $0x50] sm:$0xff] }
 0x197   : > { %11109 = vrot.lane.b32.xlu0 %v11108_v43, %s16511_s24  ;;  %2405 = vmatprep.mubr.bf16.mxu1 %v2122_v44  ;;  %v13170_v31 = vld [vmem:[#allocation2 + $0x16a] sm:$0xff] }
 0x198   : > { %v2027_v8 = vsel %vm386_vm0, %v1001_v27, %v10822_v48  ;;  %v2026_v4 = vsel %vm386_vm0, %v1000_v1, %v10821_v16  ;;  %11094 = vrot.lane.b32.xlu1 %v13029_v29, %s16511_s24  ;;  %2406 = vmatmul.mubr.bf16.gmra.mxu1 %v2121_v54  ;;  %v10752_v29 = vunpack.i.h.bf16 %v12999_v41  ;;  %v1929_v41 = vsel %vm386_vm0, %v12725_v50, %v10751_v15  ;;  %v1002_v1 = vld [vmem:[#allocation2 + $0x61] sm:$0xff] }
 0x199   : > { %v13101_v5 = vpop.permute.xlu0 %10839  ;;  %v2058_v25 = vsel %vm529_vm1, %v2026_v4, %v10781_v61  ;;  %v2059_v9 = vsel %vm529_vm1, %v2027_v8, %v10782_v57  ;;  %v11143_v50 = vpack.i.bf16 %v13124_v10, %v13122_v63  ;;  %v11153_v61 = vpack.i.bf16 %v13152_v39, %v13150_v37 }
 0x19a   : > { %v13107_v22 = vpop.permute.xlu1 %10804  ;;  %v2090_v28 = vsel %vm1989_vm7, %v2058_v25, %v10786_v32  ;;  %v2091_v0 = vsel %vm1989_vm7, %v2059_v9, %v10787_v2  ;;  %v1930_v52 = vsel %vm386_vm0, %v12727_v51, %v10752_v29  ;;  %v10797_v27 = vunpack.i.h.bf16 %v13071_v62 }
 0x19b   : > { %11114 = vrot.lane.b32.xlu0 %v11113_v26, %s16564_s22  ;;  %v2125_v17 = vpack.c.bf16 %v2091_v0, %v2090_v28  ;;  %v1962_v60 = vsel %vm529_vm1, %v1930_v52, %v10757_v11  ;;  %v10796_v2 = vunpack.i.l.bf16 %v13071_v62  ;;  %v2029_v25 = vsel %vm386_vm0, %v1003_v53, %v10792_v38  ;;  %v1124_v53 = vld [vmem:[#allocation2 + $0x1a1] sm:$0xff] }
 0x19c   : > { %11099 = vrot.lane.b32.xlu1 %v13038_v58, %s16564_s22  ;;  %v1961_v58 = vsel %vm529_vm1, %v1929_v41, %v10756_v12  ;;  %v2028_v9 = vsel %vm386_vm0, %v1002_v1, %v10791_v46  ;;  %v11158_v41 = vpack.i.bf16 %v13172_v13, %v13170_v31  ;;  %v1091_v46 = vld [vmem:[#allocation2 + $0x198] sm:$0xff] }
 0x19d   : > { %v13118_v18 = vpop.permute.xlu0 %10844  ;;  %2413 = vmatprep.mubr.bf16.mxu1 %v2125_v17  ;;  %v1123_v1 = vld [vmem:[#allocation2 + $0x199] sm:$0xff] }
 0x19e   : > { %v10825_v24 = vpop.permute.xlu1 %10824 }
 0x19f   : > { %v10827_v20 = vunpack.i.h.bf16 %v10825_v24  ;;  %v10826_v59 = vunpack.i.l.bf16 %v10825_v24  ;;  %11139 = vrot.lane.b32.xlu0 %v13120_v23, %s16563_s15 }
 0x1a0   : > { %11119 = vrot.lane.b32.xlu1 %v13058_v47, %s16511_s24 }
 0x1a1   : > { %v13136_v55 = vpop.permute.xlu0 %10849  ;;  %v1994_v56 = vsel %vm1989_vm7, %v1961_v58, %v10826_v59  ;;  %v1995_v51 = vsel %vm1989_vm7, %v1962_v60, %v10827_v20 }
 0x1a2   : > { %v10830_v14 = vpop.permute.xlu1 %10829  ;;  %v2124_v30 = vpack.c.bf16 %v1995_v51, %v1994_v56  ;;  %v13189_v56 = vld [vmem:[#allocation2 + $0x18a] sm:$0xff]  ;;  %v10841_v51 = vunpack.i.l.bf16 %v13101_v5 }
 0x1a3   : > { %11144 = vrot.lane.b32.xlu0 %v11143_v50, %s16511_s24  ;;  %v10832_v47 = vunpack.i.h.bf16 %v10830_v14  ;;  %v10831_v33 = vunpack.i.l.bf16 %v10830_v14  ;;  %v13187_v50 = vld [vmem:[#allocation2 + $0x182] sm:$0xff]  ;;  %v1004_v14 = vld [vmem:[#allocation2 + $0x79] sm:$0xff] }
 0x1a4   : > { %11124 = vrot.lane.b32.xlu1 %v11108_v43, %s16564_s22  ;;  %2414 = vmatmul.mubr.bf16.gmra.mxu1 %v2124_v30  ;;  %v1005_v30 = vld [vmem:[#allocation2 + $0x81] sm:$0xff] }
 0x1a5   : > { %v10870_v7 = vpop.permute.xlu0 %10869  ;;  %v1932_v54 = vsel %vm386_vm0, %v875_v42, %v10832_v47  ;;  %v1931_v57 = vsel %vm386_vm0, %v874_v6, %v10831_v33  ;;  %v10847_v47 = vunpack.i.h.bf16 %v13118_v18  ;;  %v10846_v33 = vunpack.i.l.bf16 %v13118_v18 }
 0x1a6   : > { %v10835_v40 = vpop.permute.xlu1 %10834  ;;  %v10872_v44 = vunpack.i.h.bf16 %v10870_v7  ;;  %v10871_v48 = vunpack.i.l.bf16 %v10870_v7 }
 0x1a7   : > { %v10837_v16 = vunpack.i.h.bf16 %v10835_v40  ;;  %v10836_v43 = vunpack.i.l.bf16 %v10835_v40  ;;  %11149 = vrot.lane.b32.xlu0 %v11148_v35, %s16563_s15  ;;  %v1092_v40 = vld [vmem:[#allocation2 + $0x1a0] sm:$0xff] }
 0x1a8   : > { %11129 = vrot.lane.b32.xlu1 %v11113_v26, %s16563_s15  ;;  %v2060_v62 = vsel %vm529_vm1, %v2028_v9, %v10871_v48  ;;  %v2061_v29 = vsel %vm529_vm1, %v2029_v25, %v10872_v44  ;;  %v11173_v9 = vpack.i.bf16 %v1124_v53, %v1123_v1 }
 0x1a9   : > { %v10875_v32 = vpop.permute.xlu0 %10874  ;;  %v1963_v8 = vsel %vm529_vm1, %v1931_v57, %v10836_v43  ;;  %v1964_v4 = vsel %vm529_vm1, %v1932_v54, %v10837_v16  ;;  %v10801_v43 = vunpack.i.l.bf16 %v13090_v49  ;;  %v11168_v57 = vpack.i.bf16 %v1092_v40, %v1091_v46  ;;  %v1006_v46 = vld [vmem:[#allocation2 + $0x91] sm:$0xff]  ;;  %v1007_v40 = vld [vmem:[#allocation2 + $0x99] sm:$0xff] }
 0x1aa   : > { %v10877_v28 = vunpack.i.h.bf16 %v10875_v32  ;;  %v10876_v26 = vunpack.i.l.bf16 %v10875_v32  ;;  %v13168_v0 = vpop.permute.xlu1 %10854  ;;  %v1996_v15 = vsel %vm1989_vm7, %v1963_v8, %v10796_v2  ;;  %v1997_v17 = vsel %vm1989_vm7, %v1964_v4, %v10797_v27  ;;  %v876_v8 = vld [vmem:[#allocation2 + $0x60] sm:$0xff]  ;;  %v877_v4 = vld [vmem:[#allocation2 + $0x68] sm:$0xff] }
 0x1ab   : > { %11154 = vrot.lane.b32.xlu0 %v11153_v61, %s16511_s24  ;;  %v2127_v60 = vpack.c.bf16 %v1997_v17, %v1996_v15  ;;  %v10807_v27 = vunpack.i.h.bf16 %v13107_v22  ;;  %v10806_v2 = vunpack.i.l.bf16 %v13107_v22 }
 0x1ac   : > { %11134 = vrot.lane.b32.xlu1 %v13046_v45, %s16563_s15  ;;  %v2092_v11 = vsel %vm1989_vm7, %v2060_v62, %v10876_v26  ;;  %v2093_v12 = vsel %vm1989_vm7, %v2061_v29, %v10877_v28  ;;  %v10842_v45 = vunpack.i.h.bf16 %v13101_v5  ;;  %v11163_v5 = vpack.i.bf16 %v13189_v56, %v13187_v50 }
 0x1ad   : > { %v10880_v24 = vpop.permute.xlu0 %10879  ;;  %v2128_v52 = vpack.c.bf16 %v2093_v12, %v2092_v11  ;;  %v1933_v28 = vsel %vm386_vm0, %v876_v8, %v10801_v43 }
 0x1ae   : > { %v10882_v20 = vunpack.i.h.bf16 %v10880_v24  ;;  %v10881_v59 = vunpack.i.l.bf16 %v10880_v24  ;;  %v13185_v58 = vpop.permute.xlu1 %10859  ;;  %v1965_v22 = vsel %vm529_vm1, %v1933_v28, %v10806_v2 }
 0x1af   : > { %11159 = vrot.lane.b32.xlu0 %v11158_v41, %s16564_s22  ;;  %2421 = vmatprep.mubr.bf16.mxu1 %v2128_v52 }
 0x1b0   : > { %v2031_v7 = vsel %vm386_vm0, %v1005_v30, %v10882_v20  ;;  %v2030_v38 = vsel %vm386_vm0, %v1004_v14, %v10881_v59  ;;  %11179 = vrot.lane.b32.xlu1 %v11148_v35, %s16511_s24  ;;  %2422 = vmatmul.mubr.bf16.gmra.mxu1 %v2127_v60  ;;  %v10802_v35 = vunpack.i.h.bf16 %v13090_v49  ;;  %v10852_v20 = vunpack.i.h.bf16 %v13136_v55 }
 0x1b1   : > { %v13199_v6 = vpop.permute.xlu0 %10899  ;;  %v2062_v42 = vsel %vm529_vm1, %v2030_v38, %v10841_v51  ;;  %v2063_v44 = vsel %vm529_vm1, %v2031_v7, %v10842_v45  ;;  %v10851_v59 = vunpack.i.l.bf16 %v13136_v55  ;;  %v878_v45 = vld [vmem:[#allocation2 + $0x78] sm:$0xff]  ;;  %v879_v51 = vld [vmem:[#allocation2 + $0x80] sm:$0xff] }
 0x1b2   : > { %v13205_v48 = vpop.permute.xlu1 %10864  ;;  %v2094_v18 = vsel %vm1989_vm7, %v2062_v42, %v10846_v33  ;;  %v2095_v16 = vsel %vm1989_vm7, %v2063_v44, %v10847_v47  ;;  %v1934_v49 = vsel %vm386_vm0, %v877_v4, %v10802_v35 }
 0x1b3   : > { %11164 = vrot.lane.b32.xlu0 %v11163_v5, %s16564_s22  ;;  %v2131_v54 = vpack.c.bf16 %v2095_v16, %v2094_v18  ;;  %v10856_v5 = vunpack.i.l.bf16 %v13168_v0  ;;  %v2033_v18 = vsel %vm386_vm0, %v1007_v40, %v10852_v20  ;;  %v2032_v16 = vsel %vm386_vm0, %v1006_v46, %v10851_v59 }
 0x1b4   : > { %11184 = vrot.lane.b32.xlu1 %v11153_v61, %s16564_s22  ;;  %v1966_v61 = vsel %vm529_vm1, %v1934_v49, %v10807_v27 }
 0x1b5   : > { %v13215_v32 = vpop.permute.xlu0 %10904  ;;  %2429 = vmatprep.mubr.bf16.mxu1 %v2131_v54 }
 0x1b6   : > { %v10885_v25 = vpop.permute.xlu1 %10884 }
 0x1b7   : > { %v10887_v26 = vunpack.i.h.bf16 %v10885_v25  ;;  %v10886_v62 = vunpack.i.l.bf16 %v10885_v25  ;;  %11169 = vrot.lane.b32.xlu0 %v11168_v57, %s16563_s15 }
 0x1b8   : > { %11189 = vrot.lane.b32.xlu1 %v11158_v41, %s16563_s15 }
 0x1b9   : > { %v13223_v29 = vpop.permute.xlu0 %10909  ;;  %v1998_v15 = vsel %vm1989_vm7, %v1965_v22, %v10886_v62  ;;  %v1999_v17 = vsel %vm1989_vm7, %v1966_v61, %v10887_v26  ;;  %v10902_v26 = vunpack.i.h.bf16 %v13199_v6  ;;  %v10901_v62 = vunpack.i.l.bf16 %v13199_v6  ;;  %v1008_v22 = vld [vmem:[#allocation2 + $0xa9] sm:$0xff]  ;;  %v1009_v61 = vld [vmem:[#allocation2 + $0xb1] sm:$0xff] }
 0x1ba   : > { %v10890_v11 = vpop.permute.xlu1 %10889  ;;  %v2130_v12 = vpack.c.bf16 %v1999_v17, %v1998_v15  ;;  %v10907_v15 = vunpack.i.h.bf16 %v13215_v32  ;;  %v10906_v17 = vunpack.i.l.bf16 %v13215_v32  ;;  %v10861_v32 = vunpack.i.l.bf16 %v13185_v58 }
 0x1bb   : > { %11174 = vrot.lane.b32.xlu0 %v11173_v9, %s16511_s24  ;;  %v10892_v24 = vunpack.i.h.bf16 %v10890_v11  ;;  %v10891_v52 = vunpack.i.l.bf16 %v10890_v11 }
 0x1bc   : > { %11194 = vrot.lane.b32.xlu1 %v13120_v23, %s16511_s24  ;;  %2430 = vmatmul.mubr.bf16.gmra.mxu1 %v2130_v12  ;;  %v10857_v23 = vunpack.i.h.bf16 %v13168_v0 }
 0x1bd   : > { %v10930_v41 = vpop.permute.xlu0 %10929  ;;  %v1936_v7 = vsel %vm386_vm0, %v879_v51, %v10892_v24  ;;  %v1935_v38 = vsel %vm386_vm0, %v878_v45, %v10891_v52  ;;  %v10867_v51 = vunpack.i.h.bf16 %v13205_v48 }
 0x1be   : > { %v10895_v60 = vpop.permute.xlu1 %10894  ;;  %v10932_v14 = vunpack.i.h.bf16 %v10930_v41  ;;  %v10931_v30 = vunpack.i.l.bf16 %v10930_v41 }
 0x1bf   : > { %v10897_v47 = vunpack.i.h.bf16 %v10895_v60  ;;  %v10896_v33 = vunpack.i.l.bf16 %v10895_v60  ;;  %v10862_v60 = vunpack.i.h.bf16 %v13185_v58 }
 0x1c0   : > { %v2064_v57 = vsel %vm529_vm1, %v2032_v16, %v10931_v30  ;;  %v2065_v1 = vsel %vm529_vm1, %v2033_v18, %v10932_v14  ;;  %v10866_v14 = vunpack.i.l.bf16 %v13205_v48 }
 0x1c1   : > { %v10935_v42 = vpop.permute.xlu0 %10934  ;;  %v1967_v55 = vsel %vm529_vm1, %v1935_v38, %v10896_v33  ;;  %v1968_v44 = vsel %vm529_vm1, %v1936_v7, %v10897_v47  ;;  %v880_v47 = vld [vmem:[#allocation2 + $0x90] sm:$0xff]  ;;  %v881_v33 = vld [vmem:[#allocation2 + $0x98] sm:$0xff] }
 0x1c2   : > { %v10937_v35 = vunpack.i.h.bf16 %v10935_v42  ;;  %v10936_v43 = vunpack.i.l.bf16 %v10935_v42  ;;  %v13240_v54 = vpop.permute.xlu1 %10914  ;;  %v2000_v53 = vsel %vm1989_vm7, %v1967_v55, %v10856_v5  ;;  %v2001_v0 = vsel %vm1989_vm7, %v1968_v44, %v10857_v23 }
 0x1c3   : > { %v2133_v28 = vpack.c.bf16 %v2001_v0, %v2000_v53  ;;  %v1938_v38 = vsel %vm386_vm0, %v881_v33, %v10862_v60  ;;  %v1937_v46 = vsel %vm386_vm0, %v880_v47, %v10861_v32  ;;  %v882_v0 = vld [vmem:[#allocation2 + $0xa8] sm:$0xff] }
 0x1c4   : > { %v2096_v27 = vsel %vm1989_vm7, %v2064_v57, %v10936_v43  ;;  %v2097_v2 = vsel %vm1989_vm7, %v2065_v1, %v10937_v35  ;;  %v1969_v5 = vsel %vm529_vm1, %v1937_v46, %v10866_v14  ;;  %v1970_v58 = vsel %vm529_vm1, %v1938_v38, %v10867_v51 }
 0x1c5   : > { %v10940_v8 = vpop.permute.xlu0 %10939  ;;  %v2134_v4 = vpack.c.bf16 %v2097_v2, %v2096_v27  ;;  %v10912_v57 = vunpack.i.h.bf16 %v13223_v29  ;;  %v10911_v1 = vunpack.i.l.bf16 %v13223_v29  ;;  %v883_v27 = vld [vmem:[#allocation2 + $0xb0] sm:$0xff] }
 0x1c6   : > { %v10942_v25 = vunpack.i.h.bf16 %v10940_v8  ;;  %v10941_v9 = vunpack.i.l.bf16 %v10940_v8  ;;  %v13248_v49 = vpop.permute.xlu1 %10919 }
 0x1c7   : > { %2437 = vmatprep.mubr.bf16.mxu1 %v2134_v4 }
 0x1c8   : > { %v2035_v11 = vsel %vm386_vm0, %v1009_v61, %v10942_v25  ;;  %v2034_v12 = vsel %vm386_vm0, %v1008_v22, %v10941_v9  ;;  %2438 = vmatmul.mubr.bf16.gmra.mxu1 %v2133_v28  ;;  %v10917_v22 = vunpack.i.h.bf16 %v13240_v54  ;;  %v10916_v61 = vunpack.i.l.bf16 %v13240_v54 }
 0x1c9   : > { %v13256_v24 = vpop.permute.xlu0 %10959  ;;  %v2066_v52 = vsel %vm529_vm1, %v2034_v12, %v10901_v62  ;;  %v2067_v41 = vsel %vm529_vm1, %v2035_v11, %v10902_v26  ;;  %v1010_v26 = vld [vmem:[#allocation2 + $0xc1] sm:$0xff]  ;;  %v1011_v62 = vld [vmem:[#allocation2 + $0xc9] sm:$0xff] }
 0x1ca   : > { %v13260_v20 = vpop.permute.xlu1 %10924  ;;  %v2098_v6 = vsel %vm1989_vm7, %v2066_v52, %v10906_v17  ;;  %v2099_v59 = vsel %vm1989_vm7, %v2067_v41, %v10907_v15  ;;  %v2037_v11 = vsel %vm386_vm0, %v1011_v62, %v10912_v57  ;;  %v2036_v12 = vsel %vm386_vm0, %v1010_v26, %v10911_v1 }
 0x1cb   : > { %v2137_v45 = vpack.c.bf16 %v2099_v59, %v2098_v6 }
 0x1cd   : > { %v13268_v30 = vpop.permute.xlu0 %10964  ;;  %2445 = vmatprep.mubr.bf16.mxu1 %v2137_v45 }
 0x1ce   : > { %v10945_v7 = vpop.permute.xlu1 %10944 }
 0x1cf   : > { %v10947_v40 = vunpack.i.h.bf16 %v10945_v7  ;;  %v10946_v23 = vunpack.i.l.bf16 %v10945_v7 }
 0x1d1   : > { %v13274_v42 = vpop.permute.xlu0 %10969  ;;  %v2002_v48 = vsel %vm1989_vm7, %v1969_v5, %v10946_v23  ;;  %v2003_v55 = vsel %vm1989_vm7, %v1970_v58, %v10947_v40  ;;  %v10962_v40 = vunpack.i.h.bf16 %v13256_v24  ;;  %v10961_v23 = vunpack.i.l.bf16 %v13256_v24  ;;  %v1012_v5 = vld [vmem:[#allocation2 + $0xd9] sm:$0xff]  ;;  %v1013_v58 = vld [vmem:[#allocation2 + $0xe1] sm:$0xff] }
 0x1d2   : > { %v10950_v44 = vpop.permute.xlu1 %10949  ;;  %v2136_v18 = vpack.c.bf16 %v2003_v55, %v2002_v48  ;;  %v10967_v48 = vunpack.i.h.bf16 %v13268_v30  ;;  %v10966_v55 = vunpack.i.l.bf16 %v13268_v30  ;;  %v10921_v30 = vunpack.i.l.bf16 %v13248_v49 }
 0x1d3   : > { %v10952_v16 = vunpack.i.h.bf16 %v10950_v44  ;;  %v10951_v35 = vunpack.i.l.bf16 %v10950_v44 }
 0x1d4   : > { %2446 = vmatmul.mubr.bf16.gmra.mxu1 %v2136_v18 }
 0x1d5   : > { %v10990_v43 = vpop.permute.xlu0 %10989  ;;  %v1940_v9 = vsel %vm386_vm0, %v883_v27, %v10952_v16  ;;  %v1939_v28 = vsel %vm386_vm0, %v882_v0, %v10951_v35  ;;  %v12180_v27 = vld [vmem:[%s16500_s5 + $0x8] sm:$0xff]  }
 0x1d6   : > { %v10955_v53 = vpop.permute.xlu1 %10954  ;;  %v10992_v2 = vunpack.i.h.bf16 %v10990_v43  ;;  %v10991_v8 = vunpack.i.l.bf16 %v10990_v43  ;;  %10354 = vmatprep.subr.bf16.mxu0 %v12180_v27 }
 0x1d7   : > { %v10957_v4 = vunpack.i.h.bf16 %v10955_v53  ;;  %v10956_v25 = vunpack.i.l.bf16 %v10955_v53  ;;  %v10922_v53 = vunpack.i.h.bf16 %v13248_v49  ;;  %10355 = vmatpush3.bf16.msra.mxu0 %v12180_v27 }
 0x1d8   : > { %v2068_v59 = vsel %vm529_vm1, %v2036_v12, %v10991_v8  ;;  %v2069_v60 = vsel %vm529_vm1, %v2037_v11, %v10992_v2  ;;  %v10927_v2 = vunpack.i.h.bf16 %v13260_v20  ;;  %v10926_v8 = vunpack.i.l.bf16 %v13260_v20 }
 0x1d9   : > { %v10995_v15 = vpop.permute.xlu0 %10994  ;;  %v1971_v29 = vsel %vm529_vm1, %v1939_v28, %v10956_v25  ;;  %v1972_v17 = vsel %vm529_vm1, %v1940_v9, %v10957_v4  ;;  %v884_v25 = vld [vmem:[#allocation2 + $0xc0] sm:$0xff]  ;;  %v885_v9 = vld [vmem:[#allocation2 + $0xc8] sm:$0xff] }
 0x1da   : > { %v10997_v52 = vunpack.i.h.bf16 %v10995_v15  ;;  %v10996_v41 = vunpack.i.l.bf16 %v10995_v15  ;;  %v13288_v6 = vpop.permute.xlu1 %10974  ;;  %v2004_v32 = vsel %vm1989_vm7, %v1971_v29, %v10916_v61  ;;  %v2005_v54 = vsel %vm1989_vm7, %v1972_v17, %v10917_v22  ;;  %v12181_v61 = vld [vmem:[%s16500_s5] sm:$0xff]  }
 0x1db   : > { %v2139_v46 = vpack.c.bf16 %v2005_v54, %v2004_v32  ;;  %v1942_v26 = vsel %vm386_vm0, %v885_v9, %v10922_v53  ;;  %v1941_v49 = vsel %vm386_vm0, %v884_v25, %v10921_v30  ;;  %10356 = vmatprep.subr.bf16.mxu0 %v12181_v61  ;;  %v10972_v32 = vunpack.i.h.bf16 %v13274_v42 }
 0x1dc   : > { %v2100_v45 = vsel %vm1989_vm7, %v2068_v59, %v10996_v41  ;;  %v2101_v51 = vsel %vm1989_vm7, %v2069_v60, %v10997_v52  ;;  %v1973_v20 = vsel %vm529_vm1, %v1941_v49, %v10926_v8  ;;  %v1974_v15 = vsel %vm529_vm1, %v1942_v26, %v10927_v2  ;;  %10357 = vmatpush3.bf16.msra.mxu0 %v12181_v61 }
 0x1dd   : > { %v11000_v14 = vpop.permute.xlu0 %10999  ;;  %v2140_v47 = vpack.c.bf16 %v2101_v51, %v2100_v45  ;;  %v10971_v54 = vunpack.i.l.bf16 %v13274_v42  ;;  %v886_v51 = vld [vmem:[#allocation2 + $0xd8] sm:$0xff] }
 0x1de   : > { %v11002_v33 = vunpack.i.h.bf16 %v11000_v14  ;;  %v11001_v7 = vunpack.i.l.bf16 %v11000_v14  ;;  %v13296_v38 = vpop.permute.xlu1 %10979  ;;  %v887_v14 = vld [vmem:[#allocation2 + $0xe0] sm:$0xff] }
 0x1df   : > { %2453 = vmatprep.mubr.bf16.mxu1 %v2140_v47 }
 0x1e0   : > { %v2039_v44 = vsel %vm386_vm0, %v1013_v58, %v11002_v33  ;;  %v2038_v18 = vsel %vm386_vm0, %v1012_v5, %v11001_v7  ;;  %2454 = vmatmul.mubr.bf16.gmra.mxu1 %v2139_v46  ;;  %v1014_v5 = vld [vmem:[#allocation2 + $0xf1] sm:$0xff]  ;;  %v1015_v58 = vld [vmem:[#allocation2 + $0xf9] sm:$0xff] }
 0x1e1   : > { %v13304_v16 = vpop.permute.xlu0 %11019  ;;  %v2070_v35 = vsel %vm529_vm1, %v2038_v18, %v10961_v23  ;;  %v2071_v43 = vsel %vm529_vm1, %v2039_v44, %v10962_v40 }
 0x1e2   : > { %v13308_v57 = vpop.permute.xlu1 %10984  ;;  %v2102_v24 = vsel %vm1989_vm7, %v2070_v35, %v10966_v55  ;;  %v2103_v1 = vsel %vm1989_vm7, %v2071_v43, %v10967_v48  ;;  %v10977_v48 = vunpack.i.h.bf16 %v13288_v6  ;;  %v10976_v55 = vunpack.i.l.bf16 %v13288_v6 }
 0x1e3   : > { %v2143_v0 = vpack.c.bf16 %v2103_v1, %v2102_v24  ;;  %v2041_v35 = vsel %vm386_vm0, %v1015_v58, %v10972_v32  ;;  %v2040_v43 = vsel %vm386_vm0, %v1014_v5, %v10971_v54  ;;  %v11021_v61 = vunpack.i.l.bf16 %v13304_v16 }
 0x1e5   : > { %v13319_v4 = vpop.permute.xlu0 %11024  ;;  %2461 = vmatprep.mubr.bf16.mxu1 %v2143_v0 }
 0x1e6   : > { %v11005_v28 = vpop.permute.xlu1 %11004 }
 0x1e7   : > { %v11007_v62 = vunpack.i.h.bf16 %v11005_v28  ;;  %v11006_v22 = vunpack.i.l.bf16 %v11005_v28 }
 0x1e9   : > { %v13328_v29 = vpop.permute.xlu0 %11029  ;;  %v2006_v17 = vsel %vm1989_vm7, %v1973_v20, %v11006_v22  ;;  %v2007_v11 = vsel %vm1989_vm7, %v1974_v15, %v11007_v62  ;;  %v11022_v22 = vunpack.i.h.bf16 %v13304_v16  ;;  %v1016_v20 = vld [vmem:[#allocation2 + $0x109] sm:$0xff]  ;;  %v1017_v15 = vld [vmem:[#allocation2 + $0x111] sm:$0xff] }
 0x1ea   : > { %v11010_v12 = vpop.permute.xlu1 %11009  ;;  %v2142_v52 = vpack.c.bf16 %v2007_v11, %v2006_v17  ;;  %v11027_v17 = vunpack.i.h.bf16 %v13319_v4  ;;  %v11026_v11 = vunpack.i.l.bf16 %v13319_v4  ;;  %v10981_v4 = vunpack.i.l.bf16 %v13296_v38 }
 0x1eb   : > { %v11012_v41 = vunpack.i.h.bf16 %v11010_v12  ;;  %v11011_v59 = vunpack.i.l.bf16 %v11010_v12 }
 0x1ec   : > { %2462 = vmatmul.mubr.bf16.gmra.mxu1 %v2142_v52 }
 0x1ed   : > { %v11050_v60 = vpop.permute.xlu0 %11049  ;;  %v1944_v40 = vsel %vm386_vm0, %v887_v14, %v11012_v41  ;;  %v1943_v23 = vsel %vm386_vm0, %v886_v51, %v11011_v59  ;;  %v10987_v14 = vunpack.i.h.bf16 %v13308_v57 }
 0x1ee   : > { %v11015_v45 = vpop.permute.xlu1 %11014  ;;  %v11052_v47 = vunpack.i.h.bf16 %v11050_v60  ;;  %v11051_v33 = vunpack.i.l.bf16 %v11050_v60 }
 0x1ef   : > { %v11017_v7 = vunpack.i.h.bf16 %v11015_v45  ;;  %v11016_v46 = vunpack.i.l.bf16 %v11015_v45  ;;  %v10982_v45 = vunpack.i.h.bf16 %v13296_v38 }
 0x1f0   : > { %v2072_v30 = vsel %vm529_vm1, %v2040_v43, %v11051_v33  ;;  %v2073_v0 = vsel %vm529_vm1, %v2041_v35, %v11052_v47  ;;  %v10986_v47 = vunpack.i.l.bf16 %v13308_v57 }
 0x1f1   : > { %v11055_v44 = vpop.permute.xlu0 %11054  ;;  %v1975_v42 = vsel %vm529_vm1, %v1943_v23, %v11016_v46  ;;  %v1976_v18 = vsel %vm529_vm1, %v1944_v40, %v11017_v7  ;;  %v888_v7 = vld [vmem:[#allocation2 + $0xf0] sm:$0xff]  ;;  %v889_v46 = vld [vmem:[#allocation2 + $0xf8] sm:$0xff] }
 0x1f2   : > { %v11057_v24 = vunpack.i.h.bf16 %v11055_v44  ;;  %v11056_v1 = vunpack.i.l.bf16 %v11055_v44  ;;  %v13342_v53 = vpop.permute.xlu1 %11034  ;;  %v2008_v27 = vsel %vm1989_vm7, %v1975_v42, %v10976_v55  ;;  %v2009_v6 = vsel %vm1989_vm7, %v1976_v18, %v10977_v48 }
 0x1f3   : > { %v2145_v62 = vpack.c.bf16 %v2009_v6, %v2008_v27  ;;  %v1946_v23 = vsel %vm386_vm0, %v889_v46, %v10982_v45  ;;  %v1945_v5 = vsel %vm386_vm0, %v888_v7, %v10981_v4  ;;  %v890_v6 = vld [vmem:[#allocation2 + $0x108] sm:$0xff] }
 0x1f4   : > { %v2104_v2 = vsel %vm1989_vm7, %v2072_v30, %v11056_v1  ;;  %v2105_v8 = vsel %vm1989_vm7, %v2073_v0, %v11057_v24  ;;  %v1977_v55 = vsel %vm529_vm1, %v1945_v5, %v10986_v47  ;;  %v1978_v38 = vsel %vm529_vm1, %v1946_v23, %v10987_v14 }
 0x1f5   : > { %v11060_v25 = vpop.permute.xlu0 %11059  ;;  %v2146_v9 = vpack.c.bf16 %v2105_v8, %v2104_v2  ;;  %v11032_v30 = vunpack.i.h.bf16 %v13328_v29  ;;  %v11031_v0 = vunpack.i.l.bf16 %v13328_v29  ;;  %v891_v2 = vld [vmem:[#allocation2 + $0x110] sm:$0xff] }
 0x1f6   : > { %v11062_v28 = vunpack.i.h.bf16 %v11060_v25  ;;  %v11061_v26 = vunpack.i.l.bf16 %v11060_v25  ;;  %v13350_v49 = vpop.permute.xlu1 %11039 }
 0x1f7   : > { %2469 = vmatprep.mubr.bf16.mxu1 %v2146_v9  ;;  %v11042_v47 = vunpack.i.h.bf16 %v13350_v49 }
 0x1f8   : > { %v2043_v12 = vsel %vm386_vm0, %v1017_v15, %v11062_v28  ;;  %v2042_v52 = vsel %vm386_vm0, %v1016_v20, %v11061_v26  ;;  %2470 = vmatmul.mubr.bf16.gmra.mxu1 %v2145_v62  ;;  %v11037_v20 = vunpack.i.h.bf16 %v13342_v53  ;;  %v11036_v15 = vunpack.i.l.bf16 %v13342_v53 }
 0x1f9   : > { %v13358_v41 = vpop.permute.xlu0 %11079  ;;  %v2074_v59 = vsel %vm529_vm1, %v2042_v52, %v11021_v61  ;;  %v2075_v60 = vsel %vm529_vm1, %v2043_v12, %v11022_v22  ;;  %v1018_v22 = vld [vmem:[#allocation2 + $0x121] sm:$0xff]  ;;  %v1019_v61 = vld [vmem:[#allocation2 + $0x129] sm:$0xff] }
 0x1fa   : > { %v13362_v32 = vpop.permute.xlu1 %11044  ;;  %v2106_v16 = vsel %vm1989_vm7, %v2074_v59, %v11026_v11  ;;  %v2107_v54 = vsel %vm1989_vm7, %v2075_v60, %v11027_v17  ;;  %v2045_v12 = vsel %vm386_vm0, %v1019_v61, %v11032_v30  ;;  %v2044_v52 = vsel %vm386_vm0, %v1018_v22, %v11031_v0 }
 0x1fb   : > { %v2149_v51 = vpack.c.bf16 %v2107_v54, %v2106_v16 }
 0x1fd   : > { %v13370_v33 = vpop.permute.xlu0 %11084  ;;  %2477 = vmatprep.mubr.bf16.mxu1 %v2149_v51 }
 0x1fe   : > { %v11065_v40 = vpop.permute.xlu1 %11064 }
 0x1ff   : > { %v11067_v58 = vunpack.i.h.bf16 %v11065_v40  ;;  %v11066_v48 = vunpack.i.l.bf16 %v11065_v40  ;;  %v11041_v40 = vunpack.i.l.bf16 %v13350_v49 }
 0x201   : > { %v13376_v44 = vpop.permute.xlu0 %11089  ;;  %v2010_v57 = vsel %vm1989_vm7, %v1977_v55, %v11066_v48  ;;  %v2011_v42 = vsel %vm1989_vm7, %v1978_v38, %v11067_v58  ;;  %v11082_v55 = vunpack.i.h.bf16 %v13358_v41  ;;  %v11081_v38 = vunpack.i.l.bf16 %v13358_v41 }
 0x202   : > { %v11070_v18 = vpop.permute.xlu1 %11069  ;;  %v2148_v35 = vpack.c.bf16 %v2011_v42, %v2010_v57  ;;  %v11047_v57 = vunpack.i.h.bf16 %v13362_v32  ;;  %v11046_v42 = vunpack.i.l.bf16 %v13362_v32  ;;  %v892_v32 = vld [vmem:[#allocation2 + $0x120] sm:$0xff] }
 0x203   : > { %v11072_v43 = vunpack.i.h.bf16 %v11070_v18  ;;  %v11071_v24 = vunpack.i.l.bf16 %v11070_v18  ;;  %v11087_v18 = vunpack.i.h.bf16 %v13370_v33 }
 0x204   : > { %2478 = vmatmul.mubr.bf16.gmra.mxu1 %v2148_v35  ;;  %v11086_v35 = vunpack.i.l.bf16 %v13370_v33 }
 0x205   : > { %v11105_v1 = vpop.permute.xlu0 %11104  ;;  %v1948_v26 = vsel %vm386_vm0, %v891_v2, %v11072_v43  ;;  %v1947_v62 = vsel %vm386_vm0, %v890_v6, %v11071_v24  ;;  %v893_v24 = vld [vmem:[#allocation2 + $0x128] sm:$0xff] }
 0x206   : > { %v11075_v27 = vpop.permute.xlu1 %11074  ;;  %v11107_v8 = vunpack.i.h.bf16 %v11105_v1  ;;  %v11106_v25 = vunpack.i.l.bf16 %v11105_v1  ;;  %v1950_v0 = vsel %vm386_vm0, %v893_v24, %v11042_v47 }
 0x207   : > { %v11077_v9 = vunpack.i.h.bf16 %v11075_v27  ;;  %v11076_v28 = vunpack.i.l.bf16 %v11075_v27 }
 0x208   : > { %v2076_v54 = vsel %vm529_vm1, %v2044_v52, %v11106_v25  ;;  %v2077_v45 = vsel %vm529_vm1, %v2045_v12, %v11107_v8  ;;  %v894_v52 = vld [vmem:[#allocation2 + $0x138] sm:$0xff] }
 0x209   : > { %v11110_v17 = vpop.permute.xlu0 %11109  ;;  %v1979_v29 = vsel %vm529_vm1, %v1947_v62, %v11076_v28  ;;  %v1980_v11 = vsel %vm529_vm1, %v1948_v26, %v11077_v9  ;;  %v1982_v9 = vsel %vm529_vm1, %v1950_v0, %v11047_v57 }
 0x20a   : > { %v11112_v59 = vunpack.i.h.bf16 %v11110_v17  ;;  %v11111_v60 = vunpack.i.l.bf16 %v11110_v17  ;;  %v13390_v16 = vpop.permute.xlu1 %11094  ;;  %v2012_v4 = vsel %vm1989_vm7, %v1979_v29, %v11036_v15  ;;  %v2013_v53 = vsel %vm1989_vm7, %v1980_v11, %v11037_v20 }
 0x20b   : > { %v2151_v48 = vpack.c.bf16 %v2013_v53, %v2012_v4  ;;  %v11092_v29 = vunpack.i.h.bf16 %v13376_v44  ;;  %v11091_v11 = vunpack.i.l.bf16 %v13376_v44  ;;  %v11096_v47 = vunpack.i.l.bf16 %v13390_v16 }
 0x20c   : > { %v2108_v51 = vsel %vm1989_vm7, %v2076_v54, %v11111_v60  ;;  %v2109_v14 = vsel %vm1989_vm7, %v2077_v45, %v11112_v59  ;;  %v895_v59 = vld [vmem:[#allocation2 + $0x140] sm:$0xff] }
 0x20d   : > { %v11115_v7 = vpop.permute.xlu0 %11114  ;;  %v2152_v46 = vpack.c.bf16 %v2109_v14, %v2108_v51  ;;  %v11097_v14 = vunpack.i.h.bf16 %v13390_v16 }
 0x20e   : > { %v11117_v23 = vunpack.i.h.bf16 %v11115_v7  ;;  %v11116_v5 = vunpack.i.l.bf16 %v11115_v7  ;;  %v13400_v58 = vpop.permute.xlu1 %11099 }
 0x20f   : > { %2485 = vmatprep.mubr.bf16.mxu1 %v2152_v46  ;;  %v11102_v24 = vunpack.i.h.bf16 %v13400_v58 }
 0x210   : > { %v2047_v49 = vsel %vm386_vm0, %v13075_v36, %v11117_v23  ;;  %v2046_v43 = vsel %vm386_vm0, %v13073_v21, %v11116_v5  ;;  %2486 = vmatmul.mubr.bf16.gmra.mxu1 %v2151_v48  ;;  %v1949_v36 = vsel %vm386_vm0, %v892_v32, %v11041_v40  ;;  %v12255_v40 = vld [vmem:[#allocation2 + $0x159] sm:$0xff]  ;;  %v12256_v5 = vld [vmem:[#allocation2 + $0x151] sm:$0xff] }
 0x211   : > { %v13412_v1 = vpop.permute.xlu0 %11139  ;;  %v2078_v41 = vsel %vm529_vm1, %v2046_v43, %v11081_v38  ;;  %v2079_v30 = vsel %vm529_vm1, %v2047_v49, %v11082_v55  ;;  %v1981_v25 = vsel %vm529_vm1, %v1949_v36, %v11046_v42  ;;  %v2049_v23 = vsel %vm386_vm0, %v12255_v40, %v11092_v29 }
 0x212   : > { %v11120_v27 = vpop.permute.xlu1 %11119  ;;  %v2110_v33 = vsel %vm1989_vm7, %v2078_v41, %v11086_v35  ;;  %v2111_v6 = vsel %vm1989_vm7, %v2079_v30, %v11087_v18  ;;  %v2048_v48 = vsel %vm386_vm0, %v12256_v5, %v11091_v11  ;;  %v11101_v41 = vunpack.i.l.bf16 %v13400_v58 }
 0x213   : > { %v11122_v2 = vunpack.i.h.bf16 %v11120_v27  ;;  %v11121_v21 = vunpack.i.l.bf16 %v11120_v27  ;;  %v2155_v8 = vpack.c.bf16 %v2111_v6, %v2110_v33 }
 0x215   : > { %v13422_v28 = vpop.permute.xlu0 %11144  ;;  %2493 = vmatprep.mubr.bf16.mxu1 %v2155_v8  ;;  %v2014_v26 = vsel %vm1989_vm7, %v1981_v25, %v11121_v21  ;;  %v2015_v62 = vsel %vm1989_vm7, %v1982_v9, %v11122_v2  ;;  %v11142_v21 = vunpack.i.h.bf16 %v13412_v1  ;;  %v11141_v8 = vunpack.i.l.bf16 %v13412_v1 }
 0x216   : > { %v11125_v22 = vpop.permute.xlu1 %11124  ;;  %v2154_v61 = vpack.c.bf16 %v2015_v62, %v2014_v26  ;;  %v896_v26 = vld [vmem:[#allocation2 + $0x150] sm:$0xff]  ;;  %v897_v62 = vld [vmem:[#allocation2 + $0x158] sm:$0xff]  ;;  %v11146_v58 = vunpack.i.l.bf16 %v13422_v28 }
 0x217   : > { %v11127_v20 = vunpack.i.h.bf16 %v11125_v22  ;;  %v11126_v15 = vunpack.i.l.bf16 %v11125_v22  ;;  %v11147_v22 = vunpack.i.h.bf16 %v13422_v28  ;;  %v1953_v1 = vsel %vm386_vm0, %v896_v26, %v11101_v41 }
 0x218   : > { %2494 = vmatmul.mubr.bf16.gmra.mxu1 %v2154_v61 }
 0x219   : > { %v11150_v17 = vpop.permute.xlu0 %11149  ;;  %v1952_v53 = vsel %vm386_vm0, %v895_v59, %v11127_v20  ;;  %v1951_v51 = vsel %vm386_vm0, %v894_v52, %v11126_v15  ;;  %v1954_v15 = vsel %vm386_vm0, %v897_v62, %v11102_v24 }
 0x21a   : > { %v11130_v12 = vpop.permute.xlu1 %11129  ;;  %v11152_v60 = vunpack.i.h.bf16 %v11150_v17  ;;  %v11151_v54 = vunpack.i.l.bf16 %v11150_v17 }
 0x21b   : > { %v11132_v45 = vunpack.i.h.bf16 %v11130_v12  ;;  %v11131_v4 = vunpack.i.l.bf16 %v11130_v12 }
 0x21c   : > { %v2080_v42 = vsel %vm529_vm1, %v2048_v48, %v11151_v54  ;;  %v2081_v18 = vsel %vm529_vm1, %v2049_v23, %v11152_v60 }
 0x21d   : > { %v11155_v7 = vpop.permute.xlu0 %11154  ;;  %v1983_v46 = vsel %vm529_vm1, %v1951_v51, %v11131_v4  ;;  %v1984_v44 = vsel %vm529_vm1, %v1952_v53, %v11132_v45 }
 0x21e   : > { %v11157_v55 = vunpack.i.h.bf16 %v11155_v7  ;;  %v11156_v38 = vunpack.i.l.bf16 %v11155_v7  ;;  %v11135_v57 = vpop.permute.xlu1 %11134  ;;  %v2016_v16 = vsel %vm1989_vm7, %v1983_v46, %v11096_v47  ;;  %v2017_v35 = vsel %vm1989_vm7, %v1984_v44, %v11097_v14 }
 0x21f   : > { %v11137_v30 = vunpack.i.h.bf16 %v11135_v57  ;;  %v11136_v27 = vunpack.i.l.bf16 %v11135_v57  ;;  %v2157_v2 = vpack.c.bf16 %v2017_v35, %v2016_v16 }
 0x220   : > { %v2112_v49 = vsel %vm1989_vm7, %v2080_v42, %v11156_v38  ;;  %v2113_v43 = vsel %vm1989_vm7, %v2081_v18, %v11157_v55 }
 0x221   : > { %v11160_v32 = vpop.permute.xlu0 %11159  ;;  %v2158_v0 = vpack.c.bf16 %v2113_v43, %v2112_v49  ;;  %v1986_v59 = vsel %vm529_vm1, %v1954_v15, %v11137_v30  ;;  %v1149_v30 = vld [vmem:[#allocation2 + $0x152] sm:$0xff] }
 0x222   : > { %v11162_v33 = vunpack.i.h.bf16 %v11160_v32  ;;  %v11161_v6 = vunpack.i.l.bf16 %v11160_v32  ;;  %v11180_v36 = vpop.permute.xlu1 %11179  ;;  %v1150_v32 = vld [vmem:[#allocation2 + $0x15a] sm:$0xff] }
 0x223   : > { %v11182_v25 = vunpack.i.h.bf16 %v11180_v36  ;;  %v11181_v9 = vunpack.i.l.bf16 %v11180_v36  ;;  %2501 = vmatprep.mubr.bf16.mxu1 %v2158_v0  ;;  %v2159_v36 = vpack.c.bf16 %v13172_v13, %v13170_v31 }
 0x224   : > { %v2051_v61 = vsel %vm386_vm0, %v13152_v39, %v11162_v33  ;;  %v2050_v20 = vsel %vm386_vm0, %v13150_v37, %v11161_v6  ;;  %2502 = vmatmul.mubr.bf16.gmra.mxu1 %v2157_v2  ;;  %v1985_v39 = vsel %vm529_vm1, %v1953_v1, %v11136_v27  ;;  %v2156_v6 = vpack.c.bf16 %v1150_v32, %v1149_v30 }
 0x225   : > { %v11165_v17 = vpop.permute.xlu0 %11164  ;;  %v2082_v29 = vsel %vm529_vm1, %v2050_v20, %v11141_v8  ;;  %v2083_v11 = vsel %vm529_vm1, %v2051_v61, %v11142_v21  ;;  %v2018_v60 = vsel %vm1989_vm7, %v1985_v39, %v11181_v9  ;;  %v2019_v54 = vsel %vm1989_vm7, %v1986_v59, %v11182_v25  ;;  %v1155_v21 = vld [vmem:[#allocation2 + $0x19a] sm:$0xff]  ;;  %v1156_v8 = vld [vmem:[#allocation2 + $0x1a2] sm:$0xff]  ;;  %v10324_v9 = vpop.f32.mrf.mxu0 }
 0x226   : > { %v11185_v12 = vpop.permute.xlu1 %11184  ;;  %v2114_v52 = vsel %vm1989_vm7, %v2082_v29, %v11146_v58  ;;  %v2115_v28 = vsel %vm1989_vm7, %v2083_v11, %v11147_v22  ;;  %v11167_v45 = vunpack.i.h.bf16 %v11165_v17  ;;  %v11166_v4 = vunpack.i.l.bf16 %v11165_v17  ;;  %v13489_v22 = vld [vmem:[%s16499_s4] ss:$0 sm:$0xff] }
 0x227   : > { %v2161_v37 = vpack.c.bf16 %v2115_v28, %v2114_v52  ;;  %v11187_v51 = vunpack.i.h.bf16 %v11185_v12  ;;  %v11186_v14 = vunpack.i.l.bf16 %v11185_v12  ;;  %v2160_v7 = vpack.c.bf16 %v2019_v54, %v2018_v60  ;;  %v2560_v62 = vpop.f32.mrf.mxu0 }
 0x228   : > { %v2053_v5 = vsel %vm386_vm0, %v13124_v10, %v11167_v45  ;;  %v2052_v48 = vsel %vm386_vm0, %v13122_v63, %v11166_v4  ;;  %v2162_v2 = vpack.c.bf16 %v13189_v56, %v13187_v50  ;;  %v2165_v25 = vpack.c.bf16 %v1156_v8, %v1155_v21 }
 0x229   : > { %v11170_v53 = vpop.permute.xlu0 %11169  ;;  %2509 = vmatprep.mubr.bf16.mxu1 %v2161_v37  ;;  %v1956_v38 = vsel %vm386_vm0, %v13144_v19, %v11187_v51  ;;  %v1955_v57 = vsel %vm386_vm0, %v13142_v34, %v11186_v14  ;;  %v10325_v58 = vpop.f32.mrf.mxu0 }
 0x22a   : > { %v11190_v47 = vpop.permute.xlu1 %11189  ;;  %v11172_v46 = vunpack.i.h.bf16 %v11170_v53  ;;  %v11171_v44 = vunpack.i.l.bf16 %v11170_v53 }
 0x22b   : > { %v11192_v40 = vunpack.i.h.bf16 %v11190_v47  ;;  %v11191_v23 = vunpack.i.l.bf16 %v11190_v47  ;;  %v2563_v17 = vpop.f32.mrf.mxu0 }
 0x22c   : > { %2510 = vmatmul.mubr.bf16.gmra.mxu1 %v2160_v7  ;;  %v2084_v43 = vsel %vm529_vm1, %v2052_v48, %v11171_v44  ;;  %v2085_v24 = vsel %vm529_vm1, %v2053_v5, %v11172_v46 }
 0x22d   : > { %v11175_v55 = vpop.permute.xlu0 %11174  ;;  %v1987_v41 = vsel %vm529_vm1, %v1955_v57, %v11191_v23  ;;  %v1988_v19 = vsel %vm529_vm1, %v1956_v38, %v11192_v40  ;;  %v10328_v47 = vpop.f32.mrf.mxu0 }
 0x22e   : > { %v11177_v42 = vunpack.i.h.bf16 %v11175_v55  ;;  %v11176_v18 = vunpack.i.l.bf16 %v11175_v55  ;;  %v11195_v16 = vpop.permute.xlu1 %11194 }
 0x22f   : > { %v11197_v35 = vunpack.i.h.bf16 %v11195_v16  ;;  %v11196_v49 = vunpack.i.l.bf16 %v11195_v16  ;;  %v2576_v23 = vpop.f32.mrf.mxu0 }
 0x230   : > { %v2116_v10 = vsel %vm1989_vm7, %v2084_v43, %v11176_v18  ;;  %v2117_v63 = vsel %vm1989_vm7, %v2085_v24, %v11177_v42 }
 0x231   : > { %v2164_v34 = vpack.c.bf16 %v2117_v63, %v2116_v10  ;;  %v2020_v0 = vsel %vm1989_vm7, %v1987_v41, %v11196_v49  ;;  %v2021_v27 = vsel %vm1989_vm7, %v1988_v19, %v11197_v35  ;;  %v10329_v16 = vpop.f32.mrf.mxu0 }
 0x232   : > { %v2163_v33 = vpack.c.bf16 %v2021_v27, %v2020_v0 }
 0x233   : > { %2517 = vmatprep.mubr.bf16.mxu1 %v2164_v34  ;;  %v2579_v10 = vpop.f32.mrf.mxu0 }
 0x234   : > { %2518 = vmatmul.mubr.bf16.gmra.mxu1 %v2163_v33 }
 0x235   : > { %10346 = vmatprep.mubr.msk.bf16.mxu1 %vm386_vm0, %v2156_v6 }
 0x23c   : > { %10347 = vmatmul.mubr.msk.bf16.vlgmr.msra.gmra.mxu1 %vm386_vm0, %v2159_v36 }
 0x23d   : > { %10350 = vmatprep.mubr.msk.bf16.mxu1 %vm386_vm0, %v2162_v2 }
 0x244   : > { %10351 = vmatmul.mubr.msk.bf16.gmra.mxu1 %vm386_vm0, %v2165_v25 }
 0x24c   : > { %v9789_v26 = vpop.f32.mrf.mxu1 }
 0x24e   : > { %v9790_v31 = vpop.f32.mrf.mxu1 }
 0x24f   : > { %v9791_v13 = vadd.f32 %v9790_v31, %v9789_v26 }
 0x250   : > { %v9792_v50 = vpop.f32.mrf.mxu1 }
 0x251   : > { %v2400_v56 = vadd.f32 %v9791_v13, %v13489_v22 }
 0x252   : > { %v9793_v61 = vpop.f32.mrf.mxu1 }
 0x253   : > { %v2561_v20 = vadd.f32 %v2560_v62, %v2400_v56  ;;  %v9794_v15 = vadd.f32 %v9793_v61, %v9792_v50 }
 0x255   : > { %v2403_v1 = vadd.f32 %v9794_v15, %v13489_v22  ;;  %v2719_v29 = vmul.f32 0.01, %v2561_v20  ;;  %vm2687_vm8 = vcmp.gt.f32.partialorder %v2561_v20, 0.0 }
 0x257   : > { %v2564_v11 = vadd.f32 %v2563_v17, %v2403_v1  ;;  %v2751_v59 = vsel %vm2687_vm8, %v2561_v20, %v2719_v29 }
 0x258   : > { %v9795_v12 = vpop.f32.mrf.mxu1 }
 0x259   : > { %vm2688_vm9 = vcmp.gt.f32.partialorder %v2564_v11, 0.0  ;;  %v2720_v52 = vmul.f32 0.01, %v2564_v11 }
 0x25a   : > { %v9796_v28 = vpop.f32.mrf.mxu1 }
 0x25b   : > { %v9797_v39 = vadd.f32 %v9796_v28, %v9795_v12  ;;  %v2752_v37 = vsel %vm2688_vm9, %v2564_v11, %v2720_v52 }
 0x25c   : > { %v9798_v60 = vpop.f32.mrf.mxu1  ;;  %v2783_v54 = vpack.c.bf16 %v2752_v37, %v2751_v59 }
 0x25d   : > { %v2408_v45 = vadd.f32 %v9797_v39, %v13489_v22 }
 0x25e   : > { %10358 = vmatprep.mubr.msk.bf16.mxu0 %vm386_vm0, %v2783_v54  ;;  %v9799_v4 = vpop.f32.mrf.mxu1 }
 0x25f   : > { %v2569_v53 = vadd.f32 %v10324_v9, %v2408_v45  ;;  %v9800_v51 = vadd.f32 %v9799_v4, %v9798_v60  ;;  %v10332_v9 = vpop.f32.mrf.mxu0 }
 0x261   : > { %v2411_v14 = vadd.f32 %v9800_v51, %v13489_v22  ;;  %v2721_v7 = vmul.f32 0.01, %v2569_v53  ;;  %vm2689_vm10 = vcmp.gt.f32.partialorder %v2569_v53, 0.0  ;;  %v2592_v50 = vpop.f32.mrf.mxu0 }
 0x263   : > { %v2572_v46 = vadd.f32 %v10325_v58, %v2411_v14  ;;  %v2753_v48 = vsel %vm2689_vm10, %v2569_v53, %v2721_v7  ;;  %v10333_v29 = vpop.f32.mrf.mxu0 }
 0x264   : > { %v9801_v44 = vpop.f32.mrf.mxu1 }
 0x265   : > { %vm2690_vm11 = vcmp.gt.f32.partialorder %v2572_v46, 0.0  ;;  %v2722_v40 = vmul.f32 0.01, %v2572_v46  ;;  %v2595_v39 = vpop.f32.mrf.mxu0 }
 0x266   : > { %v9802_v5 = vpop.f32.mrf.mxu1 }
 0x267   : > { %v2754_v55 = vsel %vm2690_vm11, %v2572_v46, %v2722_v40  ;;  %v9803_v38 = vadd.f32 %v9802_v5, %v9801_v44  ;;  %v10336_v5 = vpop.f32.mrf.mxu0 }
 0x268   : > { %v2784_v57 = vpack.c.bf16 %v2754_v55, %v2753_v48  ;;  %v9804_v42 = vpop.f32.mrf.mxu1 }
 0x269   : > { %v2416_v18 = vadd.f32 %v9803_v38, %v13489_v22 }
 0x26a   : > { %v9805_v35 = vpop.f32.mrf.mxu1  ;;  %10359 = vmatmul.mubr.msk.bf16.vlgmr.msra.gmra.mxu0 %vm386_vm0, %v2784_v57 }
 0x26b   : > { %v2577_v49 = vadd.f32 %v2576_v23, %v2416_v18  ;;  %v9806_v43 = vadd.f32 %v9805_v35, %v9804_v42  ;;  %v2608_v42 = vpop.f32.mrf.mxu0 }
 0x26d   : > { %v2419_v24 = vadd.f32 %v9806_v43, %v13489_v22  ;;  %v2723_v63 = vmul.f32 0.01, %v2577_v49  ;;  %vm2691_vm12 = vcmp.gt.f32.partialorder %v2577_v49, 0.0 }
 0x26f   : > { %v2580_v41 = vadd.f32 %v2579_v10, %v2419_v24  ;;  %v2755_v0 = vsel %vm2691_vm12, %v2577_v49, %v2723_v63  ;;  %v10337_v63 = vpop.f32.mrf.mxu0 }
 0x270   : > { %v9807_v19 = vpop.f32.mrf.mxu1 }
 0x271   : > { %vm2692_vm13 = vcmp.gt.f32.partialorder %v2580_v41, 0.0  ;;  %v2724_v30 = vmul.f32 0.01, %v2580_v41 }
 0x272   : > { %v9808_v32 = vpop.f32.mrf.mxu1 }
 0x273   : > { %v9809_v34 = vadd.f32 %v9808_v32, %v9807_v19  ;;  %v2756_v27 = vsel %vm2692_vm13, %v2580_v41, %v2724_v30 }
 0x274   : > { %v9810_v33 = vpop.f32.mrf.mxu1  ;;  %v2785_v6 = vpack.c.bf16 %v2756_v27, %v2755_v0 }
 0x275   : > { %v2424_v36 = vadd.f32 %v9809_v34, %v13489_v22  ;;  %v2611_v34 = vpop.f32.mrf.mxu0 }
 0x276   : > { %10362 = vmatprep.mubr.msk.bf16.mxu0 %vm386_vm0, %v2785_v6  ;;  %v9811_v2 = vpop.f32.mrf.mxu1 }
 0x277   : > { %v2585_v21 = vadd.f32 %v10328_v47, %v2424_v36  ;;  %v9812_v8 = vadd.f32 %v9811_v2, %v9810_v33 }
 0x279   : > { %v2427_v25 = vadd.f32 %v9812_v8, %v13489_v22  ;;  %v2725_v26 = vmul.f32 0.01, %v2585_v21  ;;  %vm2693_vm14 = vcmp.gt.f32.partialorder %v2585_v21, 0.0 }
 0x27b   : > { %v2588_v62 = vadd.f32 %v10329_v16, %v2427_v25  ;;  %v2757_v61 = vsel %vm2693_vm14, %v2585_v21, %v2725_v26 }
 0x27c   : > { %v9813_v31 = vpop.f32.mrf.mxu1 }
 0x27d   : > { %vm2694_vm15 = vcmp.gt.f32.partialorder %v2588_v62, 0.0  ;;  %v2726_v13 = vmul.f32 0.01, %v2588_v62 }
 0x27e   : > { %v9814_v56 = vpop.f32.mrf.mxu1 }
 0x27f   : > { %v9815_v58 = vadd.f32 %v9814_v56, %v9813_v31  ;;  %v2758_v20 = vsel %vm2694_vm15, %v2588_v62, %v2726_v13  ;;  %v10340_v56 = vpop.f32.mrf.mxu0 }
 0x280   : > { %v9816_v15 = vpop.f32.mrf.mxu1  ;;  %v2786_v1 = vpack.c.bf16 %v2758_v20, %v2757_v61 }
 0x281   : > { %v2432_v17 = vadd.f32 %v9815_v58, %v13489_v22 }
 0x282   : > { %v9817_v11 = vpop.f32.mrf.mxu1  ;;  %10363 = vmatmul.mubr.msk.bf16.gmra.mxu0 %vm386_vm0, %v2786_v1  ;;  %v2624_v1 = vpop.f32.mrf.mxu0 }
 0x283   : > { %v2593_v12 = vadd.f32 %v2592_v50, %v2432_v17  ;;  %v9818_v52 = vadd.f32 %v9817_v11, %v9816_v15 }
 0x285   : > { %v2435_v28 = vadd.f32 %v9818_v52, %v13489_v22  ;;  %v2727_v59 = vmul.f32 0.01, %v2593_v12  ;;  %vm2695_vm2 = vcmp.gt.f32.partialorder %v2593_v12, 0.0 }
 0x287   : > { %v2596_v37 = vadd.f32 %v2595_v39, %v2435_v28  ;;  %v2759_v53 = vsel %vm2695_vm2, %v2593_v12, %v2727_v59  ;;  %v10341_v59 = vpop.f32.mrf.mxu0 }
 0x288   : > { %v9819_v60 = vpop.f32.mrf.mxu1 }
 0x289   : > { %vm2696_vm3 = vcmp.gt.f32.partialorder %v2596_v37, 0.0  ;;  %v2728_v54 = vmul.f32 0.01, %v2596_v37 }
 0x28a   : > { %v9820_v45 = vpop.f32.mrf.mxu1 }
 0x28b   : > { %v9821_v4 = vadd.f32 %v9820_v45, %v9819_v60  ;;  %v2760_v51 = vsel %vm2696_vm3, %v2596_v37, %v2728_v54 }
 0x28c   : > { %v9822_v14 = vpop.f32.mrf.mxu1  ;;  %v2787_v47 = vpack.c.bf16 %v2760_v51, %v2759_v53 }
 0x28d   : > { %v2440_v7 = vadd.f32 %v9821_v4, %v13489_v22  ;;  %v2627_v4 = vpop.f32.mrf.mxu0 }
 0x28e   : > { %10366 = vmatprep.mubr.msk.bf16.mxu0 %vm386_vm0, %v2787_v47  ;;  %v9823_v46 = vpop.f32.mrf.mxu1 }
 0x28f   : > { %v2601_v44 = vadd.f32 %v10332_v9, %v2440_v7  ;;  %v9824_v40 = vadd.f32 %v9823_v46, %v9822_v14 }
 0x291   : > { %v2443_v23 = vadd.f32 %v9824_v40, %v13489_v22  ;;  %v2729_v48 = vmul.f32 0.01, %v2601_v44  ;;  %vm2697_vm4 = vcmp.gt.f32.partialorder %v2601_v44, 0.0 }
 0x293   : > { %v2604_v55 = vadd.f32 %v10333_v29, %v2443_v23  ;;  %v2761_v35 = vsel %vm2697_vm4, %v2601_v44, %v2729_v48 }
 0x294   : > { %v9825_v38 = vpop.f32.mrf.mxu1 }
 0x295   : > { %vm2698_vm5 = vcmp.gt.f32.partialorder %v2604_v55, 0.0  ;;  %v2730_v57 = vmul.f32 0.01, %v2604_v55 }
 0x296   : > { %v9826_v18 = vpop.f32.mrf.mxu1 }
 0x297   : > { %v9827_v16 = vadd.f32 %v9826_v18, %v9825_v38  ;;  %v2762_v49 = vsel %vm2698_vm5, %v2604_v55, %v2730_v57  ;;  %v10344_v18 = vpop.f32.mrf.mxu0 }
 0x298   : > { %v9828_v43 = vpop.f32.mrf.mxu1  ;;  %v2788_v24 = vpack.c.bf16 %v2762_v49, %v2761_v35 }
 0x299   : > { %v2448_v10 = vadd.f32 %v9827_v16, %v13489_v22 }
 0x29a   : > { %v9829_v41 = vpop.f32.mrf.mxu1  ;;  %10367 = vmatmul.mubr.msk.bf16.gmra.mxu0 %vm386_vm0, %v2788_v24  ;;  %v2640_v24 = vpop.f32.mrf.mxu0 }
 0x29b   : > { %v2609_v19 = vadd.f32 %v2608_v42, %v2448_v10  ;;  %v9830_v30 = vadd.f32 %v9829_v41, %v9828_v43 }
 0x29d   : > { %v2451_v32 = vadd.f32 %v9830_v30, %v13489_v22  ;;  %v2731_v0 = vmul.f32 0.01, %v2609_v19  ;;  %vm2699_vm6 = vcmp.gt.f32.partialorder %v2609_v19, 0.0 }
 0x29f   : > { %v2612_v27 = vadd.f32 %v2611_v34, %v2451_v32  ;;  %v2763_v21 = vsel %vm2699_vm6, %v2609_v19, %v2731_v0  ;;  %v10345_v0 = vpop.f32.mrf.mxu0 }
 0x2a0   : > { %v9831_v33 = vpop.f32.mrf.mxu1 }
 0x2a1   : > { %vm2700_vm8 = vcmp.gt.f32.partialorder %v2612_v27, 0.0  ;;  %v2732_v6 = vmul.f32 0.01, %v2612_v27 }
 0x2a2   : > { %v9832_v36 = vpop.f32.mrf.mxu1 }
 0x2a3   : > { %v9833_v2 = vadd.f32 %v9832_v36, %v9831_v33  ;;  %v2764_v8 = vsel %vm2700_vm8, %v2612_v27, %v2732_v6 }
 0x2a4   : > { %v9834_v25 = vpop.f32.mrf.mxu1  ;;  %v2789_v9 = vpack.c.bf16 %v2764_v8, %v2763_v21 }
 0x2a5   : > { %v2456_v26 = vadd.f32 %v9833_v2, %v13489_v22  ;;  %v2643_v2 = vpop.f32.mrf.mxu0 }
 0x2a6   : > { %10370 = vmatprep.mubr.msk.bf16.mxu0 %vm386_vm0, %v2789_v9  ;;  %v9835_v62 = vpop.f32.mrf.mxu1 }
 0x2a7   : > { %v2617_v31 = vadd.f32 %v10336_v5, %v2456_v26  ;;  %v9836_v13 = vadd.f32 %v9835_v62, %v9834_v25 }
 0x2a9   : > { %v2459_v50 = vadd.f32 %v9836_v13, %v13489_v22  ;;  %v2733_v58 = vmul.f32 0.01, %v2617_v31  ;;  %vm2701_vm9 = vcmp.gt.f32.partialorder %v2617_v31, 0.0 }
 0x2ab   : > { %v2620_v61 = vadd.f32 %v10337_v63, %v2459_v50  ;;  %v2765_v11 = vsel %vm2701_vm9, %v2617_v31, %v2733_v58 }
 0x2ac   : > { %v9837_v20 = vpop.f32.mrf.mxu1 }
 0x2ad   : > { %vm2702_vm10 = vcmp.gt.f32.partialorder %v2620_v61, 0.0  ;;  %v2734_v15 = vmul.f32 0.01, %v2620_v61 }
 0x2ae   : > { %v9838_v17 = vpop.f32.mrf.mxu1 }
 0x2af   : > { %v9839_v29 = vadd.f32 %v9838_v17, %v9837_v20  ;;  %v2766_v12 = vsel %vm2702_vm10, %v2620_v61, %v2734_v15 }
 0x2b0   : > { %v9840_v52 = vpop.f32.mrf.mxu1  ;;  %v2790_v28 = vpack.c.bf16 %v2766_v12, %v2765_v11 }
 0x2b1   : > { %v2464_v39 = vadd.f32 %v9839_v29, %v13489_v22 }
 0x2b2   : > { %v9841_v37 = vpop.f32.mrf.mxu1  ;;  %10371 = vmatmul.mubr.msk.bf16.gmra.mxu0 %vm386_vm0, %v2790_v28 }
 0x2b3   : > { %v2625_v60 = vadd.f32 %v2624_v1, %v2464_v39  ;;  %v9842_v54 = vadd.f32 %v9841_v37, %v9840_v52 }
 0x2b5   : > { %v2467_v45 = vadd.f32 %v9842_v54, %v13489_v22  ;;  %v2735_v53 = vmul.f32 0.01, %v2625_v60  ;;  %vm2703_vm11 = vcmp.gt.f32.partialorder %v2625_v60, 0.0 }
 0x2b7   : > { %v2628_v51 = vadd.f32 %v2627_v4, %v2467_v45  ;;  %v2767_v44 = vsel %vm2703_vm11, %v2625_v60, %v2735_v53 }
 0x2b8   : > { %v9843_v14 = vpop.f32.mrf.mxu1 }
 0x2b9   : > { %vm2704_vm12 = vcmp.gt.f32.partialorder %v2628_v51, 0.0  ;;  %v2736_v47 = vmul.f32 0.01, %v2628_v51 }
 0x2ba   : > { %v9844_v7 = vpop.f32.mrf.mxu1 }
 0x2bb   : > { %v9845_v46 = vadd.f32 %v9844_v7, %v9843_v14  ;;  %v2768_v40 = vsel %vm2704_vm12, %v2628_v51, %v2736_v47 }
 0x2bc   : > { %v9846_v23 = vpop.f32.mrf.mxu1  ;;  %v2791_v5 = vpack.c.bf16 %v2768_v40, %v2767_v44 }
 0x2bd   : > { %v2472_v48 = vadd.f32 %v9845_v46, %v13489_v22 }
 0x2be   : > { %10374 = vmatprep.mubr.msk.bf16.mxu0 %vm386_vm0, %v2791_v5  ;;  %v9847_v55 = vpop.f32.mrf.mxu1 }
 0x2bf   : > { %v2633_v38 = vadd.f32 %v10340_v56, %v2472_v48  ;;  %v9848_v57 = vadd.f32 %v9847_v55, %v9846_v23 }
 0x2c1   : > { %v2475_v42 = vadd.f32 %v9848_v57, %v13489_v22  ;;  %v2737_v16 = vmul.f32 0.01, %v2633_v38  ;;  %vm2705_vm13 = vcmp.gt.f32.partialorder %v2633_v38, 0.0 }
 0x2c3   : > { %v2636_v35 = vadd.f32 %v10341_v59, %v2475_v42  ;;  %v2769_v41 = vsel %vm2705_vm13, %v2633_v38, %v2737_v16 }
 0x2c4   : > { %v9849_v49 = vpop.f32.mrf.mxu1 }
 0x2c5   : > { %vm2706_vm14 = vcmp.gt.f32.partialorder %v2636_v35, 0.0  ;;  %v2738_v43 = vmul.f32 0.01, %v2636_v35 }
 0x2c6   : > { %v9850_v10 = vpop.f32.mrf.mxu1 }
 0x2c7   : > { %v9851_v63 = vadd.f32 %v9850_v10, %v9849_v49  ;;  %v2770_v19 = vsel %vm2706_vm14, %v2636_v35, %v2738_v43  ;;  %vm12359_vm14 = vmmov 0  }
 0x2c8   : > { %v9852_v30 = vpop.f32.mrf.mxu1  ;;  %v2792_v32 = vpack.c.bf16 %v2770_v19, %v2769_v41  ;;  %10398 = vmatprep.mubr.msk.bf16.mxu1 %vm12359_vm14, %v16513_v3 }
 0x2c9   : > { %v2480_v34 = vadd.f32 %v9851_v63, %v13489_v22 }
 0x2ca   : > { %v9853_v27 = vpop.f32.mrf.mxu1  ;;  %10375 = vmatmul.mubr.msk.bf16.gmra.mxu0 %vm386_vm0, %v2792_v32 }
 0x2cb   : > { %v2641_v33 = vadd.f32 %v2640_v24, %v2480_v34  ;;  %v9854_v6 = vadd.f32 %v9853_v27, %v9852_v30 }
 0x2cd   : > { %v2483_v36 = vadd.f32 %v9854_v6, %v13489_v22  ;;  %v2739_v21 = vmul.f32 0.01, %v2641_v33  ;;  %vm2707_vm15 = vcmp.gt.f32.partialorder %v2641_v33, 0.0 }
 0x2cf   : > { %v2644_v8 = vadd.f32 %v2643_v2, %v2483_v36  ;;  %v2771_v31 = vsel %vm2707_vm15, %v2641_v33, %v2739_v21 }
 0x2d0   : > { %v9855_v25 = vpop.f32.mrf.mxu1 }
 0x2d1   : > { %vm2708_vm2 = vcmp.gt.f32.partialorder %v2644_v8, 0.0  ;;  %v2740_v9 = vmul.f32 0.01, %v2644_v8 }
 0x2d2   : > { %v9856_v26 = vpop.f32.mrf.mxu1 }
 0x2d3   : > { %v9857_v62 = vadd.f32 %v9856_v26, %v9855_v25  ;;  %v2772_v13 = vsel %vm2708_vm2, %v2644_v8, %v2740_v9 }
 0x2d4   : > { %v9858_v50 = vpop.f32.mrf.mxu1  ;;  %v2793_v56 = vpack.c.bf16 %v2772_v13, %v2771_v31 }
 0x2d5   : > { %v2488_v58 = vadd.f32 %v9857_v62, %v13489_v22 }
 0x2d6   : > { %10378 = vmatprep.mubr.msk.bf16.mxu0 %vm386_vm0, %v2793_v56  ;;  %v9859_v61 = vpop.f32.mrf.mxu1 }
 0x2d7   : > { %v2649_v20 = vadd.f32 %v10344_v18, %v2488_v58  ;;  %v9860_v15 = vadd.f32 %v9859_v61, %v9858_v50 }
 0x2d8   : > { %v9861_v1 = vpop.f32.mrf.mxu1 }
 0x2d9   : > { %v2491_v17 = vadd.f32 %v9860_v15, %v13489_v22  ;;  %v2741_v11 = vmul.f32 0.01, %v2649_v20  ;;  %vm2709_vm3 = vcmp.gt.f32.partialorder %v2649_v20, 0.0 }
 0x2da   : > { %v9862_v29 = vpop.f32.mrf.mxu1 }
 0x2db   : > { %v2652_v12 = vadd.f32 %v10345_v0, %v2491_v17  ;;  %v2773_v39 = vsel %vm2709_vm3, %v2649_v20, %v2741_v11  ;;  %v9863_v23 = vadd.f32 %v9862_v29, %v9861_v1 }
 0x2dc   : > { %v9864_v28 = vpop.f32.mrf.mxu1 }
 0x2dd   : > { %vm2710_vm4 = vcmp.gt.f32.partialorder %v2652_v12, 0.0  ;;  %v2742_v52 = vmul.f32 0.01, %v2652_v12  ;;  %v2496_v42 = vadd.f32 %v9863_v23, %v13489_v22 }
 0x2de   : > { %v9865_v60 = vpop.f32.mrf.mxu1 }
 0x2df   : > { %v2774_v59 = vsel %vm2710_vm4, %v2652_v12, %v2742_v52  ;;  %v9866_v57 = vadd.f32 %v9865_v60, %v9864_v28 }
 0x2e0   : > { %v2794_v37 = vpack.c.bf16 %v2774_v59, %v2773_v39 }
 0x2e1   : > { %v2499_v41 = vadd.f32 %v9866_v57, %v13489_v22 }
 0x2e2   : > { %10379 = vmatmul.mubr.msk.bf16.gmra.mxu0 %vm386_vm0, %v2794_v37 }
 0x2e4   : > { %v9867_v54 = vpop.f32.mrf.mxu1 }
 0x2e6   : > { %v9868_v45 = vpop.f32.mrf.mxu1 }
 0x2e7   : > { %v9869_v5 = vadd.f32 %v9868_v45, %v9867_v54  ;;  %v12182_v45 = vld [vmem:[%s16502_s7 + $0x18] sm:$0xff]  }
 0x2e8   : > { %v9870_v4 = vpop.f32.mrf.mxu1  ;;  %10391 = vmatpush3.bf16.msra.mxu1 %v12182_v45 }
 0x2e9   : > { %v2504_v18 = vadd.f32 %v9869_v5, %v13489_v22  ;;  %10392 = vmatprep.subr.bf16.mxu1 %v16513_v3  ;;  %v13560_v5 = vld [vmem:[%s16501_s6] ss:$0 sm:$0xff] }
 0x2ea   : > { %v9871_v53 = vpop.f32.mrf.mxu1 }
 0x2eb   : > { %v9872_v55 = vadd.f32 %v9871_v53, %v9870_v4  ;;  %v12183_v53 = vld [vmem:[%s16502_s7 + $0x10] sm:$0xff]  }
 0x2ec   : > { %v9873_v51 = vpop.f32.mrf.mxu1  ;;  %10393 = vmatpush3.bf16.msra.mxu1 %v12183_v53 }
 0x2ed   : > { %v2507_v49 = vadd.f32 %v9872_v55, %v13489_v22  ;;  %10394 = vmatprep.subr.bf16.mxu1 %v16513_v3 }
 0x2ee   : > { %v9874_v14 = vpop.f32.mrf.mxu1 }
 0x2ef   : > { %v9875_v43 = vadd.f32 %v9874_v14, %v9873_v51  ;;  %v12184_v14 = vld [vmem:[%s16502_s7 + $0x8] sm:$0xff]  }
 0x2f0   : > { %v9876_v47 = vpop.f32.mrf.mxu1  ;;  %10395 = vmatpush3.bf16.msra.mxu1 %v12184_v14 }
 0x2f1   : > { %v2512_v36 = vadd.f32 %v9875_v43, %v13489_v22  ;;  %10396 = vmatprep.subr.bf16.mxu1 %v16513_v3 }
 0x2f2   : > { %v9877_v7 = vpop.f32.mrf.mxu1 }
 0x2f3   : > { %v9878_v2 = vadd.f32 %v9877_v7, %v9876_v47  ;;  %v12185_v7 = vld [vmem:[%s16502_s7] sm:$0xff]  }
 0x2f4   : > { %v9879_v46 = vpop.f32.mrf.mxu1  ;;  %10397 = vmatpush3.bf16.msra.mxu1 %v12185_v7 }
 0x2f5   : > { %v2515_v1 = vadd.f32 %v9878_v2, %v13489_v22  ;;  %10402 = vmatprep.subr.bf16.mxu1 %v16513_v3 }
 0x2f6   : > { %v9880_v44 = vpop.f32.mrf.mxu1 }
 0x2f7   : > { %v9881_v19 = vadd.f32 %v9880_v44, %v9879_v46 }
 0x2f8   : > { %v9882_v40 = vpop.f32.mrf.mxu1 }
 0x2f9   : > { %v2520_v25 = vadd.f32 %v9881_v19, %v13489_v22 }
 0x2fa   : > { %v9883_v48 = vpop.f32.mrf.mxu1 }
 0x2fb   : > { %v9884_v30 = vadd.f32 %v9883_v48, %v9882_v40 }
 0x2fc   : > { %v10348_v38 = vpop.f32.mrf.mxu1 }
 0x2fd   : > { %v2665_v24 = vadd.f32 %v10348_v38, %v2504_v18  ;;  %v2523_v13 = vadd.f32 %v9884_v30, %v13489_v22 }
 0x2fe   : > { %v2656_v16 = vpop.f32.mrf.mxu1 }
 0x2ff   : > { %v2657_v35 = vadd.f32 %v2656_v16, %v2496_v42  ;;  %v2745_v33 = vmul.f32 0.01, %v2665_v24  ;;  %vm2713_vm8 = vcmp.gt.f32.partialorder %v2665_v24, 0.0 }
 0x300   : > { %v10349_v10 = vpop.f32.mrf.mxu1 }
 0x301   : > { %v2668_v63 = vadd.f32 %v10349_v10, %v2507_v49  ;;  %v2743_v34 = vmul.f32 0.01, %v2657_v35  ;;  %vm2711_vm6 = vcmp.gt.f32.partialorder %v2657_v35, 0.0  ;;  %v2777_v50 = vsel %vm2713_vm8, %v2665_v24, %v2745_v33 }
 0x302   : > { %v2659_v32 = vpop.f32.mrf.mxu1 }
 0x303   : > { %vm2714_vm5 = vcmp.gt.f32.partialorder %v2668_v63, 0.0  ;;  %v2746_v0 = vmul.f32 0.01, %v2668_v63  ;;  %v2660_v27 = vadd.f32 %v2659_v32, %v2499_v41  ;;  %v2775_v26 = vsel %vm2711_vm6, %v2657_v35, %v2743_v34 }
 0x304   : > { %v10352_v6 = vpop.f32.mrf.mxu1 }
 0x305   : > { %vm2712_vm9 = vcmp.gt.f32.partialorder %v2660_v27, 0.0  ;;  %v2744_v21 = vmul.f32 0.01, %v2660_v27  ;;  %v2778_v8 = vsel %vm2714_vm5, %v2668_v63, %v2746_v0  ;;  %v2681_v58 = vadd.f32 %v10352_v6, %v2520_v25 }
 0x306   : > { %v2672_v9 = vpop.f32.mrf.mxu1  ;;  %v2796_v20 = vpack.c.bf16 %v2778_v8, %v2777_v50 }
 0x307   : > { %v2776_v62 = vsel %vm2712_vm9, %v2660_v27, %v2744_v21  ;;  %v2673_v31 = vadd.f32 %v2672_v9, %v2512_v36  ;;  %v2749_v52 = vmul.f32 0.01, %v2681_v58  ;;  %vm2717_vm12 = vcmp.gt.f32.partialorder %v2681_v58, 0.0 }
 0x308   : > { %v2795_v56 = vpack.c.bf16 %v2776_v62, %v2775_v26  ;;  %v10353_v61 = vpop.f32.mrf.mxu1 }
 0x309   : > { %v2684_v15 = vadd.f32 %v10353_v61, %v2523_v13  ;;  %v2747_v29 = vmul.f32 0.01, %v2673_v31  ;;  %vm2715_vm11 = vcmp.gt.f32.partialorder %v2673_v31, 0.0  ;;  %v2781_v60 = vsel %vm2717_vm12, %v2681_v58, %v2749_v52 }
 0x30a   : > { %v2675_v17 = vpop.f32.mrf.mxu1  ;;  %10382 = vmatprep.mubr.msk.bf16.mxu0 %vm386_vm0, %v2795_v56 }
 0x30b   : > { %vm2718_vm10 = vcmp.gt.f32.partialorder %v2684_v15, 0.0  ;;  %v2750_v11 = vmul.f32 0.01, %v2684_v15  ;;  %v2676_v12 = vadd.f32 %v2675_v17, %v2515_v1  ;;  %10383 = vmatmul.mubr.msk.bf16.gmra.mxu0 %vm386_vm0, %v2796_v20  ;;  %v2779_v59 = vsel %vm2715_vm11, %v2673_v31, %v2747_v29 }
 0x30d   : > { %vm2716_vm13 = vcmp.gt.f32.partialorder %v2676_v12, 0.0  ;;  %v2748_v28 = vmul.f32 0.01, %v2676_v12  ;;  %v2782_v39 = vsel %vm2718_vm10, %v2684_v15, %v2750_v11 }
 0x30e   : > { %v2798_v22 = vpack.c.bf16 %v2782_v39, %v2781_v60 }
 0x30f   : > { %v2780_v37 = vsel %vm2716_vm13, %v2676_v12, %v2748_v28 }
 0x310   : > { %v2797_v54 = vpack.c.bf16 %v2780_v37, %v2779_v59 }
 0x312   : > { %10386 = vmatprep.mubr.msk.bf16.mxu0 %vm386_vm0, %v2797_v54 }
 0x313   : > { %10387 = vmatmul.mubr.msk.bf16.gmra.mxu0 %vm386_vm0, %v2798_v22 }
 0x32a   : > { %v10360_v4 = vpop.f32.mrf.mxu0 }
 0x32b   : > { %v2913_v18 = vadd.f32 %v10360_v4, %v13560_v5 }
 0x32c   : > { %v2904_v51 = vpop.f32.mrf.mxu0 }
 0x32d   : > { %v2905_v38 = vadd.f32 %v13560_v5, %v2904_v51  ;;  %v3065_v43 = vmul.f32 0.01, %v2913_v18  ;;  %vm3033_vm3 = vcmp.gt.f32.partialorder %v2913_v18, 0.0 }
 0x32e   : > { %v10361_v47 = vpop.f32.mrf.mxu0 }
 0x32f   : > { %v3063_v16 = vmul.f32 0.01, %v2905_v38  ;;  %vm3031_vm2 = vcmp.gt.f32.partialorder %v2905_v38, 0.0  ;;  %v2916_v10 = vadd.f32 %v10361_v47, %v13560_v5  ;;  %v13576_v34 = vsel %vm3033_vm3, %v2913_v18, %v3065_v43 }
 0x330   : > { %v2907_v46 = vpop.f32.mrf.mxu0  ;;  %v3130_v2 = vsel %vm529_vm1, %v13576_v34, 0.0 }
 0x331   : > { %v2908_v48 = vadd.f32 %v13560_v5, %v2907_v46  ;;  %v13567_v24 = vsel %vm3031_vm2, %v2905_v38, %v3063_v16  ;;  %v3066_v0 = vmul.f32 0.01, %v2916_v10  ;;  %vm3034_vm4 = vcmp.gt.f32.partialorder %v2916_v10, 0.0 }
 0x332   : > { %v3127_v32 = vsel %vm529_vm1, %v13567_v24, 0.0 }
 0x333   : > { %v3064_v42 = vmul.f32 0.01, %v2908_v48  ;;  %vm3032_vm15 = vcmp.gt.f32.partialorder %v2908_v48, 0.0  ;;  %v13580_v8 = vsel %vm3034_vm4, %v2916_v10, %v3066_v0 }
 0x334   : > { %v3132_v31 = vsel %vm529_vm1, %v13580_v8, 0.0 }
 0x335   : > { %v13565_v49 = vsel %vm3032_vm15, %v2908_v48, %v3064_v42 }
 0x336   : > { %v3128_v41 = vsel %vm529_vm1, %v13565_v49, 0.0 }
 0x337   : > { %v3129_v27 = vadd.f32 %v3128_v41, %v3127_v32 }
 0x339   : > { %v3131_v25 = vadd.f32 %v3130_v2, %v3129_v27 }
 0x33b   : > { %v3133_v58 = vadd.f32 %v3132_v31, %v3131_v25 }
 0x342   : > { %v10364_v44 = vpop.f32.mrf.mxu0 }
 0x343   : > { %v2929_v9 = vadd.f32 %v10364_v44, %v13560_v5 }
 0x344   : > { %v2920_v40 = vpop.f32.mrf.mxu0 }
 0x345   : > { %v2921_v63 = vadd.f32 %v13560_v5, %v2920_v40  ;;  %v3069_v56 = vmul.f32 0.01, %v2929_v9  ;;  %vm3037_vm8 = vcmp.gt.f32.partialorder %v2929_v9, 0.0 }
 0x346   : > { %v10365_v23 = vpop.f32.mrf.mxu0 }
 0x347   : > { %v3067_v33 = vmul.f32 0.01, %v2921_v63  ;;  %vm3035_vm5 = vcmp.gt.f32.partialorder %v2921_v63, 0.0  ;;  %v2932_v61 = vadd.f32 %v10365_v23, %v13560_v5  ;;  %v13596_v11 = vsel %vm3037_vm8, %v2929_v9, %v3069_v56 }
 0x348   : > { %v2923_v55 = vpop.f32.mrf.mxu0  ;;  %v3138_v59 = vsel %vm529_vm1, %v13596_v11, 0.0 }
 0x349   : > { %v2924_v30 = vadd.f32 %v13560_v5, %v2923_v55  ;;  %v13583_v26 = vsel %vm3035_vm5, %v2921_v63, %v3067_v33  ;;  %v3070_v12 = vmul.f32 0.01, %v2932_v61  ;;  %vm3038_vm9 = vcmp.gt.f32.partialorder %v2932_v61, 0.0 }
 0x34a   : > { %v3134_v13 = vsel %vm529_vm1, %v13583_v26, 0.0 }
 0x34b   : > { %v3068_v36 = vmul.f32 0.01, %v2924_v30  ;;  %vm3036_vm6 = vcmp.gt.f32.partialorder %v2924_v30, 0.0  ;;  %v3135_v1 = vadd.f32 %v3134_v13, %v3133_v58  ;;  %v13600_v60 = vsel %vm3038_vm9, %v2932_v61, %v3070_v12 }
 0x34c   : > { %v3140_v51 = vsel %vm529_vm1, %v13600_v60, 0.0 }
 0x34d   : > { %v13585_v62 = vsel %vm3036_vm6, %v2924_v30, %v3068_v36 }
 0x34e   : > { %v3136_v15 = vsel %vm529_vm1, %v13585_v62, 0.0 }
 0x34f   : > { %v3137_v52 = vadd.f32 %v3136_v15, %v3135_v1 }
 0x351   : > { %v3139_v54 = vadd.f32 %v3138_v59, %v3137_v52 }
 0x353   : > { %v3141_v7 = vadd.f32 %v3140_v51, %v3139_v54 }
 0x35a   : > { %v10368_v57 = vpop.f32.mrf.mxu0 }
 0x35b   : > { %v2945_v22 = vadd.f32 %v10368_v57, %v13560_v5 }
 0x35c   : > { %v2936_v35 = vpop.f32.mrf.mxu0 }
 0x35d   : > { %v2937_v20 = vadd.f32 %v13560_v5, %v2936_v35  ;;  %v3073_v47 = vmul.f32 0.01, %v2945_v22  ;;  %vm3041_vm12 = vcmp.gt.f32.partialorder %v2945_v22, 0.0 }
 0x35e   : > { %v10369_v19 = vpop.f32.mrf.mxu0 }
 0x35f   : > { %v3071_v28 = vmul.f32 0.01, %v2937_v20  ;;  %vm3039_vm10 = vcmp.gt.f32.partialorder %v2937_v20, 0.0  ;;  %v2948_v46 = vadd.f32 %v10369_v19, %v13560_v5  ;;  %v13616_v38 = vsel %vm3041_vm12, %v2945_v22, %v3073_v47 }
 0x360   : > { %v2939_v6 = vpop.f32.mrf.mxu0  ;;  %v3146_v43 = vsel %vm529_vm1, %v13616_v38, 0.0 }
 0x361   : > { %v2940_v17 = vadd.f32 %v13560_v5, %v2939_v6  ;;  %v13603_v45 = vsel %vm3039_vm10, %v2937_v20, %v3071_v28  ;;  %v3074_v57 = vmul.f32 0.01, %v2948_v46  ;;  %vm3042_vm13 = vcmp.gt.f32.partialorder %v2948_v46, 0.0 }
 0x362   : > { %v3142_v14 = vsel %vm529_vm1, %v13603_v45, 0.0 }
 0x363   : > { %v3072_v39 = vmul.f32 0.01, %v2940_v17  ;;  %vm3040_vm11 = vcmp.gt.f32.partialorder %v2940_v17, 0.0  ;;  %v3143_v48 = vadd.f32 %v3142_v14, %v3141_v7  ;;  %v13620_v10 = vsel %vm3042_vm13, %v2948_v46, %v3074_v57 }
 0x364   : > { %v3148_v0 = vsel %vm529_vm1, %v13620_v10, 0.0 }
 0x365   : > { %v13605_v53 = vsel %vm3040_vm11, %v2940_v17, %v3072_v39 }
 0x366   : > { %v3144_v40 = vsel %vm529_vm1, %v13605_v53, 0.0 }
 0x367   : > { %v3145_v42 = vadd.f32 %v3144_v40, %v3143_v48 }
 0x369   : > { %v3147_v63 = vadd.f32 %v3146_v43, %v3145_v42 }
 0x36b   : > { %v3149_v36 = vadd.f32 %v3148_v0, %v3147_v63 }
 0x372   : > { %v10372_v21 = vpop.f32.mrf.mxu0 }
 0x373   : > { %v2961_v41 = vadd.f32 %v10372_v21, %v13560_v5 }
 0x374   : > { %v2952_v50 = vpop.f32.mrf.mxu0 }
 0x375   : > { %v2953_v44 = vadd.f32 %v13560_v5, %v2952_v50  ;;  %v3077_v6 = vmul.f32 0.01, %v2961_v41  ;;  %vm3045_vm3 = vcmp.gt.f32.partialorder %v2961_v41, 0.0 }
 0x376   : > { %v10373_v29 = vpop.f32.mrf.mxu0 }
 0x377   : > { %v3075_v18 = vmul.f32 0.01, %v2953_v44  ;;  %vm3043_vm15 = vcmp.gt.f32.partialorder %v2953_v44, 0.0  ;;  %v2964_v2 = vadd.f32 %v10373_v29, %v13560_v5  ;;  %v13636_v50 = vsel %vm3045_vm3, %v2961_v41, %v3077_v6 }
 0x378   : > { %v2955_v37 = vpop.f32.mrf.mxu0  ;;  %v3154_v15 = vsel %vm529_vm1, %v13636_v50, 0.0 }
 0x379   : > { %v2956_v55 = vadd.f32 %v13560_v5, %v2955_v37  ;;  %v13623_v19 = vsel %vm3043_vm15, %v2953_v44, %v3075_v18  ;;  %v3078_v56 = vmul.f32 0.01, %v2964_v2  ;;  %vm3046_vm4 = vcmp.gt.f32.partialorder %v2964_v2, 0.0 }
 0x37a   : > { %v3150_v27 = vsel %vm529_vm1, %v13623_v19, 0.0 }
 0x37b   : > { %v3076_v35 = vmul.f32 0.01, %v2956_v55  ;;  %vm3044_vm2 = vcmp.gt.f32.partialorder %v2956_v55, 0.0  ;;  %v3151_v9 = vadd.f32 %v3150_v27, %v3149_v36  ;;  %v13640_v17 = vsel %vm3046_vm4, %v2964_v2, %v3078_v56 }
 0x37c   : > { %v3156_v39 = vsel %vm529_vm1, %v13640_v17, 0.0 }
 0x37d   : > { %v13625_v32 = vsel %vm3044_vm2, %v2956_v55, %v3076_v35 }
 0x37e   : > { %v3152_v21 = vsel %vm529_vm1, %v13625_v32, 0.0 }
 0x37f   : > { %v3153_v58 = vadd.f32 %v3152_v21, %v3151_v9 }
 0x381   : > { %v3155_v29 = vadd.f32 %v3154_v15, %v3153_v58 }
 0x383   : > { %v3157_v22 = vadd.f32 %v3156_v39, %v3155_v29 }
 0x38a   : > { %v10376_v4 = vpop.f32.mrf.mxu0 }
 0x38b   : > { %v2977_v12 = vadd.f32 %v10376_v4, %v13560_v5 }
 0x38c   : > { %v2968_v23 = vpop.f32.mrf.mxu0 }
 0x38d   : > { %v2969_v25 = vadd.f32 %v13560_v5, %v2968_v23  ;;  %v3081_v54 = vmul.f32 0.01, %v2977_v12  ;;  %vm3049_vm8 = vcmp.gt.f32.partialorder %v2977_v12, 0.0 }
 0x38e   : > { %v10377_v16 = vpop.f32.mrf.mxu0 }
 0x38f   : > { %v3079_v61 = vmul.f32 0.01, %v2969_v25  ;;  %vm3047_vm5 = vcmp.gt.f32.partialorder %v2969_v25, 0.0  ;;  %v2980_v51 = vadd.f32 %v10377_v16, %v13560_v5  ;;  %v13656_v46 = vsel %vm3049_vm8, %v2977_v12, %v3081_v54 }
 0x390   : > { %v2971_v30 = vpop.f32.mrf.mxu0  ;;  %v3162_v55 = vsel %vm529_vm1, %v13656_v46, 0.0 }
 0x391   : > { %v2972_v31 = vadd.f32 %v13560_v5, %v2971_v30  ;;  %v13643_v52 = vsel %vm3047_vm5, %v2969_v25, %v3079_v61  ;;  %v3082_v44 = vmul.f32 0.01, %v2980_v51  ;;  %vm3050_vm9 = vcmp.gt.f32.partialorder %v2980_v51, 0.0 }
 0x392   : > { %v3158_v59 = vsel %vm529_vm1, %v13643_v52, 0.0 }
 0x393   : > { %v3080_v20 = vmul.f32 0.01, %v2972_v31  ;;  %vm3048_vm6 = vcmp.gt.f32.partialorder %v2972_v31, 0.0  ;;  %v3159_v47 = vadd.f32 %v3158_v59, %v3157_v22  ;;  %v13660_v57 = vsel %vm3050_vm9, %v2980_v51, %v3082_v44 }
 0x394   : > { %v3164_v43 = vsel %vm529_vm1, %v13660_v57, 0.0 }
 0x395   : > { %v13645_v28 = vsel %vm3048_vm6, %v2972_v31, %v3080_v20 }
 0x396   : > { %v3160_v4 = vsel %vm529_vm1, %v13645_v28, 0.0 }
 0x397   : > { %v3161_v40 = vadd.f32 %v3160_v4, %v3159_v47 }
 0x399   : > { %v3163_v42 = vadd.f32 %v3162_v55, %v3161_v40 }
 0x39b   : > { %v3165_v0 = vadd.f32 %v3164_v43, %v3163_v42 }
 0x3a2   : > { %v10380_v33 = vpop.f32.mrf.mxu0 }
 0x3a3   : > { %v2993_v18 = vadd.f32 %v10380_v33, %v13560_v5 }
 0x3a4   : > { %v2984_v13 = vpop.f32.mrf.mxu0 }
 0x3a5   : > { %v2985_v14 = vadd.f32 %v13560_v5, %v2984_v13  ;;  %v3085_v30 = vmul.f32 0.01, %v2993_v18  ;;  %vm3053_vm12 = vcmp.gt.f32.partialorder %v2993_v18, 0.0 }
 0x3a6   : > { %v10381_v1 = vpop.f32.mrf.mxu0 }
 0x3a7   : > { %v3083_v23 = vmul.f32 0.01, %v2985_v14  ;;  %vm3051_vm10 = vcmp.gt.f32.partialorder %v2985_v14, 0.0  ;;  %v2996_v41 = vadd.f32 %v10381_v1, %v13560_v5  ;;  %v13674_v2 = vsel %vm3053_vm12, %v2993_v18, %v3085_v30 }
 0x3a8   : > { %v2987_v37 = vpop.f32.mrf.mxu0  ;;  %v3170_v13 = vsel %vm529_vm1, %v13674_v2, 0.0 }
 0x3a9   : > { %v2988_v7 = vadd.f32 %v13560_v5, %v2987_v37  ;;  %v13663_v16 = vsel %vm3051_vm10, %v2985_v14, %v3083_v23  ;;  %v3086_v33 = vmul.f32 0.01, %v2996_v41  ;;  %vm3054_vm13 = vcmp.gt.f32.partialorder %v2996_v41, 0.0 }
 0x3aa   : > { %v3166_v63 = vsel %vm529_vm1, %v13663_v16, 0.0  ;;  %vm3283_vm10 = vcmask 1041408  }
 0x3ab   : > { %v3084_v48 = vmul.f32 0.01, %v2988_v7  ;;  %vm3052_vm11 = vcmp.gt.f32.partialorder %v2988_v7, 0.0  ;;  %v3167_v6 = vadd.f32 %v3166_v63, %v3165_v0  ;;  %v13680_v56 = vsel %vm3054_vm13, %v2996_v41, %v3086_v33 }
 0x3ac   : > { %v3172_v59 = vsel %vm529_vm1, %v13680_v56, 0.0 }
 0x3ad   : > { %v13665_v35 = vsel %vm3052_vm11, %v2988_v7, %v3084_v48  ;;  %vm3279_vm11 = vcmask 31744  }
 0x3ae   : > { %v3168_v27 = vsel %vm529_vm1, %v13665_v35, 0.0 }
 0x3af   : > { %v3169_v25 = vadd.f32 %v3168_v27, %v3167_v6 }
 0x3b1   : > { %v3171_v61 = vadd.f32 %v3170_v13, %v3169_v25 }
 0x3b3   : > { %v3173_v22 = vadd.f32 %v3172_v59, %v3171_v61 }
 0x3cb   : > { %v10384_v36 = vpop.f32.mrf.mxu0 }
 0x3cc   : > { %v3009_v9 = vadd.f32 %v10384_v36, %v13560_v5 }
 0x3cd   : > { %v3000_v21 = vpop.f32.mrf.mxu0 }
 0x3ce   : > { %v3001_v31 = vadd.f32 %v13560_v5, %v3000_v21  ;;  %v3089_v29 = vmul.f32 0.01, %v3009_v9  ;;  %vm3057_vm2 = vcmp.gt.f32.partialorder %v3009_v9, 0.0 }
 0x3cf   : > { %v10385_v58 = vpop.f32.mrf.mxu0 }
 0x3d0   : > { %vm3055_vm15 = vcmp.gt.f32.partialorder %v3001_v31, 0.0  ;;  %v3087_v20 = vmul.f32 0.01, %v3001_v31  ;;  %v3012_v15 = vadd.f32 %v10385_v58, %v13560_v5  ;;  %v13690_v47 = vsel %vm3057_vm2, %v3009_v9, %v3089_v29 }
 0x3d1   : > { %v3003_v1 = vpop.f32.mrf.mxu0  ;;  %v3178_v63 = vsel %vm529_vm1, %v13690_v47, 0.0 }
 0x3d2   : > { %v13683_v12 = vsel %vm3055_vm15, %v3001_v31, %v3087_v20  ;;  %v3004_v39 = vadd.f32 %v13560_v5, %v3003_v1  ;;  %v3090_v51 = vmul.f32 0.01, %v3012_v15  ;;  %vm3058_vm4 = vcmp.gt.f32.partialorder %v3012_v15, 0.0 }
 0x3d3   : > { %v3174_v37 = vsel %vm529_vm1, %v13683_v12, 0.0  ;;  %v10388_v54 = vpop.f32.mrf.mxu0 }
 0x3d4   : > { %vm3056_vm3 = vcmp.gt.f32.partialorder %v3004_v39, 0.0  ;;  %v3088_v14 = vmul.f32 0.01, %v3004_v39  ;;  %v3175_v7 = vadd.f32 %v3174_v37, %v3173_v22  ;;  %v3025_v48 = vadd.f32 %v10388_v54, %v13560_v5 }
 0x3d5   : > { %v3016_v4 = vpop.f32.mrf.mxu0  ;;  %v13698_v42 = vsel %vm3058_vm4, %v3012_v15, %v3090_v51 }
 0x3d6   : > { %v13692_v44 = vsel %vm3056_vm3, %v3004_v39, %v3088_v14  ;;  %v3017_v40 = vadd.f32 %v13560_v5, %v3016_v4  ;;  %v3180_v6 = vsel %vm529_vm1, %v13698_v42, 0.0  ;;  %v3093_v33 = vmul.f32 0.01, %v3025_v48 }
 0x3d7   : > { %v3176_v23 = vsel %vm529_vm1, %v13692_v44, 0.0  ;;  %v10389_v55 = vpop.f32.mrf.mxu0  ;;  %vm3061_vm6 = vcmp.gt.f32.partialorder %v3025_v48, 0.0 }
 0x3d8   : > { %v3177_v18 = vadd.f32 %v3176_v23, %v3175_v7  ;;  %vm3059_vm5 = vcmp.gt.f32.partialorder %v3017_v40, 0.0  ;;  %v3091_v43 = vmul.f32 0.01, %v3017_v40  ;;  %v3028_v41 = vadd.f32 %v10389_v55, %v13560_v5  ;;  %v3277_v7 = vld [vmem:[%s16504_s9] sm:$0x3] }
 0x3d9   : > { %v3019_v30 = vpop.f32.mrf.mxu0  ;;  %v13710_v58 = vsel %vm3061_vm6, %v3025_v48, %v3093_v33  ;;  %v3285_v48 = vsel %vm3283_vm10, %v3277_v7, 0  ;;  %v3207_v55 = vld [vmem:[%s16503_s8] sm:$0x1]  ;;  %v12186_v33 = vld [vmem:[%s16561_s1 + $0x38] sm:$0xff]  }
 0x3da   : > { %v3179_v0 = vadd.f32 %v3178_v63, %v3177_v18  ;;  %v13703_v27 = vsel %vm3059_vm5, %v3017_v40, %v3091_v43  ;;  %v3020_v36 = vadd.f32 %v13560_v5, %v3019_v30  ;;  %v3094_v9 = vmul.f32 0.01, %v3028_v41 }
 0x3db   : > { %v3182_v21 = vsel %vm529_vm1, %v13703_v27, 0.0  ;;  %vm3062_vm9 = vcmp.gt.f32.partialorder %v3028_v41, 0.0  ;;  %v3186_v1 = vsel %vm529_vm1, %v13710_v58, 0.0 }
 0x3dc   : > { %v3181_v25 = vadd.f32 %v3180_v6, %v3179_v0  ;;  %vm3060_vm8 = vcmp.gt.f32.partialorder %v3020_v36, 0.0  ;;  %v3092_v31 = vmul.f32 0.01, %v3020_v36  ;;  %v13716_v15 = vsel %vm3062_vm9, %v3028_v41, %v3094_v9  ;;  %v3278_v9 = vld [vmem:[%s16505_s10] sm:$0x1] }
 0x3dd   : > { %v3188_v39 = vsel %vm529_vm1, %v13716_v15, 0.0 }
 0x3de   : > { %v3183_v13 = vadd.f32 %v3182_v21, %v3181_v25  ;;  %v13712_v61 = vsel %vm3060_vm8, %v3020_v36, %v3092_v31  ;;  %v12187_v36 = vld [vmem:[%s16561_s1 + $0x30] sm:$0xff]   ;;  %v12188_v25 = vld [vmem:[%s16561_s1 + $0x28] sm:$0xff]   ;;  %v12189_v21 = vld [vmem:[%s16561_s1 + $0x20] sm:$0xff]  }
 0x3df   : > { %v3184_v20 = vsel %vm529_vm1, %v13712_v61, 0.0 }
 0x3e0   : > { %v3185_v5 = vadd.f32 %v3184_v20, %v3183_v13 }
 0x3e2   : > { %v3187_v29 = vadd.f32 %v3186_v1, %v3185_v5 }
 0x3e4   : > { %v3189_v59 = vadd.f32 %v3188_v39, %v3187_v29 }
 0x3e6   : > { %v3190_v37 = vrot.slane %v3189_v59, 4 }
 0x3e8   : > { %v3191_v54 = vadd.f32 %v3190_v37, %v3189_v59  ;;  %v3333_v37 = vlaneseq }
 0x3ea   : > { %v3192_v22 = vrot.slane %v3191_v54, 2 }
 0x3ec   : > { %v3193_v51 = vadd.f32 %v3192_v22, %v3191_v54  ;;  %v3334_v54 = vshrl.u32 %v3333_v37, 7 }
 0x3ee   : > { %v3194_v14 = vrot.slane %v3193_v51, 1  ;;  %v13748_v22 = vsub.s32 0, %v3334_v54 }
 0x3f0   : > { %v3195_v4 = vadd.f32 %v3194_v14, %v3193_v51 }
 0x3f2   : > { %v3197_v40 = vmul.f32 0.00390625, %v3195_v4 }
 0x3f4   : > { %v3198_v23 = vpack.c.bf16 %v3197_v40, %v3197_v40 }
 0x3f6   : > { %10399 = vmatmul.mubr.msk.bf16.vlgmr.msra.gmra.mxu1 %vm529_vm1, %v3198_v23 }
 0x3f7   : > { %10403 = vmatpush3.bf16.msra.mxu1 %v3285_v48  ;;  %10404 = vmatprep.mubr.msk.bf16.mxu1 %vm12359_vm14, %v16513_v3 }
 0x3f8   : > { %10408 = vmatprep.subr.bf16.mxu1 %v12186_v33 }
 0x4b6   : > { %v3269_v18 = vpop.f32.mrf.mxu1 }
 0x4b7   : > { %v3270_v43 = vadd.f32 %v3269_v18, %v3207_v55  ;;  %v12257_v18 = vld [vmem:[%s12485_s29] sm:$0xff] }
 0x4b8   : > { %v10400_v63 = vpop.f32.mrf.mxu1 }
 0x4b9   : > { %v3275_v41 = vmax.f32 %v3270_v43, 0.0 }
 0x4ba   : > { %v3272_v30 = vpop.f32.mrf.mxu1 }
 0x4bb   : > { %v3276_v0 = vpack.c.bf16 %v3275_v41, %v3275_v41  ;;  %v12259_v41 = vld [vmem:[%s12485_s29 + $0x10] sm:$0xff]  ;;  %v12260_v30 = vld [vmem:[%s12485_s29 + $0x18] sm:$0xff] }
 0x4bc   : > { %v10401_v6 = vpop.f32.mrf.mxu1 }
 0x4bd   : > { %10405 = vmatmul.mubr.msk.bf16.vlgmr.msra.gmra.mxu1 %vm3279_vm11, %v3276_v0 }
 0x4be   : > { %10409 = vmatpush3.bf16.msra.mxu1 %v12186_v33 }
 0x4bf   : > { %10410 = vmatprep.subr.bf16.mxu1 %v12187_v36 }
 0x4c2   : > { %10411 = vmatpush3.bf16.msra.mxu1 %v12187_v36 }
 0x4c3   : > { %10412 = vmatprep.subr.bf16.mxu1 %v12188_v25 }
 0x4c6   : > { %10413 = vmatpush3.bf16.msra.mxu1 %v12188_v25 }
 0x4c7   : > { %10414 = vmatprep.subr.bf16.mxu1 %v12189_v21 }
 0x4ca   : > { %10415 = vmatpush3.bf16.msra.mxu1 %v12189_v21 }
 0x57d   : > { %v3321_v31 = vpop.f32.mrf.mxu1 }
 0x57e   : > { %v3322_v13 = vadd.f32 %v3321_v31, %v3278_v9 }
 0x57f   : > { %v10406_v20 = vpop.f32.mrf.mxu1 }
 0x580   : > { %v9457_v5 = vmul.f32 -1.442695, %v3322_v13  ;;  %v12263_v13 = vld [vmem:[%s12485_s29 + $0x30] sm:$0xff] }
 0x581   : > { %v3324_v1 = vpop.f32.mrf.mxu1 }
 0x582   : > { %12242 = vpow2.f32 %v9457_v5  ;;  %v12266_v5 = vld [vmem:[%s12485_s29 + $0x48] sm:$0xff] }
 0x583   : > { %v10407_v29 = vpop.f32.mrf.mxu1 }
 0x58f   : > { %v12243_v39 = vpop.eup %12242 }
 0x590   : > { %v3330_v59 = vadd.f32 1.0, %v12243_v39 }
 0x592   : > { %12244 = vrcp.f32 %v3330_v59 }
 0x59f   : > { %v12245_v51 = vpop.eup %12244 }
 0x5a0   : > { %v13751_v14 = vrot.slane %v12245_v51, %v13748_v22 }
 0x5a2   : > { %v3337_v4 = vmul.f32 %v13751_v14, %v13567_v24  ;;  %v3338_v7 = vmul.f32 %v13751_v14, %v13565_v49  ;;  %v3339_v40 = vmul.f32 %v13751_v14, %v13576_v34  ;;  %v3340_v23 = vmul.f32 %v13751_v14, %v13580_v8  ;;  %v12258_v24 = vld [vmem:[%s12485_s29 + $0x8] sm:$0xff]  ;;  %v12261_v8 = vld [vmem:[%s12485_s29 + $0x20] sm:$0xff] }
 0x5a3   : > { %v3341_v48 = vmul.f32 %v13751_v14, %v13583_v26  ;;  %v3342_v55 = vmul.f32 %v13751_v14, %v13585_v62  ;;  %v12262_v26 = vld [vmem:[%s12485_s29 + $0x28] sm:$0xff]  ;;  %v3343_v36 = vmul.f32 %v13751_v14, %v13596_v11  ;;  %v3344_v25 = vmul.f32 %v13751_v14, %v13600_v60  ;;  %v12264_v60 = vld [vmem:[%s12485_s29 + $0x38] sm:$0xff] }
 0x5a4   : > { %v13766_v43 = vadd.f32 %v12257_v18, %v3337_v4  ;;  %v13769_v63 = vadd.f32 %v12258_v24, %v3338_v7  ;;  %v13772_v49 = vadd.f32 %v12259_v41, %v3339_v40  ;;  %v13775_v34 = vadd.f32 %v12260_v30, %v3340_v23  ;;  %v12269_v40 = vld [vmem:[%s12485_s29 + $0x60] sm:$0xff] }
 0x5a5   : > { %v13778_v0 = vadd.f32 %v12261_v8, %v3341_v48  ;;  %v13781_v62 = vadd.f32 %v12262_v26, %v3342_v55  ;;  %v3345_v21 = vmul.f32 %v13751_v14, %v13603_v45  ;;  %v3346_v9 = vmul.f32 %v13751_v14, %v13605_v53  ;;  %v12265_v45 = vld [vmem:[%s12485_s29 + $0x40] sm:$0xff] }
 0x5a6   : > { %v3402_v6 = vpack.c.bf16 %v13775_v34, %v13772_v49  ;;  %v3401_v33 = vpack.c.bf16 %v13769_v63, %v13766_v43  ;;  %v13801_v11 = vadd.f32 %v12263_v13, %v3343_v36  ;;  %v13804_v20 = vadd.f32 %v12264_v60, %v3344_v25 }
 0x5a7   : > { %v3403_v31 = vpack.c.bf16 %v13781_v62, %v13778_v0  ;;  %v13807_v53 = vadd.f32 %v12265_v45, %v3345_v21  ;;  %v13810_v1 = vadd.f32 %v12266_v5, %v3346_v9  ;;  %v3347_v29 = vmul.f32 %v13751_v14, %v13616_v38  ;;  %v12267_v38 = vld [vmem:[%s12485_s29 + $0x50] sm:$0xff]  ;;  %v12277_v5 = vld [vmem:[%s12485_s29 + $0xa0] sm:$0xff] }
 0x5a8   : > { %10416 = vmatprep.mubr.msk.bf16.mxu1 %vm529_vm1, %v3401_v33  ;;  %v3348_v39 = vmul.f32 %v13751_v14, %v13620_v10  ;;  %v3404_v59 = vpack.c.bf16 %v13804_v20, %v13801_v11  ;;  %v3349_v37 = vmul.f32 %v13751_v14, %v13623_v19  ;;  %v3350_v54 = vmul.f32 %v13751_v14, %v13625_v32  ;;  %v12268_v10 = vld [vmem:[%s12485_s29 + $0x58] sm:$0xff]  ;;  %v12270_v32 = vld [vmem:[%s12485_s29 + $0x68] sm:$0xff] }
 0x5a9   : > { %10417 = vmatmul.mubr.msk.bf16.vlgmr.msra.gmra.mxu1 %vm529_vm1, %v3402_v6  ;;  %v3405_v51 = vpack.c.bf16 %v13810_v1, %v13807_v53  ;;  %v13827_v4 = vadd.f32 %v12267_v38, %v3347_v29  ;;  %v3351_v48 = vmul.f32 %v13751_v14, %v13636_v50  ;;  %v3352_v55 = vmul.f32 %v13751_v14, %v13640_v17  ;;  %v12271_v50 = vld [vmem:[%s12485_s29 + $0x70] sm:$0xff]  ;;  %v12272_v17 = vld [vmem:[%s12485_s29 + $0x78] sm:$0xff]  ;;  %v12273_v6 = vld [vmem:[%s12485_s29 + $0x80] sm:$0xff] }
 0x5aa   : > { %10420 = vmatprep.mubr.msk.bf16.mxu1 %vm529_vm1, %v3403_v31  ;;  %v13830_v7 = vadd.f32 %v12268_v10, %v3348_v39  ;;  %v13833_v19 = vadd.f32 %v12269_v40, %v3349_v37  ;;  %v13836_v23 = vadd.f32 %v12270_v32, %v3350_v54  ;;  %v3353_v24 = vmul.f32 %v13751_v14, %v13643_v52  ;;  %v12281_v32 = vld [vmem:[%s12485_s29 + $0xc0] sm:$0xff] }
 0x5ab   : > { %v3354_v41 = vmul.f32 %v13751_v14, %v13645_v28  ;;  %v13853_v8 = vadd.f32 %v12271_v50, %v3351_v48  ;;  %v13856_v26 = vadd.f32 %v12272_v17, %v3352_v55  ;;  %v12274_v28 = vld [vmem:[%s12485_s29 + $0x88] sm:$0xff]  ;;  %v3355_v36 = vmul.f32 %v13751_v14, %v13656_v46  ;;  %v12275_v46 = vld [vmem:[%s12485_s29 + $0x90] sm:$0xff]  ;;  %v12284_v17 = vld [vmem:[%s12485_s29 + $0xd8] sm:$0xff] }
 0x5ac   : > { %16565 = vst [vmem:[#allocation7_spill] sm:$0xff] %v13830_v7  ;;  %16566 = vst [vmem:[#allocation8_spill] sm:$0xff] %v13833_v19  ;;  %v3406_v18 = vpack.c.bf16 %v13830_v7, %v13827_v4  ;;  %v3407_v30 = vpack.c.bf16 %v13836_v23, %v13833_v19  ;;  %v13859_v52 = vadd.f32 %v12273_v6, %v3353_v24 }
 0x5ad   : > { %16567 = vst [vmem:[#allocation9_spill] sm:$0xff] %v13836_v23  ;;  %16568 = vst [vmem:[#allocation10_spill] sm:$0xff] %v13853_v8  ;;  %v13862_v33 = vadd.f32 %v12274_v28, %v3354_v41  ;;  %v3356_v25 = vmul.f32 %v13751_v14, %v13660_v57  ;;  %v3408_v21 = vpack.c.bf16 %v13856_v26, %v13853_v8  ;;  %v12276_v57 = vld [vmem:[%s12485_s29 + $0x98] sm:$0xff]  ;;  %v12285_v28 = vld [vmem:[%s12485_s29 + $0xe0] sm:$0xff] }
 0x5ae   : > { %16569 = vst [vmem:[#allocation11_spill] sm:$0xff] %v13856_v26  ;;  %16570 = vst [vmem:[#allocation12_spill] sm:$0xff] %v13859_v52  ;;  %v3357_v9 = vmul.f32 %v13751_v14, %v13663_v16  ;;  %v3358_v31 = vmul.f32 %v13751_v14, %v13665_v35  ;;  %v13879_v60 = vadd.f32 %v12275_v46, %v3355_v36  ;;  %v12278_v35 = vld [vmem:[%s12485_s29 + $0xa8] sm:$0xff] }
 0x5af   : > { %16571 = vst [vmem:[#allocation13_spill] sm:$0xff] %v13862_v33  ;;  %v3409_v13 = vpack.c.bf16 %v13862_v33, %v13859_v52  ;;  %v13882_v45 = vadd.f32 %v12276_v57, %v3356_v25  ;;  %v3359_v39 = vmul.f32 %v13751_v14, %v13674_v2  ;;  %v3361_v54 = vmul.f32 %v13751_v14, %v13683_v12  ;;  %v12279_v2 = vld [vmem:[%s12485_s29 + $0xb0] sm:$0xff]  ;;  %v12286_v36 = vld [vmem:[%s12485_s29 + $0xe8] sm:$0xff]  ;;  %v12288_v57 = vld [vmem:[%s12485_s29 + $0xf8] sm:$0xff] }
 0x5b0   : > { %16572 = vst [vmem:[#allocation14_spill] sm:$0xff] %v13879_v60  ;;  %v13885_v16 = vadd.f32 %v12277_v5, %v3357_v9  ;;  %v13888_v29 = vadd.f32 %v12278_v35, %v3358_v31  ;;  %v3363_v55 = vmul.f32 %v13751_v14, %v13690_v47  ;;  %v3365_v41 = vmul.f32 %v13751_v14, %v13703_v27  ;;  %v12283_v47 = vld [vmem:[%s12485_s29 + $0xd0] sm:$0xff] }
 0x5b1   : > { %10421 = vmatmul.mubr.msk.bf16.gmra.mxu1 %vm529_vm1, %v3404_v59  ;;  %16573 = vst [vmem:[#allocation15_spill] sm:$0xff] %v13882_v45  ;;  %v3360_v59 = vmul.f32 %v13751_v14, %v13680_v56  ;;  %v3410_v37 = vpack.c.bf16 %v13882_v45, %v13879_v60  ;;  %v13905_v10 = vadd.f32 %v12279_v2, %v3359_v39  ;;  %v12280_v56 = vld [vmem:[%s12485_s29 + $0xb8] sm:$0xff]  ;;  %v3859_v39 = vld [vmem:[#allocation2 + $0x2] sm:$0xff] }
 0x5b2   : > { %10424 = vmatprep.mubr.msk.bf16.mxu1 %vm529_vm1, %v3405_v51  ;;  %16574 = vst [vmem:[#allocation16_spill] sm:$0xff] %v13885_v16  ;;  %16575 = vst [vmem:[#allocation17_spill] sm:$0xff] %v13888_v29  ;;  %v3362_v51 = vmul.f32 %v13751_v14, %v13692_v44  ;;  %v3411_v38 = vpack.c.bf16 %v13888_v29, %v13885_v16  ;;  %v13911_v12 = vadd.f32 %v12281_v32, %v3361_v54  ;;  %v12282_v44 = vld [vmem:[%s12485_s29 + $0xc8] sm:$0xff]  ;;  %v12190_v54 = vld [vmem:[%s16498_s3 + $0x118] sm:$0xff]  }
 0x5b3   : > { %16576 = vst [vmem:[#allocation18_spill] sm:$0xff] %v13905_v10  ;;  %v13908_v40 = vadd.f32 %v12280_v56, %v3360_v59  ;;  %v13937_v27 = vadd.f32 %v12285_v28, %v3365_v41  ;;  %v3367_v25 = vmul.f32 %v13751_v14, %v13710_v58  ;;  %v3860_v59 = vld [vmem:[#allocation2 + $0xa] sm:$0xff]  ;;  %10448 = vmatprep.subr.bf16.mxu1 %v12190_v54  ;;  %v12194_v56 = vld [vmem:[%s16498_s3 + $0x100] sm:$0xff]   ;;  %v12197_v41 = vld [vmem:[%s16498_s3 + $0xb8] sm:$0xff]  }
 0x5b4   : > { %16578 = vst [vmem:[#allocation20_spill] sm:$0xff] %v13911_v12  ;;  %v13914_v48 = vadd.f32 %v12282_v44, %v3362_v51  ;;  %10449 = vmatpush3.bf16.msra.mxu1 %v12190_v54  ;;  %v12191_v51 = vld [vmem:[%s16498_s3 + $0x110] sm:$0xff]   ;;  %v12193_v2 = vld [vmem:[%s16498_s3 + $0xc8] sm:$0xff]   ;;  %v13981_v32 = vld [vmem:[%s16497_s2 + $0x1] ss:$0 sm:$0xff] }
 0x5b5   : > { %16577 = vst [vmem:[#allocation19_spill] sm:$0xff] %v13908_v40  ;;  %v3412_v24 = vpack.c.bf16 %v13908_v40, %v13905_v10  ;;  %16582 = vst [vmem:[#allocation24_spill] sm:$0xff] %v13937_v27  ;;  %10450 = vmatprep.subr.bf16.mxu1 %v12191_v51  ;;  %v12195_v44 = vld [vmem:[%s16498_s3 + $0xc0] sm:$0xff]  }
 0x5b6   : > { %16579 = vst [vmem:[#allocation21_spill] sm:$0xff] %v13914_v48  ;;  %v3413_v50 = vpack.c.bf16 %v13914_v48, %v13911_v12 }
 0x5b8   : > { %10451 = vmatpush3.bf16.msra.mxu1 %v12191_v51 }
 0x5b9   : > { %10425 = vmatmul.mubr.msk.bf16.gmra.mxu1 %vm529_vm1, %v3406_v18  ;;  %v3364_v18 = vmul.f32 %v13751_v14, %v13698_v42  ;;  %v13931_v42 = vadd.f32 %v12283_v47, %v3363_v55 }
 0x5ba   : > { %10428 = vmatprep.mubr.msk.bf16.mxu1 %vm529_vm1, %v3407_v30  ;;  %v3366_v30 = vmul.f32 %v13751_v14, %v13712_v61 }
 0x5bb   : > { %16580 = vst [vmem:[#allocation22_spill] sm:$0xff] %v13931_v42  ;;  %v13934_v6 = vadd.f32 %v12284_v17, %v3364_v18 }
 0x5bc   : > { %v13940_v61 = vadd.f32 %v12286_v36, %v3366_v30 }
 0x5bd   : > { %16581 = vst [vmem:[#allocation23_spill] sm:$0xff] %v13934_v6  ;;  %v3414_v9 = vpack.c.bf16 %v13934_v6, %v13931_v42 }
 0x5be   : > { %16583 = vst [vmem:[#allocation25_spill] sm:$0xff] %v13940_v61  ;;  %v3415_v31 = vpack.c.bf16 %v13940_v61, %v13937_v27 }
 0x5c1   : > { %10429 = vmatmul.mubr.msk.bf16.gmra.mxu1 %vm529_vm1, %v3408_v21  ;;  %v3368_v21 = vmul.f32 %v13751_v14, %v13716_v15  ;;  %v3827_v15 = vld [vmem:[#allocation2 + $0x1] sm:$0xff]  ;;  %v3828_v14 = vld [vmem:[#allocation2 + $0x9] sm:$0xff] }
 0x5c2   : > { %10432 = vmatprep.mubr.msk.bf16.mxu1 %vm529_vm1, %v3409_v13  ;;  %v12287_v13 = vld [vmem:[%s12485_s29 + $0xf0] sm:$0xff]  ;;  %v11198_v35 = vpack.i.bf16 %v3828_v14, %v3827_v15  ;;  %s16586_s29 = smov 96  }
 0x5c3   : > { %v13953_v46 = vadd.f32 %v12287_v13, %v3367_v25  ;;  %v13956_v5 = vadd.f32 %v12288_v57, %v3368_v21  ;;  %v12199_v15 = vld [vmem:[%s16498_s3 + $0xb0] sm:$0xff]  }
 0x5c4   : > { %11199 = vrot.lane.b32.xlu1 %v11198_v35, %s16564_s22 }
 0x5c5   : > { %16584 = vst [vmem:[#allocation26_spill] sm:$0xff] %v13953_v46  ;;  %16585 = vst [vmem:[#allocation27_spill] sm:$0xff] %v13956_v5  ;;  %v3416_v58 = vpack.c.bf16 %v13956_v5, %v13953_v46 }
 0x5c9   : > { %10433 = vmatmul.mubr.msk.bf16.gmra.mxu1 %vm529_vm1, %v3410_v37  ;;  %v11203_v37 = vpack.i.bf16 %v3860_v59, %v3859_v39 }
 0x5ca   : > { %10436 = vmatprep.mubr.msk.bf16.mxu1 %vm529_vm1, %v3411_v38  ;;  %v12192_v38 = vld [vmem:[%s16498_s3 + $0x108] sm:$0xff]  }
 0x5cb   : > { %11204 = vrot.lane.b32.xlu1 %v11203_v37, %s16563_s15  ;;  %9948 = vmatprep.subr.bf16.mxu0 %v12192_v38 }
 0x5cc   : > { %9949 = vmatpush3.bf16.msra.mxu0 %v12193_v2  ;;  %v12200_v2 = vld [vmem:[%s16498_s3 + $0xe8] sm:$0xff]  }
 0x5cd   : > { %9950 = vmatprep.subr.bf16.mxu0 %v12194_v56 }
 0x5d0   : > { %9951 = vmatpush3.bf16.msra.mxu0 %v12195_v44 }
 0x5d1   : > { %10437 = vmatmul.mubr.msk.bf16.gmra.mxu1 %vm529_vm1, %v3412_v24  ;;  %v12196_v24 = vld [vmem:[%s16498_s3 + $0xf8] sm:$0xff]  }
 0x5d2   : > { %10440 = vmatprep.mubr.msk.bf16.mxu1 %vm529_vm1, %v3413_v50  ;;  %9952 = vmatprep.subr.bf16.mxu0 %v12196_v24 }
 0x5d4   : > { %9953 = vmatpush3.bf16.msra.mxu0 %v12197_v41 }
 0x5d9   : > { %10441 = vmatmul.mubr.msk.bf16.gmra.mxu1 %vm529_vm1, %v3414_v9 }
 0x5da   : > { %10444 = vmatprep.mubr.msk.bf16.mxu1 %vm529_vm1, %v3415_v31 }
 0x5e1   : > { %10445 = vmatmul.mubr.msk.bf16.gmra.mxu1 %vm529_vm1, %v3416_v58  ;;  %v12198_v58 = vld [vmem:[%s16498_s3 + $0xf0] sm:$0xff]  }
 0x5e2   : > { %9954 = vmatprep.subr.bf16.mxu0 %v12198_v58 }
 0x5e3   : > { %9955 = vmatpush3.bf16.msra.mxu0 %v12199_v15 }
 0x5e4   : > { %9956 = vmatprep.subr.bf16.mxu0 %v12200_v2 }
 0x669   : > { %v10418_v55 = vpop.f32.mrf.mxu1 }
 0x66a   : > { %v3549_v18 = vadd.f32 %v10418_v55, %v13981_v32 }
 0x66b   : > { %v3540_v30 = vpop.f32.mrf.mxu1 }
 0x66c   : > { %vm3669_vm12 = vcmp.gt.f32.partialorder %v3549_v18, 0.0  ;;  %v3701_v50 = vmul.f32 0.01, %v3549_v18  ;;  %v3541_v47 = vadd.f32 %v13981_v32, %v3540_v30 }
 0x66d   : > { %v10419_v17 = vpop.f32.mrf.mxu1 }
 0x66e   : > { %v3733_v28 = vsel %vm3669_vm12, %v3549_v18, %v3701_v50  ;;  %vm3667_vm13 = vcmp.gt.f32.partialorder %v3541_v47, 0.0  ;;  %v3699_v36 = vmul.f32 0.01, %v3541_v47  ;;  %v3552_v25 = vadd.f32 %v10419_v17, %v13981_v32  ;;  %v12201_v18 = vld [vmem:[%s16498_s3 + $0xa8] sm:$0xff]  }
 0x66f   : > { %3765 = vst.msk [vmem:[#allocation2 + $0x31] sm:$0xff] %vm386_vm0, %v3733_v28  ;;  %v3543_v21 = vpop.f32.mrf.mxu1  ;;  %9957 = vmatpush3.bf16.msra.mxu0 %v12201_v18  ;;  %v12202_v28 = vld [vmem:[%s16498_s3 + $0xe0] sm:$0xff]  }
 0x670   : > { %v3731_v9 = vsel %vm3667_vm13, %v3541_v47, %v3699_v36  ;;  %vm3670_vm15 = vcmp.gt.f32.partialorder %v3552_v25, 0.0  ;;  %v3702_v31 = vmul.f32 0.01, %v3552_v25  ;;  %v3544_v13 = vadd.f32 %v13981_v32, %v3543_v21  ;;  %9958 = vmatprep.subr.bf16.mxu0 %v12202_v28  ;;  %v12206_v28 = vld [vmem:[%s16498_s3 + $0xd0] sm:$0xff]  }
 0x671   : > { %3763 = vst.msk [vmem:[#allocation2 + $0x19] sm:$0xff] %vm386_vm0, %v3731_v9  ;;  %v10422_v57 = vpop.f32.mrf.mxu1 }
 0x672   : > { %v3734_v14 = vsel %vm3670_vm15, %v3552_v25, %v3702_v31  ;;  %vm3668_vm2 = vcmp.gt.f32.partialorder %v3544_v13, 0.0  ;;  %v3700_v35 = vmul.f32 0.01, %v3544_v13  ;;  %v3565_v39 = vadd.f32 %v10422_v57, %v13981_v32 }
 0x673   : > { %3766 = vst.msk [vmem:[#allocation2 + $0x39] sm:$0xff] %vm386_vm0, %v3734_v14  ;;  %v3556_v59 = vpop.f32.mrf.mxu1  ;;  %v12203_v14 = vld [vmem:[%s16498_s3 + $0xa0] sm:$0xff]  }
 0x674   : > { %v3732_v37 = vsel %vm3668_vm2, %v3544_v13, %v3700_v35  ;;  %vm3673_vm3 = vcmp.gt.f32.partialorder %v3565_v39, 0.0  ;;  %v3705_v54 = vmul.f32 0.01, %v3565_v39  ;;  %v3557_v51 = vadd.f32 %v13981_v32, %v3556_v59  ;;  %9959 = vmatpush3.bf16.msra.mxu0 %v12203_v14 }
 0x675   : > { %3764 = vst.msk [vmem:[#allocation2 + $0x21] sm:$0xff] %vm386_vm0, %v3732_v37  ;;  %v10423_v38 = vpop.f32.mrf.mxu1 }
 0x676   : > { %v3737_v56 = vsel %vm3673_vm3, %v3565_v39, %v3705_v54  ;;  %vm3671_vm4 = vcmp.gt.f32.partialorder %v3557_v51, 0.0  ;;  %v3703_v44 = vmul.f32 0.01, %v3557_v51  ;;  %v3568_v55 = vadd.f32 %v10423_v38, %v13981_v32  ;;  %v14018_v17 = vld [vmem:[#allocation2 + $0x30] sm:$0xff] }
 0x677   : > { %3769 = vst.msk [vmem:[#allocation2 + $0x61] sm:$0xff] %vm386_vm0, %v3737_v56  ;;  %v3559_v24 = vpop.f32.mrf.mxu1 }
 0x678   : > { %v3735_v41 = vsel %vm3671_vm4, %v3557_v51, %v3703_v44  ;;  %vm3674_vm5 = vcmp.gt.f32.partialorder %v3568_v55, 0.0  ;;  %v3706_v30 = vmul.f32 0.01, %v3568_v55  ;;  %v3560_v50 = vadd.f32 %v13981_v32, %v3559_v24  ;;  %v12204_v51 = vld [vmem:[%s16498_s3 + $0xd8] sm:$0xff]  }
 0x679   : > { %3767 = vst.msk [vmem:[#allocation2 + $0x49] sm:$0xff] %vm386_vm0, %v3735_v41  ;;  %v10426_v47 = vpop.f32.mrf.mxu1  ;;  %v14043_v44 = vld [vmem:[#allocation2 + $0x31] sm:$0xff]  ;;  %9960 = vmatprep.subr.bf16.mxu0 %v12204_v51 }
 0x67a   : > { %v3738_v36 = vsel %vm3674_vm5, %v3568_v55, %v3706_v30  ;;  %vm3672_vm6 = vcmp.gt.f32.partialorder %v3560_v50, 0.0  ;;  %v3704_v25 = vmul.f32 0.01, %v3560_v50  ;;  %v3581_v21 = vadd.f32 %v10426_v47, %v13981_v32  ;;  %v4051_v9 = vld [vmem:[#allocation2 + $0x32] sm:$0xff]  ;;  %v4052_v31 = vld [vmem:[#allocation2 + $0x3a] sm:$0xff] }
 0x67b   : > { %v14024_v13 = vld [vmem:[#allocation2 + $0x38] sm:$0xff]  ;;  %3770 = vst.msk [vmem:[#allocation2 + $0x69] sm:$0xff] %vm386_vm0, %v3738_v36  ;;  %v3572_v57 = vpop.f32.mrf.mxu1  ;;  %v5045_v58 = vpack.c.bf16 %v4052_v31, %v4051_v9  ;;  %v11218_v14 = vpack.i.bf16 %v4052_v31, %v4051_v9 }
 0x67c   : > { %v11208_v15 = vpack.i.bf16 %v14024_v13, %v14018_v17  ;;  %v3736_v35 = vsel %vm3672_vm6, %v3560_v50, %v3704_v25  ;;  %vm3677_vm8 = vcmp.gt.f32.partialorder %v3581_v21, 0.0  ;;  %v3709_v39 = vmul.f32 0.01, %v3581_v21  ;;  %v14033_v37 = vld [vmem:[#allocation2 + $0x39] sm:$0xff] }
 0x67d   : > { %v3573_v59 = vadd.f32 %v13981_v32, %v3572_v57  ;;  %3768 = vst.msk [vmem:[#allocation2 + $0x51] sm:$0xff] %vm386_vm0, %v3736_v35  ;;  %10452 = vmatprep.mubr.msk.bf16.mxu1 %vm386_vm0, %v5045_v58  ;;  %v10427_v54 = vpop.f32.mrf.mxu1  ;;  %v12205_v55 = vld [vmem:[%s16498_s3 + $0x98] sm:$0xff]   ;;  %v11213_v24 = vpack.i.bf16 %v14033_v37, %v14043_v44 }
 0x67e   : > { %11209 = vrot.lane.b32.xlu0 %v11208_v15, %s16563_s15  ;;  %v3741_v38 = vsel %vm3677_vm8, %v3581_v21, %v3709_v39  ;;  %11224 = vrot.lane.b32.xlu1 %v11208_v15, %s16586_s29  ;;  %v3584_v56 = vadd.f32 %v10427_v54, %v13981_v32  ;;  %v3955_v35 = vld [vmem:[#allocation2 + $0x1a] sm:$0xff]  ;;  %v3956_v39 = vld [vmem:[#allocation2 + $0x22] sm:$0xff] }
 0x67f   : > { %vm3675_vm9 = vcmp.gt.f32.partialorder %v3573_v59, 0.0  ;;  %v3707_v2 = vmul.f32 0.01, %v3573_v59  ;;  %3773 = vst.msk [vmem:[#allocation2 + $0x91] sm:$0xff] %vm386_vm0, %v3741_v38  ;;  %v3575_v18 = vpop.f32.mrf.mxu1  ;;  %9961 = vmatpush3.bf16.msra.mxu0 %v12205_v55  ;;  %v14072_v55 = vld [vmem:[#allocation2 + $0x20] sm:$0xff] }
 0x680   : > { %vm3678_vm12 = vcmp.gt.f32.partialorder %v3584_v56, 0.0  ;;  %v3710_v30 = vmul.f32 0.01, %v3584_v56  ;;  %v3576_v50 = vadd.f32 %v13981_v32, %v3575_v18  ;;  %9962 = vmatprep.subr.bf16.mxu0 %v12206_v28  ;;  %v11238_v28 = vpack.i.bf16 %v3956_v39, %v3955_v35  ;;  %v14095_v35 = vld [vmem:[#allocation2 + $0x19] sm:$0xff] }
 0x681   : > { %v3739_v41 = vsel %vm3675_vm9, %v3573_v59, %v3707_v2  ;;  %v10430_v47 = vpop.f32.mrf.mxu1  ;;  %v12207_v59 = vld [vmem:[%s16498_s3 + $0x90] sm:$0xff]  }
 0x682   : > { %3771 = vst.msk [vmem:[#allocation2 + $0x79] sm:$0xff] %vm386_vm0, %v3739_v41  ;;  %11214 = vrot.lane.b32.xlu0 %v11213_v24, %s16586_s29  ;;  %v3742_v36 = vsel %vm3678_vm12, %v3584_v56, %v3710_v30  ;;  %vm3676_vm13 = vcmp.gt.f32.partialorder %v3576_v50, 0.0  ;;  %v3708_v25 = vmul.f32 0.01, %v3576_v50  ;;  %11229 = vrot.lane.b32.xlu1 %v11213_v24, %s16564_s22  ;;  %v3597_v21 = vadd.f32 %v10430_v47, %v13981_v32  ;;  %v14059_v57 = vld [vmem:[#allocation2 + $0x62] sm:$0xff]  ;;  %v14061_v58 = vld [vmem:[#allocation2 + $0x6a] sm:$0xff] }
 0x683   : > { %3774 = vst.msk [vmem:[#allocation2 + $0x99] sm:$0xff] %vm386_vm0, %v3742_v36  ;;  %v3588_v15 = vpop.f32.mrf.mxu1  ;;  %v5051_v18 = vpack.c.bf16 %v14061_v58, %v14059_v57  ;;  %9963 = vmatpush3.bf16.msra.mxu0 %v12207_v59  ;;  %v14091_v59 = vld [vmem:[#allocation2 + $0x21] sm:$0xff] }
 0x684   : > { %v3740_v54 = vsel %vm3676_vm13, %v3576_v50, %v3708_v25  ;;  %vm3681_vm15 = vcmp.gt.f32.partialorder %v3597_v21, 0.0  ;;  %v3713_v51 = vmul.f32 0.01, %v3597_v21  ;;  %v3589_v38 = vadd.f32 %v13981_v32, %v3588_v15  ;;  %v14068_v2 = vld [vmem:[#allocation2 + $0x4a] sm:$0xff]  ;;  %v14070_v56 = vld [vmem:[#allocation2 + $0x52] sm:$0xff]  ;;  %10520 = vmatprep.subr.bf16.mxu0 %v16513_v3 }
 0x685   : > { %3772 = vst.msk [vmem:[#allocation2 + $0x81] sm:$0xff] %vm386_vm0, %v3740_v54  ;;  %v10431_v9 = vpop.f32.mrf.mxu1  ;;  %v5048_v31 = vpack.c.bf16 %v14070_v56, %v14068_v2  ;;  %v14082_v50 = vld [vmem:[#allocation2 + $0x18] sm:$0xff]  ;;  %v14111_v3 = vld [vmem:[#allocation2 + $0x69] sm:$0xff] }
 0x686   : > { %11219 = vrot.lane.b32.xlu0 %v11218_v14, %s16564_s22  ;;  %v3745_v24 = vsel %vm3681_vm15, %v3597_v21, %v3713_v51  ;;  %vm3679_vm2 = vcmp.gt.f32.partialorder %v3589_v38, 0.0  ;;  %v3711_v41 = vmul.f32 0.01, %v3589_v38  ;;  %11234 = vrot.lane.b32.xlu1 %v11218_v14, %s16563_s15  ;;  %v3600_v30 = vadd.f32 %v10431_v9, %v13981_v32  ;;  %v3992_v14 = vld [vmem:[#allocation2 + $0x68] sm:$0xff]  ;;  %v3991_v9 = vld [vmem:[#allocation2 + $0x60] sm:$0xff] }
 0x687   : > { %3777 = vst.msk [vmem:[#allocation2 + $0xc1] sm:$0xff] %vm386_vm0, %v3745_v24  ;;  %v3591_v47 = vpop.f32.mrf.mxu1  ;;  %10453 = vmatmul.mubr.msk.bf16.vlgmr.msra.gmra.mxu1 %vm386_vm0, %v5048_v31  ;;  %v11243_v36 = vpack.i.bf16 %v14072_v55, %v14082_v50 }
 0x688   : > { %v3743_v25 = vsel %vm3679_vm2, %v3589_v38, %v3711_v41  ;;  %vm3682_vm3 = vcmp.gt.f32.partialorder %v3600_v30, 0.0  ;;  %v3714_v21 = vmul.f32 0.01, %v3600_v30  ;;  %v3592_v15 = vadd.f32 %v13981_v32, %v3591_v47  ;;  %10456 = vmatprep.mubr.msk.bf16.mxu1 %vm386_vm0, %v5051_v18 }
 0x689   : > { %3775 = vst.msk [vmem:[#allocation2 + $0xa9] sm:$0xff] %vm386_vm0, %v3743_v25  ;;  %v10434_v54 = vpop.f32.mrf.mxu1  ;;  %v11258_v41 = vpack.i.bf16 %v3992_v14, %v3991_v9  ;;  %v11248_v47 = vpack.i.bf16 %v14091_v59, %v14095_v35 }
 0x68a   : > { %11239 = vrot.lane.b32.xlu0 %v11238_v28, %s16564_s22  ;;  %v3746_v39 = vsel %vm3682_vm3, %v3600_v30, %v3714_v21  ;;  %vm3680_vm4 = vcmp.gt.f32.partialorder %v3592_v15, 0.0  ;;  %v3712_v51 = vmul.f32 0.01, %v3592_v15  ;;  %v3613_v38 = vadd.f32 %v10434_v54, %v13981_v32  ;;  %11244 = vrot.lane.b32.xlu1 %v11243_v36, %s16586_s29  ;;  %v14099_v31 = vld [vmem:[#allocation2 + $0x92] sm:$0xff]  ;;  %v14101_v18 = vld [vmem:[#allocation2 + $0x9a] sm:$0xff] }
 0x68b   : > { %3778 = vst.msk [vmem:[#allocation2 + $0xc9] sm:$0xff] %vm386_vm0, %v3746_v39  ;;  %v3604_v24 = vpop.f32.mrf.mxu1 }
 0x68c   : > { %v3744_v25 = vsel %vm3680_vm4, %v3592_v15, %v3712_v51  ;;  %vm3685_vm5 = vcmp.gt.f32.partialorder %v3613_v38, 0.0  ;;  %v3717_v30 = vmul.f32 0.01, %v3613_v38  ;;  %v3605_v21 = vadd.f32 %v13981_v32, %v3604_v24  ;;  %v14107_v54 = vld [vmem:[#allocation2 + $0x7a] sm:$0xff]  ;;  %v14109_v36 = vld [vmem:[#allocation2 + $0x82] sm:$0xff] }
 0x68d   : > { %3776 = vst.msk [vmem:[#allocation2 + $0xb1] sm:$0xff] %vm386_vm0, %v3744_v25  ;;  %v10435_v5 = vpop.f32.mrf.mxu1  ;;  %v5054_v14 = vpack.c.bf16 %v14109_v36, %v14107_v54  ;;  %v5057_v15 = vpack.c.bf16 %v14101_v18, %v14099_v31  ;;  %v14121_v24 = vld [vmem:[#allocation2 + $0x61] sm:$0xff] }
 0x68e   : > { %11259 = vrot.lane.b32.xlu0 %v11258_v41, %s16563_s15  ;;  %v3749_v39 = vsel %vm3685_vm5, %v3613_v38, %v3717_v30  ;;  %vm3683_vm6 = vcmp.gt.f32.partialorder %v3605_v21, 0.0  ;;  %v3715_v51 = vmul.f32 0.01, %v3605_v21  ;;  %v3616_v9 = vadd.f32 %v10435_v5, %v13981_v32  ;;  %11249 = vrot.lane.b32.xlu1 %v11248_v47, %s16564_s22 }
 0x68f   : > { %3781 = vst.msk [vmem:[#allocation2 + $0xf1] sm:$0xff] %vm386_vm0, %v3749_v39  ;;  %v3607_v25 = vpop.f32.mrf.mxu1  ;;  %10457 = vmatmul.mubr.msk.bf16.gmra.mxu1 %vm386_vm0, %v5054_v14  ;;  %v11263_v46 = vpack.i.bf16 %v14111_v3, %v14121_v24 }
 0x690   : > { %v3747_v61 = vsel %vm3683_vm6, %v3605_v21, %v3715_v51  ;;  %vm3686_vm8 = vcmp.gt.f32.partialorder %v3616_v9, 0.0  ;;  %v3718_v27 = vmul.f32 0.01, %v3616_v9  ;;  %v3608_v38 = vadd.f32 %v13981_v32, %v3607_v25  ;;  %10460 = vmatprep.mubr.msk.bf16.mxu1 %vm386_vm0, %v5057_v15 }
 0x691   : > { %3779 = vst.msk [vmem:[#allocation2 + $0xd9] sm:$0xff] %vm386_vm0, %v3747_v61  ;;  %v10438_v5 = vpop.f32.mrf.mxu1  ;;  %v11268_v61 = vpack.i.bf16 %v14061_v58, %v14059_v57 }
 0x692   : > { %11264 = vrot.lane.b32.xlu0 %v11263_v46, %s16586_s29  ;;  %v3750_v47 = vsel %vm3686_vm8, %v3616_v9, %v3718_v27  ;;  %vm3684_vm9 = vcmp.gt.f32.partialorder %v3608_v38, 0.0  ;;  %v3716_v30 = vmul.f32 0.01, %v3608_v38  ;;  %v3629_v14 = vadd.f32 %v10438_v5, %v13981_v32  ;;  %11254 = vrot.lane.b32.xlu1 %v11238_v28, %s16563_s15  ;;  %v14133_v39 = vld [vmem:[#allocation2 + $0xc2] sm:$0xff]  ;;  %v14135_v21 = vld [vmem:[#allocation2 + $0xca] sm:$0xff] }
 0x693   : > { %3782 = vst.msk [vmem:[#allocation2 + $0xf9] sm:$0xff] %vm386_vm0, %v3750_v47  ;;  %v3620_v51 = vpop.f32.mrf.mxu1  ;;  %v3990_v28 = vld [vmem:[#allocation2 + $0x50] sm:$0xff]  ;;  %v5063_v57 = vpack.c.bf16 %v14135_v21, %v14133_v39 }
 0x694   : > { %v3748_v15 = vsel %vm3684_vm9, %v3608_v38, %v3716_v30  ;;  %vm3689_vm12 = vcmp.gt.f32.partialorder %v3629_v14, 0.0  ;;  %v3721_v25 = vmul.f32 0.01, %v3629_v14  ;;  %v3621_v27 = vadd.f32 %v13981_v32, %v3620_v51  ;;  %v14141_v9 = vld [vmem:[#allocation2 + $0xaa] sm:$0xff]  ;;  %v14143_v5 = vld [vmem:[#allocation2 + $0xb2] sm:$0xff] }
 0x695   : > { %3780 = vst.msk [vmem:[#allocation2 + $0xe1] sm:$0xff] %vm386_vm0, %v3748_v15  ;;  %v10439_v6 = vpop.f32.mrf.mxu1  ;;  %v5060_v47 = vpack.c.bf16 %v14143_v5, %v14141_v9  ;;  %v3989_v51 = vld [vmem:[#allocation2 + $0x48] sm:$0xff] }
 0x696   : > { %11269 = vrot.lane.b32.xlu0 %v11268_v61, %s16564_s22  ;;  %v3753_v58 = vsel %vm3689_vm12, %v3629_v14, %v3721_v25  ;;  %vm3687_vm13 = vcmp.gt.f32.partialorder %v3621_v27, 0.0  ;;  %v3719_v38 = vmul.f32 0.01, %v3621_v27  ;;  %v3632_v30 = vadd.f32 %v10439_v6, %v13981_v32  ;;  %11274 = vrot.lane.b32.xlu1 %v11258_v41, %s16586_s29  ;;  %v14157_v14 = vld [vmem:[#allocation2 + $0x51] sm:$0xff]  ;;  %v4032_v26 = vld [vmem:[#allocation2 + $0xc9] sm:$0xff] }
 0x697   : > { %3785 = vst.msk [vmem:[#allocation2 + $0x121] sm:$0xff] %vm386_vm0, %v3753_v58  ;;  %v3623_v15 = vpop.f32.mrf.mxu1  ;;  %10461 = vmatmul.mubr.msk.bf16.gmra.mxu1 %vm386_vm0, %v5060_v47  ;;  %v11288_v42 = vpack.i.bf16 %v3990_v28, %v3989_v51 }
 0x698   : > { %v3751_v48 = vsel %vm3687_vm13, %v3621_v27, %v3719_v38  ;;  %vm3690_vm15 = vcmp.gt.f32.partialorder %v3632_v30, 0.0  ;;  %v3722_v12 = vmul.f32 0.01, %v3632_v30  ;;  %v3624_v40 = vadd.f32 %v13981_v32, %v3623_v15  ;;  %10464 = vmatprep.mubr.msk.bf16.mxu1 %vm386_vm0, %v5063_v57  ;;  %v14163_v27 = vld [vmem:[#allocation2 + $0x49] sm:$0xff] }
 0x699   : > { %3783 = vst.msk [vmem:[#allocation2 + $0x109] sm:$0xff] %vm386_vm0, %v3751_v48  ;;  %v10442_v6 = vpop.f32.mrf.mxu1  ;;  %v11293_v48 = vpack.i.bf16 %v14157_v14, %v14163_v27 }
 0x69a   : > { %11289 = vrot.lane.b32.xlu0 %v11288_v42, %s16563_s15  ;;  %v3754_v41 = vsel %vm3690_vm15, %v3632_v30, %v3722_v12  ;;  %vm3688_vm2 = vcmp.gt.f32.partialorder %v3624_v40, 0.0  ;;  %v3720_v25 = vmul.f32 0.01, %v3624_v40  ;;  %v3645_v47 = vadd.f32 %v10442_v6, %v13981_v32  ;;  %11279 = vrot.lane.b32.xlu1 %v11263_v46, %s16564_s22  ;;  %v14165_v28 = vld [vmem:[#allocation2 + $0xf2] sm:$0xff]  ;;  %v14167_v58 = vld [vmem:[#allocation2 + $0xfa] sm:$0xff] }
 0x69b   : > { %3786 = vst.msk [vmem:[#allocation2 + $0x129] sm:$0xff] %vm386_vm0, %v3754_v41  ;;  %v3636_v57 = vpop.f32.mrf.mxu1  ;;  %v5069_v41 = vpack.c.bf16 %v14167_v58, %v14165_v28 }
 0x69c   : > { %v3752_v38 = vsel %vm3688_vm2, %v3624_v40, %v3720_v25  ;;  %vm3693_vm3 = vcmp.gt.f32.partialorder %v3645_v47, 0.0  ;;  %v3725_v12 = vmul.f32 0.01, %v3645_v47  ;;  %v3637_v30 = vadd.f32 %v13981_v32, %v3636_v57  ;;  %v14173_v51 = vld [vmem:[#allocation2 + $0xda] sm:$0xff]  ;;  %v14175_v46 = vld [vmem:[#allocation2 + $0xe2] sm:$0xff] }
 0x69d   : > { %3784 = vst.msk [vmem:[#allocation2 + $0x111] sm:$0xff] %vm386_vm0, %v3752_v38  ;;  %v10443_v15 = vpop.f32.mrf.mxu1  ;;  %v5066_v6 = vpack.c.bf16 %v14175_v46, %v14173_v51  ;;  %v11298_v38 = vpack.i.bf16 %v14070_v56, %v14068_v2  ;;  %v3995_v2 = vld [vmem:[#allocation2 + $0x90] sm:$0xff] }
 0x69e   : > { %11294 = vrot.lane.b32.xlu0 %v11293_v48, %s16586_s29  ;;  %v3757_v40 = vsel %vm3693_vm3, %v3645_v47, %v3725_v12  ;;  %vm3691_vm4 = vcmp.gt.f32.partialorder %v3637_v30, 0.0  ;;  %v3723_v25 = vmul.f32 0.01, %v3637_v30  ;;  %v3648_v57 = vadd.f32 %v10443_v15, %v13981_v32  ;;  %11284 = vrot.lane.b32.xlu1 %v11268_v61, %s16563_s15  ;;  %v3996_v47 = vld [vmem:[#allocation2 + $0x98] sm:$0xff] }
 0x69f   : > { %3789 = vst.msk [vmem:[#allocation2 + $0x151] sm:$0xff] %vm386_vm0, %v3757_v40  ;;  %v3639_v10 = vpop.f32.mrf.mxu1  ;;  %10465 = vmatmul.mubr.msk.bf16.gmra.mxu1 %vm386_vm0, %v5066_v6 }
 0x6a0   : > { %v3755_v29 = vsel %vm3691_vm4, %v3637_v30, %v3723_v25  ;;  %vm3694_vm5 = vcmp.gt.f32.partialorder %v3648_v57, 0.0  ;;  %v3726_v16 = vmul.f32 0.01, %v3648_v57  ;;  %v3640_v45 = vadd.f32 %v13981_v32, %v3639_v10  ;;  %10468 = vmatprep.mubr.msk.bf16.mxu1 %vm386_vm0, %v5069_v41 }
 0x6a1   : > { %3787 = vst.msk [vmem:[#allocation2 + $0x139] sm:$0xff] %vm386_vm0, %v3755_v29  ;;  %v10446_v12 = vpop.f32.mrf.mxu1  ;;  %v11318_v41 = vpack.i.bf16 %v3996_v47, %v3995_v2 }
 0x6a2   : > { %11299 = vrot.lane.b32.xlu0 %v11298_v38, %s16564_s22  ;;  %v3758_v61 = vsel %vm3694_vm5, %v3648_v57, %v3726_v16  ;;  %vm3692_vm6 = vcmp.gt.f32.partialorder %v3640_v45, 0.0  ;;  %v3724_v15 = vmul.f32 0.01, %v3640_v45  ;;  %v3661_v6 = vadd.f32 %v10446_v12, %v13981_v32  ;;  %11304 = vrot.lane.b32.xlu1 %v11288_v42, %s16586_s29  ;;  %v14195_v56 = vld [vmem:[#allocation2 + $0x122] sm:$0xff]  ;;  %v14197_v30 = vld [vmem:[#allocation2 + $0x12a] sm:$0xff]  ;;  %v14205_v12 = vld [vmem:[#allocation2 + $0x99] sm:$0xff] }
 0x6a3   : > { %3790 = vst.msk [vmem:[#allocation2 + $0x159] sm:$0xff] %vm386_vm0, %v3758_v61  ;;  %v3652_v10 = vpop.f32.mrf.mxu1 }
 0x6a4   : > { %v3756_v29 = vsel %vm3692_vm6, %v3640_v45, %v3724_v15  ;;  %vm3697_vm8 = vcmp.gt.f32.partialorder %v3661_v6, 0.0  ;;  %v3729_v40 = vmul.f32 0.01, %v3661_v6  ;;  %v3653_v16 = vadd.f32 %v13981_v32, %v3652_v10  ;;  %v14201_v25 = vld [vmem:[#allocation2 + $0x10a] sm:$0xff]  ;;  %v14203_v57 = vld [vmem:[#allocation2 + $0x112] sm:$0xff] }
 0x6a5   : > { %3788 = vst.msk [vmem:[#allocation2 + $0x141] sm:$0xff] %vm386_vm0, %v3756_v29  ;;  %v10447_v42 = vpop.f32.mrf.mxu1  ;;  %v5072_v61 = vpack.c.bf16 %v14203_v57, %v14201_v25  ;;  %v5075_v45 = vpack.c.bf16 %v14197_v30, %v14195_v56  ;;  %v14215_v10 = vld [vmem:[#allocation2 + $0x91] sm:$0xff] }
 0x6a6   : > { %11319 = vrot.lane.b32.xlu0 %v11318_v41, %s16563_s15  ;;  %v3761_v47 = vsel %vm3697_vm8, %v3661_v6, %v3729_v40  ;;  %vm3695_vm9 = vcmp.gt.f32.partialorder %v3653_v16, 0.0  ;;  %v3727_v15 = vmul.f32 0.01, %v3653_v16  ;;  %v3664_v2 = vadd.f32 %v10447_v42, %v13981_v32  ;;  %11309 = vrot.lane.b32.xlu1 %v11293_v48, %s16564_s22 }
 0x6a7   : > { %3793 = vst.msk [vmem:[#allocation2 + $0x181] sm:$0xff] %vm386_vm0, %v3761_v47  ;;  %v3655_v29 = vpop.f32.mrf.mxu1  ;;  %10469 = vmatmul.mubr.msk.bf16.gmra.mxu1 %vm386_vm0, %v5072_v61  ;;  %v11323_v60 = vpack.i.bf16 %v14205_v12, %v14215_v10  ;;  %v3994_v47 = vld [vmem:[#allocation2 + $0x80] sm:$0xff] }
 0x6a8   : > { %v3759_v33 = vsel %vm3695_vm9, %v3653_v16, %v3727_v15  ;;  %vm3698_vm12 = vcmp.gt.f32.partialorder %v3664_v2, 0.0  ;;  %v3730_v52 = vmul.f32 0.01, %v3664_v2  ;;  %v3656_v6 = vadd.f32 %v13981_v32, %v3655_v29  ;;  %10472 = vmatprep.mubr.msk.bf16.mxu1 %vm386_vm0, %v5075_v45  ;;  %v14246_v15 = vld [vmem:[#allocation2 + $0x81] sm:$0xff] }
 0x6a9   : > { %3791 = vst.msk [vmem:[#allocation2 + $0x169] sm:$0xff] %vm386_vm0, %v3759_v33  ;;  %v11328_v16 = vpack.i.bf16 %v14101_v18, %v14099_v31  ;;  %v3993_v18 = vld [vmem:[#allocation2 + $0x78] sm:$0xff] }
 0x6aa   : > { %11324 = vrot.lane.b32.xlu0 %v11323_v60, %s16586_s29  ;;  %v3762_v48 = vsel %vm3698_vm12, %v3664_v2, %v3730_v52  ;;  %vm3696_vm13 = vcmp.gt.f32.partialorder %v3656_v6, 0.0  ;;  %v3728_v40 = vmul.f32 0.01, %v3656_v6  ;;  %11314 = vrot.lane.b32.xlu1 %v11298_v38, %s16563_s15  ;;  %v14229_v42 = vld [vmem:[#allocation2 + $0x152] sm:$0xff]  ;;  %v14231_v61 = vld [vmem:[#allocation2 + $0x15a] sm:$0xff]  ;;  %v11348_v38 = vpack.i.bf16 %v3994_v47, %v3993_v18 }
 0x6ab   : > { %3794 = vst.msk [vmem:[#allocation2 + $0x189] sm:$0xff] %vm386_vm0, %v3762_v48  ;;  %v5081_v31 = vpack.c.bf16 %v14231_v61, %v14229_v42  ;;  %v14250_v2 = vld [vmem:[#allocation2 + $0x79] sm:$0xff] }
 0x6ac   : > { %v3760_v32 = vsel %vm3696_vm13, %v3656_v6, %v3728_v40  ;;  %v14233_v45 = vld [vmem:[#allocation2 + $0x13a] sm:$0xff]  ;;  %v14235_v33 = vld [vmem:[#allocation2 + $0x142] sm:$0xff] }
 0x6ad   : > { %3792 = vst.msk [vmem:[#allocation2 + $0x171] sm:$0xff] %vm386_vm0, %v3760_v32  ;;  %v5078_v52 = vpack.c.bf16 %v14235_v33, %v14233_v45 }
 0x6ae   : > { %11329 = vrot.lane.b32.xlu0 %v11328_v16, %s16564_s22  ;;  %11334 = vrot.lane.b32.xlu1 %v11318_v41, %s16586_s29  ;;  %v11353_v41 = vpack.i.bf16 %v14246_v15, %v14250_v2 }
 0x6af   : > { %10473 = vmatmul.mubr.msk.bf16.gmra.mxu1 %vm386_vm0, %v5078_v52  ;;  %v4000_v52 = vld [vmem:[#allocation2 + $0xc8] sm:$0xff] }
 0x6b0   : > { %10476 = vmatprep.mubr.msk.bf16.mxu1 %vm386_vm0, %v5081_v31  ;;  %v3999_v31 = vld [vmem:[#allocation2 + $0xc0] sm:$0xff] }
 0x6b1   : > { %v11378_v18 = vpack.i.bf16 %v4000_v52, %v3999_v31  ;;  %v4036_v52 = vld [vmem:[#allocation2 + $0xf9] sm:$0xff]  ;;  %v4035_v31 = vld [vmem:[#allocation2 + $0xf1] sm:$0xff] }
 0x6b2   : > { %11349 = vrot.lane.b32.xlu0 %v11348_v38, %s16563_s15  ;;  %11339 = vrot.lane.b32.xlu1 %v11323_v60, %s16564_s22  ;;  %v4079_v29 = vld [vmem:[#allocation2 + $0x182] sm:$0xff]  ;;  %v4080_v6 = vld [vmem:[#allocation2 + $0x18a] sm:$0xff]  ;;  %v11358_v60 = vpack.i.bf16 %v14109_v36, %v14107_v54  ;;  %v11388_v54 = vpack.i.bf16 %v14135_v21, %v14133_v39  ;;  %v11418_v39 = vpack.i.bf16 %v14143_v5, %v14141_v9  ;;  %v4004_v21 = vld [vmem:[#allocation2 + $0xf8] sm:$0xff] }
 0x6b3   : > { %v5087_v47 = vpack.c.bf16 %v4080_v6, %v4079_v29  ;;  %v3998_v36 = vld [vmem:[#allocation2 + $0xb0] sm:$0xff]  ;;  %v11448_v9 = vpack.i.bf16 %v14167_v58, %v14165_v28  ;;  %v4002_v5 = vld [vmem:[#allocation2 + $0xe0] sm:$0xff]  ;;  %v11478_v28 = vpack.i.bf16 %v14175_v46, %v14173_v51  ;;  %v4008_v58 = vld [vmem:[#allocation2 + $0x128] sm:$0xff]  ;;  %v11508_v46 = vpack.i.bf16 %v14197_v30, %v14195_v56 }
 0x6b4   : > { %v14254_v48 = vld [vmem:[#allocation2 + $0x16a] sm:$0xff]  ;;  %v14256_v40 = vld [vmem:[#allocation2 + $0x172] sm:$0xff] }
 0x6b5   : > { %v5084_v32 = vpack.c.bf16 %v14256_v40, %v14254_v48 }
 0x6b6   : > { %11354 = vrot.lane.b32.xlu0 %v11353_v41, %s16586_s29  ;;  %11344 = vrot.lane.b32.xlu1 %v11328_v16, %s16563_s15  ;;  %v4031_v16 = vld [vmem:[#allocation2 + $0xc1] sm:$0xff] }
 0x6b7   : > { %10477 = vmatmul.mubr.msk.bf16.gmra.mxu1 %vm386_vm0, %v5084_v32  ;;  %v11383_v29 = vpack.i.bf16 %v4032_v26, %v4031_v16  ;;  %v4030_v32 = vld [vmem:[#allocation2 + $0xb1] sm:$0xff]  ;;  %v4029_v26 = vld [vmem:[#allocation2 + $0xa9] sm:$0xff] }
 0x6b8   : > { %10480 = vmatprep.mubr.msk.bf16.mxu1 %vm386_vm0, %v5087_v47  ;;  %v4003_v47 = vld [vmem:[#allocation2 + $0xf0] sm:$0xff]  ;;  %v4001_v16 = vld [vmem:[#allocation2 + $0xd8] sm:$0xff] }
 0x6ba   : > { %11359 = vrot.lane.b32.xlu0 %v11358_v60, %s16564_s22  ;;  %11364 = vrot.lane.b32.xlu1 %v11348_v38, %s16586_s29  ;;  %v3997_v38 = vld [vmem:[#allocation2 + $0xa8] sm:$0xff] }
 0x6bb   : > { %v11408_v6 = vpack.i.bf16 %v3998_v36, %v3997_v38  ;;  %v4033_v36 = vld [vmem:[#allocation2 + $0xd9] sm:$0xff] }
 0x6be   : > { %11379 = vrot.lane.b32.xlu0 %v11378_v18, %s16563_s15  ;;  %11369 = vrot.lane.b32.xlu1 %v11353_v41, %s16564_s22  ;;  %v11413_v41 = vpack.i.bf16 %v4030_v32, %v4029_v26  ;;  %v4007_v26 = vld [vmem:[#allocation2 + $0x120] sm:$0xff] }
 0x6c2   : > { %11384 = vrot.lane.b32.xlu0 %v11383_v29, %s16586_s29  ;;  %11374 = vrot.lane.b32.xlu1 %v11358_v60, %s16563_s15  ;;  %v11438_v60 = vpack.i.bf16 %v4004_v21, %v4003_v47  ;;  %v4039_v21 = vld [vmem:[#allocation2 + $0x121] sm:$0xff] }
 0x6c6   : > { %11389 = vrot.lane.b32.xlu0 %v11388_v54, %s16564_s22  ;;  %11394 = vrot.lane.b32.xlu1 %v11378_v18, %s16586_s29  ;;  %v11443_v18 = vpack.i.bf16 %v4036_v52, %v4035_v31 }
 0x6ca   : > { %11409 = vrot.lane.b32.xlu0 %v11408_v6, %s16563_s15  ;;  %11399 = vrot.lane.b32.xlu1 %v11383_v29, %s16564_s22  ;;  %v11468_v29 = vpack.i.bf16 %v4002_v5, %v4001_v16  ;;  %v3795_v5 = vld [vmem:[#allocation2] sm:$0xff]  ;;  %v4005_v16 = vld [vmem:[#allocation2 + $0x108] sm:$0xff] }
 0x6ce   : > { %11414 = vrot.lane.b32.xlu0 %v11413_v41, %s16586_s29  ;;  %11404 = vrot.lane.b32.xlu1 %v11388_v54, %s16563_s15  ;;  %v4034_v54 = vld [vmem:[#allocation2 + $0xe1] sm:$0xff] }
 0x6cf   : > { %v11473_v38 = vpack.i.bf16 %v4034_v54, %v4033_v36 }
 0x6d2   : > { %11419 = vrot.lane.b32.xlu0 %v11418_v39, %s16564_s22  ;;  %11424 = vrot.lane.b32.xlu1 %v11408_v6, %s16586_s29  ;;  %v11200_v6 = vpop.permute.xlu1 %11199 }
 0x6d6   : > { %11439 = vrot.lane.b32.xlu0 %v11438_v60, %s16563_s15  ;;  %11429 = vrot.lane.b32.xlu1 %v11413_v41, %s16564_s22  ;;  %v11205_v32 = vpop.permute.xlu1 %11204  ;;  %v11498_v41 = vpack.i.bf16 %v4008_v58, %v4007_v26  ;;  %v14316_v26 = vld [vmem:[#allocation2 + $0x111] sm:$0xff] }
 0x6d7   : > { %v11207_v30 = vunpack.i.h.bf16 %v11205_v32 }
 0x6da   : > { %11444 = vrot.lane.b32.xlu0 %v11443_v18, %s16586_s29  ;;  %11434 = vrot.lane.b32.xlu1 %v11418_v39, %s16563_s15  ;;  %v4040_v39 = vld [vmem:[#allocation2 + $0x129] sm:$0xff] }
 0x6de   : > { %11449 = vrot.lane.b32.xlu0 %v11448_v9, %s16564_s22  ;;  %11454 = vrot.lane.b32.xlu1 %v11438_v60, %s16586_s29  ;;  %v11503_v60 = vpack.i.bf16 %v4040_v39, %v4039_v21  ;;  %v14321_v39 = vld [vmem:[#allocation2 + $0x109] sm:$0xff] }
 0x6df   : > { %v11533_v21 = vpack.i.bf16 %v14316_v26, %v14321_v39 }
 0x6e2   : > { %11469 = vrot.lane.b32.xlu0 %v11468_v29, %s16563_s15  ;;  %11459 = vrot.lane.b32.xlu1 %v11443_v18, %s16564_s22  ;;  %v4006_v18 = vld [vmem:[#allocation2 + $0x110] sm:$0xff] }
 0x6e3   : > { %v11528_v36 = vpack.i.bf16 %v4006_v18, %v4005_v16 }
 0x6e6   : > { %11474 = vrot.lane.b32.xlu0 %v11473_v38, %s16586_s29  ;;  %11464 = vrot.lane.b32.xlu1 %v11448_v9, %s16563_s15  ;;  %v11201_v9 = vunpack.i.l.bf16 %v11200_v6 }
 0x6e8   : > { %v4851_v56 = vsel %vm386_vm0, %v3795_v5, %v11201_v9 }
 0x6ea   : > { %11479 = vrot.lane.b32.xlu0 %v11478_v28, %s16564_s22  ;;  %11484 = vrot.lane.b32.xlu1 %v11468_v29, %s16586_s29  ;;  %v11202_v29 = vunpack.i.h.bf16 %v11200_v6 }
 0x6ee   : > { %11499 = vrot.lane.b32.xlu0 %v11498_v41, %s16563_s15  ;;  %11489 = vrot.lane.b32.xlu1 %v11473_v38, %s16564_s22  ;;  %v3796_v38 = vld [vmem:[#allocation2 + $0x8] sm:$0xff] }
 0x6ef   : > { %v4852_v6 = vsel %vm386_vm0, %v3796_v38, %v11202_v29 }
 0x6f0   : > { %v11210_v47 = vpop.permute.xlu0 %11209  ;;  %v14302_v52 = vpop.permute.xlu1 %11224 }
 0x6f1   : > { %v11212_v19 = vunpack.i.h.bf16 %v11210_v47  ;;  %v11211_v9 = vunpack.i.l.bf16 %v11210_v47  ;;  %v11538_v47 = vpack.i.bf16 %v14203_v57, %v14201_v25  ;;  %v4011_v25 = vld [vmem:[#allocation2 + $0x150] sm:$0xff] }
 0x6f2   : > { %11504 = vrot.lane.b32.xlu0 %v11503_v60, %s16586_s29  ;;  %11494 = vrot.lane.b32.xlu1 %v11478_v28, %s16563_s15  ;;  %v11206_v28 = vunpack.i.l.bf16 %v11205_v32  ;;  %v4884_v32 = vsel %vm529_vm1, %v4852_v6, %v11207_v30 }
 0x6f4   : > { %v11215_v51 = vpop.permute.xlu0 %11214  ;;  %v14308_v31 = vpop.permute.xlu1 %11229  ;;  %v4883_v18 = vsel %vm529_vm1, %v4851_v56, %v11206_v28 }
 0x6f5   : > { %v11217_v28 = vunpack.i.h.bf16 %v11215_v51 }
 0x6f6   : > { %11509 = vrot.lane.b32.xlu0 %v11508_v46, %s16564_s22  ;;  %11514 = vrot.lane.b32.xlu1 %v11498_v41, %s16586_s29 }
 0x6f8   : > { %v14312_v54 = vpop.permute.xlu0 %11219  ;;  %v14314_v58 = vpop.permute.xlu1 %11234 }
 0x6fa   : > { %11529 = vrot.lane.b32.xlu0 %v11528_v36, %s16563_s15  ;;  %11519 = vrot.lane.b32.xlu1 %v11503_v60, %s16564_s22  ;;  %v11216_v60 = vunpack.i.l.bf16 %v11215_v51 }
 0x6fc   : > { %v11240_v41 = vpop.permute.xlu0 %11239  ;;  %v11245_v23 = vpop.permute.xlu1 %11244 }
 0x6fd   : > { %v11242_v16 = vunpack.i.h.bf16 %v11240_v41  ;;  %v11241_v8 = vunpack.i.l.bf16 %v11240_v41  ;;  %v11247_v5 = vunpack.i.h.bf16 %v11245_v23  ;;  %v11246_v7 = vunpack.i.l.bf16 %v11245_v23 }
 0x6fe   : > { %11534 = vrot.lane.b32.xlu0 %v11533_v21, %s16586_s29  ;;  %11524 = vrot.lane.b32.xlu1 %v11508_v46, %s16563_s15 }
 0x6ff   : > { %v4948_v29 = vsel %vm386_vm0, %v14091_v59, %v11242_v16  ;;  %v4947_v38 = vsel %vm386_vm0, %v14095_v35, %v11241_v8  ;;  %v4916_v30 = vsel %vm1989_vm7, %v4884_v32, %v11247_v5  ;;  %v4915_v6 = vsel %vm1989_vm7, %v4883_v18, %v11246_v7  ;;  %v4012_v8 = vld [vmem:[#allocation2 + $0x158] sm:$0xff] }
 0x700   : > { %v14334_v56 = vpop.permute.xlu0 %11259  ;;  %v4979_v23 = vsel %vm529_vm1, %v4947_v38, %v11211_v9  ;;  %v4980_v41 = vsel %vm529_vm1, %v4948_v29, %v11212_v19  ;;  %v11250_v59 = vpop.permute.xlu1 %11249  ;;  %v5043_v57 = vpack.c.bf16 %v4916_v30, %v4915_v6  ;;  %v11558_v19 = vpack.i.bf16 %v4012_v8, %v4011_v25  ;;  %v4044_v5 = vld [vmem:[#allocation2 + $0x159] sm:$0xff]  ;;  %v4043_v7 = vld [vmem:[#allocation2 + $0x151] sm:$0xff] }
 0x701   : > { %v5011_v16 = vsel %vm1989_vm7, %v4979_v23, %v11216_v60  ;;  %v5012_v35 = vsel %vm1989_vm7, %v4980_v41, %v11217_v28  ;;  %v11563_v32 = vpack.i.bf16 %v4044_v5, %v4043_v7  ;;  %v11251_v29 = vunpack.i.l.bf16 %v11250_v59 }
 0x702   : > { %11539 = vrot.lane.b32.xlu0 %v11538_v47, %s16564_s22  ;;  %11544 = vrot.lane.b32.xlu1 %v11528_v36, %s16586_s29  ;;  %v5044_v51 = vpack.c.bf16 %v5012_v35, %v5011_v16  ;;  %v11252_v36 = vunpack.i.h.bf16 %v11250_v59  ;;  %v14358_v41 = vpack.i.bf16 %v14231_v61, %v14229_v42  ;;  %v11221_v30 = vunpack.i.l.bf16 %v14312_v54  ;;  %v14364_v16 = vld [vmem:[#allocation2 + $0x140] sm:$0xff]  ;;  %v14373_v42 = vld [vmem:[#allocation2 + $0x138] sm:$0xff] }
 0x703   : > { %v4853_v59 = vsel %vm386_vm0, %v14082_v50, %v11251_v29  ;;  %v11226_v50 = vunpack.i.l.bf16 %v14302_v52  ;;  %v14390_v29 = vld [vmem:[#allocation2 + $0x139] sm:$0xff] }
 0x704   : > { %v14346_v46 = vpop.permute.xlu0 %11264  ;;  %5324 = vmatprep.mubr.bf16.mxu0 %v5044_v51  ;;  %v11255_v9 = vpop.permute.xlu1 %11254  ;;  %v4854_v8 = vsel %vm386_vm0, %v14072_v55, %v11252_v36  ;;  %v11227_v51 = vunpack.i.h.bf16 %v14302_v52  ;;  %v11583_v55 = vpack.i.bf16 %v14364_v16, %v14373_v42 }
 0x705   : > { %5325 = vmatmul.mubr.bf16.vlgmr.msra.gmra.mxu0 %v5043_v57  ;;  %v11257_v38 = vunpack.i.h.bf16 %v11255_v9  ;;  %v11256_v28 = vunpack.i.l.bf16 %v11255_v9  ;;  %v14381_v57 = vld [vmem:[#allocation2 + $0x141] sm:$0xff]  ;;  %v4949_v9 = vsel %vm386_vm0, %v14043_v44, %v11221_v30  ;;  %v11593_v30 = vpack.i.bf16 %v14235_v33, %v14233_v45 }
 0x706   : > { %11559 = vrot.lane.b32.xlu0 %v11558_v19, %s16563_s15  ;;  %11549 = vrot.lane.b32.xlu1 %v11533_v21, %s16564_s22  ;;  %v11222_v21 = vunpack.i.h.bf16 %v14312_v54  ;;  %v11267_v33 = vunpack.i.h.bf16 %v14346_v46 }
 0x707   : > { %v4885_v61 = vsel %vm529_vm1, %v4853_v59, %v11256_v28  ;;  %v4886_v54 = vsel %vm529_vm1, %v4854_v8, %v11257_v38  ;;  %v11232_v59 = vunpack.i.h.bf16 %v14308_v31  ;;  %v11231_v8 = vunpack.i.l.bf16 %v14308_v31 }
 0x708   : > { %v14350_v18 = vpop.permute.xlu0 %11269  ;;  %v14352_v60 = vpop.permute.xlu1 %11274  ;;  %v4917_v28 = vsel %vm1989_vm7, %v4885_v61, %v11226_v50  ;;  %v11266_v31 = vunpack.i.l.bf16 %v14346_v46 }
 0x70a   : > { %11564 = vrot.lane.b32.xlu0 %v11563_v32, %s16586_s29  ;;  %11554 = vrot.lane.b32.xlu1 %v11538_v47, %s16563_s15 }
 0x70c   : > { %v11290_v23 = vpop.permute.xlu0 %11289  ;;  %v14362_v6 = vpop.permute.xlu1 %11279 }
 0x70d   : > { %v11292_v47 = vunpack.i.h.bf16 %v11290_v23  ;;  %v11291_v35 = vunpack.i.l.bf16 %v11290_v23  ;;  %v4918_v23 = vsel %vm1989_vm7, %v4886_v54, %v11227_v51 }
 0x70e   : > { %11569 = vrot.lane.b32.xlu0 %v14358_v41, %s16564_s22  ;;  %11574 = vrot.lane.b32.xlu1 %v11558_v19, %s16586_s29  ;;  %v4950_v19 = vsel %vm386_vm0, %v14033_v37, %v11222_v21  ;;  %v11588_v37 = vpack.i.bf16 %v14381_v57, %v14390_v29 }
 0x70f   : > { %v4981_v52 = vsel %vm529_vm1, %v4949_v9, %v11291_v35  ;;  %v4982_v38 = vsel %vm529_vm1, %v4950_v19, %v11292_v47  ;;  %v11237_v47 = vunpack.i.h.bf16 %v14314_v58  ;;  %v11262_v9 = vunpack.i.h.bf16 %v14334_v56 }
 0x710   : > { %v11295_v25 = vpop.permute.xlu0 %11294  ;;  %v14387_v36 = vpop.permute.xlu1 %11284  ;;  %v11261_v19 = vunpack.i.l.bf16 %v14334_v56  ;;  %v4855_v56 = vsel %vm386_vm0, %v14018_v17, %v11231_v8  ;;  %v4015_v8 = vld [vmem:[#allocation2 + $0x180] sm:$0xff] }
 0x711   : > { %v11297_v5 = vunpack.i.h.bf16 %v11295_v25  ;;  %v11296_v7 = vunpack.i.l.bf16 %v11295_v25  ;;  %v5046_v25 = vpack.c.bf16 %v4918_v23, %v4917_v28 }
 0x712   : > { %11584 = vrot.lane.b32.xlu0 %v11583_v55, %s16563_s15  ;;  %11579 = vrot.lane.b32.xlu1 %v11563_v32, %s16564_s22  ;;  %v11236_v32 = vunpack.i.l.bf16 %v14314_v58 }
 0x713   : > { %v5013_v44 = vsel %vm1989_vm7, %v4981_v52, %v11296_v7  ;;  %v5014_v21 = vsel %vm1989_vm7, %v4982_v38, %v11297_v5  ;;  %v4856_v52 = vsel %vm386_vm0, %v14024_v13, %v11232_v59 }
 0x714   : > { %v11300_v35 = vpop.permute.xlu0 %11299  ;;  %v5047_v61 = vpack.c.bf16 %v5014_v21, %v5013_v44  ;;  %v11305_v50 = vpop.permute.xlu1 %11304  ;;  %v4016_v44 = vld [vmem:[#allocation2 + $0x188] sm:$0xff]  ;;  %v4888_v21 = vsel %vm529_vm1, %v4856_v52, %v11237_v47  ;;  %v11272_v52 = vunpack.i.h.bf16 %v14350_v18 }
 0x715   : > { %v11302_v54 = vunpack.i.h.bf16 %v11300_v35  ;;  %v11301_v51 = vunpack.i.l.bf16 %v11300_v35  ;;  %v11307_v5 = vunpack.i.h.bf16 %v11305_v50  ;;  %v11306_v45 = vunpack.i.l.bf16 %v11305_v50  ;;  %v14442_v47 = vld [vmem:[#allocation2 + $0x181] sm:$0xff] }
 0x716   : > { %11589 = vrot.lane.b32.xlu0 %v11588_v37, %s16586_s29  ;;  %5332 = vmatprep.mubr.bf16.mxu0 %v5047_v61  ;;  %v14435_v61 = vpack.i.bf16 %v4016_v44, %v4015_v8  ;;  %v11276_v8 = vunpack.i.l.bf16 %v14352_v60 }
 0x717   : > { %v4952_v58 = vsel %vm386_vm0, %v14157_v14, %v11302_v54  ;;  %v4951_v7 = vsel %vm386_vm0, %v14163_v27, %v11301_v51  ;;  %11599 = vrot.lane.b32.xlu1 %v11583_v55, %s16586_s29  ;;  %5333 = vmatmul.mubr.bf16.gmra.mxu0 %v5046_v25  ;;  %v4887_v55 = vsel %vm529_vm1, %v4855_v56, %v11236_v32  ;;  %v14437_v32 = vld [vmem:[#allocation2 + $0x189] sm:$0xff] }
 0x718   : > { %v14421_v38 = vpop.permute.xlu0 %11319  ;;  %v4983_v28 = vsel %vm529_vm1, %v4951_v7, %v11261_v19  ;;  %v4984_v46 = vsel %vm529_vm1, %v4952_v58, %v11262_v9  ;;  %v11310_v23 = vpop.permute.xlu1 %11309  ;;  %v4919_v13 = vsel %vm1989_vm7, %v4887_v55, %v11306_v45  ;;  %v4920_v59 = vsel %vm1989_vm7, %v4888_v21, %v11307_v5  ;;  %v14450_v9 = vld [vmem:[#allocation2 + $0x170] sm:$0xff] }
 0x719   : > { %v5015_v14 = vsel %vm1989_vm7, %v4983_v28, %v11266_v31  ;;  %v5016_v27 = vsel %vm1989_vm7, %v4984_v46, %v11267_v33  ;;  %v5049_v51 = vpack.c.bf16 %v4920_v59, %v4919_v13  ;;  %v11312_v19 = vunpack.i.h.bf16 %v11310_v23  ;;  %v3801_v31 = vld [vmem:[#allocation2 + $0x48] sm:$0xff]  ;;  %v3802_v58 = vld [vmem:[#allocation2 + $0x50] sm:$0xff] }
 0x71a   : > { %11594 = vrot.lane.b32.xlu0 %v11593_v30, %s16564_s22  ;;  %v5050_v17 = vpack.c.bf16 %v5016_v27, %v5015_v14  ;;  %v11311_v5 = vunpack.i.l.bf16 %v11310_v23  ;;  %v11271_v28 = vunpack.i.l.bf16 %v14350_v18  ;;  %v14463_v23 = vld [vmem:[#allocation2 + $0x171] sm:$0xff]  ;;  %v14465_v14 = vld [vmem:[#allocation2 + $0x182] sm:$0xff]  ;;  %v11277_v59 = vunpack.i.h.bf16 %v14352_v60 }
 0x71b   : > { %11604 = vrot.lane.b32.xlu1 %v11588_v37, %s16564_s22  ;;  %v11623_v37 = vpack.i.bf16 %v14437_v32, %v14442_v47  ;;  %v14467_v27 = vld [vmem:[#allocation2 + $0x18a] sm:$0xff] }
 0x71c   : > { %v14433_v35 = vpop.permute.xlu0 %11324  ;;  %5340 = vmatprep.mubr.bf16.mxu0 %v5050_v17  ;;  %v11315_v54 = vpop.permute.xlu1 %11314  ;;  %v4857_v44 = vsel %vm386_vm0, %v3801_v31, %v11311_v5  ;;  %v14473_v17 = vld [vmem:[#allocation2 + $0x169] sm:$0xff]  ;;  %v4953_v5 = vsel %vm386_vm0, %v14121_v24, %v11271_v28  ;;  %v11281_v28 = vunpack.i.l.bf16 %v14362_v6 }
 0x71d   : > { %v11317_v45 = vunpack.i.h.bf16 %v11315_v54  ;;  %v11316_v33 = vunpack.i.l.bf16 %v11315_v54 }
 0x71e   : > { %11619 = vrot.lane.b32.xlu0 %v14435_v61, %s16563_s15 }
 0x71f   : > { %11609 = vrot.lane.b32.xlu1 %v11593_v30, %s16563_s15  ;;  %5341 = vmatmul.mubr.bf16.gmra.mxu0 %v5049_v51  ;;  %v14455_v30 = vld [vmem:[#allocation2 + $0x168] sm:$0xff]  ;;  %v4889_v18 = vsel %vm529_vm1, %v4857_v44, %v11316_v33  ;;  %v11633_v51 = vpack.i.bf16 %v14463_v23, %v14473_v17 }
 0x720   : > { %v14444_v50 = vpop.permute.xlu0 %11329  ;;  %v14448_v25 = vpop.permute.xlu1 %11334  ;;  %v11628_v56 = vpack.i.bf16 %v14450_v9, %v14455_v30 }
 0x722   : > { %11624 = vrot.lane.b32.xlu0 %v11623_v37, %s16586_s29  ;;  %v11643_v37 = vpack.i.bf16 %v14467_v27, %v14465_v14  ;;  %v11282_v14 = vunpack.i.h.bf16 %v14362_v6  ;;  %v11287_v27 = vunpack.i.h.bf16 %v14387_v36 }
 0x723   : > { %11614 = vrot.lane.b32.xlu1 %v14358_v41, %s16563_s15  ;;  %v4858_v41 = vsel %vm386_vm0, %v3802_v58, %v11312_v19  ;;  %v4954_v19 = vsel %vm386_vm0, %v14111_v3, %v11272_v52  ;;  %v11638_v3 = vpack.i.bf16 %v14256_v40, %v14254_v48  ;;  %v4082_v48 = vld [vmem:[#allocation2 + $0x1a2] sm:$0xff] }
 0x724   : > { %v11350_v7 = vpop.permute.xlu0 %11349  ;;  %v14461_v46 = vpop.permute.xlu1 %11339  ;;  %v4890_v13 = vsel %vm529_vm1, %v4858_v41, %v11317_v45  ;;  %v11286_v41 = vunpack.i.l.bf16 %v14387_v36  ;;  %v3803_v40 = vld [vmem:[#allocation2 + $0x60] sm:$0xff]  ;;  %v3804_v36 = vld [vmem:[#allocation2 + $0x68] sm:$0xff] }
 0x725   : > { %v11352_v55 = vunpack.i.h.bf16 %v11350_v7  ;;  %v11351_v21 = vunpack.i.l.bf16 %v11350_v7  ;;  %v4921_v7 = vsel %vm1989_vm7, %v4889_v18, %v11276_v8 }
 0x726   : > { %11629 = vrot.lane.b32.xlu0 %v11628_v56, %s16563_s15 }
 0x727   : > { %11659 = vrot.lane.b32.xlu1 %v11628_v56, %s16586_s29  ;;  %v4985_v60 = vsel %vm529_vm1, %v4953_v5, %v11351_v21  ;;  %v4986_v58 = vsel %vm529_vm1, %v4954_v19, %v11352_v55  ;;  %v4922_v56 = vsel %vm1989_vm7, %v4890_v13, %v11277_v59  ;;  %v11322_v21 = vunpack.i.h.bf16 %v14421_v38 }
 0x728   : > { %v11355_v54 = vpop.permute.xlu0 %11354  ;;  %v14487_v45 = vpop.permute.xlu1 %11344  ;;  %v5052_v8 = vpack.c.bf16 %v4922_v56, %v4921_v7  ;;  %v4018_v7 = vld [vmem:[#allocation2 + $0x1a0] sm:$0xff]  ;;  %v4860_v56 = vsel %vm386_vm0, %v3804_v36, %v11282_v14  ;;  %v11332_v36 = vunpack.i.h.bf16 %v14444_v50 }
 0x729   : > { %v11357_v33 = vunpack.i.h.bf16 %v11355_v54  ;;  %v11356_v31 = vunpack.i.l.bf16 %v11355_v54  ;;  %v4081_v54 = vld [vmem:[#allocation2 + $0x19a] sm:$0xff] }
 0x72a   : > { %11634 = vrot.lane.b32.xlu0 %v11633_v51, %s16586_s29  ;;  %v5090_v6 = vpack.c.bf16 %v4082_v48, %v4081_v54 }
 0x72b   : > { %11664 = vrot.lane.b32.xlu1 %v11633_v51, %s16564_s22  ;;  %v5017_v24 = vsel %vm1989_vm7, %v4985_v60, %v11356_v31  ;;  %v5018_v52 = vsel %vm1989_vm7, %v4986_v58, %v11357_v33  ;;  %v11321_v51 = vunpack.i.l.bf16 %v14421_v38  ;;  %v11327_v33 = vunpack.i.h.bf16 %v14433_v35  ;;  %v4017_v38 = vld [vmem:[#allocation2 + $0x198] sm:$0xff] }
 0x72c   : > { %v11360_v44 = vpop.permute.xlu0 %11359  ;;  %v5053_v55 = vpack.c.bf16 %v5018_v52, %v5017_v24  ;;  %v11365_v59 = vpop.permute.xlu1 %11364  ;;  %v11326_v31 = vunpack.i.l.bf16 %v14433_v35  ;;  %v4859_v24 = vsel %vm386_vm0, %v3803_v40, %v11281_v28  ;;  %10481 = vmatmul.mubr.msk.bf16.gmra.mxu1 %vm386_vm0, %v5090_v6  ;;  %v11648_v28 = vpack.i.bf16 %v4018_v7, %v4017_v38 }
 0x72d   : > { %v11362_v18 = vunpack.i.h.bf16 %v11360_v44  ;;  %v11361_v13 = vunpack.i.l.bf16 %v11360_v44  ;;  %v11367_v19 = vunpack.i.h.bf16 %v11365_v59  ;;  %v11366_v5 = vunpack.i.l.bf16 %v11365_v59 }
 0x72e   : > { %11639 = vrot.lane.b32.xlu0 %v11638_v3, %s16564_s22  ;;  %5348 = vmatprep.mubr.bf16.mxu0 %v5053_v55  ;;  %v4891_v55 = vsel %vm529_vm1, %v4859_v24, %v11286_v41 }
 0x72f   : > { %v4956_v60 = vsel %vm386_vm0, %v14246_v15, %v11362_v18  ;;  %v4955_v58 = vsel %vm386_vm0, %v14250_v2, %v11361_v13  ;;  %11669 = vrot.lane.b32.xlu1 %v11638_v3, %s16563_s15  ;;  %5349 = vmatmul.mubr.bf16.gmra.mxu0 %v5052_v8  ;;  %v4892_v18 = vsel %vm529_vm1, %v4860_v56, %v11287_v27  ;;  %v4050_v8 = vld [vmem:[#allocation2 + $0x1a1] sm:$0xff] }
 0x730   : > { %v14515_v52 = vpop.permute.xlu0 %11379  ;;  %v4987_v44 = vsel %vm529_vm1, %v4955_v58, %v11321_v51  ;;  %v4988_v35 = vsel %vm529_vm1, %v4956_v60, %v11322_v21  ;;  %v11370_v15 = vpop.permute.xlu1 %11369  ;;  %v4923_v13 = vsel %vm1989_vm7, %v4891_v55, %v11366_v5  ;;  %v4924_v59 = vsel %vm1989_vm7, %v4892_v18, %v11367_v19  ;;  %v4049_v21 = vld [vmem:[#allocation2 + $0x199] sm:$0xff] }
 0x731   : > { %v5019_v2 = vsel %vm1989_vm7, %v4987_v44, %v11326_v31  ;;  %v5020_v3 = vsel %vm1989_vm7, %v4988_v35, %v11327_v33  ;;  %v5055_v41 = vpack.c.bf16 %v4924_v59, %v4923_v13  ;;  %v11653_v27 = vpack.i.bf16 %v4050_v8, %v4049_v21  ;;  %v3805_v31 = vld [vmem:[#allocation2 + $0x78] sm:$0xff]  ;;  %v3806_v60 = vld [vmem:[#allocation2 + $0x80] sm:$0xff] }
 0x732   : > { %11644 = vrot.lane.b32.xlu0 %v11643_v37, %s16564_s22  ;;  %v5056_v14 = vpack.c.bf16 %v5020_v3, %v5019_v2  ;;  %v11372_v51 = vunpack.i.h.bf16 %v11370_v15  ;;  %v11371_v19 = vunpack.i.l.bf16 %v11370_v15  ;;  %v11331_v33 = vunpack.i.l.bf16 %v14444_v50 }
 0x733   : > { %11674 = vrot.lane.b32.xlu1 %v14435_v61, %s16586_s29  ;;  %v11337_v15 = vunpack.i.h.bf16 %v14448_v25  ;;  %v11336_v2 = vunpack.i.l.bf16 %v14448_v25  ;;  %v4958_v50 = vsel %vm386_vm0, %v14205_v12, %v11332_v36  ;;  %v11342_v12 = vunpack.i.h.bf16 %v14461_v46 }
 0x734   : > { %v14529_v54 = vpop.permute.xlu0 %11384  ;;  %5356 = vmatprep.mubr.bf16.mxu0 %v5056_v14  ;;  %v11375_v48 = vpop.permute.xlu1 %11374  ;;  %v4862_v38 = vsel %vm386_vm0, %v3806_v60, %v11372_v51  ;;  %v4861_v7 = vsel %vm386_vm0, %v3805_v31, %v11371_v19  ;;  %v4957_v55 = vsel %vm386_vm0, %v14215_v10, %v11331_v33  ;;  %v11341_v10 = vunpack.i.l.bf16 %v14461_v46  ;;  %v3935_v60 = vld [vmem:[#allocation2 + $0xa9] sm:$0xff] }
 0x735   : > { %v11377_v61 = vunpack.i.h.bf16 %v11375_v48  ;;  %v11376_v5 = vunpack.i.l.bf16 %v11375_v48  ;;  %v11346_v19 = vunpack.i.l.bf16 %v14487_v45  ;;  %v11382_v33 = vunpack.i.h.bf16 %v14515_v52  ;;  %v3807_v46 = vld [vmem:[#allocation2 + $0x90] sm:$0xff] }
 0x736   : > { %11649 = vrot.lane.b32.xlu0 %v11648_v28, %s16563_s15  ;;  %v11381_v31 = vunpack.i.l.bf16 %v14515_v52  ;;  %v4863_v52 = vsel %vm386_vm0, %v3807_v46, %v11341_v10 }
 0x737   : > { %5357 = vmatmul.mubr.bf16.gmra.mxu0 %v5055_v41  ;;  %v4893_v44 = vsel %vm529_vm1, %v4861_v7, %v11376_v5  ;;  %v4894_v35 = vsel %vm529_vm1, %v4862_v38, %v11377_v61  ;;  %v11347_v41 = vunpack.i.h.bf16 %v14487_v45  ;;  %v3936_v38 = vld [vmem:[#allocation2 + $0xb1] sm:$0xff] }
 0x738   : > { %v14532_v37 = vpop.permute.xlu0 %11389  ;;  %v14534_v40 = vpop.permute.xlu1 %11394  ;;  %v4925_v21 = vsel %vm1989_vm7, %v4893_v44, %v11336_v2  ;;  %v4926_v8 = vsel %vm1989_vm7, %v4894_v35, %v11337_v15  ;;  %v11387_v44 = vunpack.i.h.bf16 %v14529_v54  ;;  %v11386_v35 = vunpack.i.l.bf16 %v14529_v54 }
 0x739   : > { %v5058_v36 = vpack.c.bf16 %v4926_v8, %v4925_v21 }
 0x73a   : > { %11654 = vrot.lane.b32.xlu0 %v11653_v27, %s16586_s29 }
 0x73c   : > { %v11410_v6 = vpop.permute.xlu0 %11409  ;;  %v14539_v58 = vpop.permute.xlu1 %11399 }
 0x73d   : > { %v11412_v56 = vunpack.i.h.bf16 %v11410_v6  ;;  %v11411_v24 = vunpack.i.l.bf16 %v11410_v6 }
 0x73f   : > { %v4989_v13 = vsel %vm529_vm1, %v4957_v55, %v11411_v24  ;;  %v4990_v59 = vsel %vm529_vm1, %v4958_v50, %v11412_v56  ;;  %v3808_v24 = vld [vmem:[#allocation2 + $0x98] sm:$0xff] }
 0x740   : > { %v11415_v3 = vpop.permute.xlu0 %11414  ;;  %v14551_v28 = vpop.permute.xlu1 %11404  ;;  %v4864_v2 = vsel %vm386_vm0, %v3808_v24, %v11342_v12 }
 0x741   : > { %v11417_v18 = vunpack.i.h.bf16 %v11415_v3  ;;  %v11416_v14 = vunpack.i.l.bf16 %v11415_v3 }
 0x743   : > { %v5021_v25 = vsel %vm1989_vm7, %v4989_v13, %v11416_v14  ;;  %v5022_v48 = vsel %vm1989_vm7, %v4990_v59, %v11417_v18  ;;  %v4895_v18 = vsel %vm529_vm1, %v4863_v52, %v11346_v19  ;;  %v4896_v14 = vsel %vm529_vm1, %v4864_v2, %v11347_v41 }
 0x744   : > { %v11420_v27 = vpop.permute.xlu0 %11419  ;;  %v5059_v51 = vpack.c.bf16 %v5022_v48, %v5021_v25  ;;  %v11425_v6 = vpop.permute.xlu1 %11424  ;;  %v11397_v2 = vunpack.i.h.bf16 %v14534_v40 }
 0x745   : > { %v11422_v61 = vunpack.i.h.bf16 %v11420_v27  ;;  %v11421_v5 = vunpack.i.l.bf16 %v11420_v27  ;;  %v11427_v7 = vunpack.i.h.bf16 %v11425_v6  ;;  %v11426_v56 = vunpack.i.l.bf16 %v11425_v6 }
 0x746   : > { %5364 = vmatprep.mubr.bf16.mxu0 %v5059_v51 }
 0x747   : > { %v4960_v45 = vsel %vm386_vm0, %v3936_v38, %v11422_v61  ;;  %v4959_v15 = vsel %vm386_vm0, %v3935_v60, %v11421_v5  ;;  %5365 = vmatmul.mubr.bf16.gmra.mxu0 %v5058_v36  ;;  %v4927_v21 = vsel %vm1989_vm7, %v4895_v18, %v11426_v56  ;;  %v4928_v8 = vsel %vm1989_vm7, %v4896_v14, %v11427_v7  ;;  %v3810_v60 = vld [vmem:[#allocation2 + $0xb0] sm:$0xff] }
 0x748   : > { %v14571_v3 = vpop.permute.xlu0 %11439  ;;  %v4991_v50 = vsel %vm529_vm1, %v4959_v15, %v11381_v31  ;;  %v4992_v55 = vsel %vm529_vm1, %v4960_v45, %v11382_v33  ;;  %v11430_v54 = vpop.permute.xlu1 %11429  ;;  %v5061_v10 = vpack.c.bf16 %v4928_v8, %v4927_v21  ;;  %v11392_v36 = vunpack.i.h.bf16 %v14532_v37  ;;  %v3809_v31 = vld [vmem:[#allocation2 + $0xa8] sm:$0xff] }
 0x749   : > { %v5023_v13 = vsel %vm1989_vm7, %v4991_v50, %v11386_v35  ;;  %v5024_v59 = vsel %vm1989_vm7, %v4992_v55, %v11387_v44  ;;  %v11432_v41 = vunpack.i.h.bf16 %v11430_v54  ;;  %v11431_v19 = vunpack.i.l.bf16 %v11430_v54  ;;  %v3937_v45 = vld [vmem:[#allocation2 + $0xc1] sm:$0xff]  ;;  %v3938_v15 = vld [vmem:[#allocation2 + $0xc9] sm:$0xff] }
 0x74a   : > { %v5062_v25 = vpack.c.bf16 %v5024_v59, %v5023_v13  ;;  %v11391_v33 = vunpack.i.l.bf16 %v14532_v37  ;;  %v11396_v37 = vunpack.i.l.bf16 %v14534_v40  ;;  %v4962_v50 = vsel %vm386_vm0, %v3938_v15, %v11392_v36 }
 0x74b   : > { %v4866_v7 = vsel %vm386_vm0, %v3810_v60, %v11432_v41  ;;  %v4865_v56 = vsel %vm386_vm0, %v3809_v31, %v11431_v19  ;;  %v11407_v41 = vunpack.i.h.bf16 %v14551_v28  ;;  %v11442_v60 = vunpack.i.h.bf16 %v14571_v3 }
 0x74c   : > { %v14581_v48 = vpop.permute.xlu0 %11444  ;;  %5372 = vmatprep.mubr.bf16.mxu0 %v5062_v25  ;;  %v11435_v12 = vpop.permute.xlu1 %11434  ;;  %v4961_v55 = vsel %vm386_vm0, %v3937_v45, %v11391_v33 }
 0x74d   : > { %v11437_v61 = vunpack.i.h.bf16 %v11435_v12  ;;  %v11436_v5 = vunpack.i.l.bf16 %v11435_v12  ;;  %v11402_v12 = vunpack.i.h.bf16 %v14539_v58  ;;  %v11447_v45 = vunpack.i.h.bf16 %v14581_v48 }
 0x74e   : > { %v11446_v15 = vunpack.i.l.bf16 %v14581_v48 }
 0x74f   : > { %5373 = vmatmul.mubr.bf16.gmra.mxu0 %v5061_v10  ;;  %v4897_v44 = vsel %vm529_vm1, %v4865_v56, %v11436_v5  ;;  %v4898_v35 = vsel %vm529_vm1, %v4866_v7, %v11437_v61  ;;  %v11401_v10 = vunpack.i.l.bf16 %v14539_v58  ;;  %v11406_v5 = vunpack.i.l.bf16 %v14551_v28  ;;  %v3939_v56 = vld [vmem:[#allocation2 + $0xd9] sm:$0xff] }
 0x750   : > { %v14583_v27 = vpop.permute.xlu0 %11449  ;;  %v14585_v51 = vpop.permute.xlu1 %11454  ;;  %v4929_v21 = vsel %vm1989_vm7, %v4897_v44, %v11396_v37  ;;  %v4930_v8 = vsel %vm1989_vm7, %v4898_v35, %v11397_v2  ;;  %v11441_v7 = vunpack.i.l.bf16 %v14571_v3  ;;  %v3811_v58 = vld [vmem:[#allocation2 + $0xc0] sm:$0xff]  ;;  %v3812_v35 = vld [vmem:[#allocation2 + $0xc8] sm:$0xff] }
 0x751   : > { %v5064_v31 = vpack.c.bf16 %v4930_v8, %v4929_v21  ;;  %v4868_v37 = vsel %vm386_vm0, %v3812_v35, %v11402_v12  ;;  %v4867_v3 = vsel %vm386_vm0, %v3811_v58, %v11401_v10 }
 0x754   : > { %v11470_v6 = vpop.permute.xlu0 %11469  ;;  %v14589_v38 = vpop.permute.xlu1 %11459 }
 0x755   : > { %v11472_v46 = vunpack.i.h.bf16 %v11470_v6  ;;  %v11471_v24 = vunpack.i.l.bf16 %v11470_v6 }
 0x757   : > { %v4993_v13 = vsel %vm529_vm1, %v4961_v55, %v11471_v24  ;;  %v4994_v59 = vsel %vm529_vm1, %v4962_v50, %v11472_v46  ;;  %v3940_v46 = vld [vmem:[#allocation2 + $0xe1] sm:$0xff] }
 0x758   : > { %v11475_v52 = vpop.permute.xlu0 %11474  ;;  %v14599_v54 = vpop.permute.xlu1 %11464 }
 0x759   : > { %v11477_v18 = vunpack.i.h.bf16 %v11475_v52  ;;  %v11476_v14 = vunpack.i.l.bf16 %v11475_v52 }
 0x75b   : > { %v5025_v25 = vsel %vm1989_vm7, %v4993_v13, %v11476_v14  ;;  %v5026_v40 = vsel %vm1989_vm7, %v4994_v59, %v11477_v18  ;;  %v4899_v18 = vsel %vm529_vm1, %v4867_v3, %v11406_v5  ;;  %v4900_v14 = vsel %vm529_vm1, %v4868_v37, %v11407_v41  ;;  %v3941_v37 = vld [vmem:[#allocation2 + $0xf1] sm:$0xff]  ;;  %v3942_v3 = vld [vmem:[#allocation2 + $0xf9] sm:$0xff] }
 0x75c   : > { %v11480_v19 = vpop.permute.xlu0 %11479  ;;  %v5065_v61 = vpack.c.bf16 %v5026_v40, %v5025_v25  ;;  %v11485_v33 = vpop.permute.xlu1 %11484  ;;  %v12208_v40 = vld [vmem:[%s16500_s5 + $0x18] sm:$0xff]  }
 0x75d   : > { %v11482_v6 = vunpack.i.h.bf16 %v11480_v19  ;;  %v11481_v36 = vunpack.i.l.bf16 %v11480_v19  ;;  %v11487_v24 = vunpack.i.h.bf16 %v11485_v33  ;;  %v11486_v44 = vunpack.i.l.bf16 %v11485_v33  ;;  %10484 = vmatprep.subr.bf16.mxu1 %v12208_v40  ;;  %v12209_v19 = vld [vmem:[%s16500_s5 + $0x10] sm:$0xff]  }
 0x75e   : > { %5380 = vmatprep.mubr.bf16.mxu0 %v5065_v61  ;;  %10485 = vmatpush3.bf16.msra.mxu1 %v12208_v40 }
 0x75f   : > { %v4964_v28 = vsel %vm386_vm0, %v3940_v46, %v11482_v6  ;;  %v4963_v2 = vsel %vm386_vm0, %v3939_v56, %v11481_v36  ;;  %5381 = vmatmul.mubr.bf16.gmra.mxu0 %v5064_v31  ;;  %v4931_v21 = vsel %vm1989_vm7, %v4899_v18, %v11486_v44  ;;  %v4932_v8 = vsel %vm1989_vm7, %v4900_v14, %v11487_v24  ;;  %v3813_v46 = vld [vmem:[#allocation2 + $0xd8] sm:$0xff]  ;;  %v3814_v24 = vld [vmem:[#allocation2 + $0xe0] sm:$0xff] }
 0x760   : > { %v14619_v52 = vpop.permute.xlu0 %11499  ;;  %v4995_v50 = vsel %vm529_vm1, %v4963_v2, %v11441_v7  ;;  %v4996_v55 = vsel %vm529_vm1, %v4964_v28, %v11442_v60  ;;  %v11490_v48 = vpop.permute.xlu1 %11489  ;;  %v5067_v41 = vpack.c.bf16 %v4932_v8, %v4931_v21  ;;  %10486 = vmatprep.subr.bf16.mxu1 %v12209_v19  ;;  %v11452_v7 = vunpack.i.h.bf16 %v14583_v27 }
 0x761   : > { %v5027_v13 = vsel %vm1989_vm7, %v4995_v50, %v11446_v15  ;;  %v5028_v59 = vsel %vm1989_vm7, %v4996_v55, %v11447_v45  ;;  %v11492_v6 = vunpack.i.h.bf16 %v11490_v48  ;;  %v11491_v36 = vunpack.i.l.bf16 %v11490_v48 }
 0x762   : > { %v5068_v25 = vpack.c.bf16 %v5028_v59, %v5027_v13  ;;  %10487 = vmatpush3.bf16.msra.mxu1 %v12209_v19  ;;  %v11451_v56 = vunpack.i.l.bf16 %v14583_v27  ;;  %v11457_v50 = vunpack.i.h.bf16 %v14585_v51  ;;  %v11456_v27 = vunpack.i.l.bf16 %v14585_v51 }
 0x763   : > { %v4870_v58 = vsel %vm386_vm0, %v3814_v24, %v11492_v6  ;;  %v4869_v35 = vsel %vm386_vm0, %v3813_v46, %v11491_v36  ;;  %v4966_v18 = vsel %vm386_vm0, %v3942_v3, %v11452_v7  ;;  %v11461_v19 = vunpack.i.l.bf16 %v14589_v38 }
 0x764   : > { %v14632_v12 = vpop.permute.xlu0 %11504  ;;  %5388 = vmatprep.mubr.bf16.mxu0 %v5068_v25  ;;  %v11495_v10 = vpop.permute.xlu1 %11494  ;;  %v4965_v14 = vsel %vm386_vm0, %v3941_v37, %v11451_v56  ;;  %v11467_v6 = vunpack.i.h.bf16 %v14599_v54  ;;  %v11502_v24 = vunpack.i.h.bf16 %v14619_v52 }
 0x765   : > { %v11497_v33 = vunpack.i.h.bf16 %v11495_v10  ;;  %v11496_v31 = vunpack.i.l.bf16 %v11495_v10 }
 0x767   : > { %5389 = vmatmul.mubr.bf16.gmra.mxu0 %v5067_v41  ;;  %v4901_v28 = vsel %vm529_vm1, %v4869_v35, %v11496_v31  ;;  %v4902_v2 = vsel %vm529_vm1, %v4870_v58, %v11497_v33  ;;  %v11462_v41 = vunpack.i.h.bf16 %v14589_v38  ;;  %v11466_v31 = vunpack.i.l.bf16 %v14599_v54 }
 0x768   : > { %v14637_v61 = vpop.permute.xlu0 %11509  ;;  %v14639_v5 = vpop.permute.xlu1 %11514  ;;  %v4933_v25 = vsel %vm1989_vm7, %v4901_v28, %v11456_v27  ;;  %v4934_v40 = vsel %vm1989_vm7, %v4902_v2, %v11457_v50  ;;  %v11501_v58 = vunpack.i.l.bf16 %v14619_v52  ;;  %v3816_v28 = vld [vmem:[#allocation2 + $0xf8] sm:$0xff]  ;;  %v11507_v38 = vunpack.i.h.bf16 %v14632_v12 }
 0x769   : > { %v5070_v46 = vpack.c.bf16 %v4934_v40, %v4933_v25  ;;  %v11506_v2 = vunpack.i.l.bf16 %v14632_v12  ;;  %v4872_v3 = vsel %vm386_vm0, %v3816_v28, %v11462_v41 }
 0x76a   : > { %v4904_v12 = vsel %vm529_vm1, %v4872_v3, %v11467_v6 }
 0x76c   : > { %v11530_v60 = vpop.permute.xlu0 %11529  ;;  %v14643_v44 = vpop.permute.xlu1 %11519 }
 0x76d   : > { %v11532_v45 = vunpack.i.h.bf16 %v11530_v60  ;;  %v11531_v15 = vunpack.i.l.bf16 %v11530_v60 }
 0x76f   : > { %v4997_v21 = vsel %vm529_vm1, %v4965_v14, %v11531_v15  ;;  %v4998_v8 = vsel %vm529_vm1, %v4966_v18, %v11532_v45  ;;  %v3815_v15 = vld [vmem:[#allocation2 + $0xf0] sm:$0xff] }
 0x770   : > { %v11535_v55 = vpop.permute.xlu0 %11534  ;;  %v14653_v59 = vpop.permute.xlu1 %11524  ;;  %v4871_v52 = vsel %vm386_vm0, %v3815_v15, %v11461_v19 }
 0x771   : > { %v11537_v48 = vunpack.i.h.bf16 %v11535_v55  ;;  %v11536_v13 = vunpack.i.l.bf16 %v11535_v55  ;;  %v4903_v18 = vsel %vm529_vm1, %v4871_v52, %v11466_v31  ;;  %v11512_v31 = vunpack.i.h.bf16 %v14637_v61 }
 0x773   : > { %v5029_v10 = vsel %vm1989_vm7, %v4997_v21, %v11536_v13  ;;  %v5030_v51 = vsel %vm1989_vm7, %v4998_v8, %v11537_v48 }
 0x774   : > { %v11540_v36 = vpop.permute.xlu0 %11539  ;;  %v5071_v33 = vpack.c.bf16 %v5030_v51, %v5029_v10  ;;  %v11545_v56 = vpop.permute.xlu1 %11544 }
 0x775   : > { %v11542_v60 = vunpack.i.h.bf16 %v11540_v36  ;;  %v11541_v7 = vunpack.i.l.bf16 %v11540_v36  ;;  %v11547_v35 = vunpack.i.h.bf16 %v11545_v56  ;;  %v11546_v45 = vunpack.i.l.bf16 %v11545_v56  ;;  %v3818_v56 = vld [vmem:[#allocation2 + $0x110] sm:$0xff] }
 0x776   : > { %5396 = vmatprep.mubr.bf16.mxu0 %v5071_v33 }
 0x777   : > { %v4968_v54 = vsel %vm386_vm0, %v14316_v26, %v11542_v60  ;;  %v4967_v37 = vsel %vm386_vm0, %v14321_v39, %v11541_v7  ;;  %5397 = vmatmul.mubr.bf16.gmra.mxu0 %v5070_v46  ;;  %v4935_v48 = vsel %vm1989_vm7, %v4903_v18, %v11546_v45  ;;  %v4936_v13 = vsel %vm1989_vm7, %v4904_v12, %v11547_v35  ;;  %v3817_v7 = vld [vmem:[#allocation2 + $0x108] sm:$0xff] }
 0x778   : > { %v14675_v50 = vpop.permute.xlu0 %11559  ;;  %v4999_v27 = vsel %vm529_vm1, %v4967_v37, %v11501_v58  ;;  %v5000_v55 = vsel %vm529_vm1, %v4968_v54, %v11502_v24  ;;  %v11550_v14 = vpop.permute.xlu1 %11549  ;;  %v5073_v40 = vpack.c.bf16 %v4936_v13, %v4935_v48  ;;  %v11511_v60 = vunpack.i.l.bf16 %v14637_v61 }
 0x779   : > { %v5031_v26 = vsel %vm1989_vm7, %v4999_v27, %v11506_v2  ;;  %v5032_v39 = vsel %vm1989_vm7, %v5000_v55, %v11507_v38  ;;  %v11552_v41 = vunpack.i.h.bf16 %v11550_v14  ;;  %v11551_v19 = vunpack.i.l.bf16 %v11550_v14  ;;  %v3945_v38 = vld [vmem:[#allocation2 + $0x121] sm:$0xff]  ;;  %v3946_v2 = vld [vmem:[#allocation2 + $0x129] sm:$0xff] }
 0x77a   : > { %v5074_v21 = vpack.c.bf16 %v5032_v39, %v5031_v26  ;;  %v11517_v54 = vunpack.i.h.bf16 %v14639_v5  ;;  %v11516_v61 = vunpack.i.l.bf16 %v14639_v5  ;;  %v4970_v3 = vsel %vm386_vm0, %v3946_v2, %v11512_v31 }
 0x77b   : > { %v4874_v24 = vsel %vm386_vm0, %v3818_v56, %v11552_v41  ;;  %v4873_v58 = vsel %vm386_vm0, %v3817_v7, %v11551_v19  ;;  %v4969_v52 = vsel %vm386_vm0, %v3945_v38, %v11511_v60  ;;  %v11522_v13 = vunpack.i.h.bf16 %v14643_v44 }
 0x77c   : > { %v14685_v8 = vpop.permute.xlu0 %11564  ;;  %5404 = vmatprep.mubr.bf16.mxu0 %v5074_v21  ;;  %v11555_v25 = vpop.permute.xlu1 %11554  ;;  %v11521_v21 = vunpack.i.l.bf16 %v14643_v44  ;;  %v11526_v19 = vunpack.i.l.bf16 %v14653_v59  ;;  %v11562_v60 = vunpack.i.h.bf16 %v14675_v50  ;;  %v11561_v7 = vunpack.i.l.bf16 %v14675_v50 }
 0x77d   : > { %v11557_v6 = vunpack.i.h.bf16 %v11555_v25  ;;  %v11556_v36 = vunpack.i.l.bf16 %v11555_v25  ;;  %v11527_v25 = vunpack.i.h.bf16 %v14653_v59  ;;  %v11567_v44 = vunpack.i.h.bf16 %v14685_v8 }
 0x77f   : > { %5405 = vmatmul.mubr.bf16.gmra.mxu0 %v5073_v40  ;;  %v4905_v15 = vsel %vm529_vm1, %v4873_v58, %v11556_v36  ;;  %v4906_v28 = vsel %vm529_vm1, %v4874_v24, %v11557_v6  ;;  %v3819_v58 = vld [vmem:[#allocation2 + $0x120] sm:$0xff] }
 0x780   : > { %v14687_v10 = vpop.permute.xlu0 %11569  ;;  %v14689_v51 = vpop.permute.xlu1 %11574  ;;  %v4937_v26 = vsel %vm1989_vm7, %v4905_v15, %v11516_v61  ;;  %v4938_v39 = vsel %vm1989_vm7, %v4906_v28, %v11517_v54  ;;  %v4875_v50 = vsel %vm386_vm0, %v3819_v58, %v11521_v21 }
 0x781   : > { %v5076_v31 = vpack.c.bf16 %v4938_v39, %v4937_v26  ;;  %v4907_v61 = vsel %vm529_vm1, %v4875_v50, %v11526_v19  ;;  %v11571_v21 = vunpack.i.l.bf16 %v14687_v10 }
 0x784   : > { %v11585_v33 = vpop.permute.xlu0 %11584  ;;  %v14693_v46 = vpop.permute.xlu1 %11579 }
 0x785   : > { %v11587_v35 = vunpack.i.h.bf16 %v11585_v33  ;;  %v11586_v45 = vunpack.i.l.bf16 %v11585_v33  ;;  %v11582_v50 = vunpack.i.h.bf16 %v14693_v46 }
 0x787   : > { %v5001_v12 = vsel %vm529_vm1, %v4969_v52, %v11586_v45  ;;  %v5002_v14 = vsel %vm529_vm1, %v4970_v3, %v11587_v35  ;;  %v3820_v35 = vld [vmem:[#allocation2 + $0x128] sm:$0xff]  ;;  %v11566_v45 = vunpack.i.l.bf16 %v14685_v8 }
 0x788   : > { %v11590_v37 = vpop.permute.xlu0 %11589  ;;  %v4876_v28 = vsel %vm386_vm0, %v3820_v35, %v11522_v13  ;;  %v11572_v13 = vunpack.i.h.bf16 %v14687_v10 }
 0x789   : > { %v11592_v27 = vunpack.i.h.bf16 %v11590_v37  ;;  %v11591_v55 = vunpack.i.l.bf16 %v11590_v37  ;;  %v11600_v18 = vpop.permute.xlu1 %11599  ;;  %v4908_v8 = vsel %vm529_vm1, %v4876_v28, %v11527_v25 }
 0x78a   : > { %v11602_v56 = vunpack.i.h.bf16 %v11600_v18  ;;  %v11601_v24 = vunpack.i.l.bf16 %v11600_v18 }
 0x78b   : > { %v5033_v48 = vsel %vm1989_vm7, %v5001_v12, %v11591_v55  ;;  %v5034_v5 = vsel %vm1989_vm7, %v5002_v14, %v11592_v27 }
 0x78c   : > { %v11595_v40 = vpop.permute.xlu0 %11594  ;;  %v5077_v41 = vpack.c.bf16 %v5034_v5, %v5033_v48  ;;  %v4939_v3 = vsel %vm1989_vm7, %v4907_v61, %v11601_v24  ;;  %v4940_v52 = vsel %vm1989_vm7, %v4908_v8, %v11602_v56  ;;  %v12289_v56 = vld [vmem:[#allocation2 + $0x159] sm:$0xff]  ;;  %v12290_v24 = vld [vmem:[#allocation2 + $0x151] sm:$0xff] }
 0x78d   : > { %v11597_v6 = vunpack.i.h.bf16 %v11595_v40  ;;  %v11596_v36 = vunpack.i.l.bf16 %v11595_v40  ;;  %v11605_v33 = vpop.permute.xlu1 %11604  ;;  %v5079_v12 = vpack.c.bf16 %v4940_v52, %v4939_v3  ;;  %v4974_v10 = vsel %vm386_vm0, %v12289_v56, %v11572_v13 }
 0x78e   : > { %5412 = vmatprep.mubr.bf16.mxu0 %v5077_v41  ;;  %v11607_v14 = vunpack.i.h.bf16 %v11605_v33  ;;  %v11606_v26 = vunpack.i.l.bf16 %v11605_v33 }
 0x78f   : > { %v4972_v59 = vsel %vm386_vm0, %v14381_v57, %v11597_v6  ;;  %v4971_v15 = vsel %vm386_vm0, %v14390_v29, %v11596_v36  ;;  %5413 = vmatmul.mubr.bf16.gmra.mxu0 %v5076_v31  ;;  %v11577_v31 = vunpack.i.h.bf16 %v14689_v51 }
 0x790   : > { %v14723_v38 = vpop.permute.xlu0 %11619  ;;  %v5003_v2 = vsel %vm529_vm1, %v4971_v15, %v11561_v7  ;;  %v5004_v54 = vsel %vm529_vm1, %v4972_v59, %v11562_v60  ;;  %v4878_v40 = vsel %vm386_vm0, %v14364_v16, %v11607_v14  ;;  %v4877_v41 = vsel %vm386_vm0, %v14373_v42, %v11606_v26 }
 0x791   : > { %v11610_v37 = vpop.permute.xlu1 %11609  ;;  %v5035_v57 = vsel %vm1989_vm7, %v5003_v2, %v11566_v45  ;;  %v5036_v29 = vsel %vm1989_vm7, %v5004_v54, %v11567_v44  ;;  %v11576_v60 = vunpack.i.l.bf16 %v14689_v51  ;;  %v4973_v16 = vsel %vm386_vm0, %v12290_v24, %v11571_v21 }
 0x792   : > { %v5080_v27 = vpack.c.bf16 %v5036_v29, %v5035_v57  ;;  %v11612_v39 = vunpack.i.h.bf16 %v11610_v37  ;;  %v11611_v48 = vunpack.i.l.bf16 %v11610_v37  ;;  %v11581_v2 = vunpack.i.l.bf16 %v14693_v46 }
 0x794   : > { %v14733_v55 = vpop.permute.xlu0 %11624  ;;  %5420 = vmatprep.mubr.bf16.mxu0 %v5080_v27  ;;  %v4909_v36 = vsel %vm529_vm1, %v4877_v41, %v11611_v48  ;;  %v4910_v33 = vsel %vm529_vm1, %v4878_v40, %v11612_v39  ;;  %v11622_v27 = vunpack.i.h.bf16 %v14723_v38  ;;  %v3823_v39 = vld [vmem:[#allocation2 + $0x150] sm:$0xff]  ;;  %v3824_v48 = vld [vmem:[#allocation2 + $0x158] sm:$0xff] }
 0x795   : > { %v14735_v18 = vpop.permute.xlu1 %11614  ;;  %v4941_v59 = vsel %vm1989_vm7, %v4909_v36, %v11576_v60  ;;  %v4942_v15 = vsel %vm1989_vm7, %v4910_v33, %v11577_v31  ;;  %v11627_v46 = vunpack.i.h.bf16 %v14733_v55  ;;  %v4880_v21 = vsel %vm386_vm0, %v3824_v48, %v11582_v50 }
 0x796   : > { %v11617_v54 = vunpack.i.h.bf16 %v14735_v18  ;;  %v11616_v37 = vunpack.i.l.bf16 %v14735_v18  ;;  %v5082_v52 = vpack.c.bf16 %v4942_v15, %v4941_v59 }
 0x797   : > { %5421 = vmatmul.mubr.bf16.gmra.mxu0 %v5079_v12  ;;  %v11621_v12 = vunpack.i.l.bf16 %v14723_v38  ;;  %v4879_v38 = vsel %vm386_vm0, %v3823_v39, %v11581_v2  ;;  %v14798_v39 = vld [vmem:[%s16499_s4 + $0x1] ss:$0 sm:$0xff] }
 0x798   : > { %v11630_v5 = vpop.permute.xlu0 %11629 }
 0x799   : > { %v11660_v25 = vpop.permute.xlu1 %11659  ;;  %v11632_v19 = vunpack.i.h.bf16 %v11630_v5  ;;  %v11631_v6 = vunpack.i.l.bf16 %v11630_v5  ;;  %v11626_v5 = vunpack.i.l.bf16 %v14733_v55  ;;  %v4912_v55 = vsel %vm529_vm1, %v4880_v21, %v11617_v54 }
 0x79a   : > { %v11662_v14 = vunpack.i.h.bf16 %v11660_v25  ;;  %v11661_v26 = vunpack.i.l.bf16 %v11660_v25 }
 0x79b   : > { %v5005_v44 = vsel %vm529_vm1, %v4973_v16, %v11631_v6  ;;  %v5006_v45 = vsel %vm529_vm1, %v4974_v10, %v11632_v19  ;;  %v4911_v19 = vsel %vm529_vm1, %v4879_v38, %v11616_v37 }
 0x79c   : > { %v11635_v7 = vpop.permute.xlu0 %11634  ;;  %v4944_v36 = vsel %vm1989_vm7, %v4912_v55, %v11662_v14 }
 0x79d   : > { %v11637_v58 = vunpack.i.h.bf16 %v11635_v7  ;;  %v11636_v35 = vunpack.i.l.bf16 %v11635_v7  ;;  %v11665_v42 = vpop.permute.xlu1 %11664 }
 0x79e   : > { %v11667_v31 = vunpack.i.h.bf16 %v11665_v42  ;;  %v11666_v60 = vunpack.i.l.bf16 %v11665_v42 }
 0x79f   : > { %v5037_v51 = vsel %vm1989_vm7, %v5005_v44, %v11636_v35  ;;  %v5038_v28 = vsel %vm1989_vm7, %v5006_v45, %v11637_v58 }
 0x7a0   : > { %v11640_v61 = vpop.permute.xlu0 %11639  ;;  %v5083_v8 = vpack.c.bf16 %v5038_v28, %v5037_v51  ;;  %v4882_v51 = vsel %vm386_vm0, %v14450_v9, %v11667_v31  ;;  %v4881_v28 = vsel %vm386_vm0, %v14455_v30, %v11666_v60 }
 0x7a1   : > { %v11642_v57 = vunpack.i.h.bf16 %v11640_v61  ;;  %v11641_v29 = vunpack.i.l.bf16 %v11640_v61  ;;  %v11670_v3 = vpop.permute.xlu1 %11669 }
 0x7a2   : > { %5428 = vmatprep.mubr.bf16.mxu0 %v5083_v8  ;;  %v11672_v56 = vunpack.i.h.bf16 %v11670_v3  ;;  %v11671_v10 = vunpack.i.l.bf16 %v11670_v3 }
 0x7a3   : > { %v4976_v18 = vsel %vm386_vm0, %v14463_v23, %v11642_v57  ;;  %v4975_v13 = vsel %vm386_vm0, %v14473_v17, %v11641_v29  ;;  %5429 = vmatmul.mubr.bf16.gmra.mxu0 %v5082_v52  ;;  %v4943_v17 = vsel %vm1989_vm7, %v4911_v19, %v11661_v26 }
 0x7a4   : > { %v11645_v40 = vpop.permute.xlu0 %11644  ;;  %v5007_v25 = vsel %vm529_vm1, %v4975_v13, %v11621_v12  ;;  %v5008_v41 = vsel %vm529_vm1, %v4976_v18, %v11622_v27  ;;  %v5085_v35 = vpack.c.bf16 %v4944_v36, %v4943_v17  ;;  %v4913_v42 = vsel %vm529_vm1, %v4881_v28, %v11671_v10 }
 0x7a5   : > { %v5039_v6 = vsel %vm1989_vm7, %v5007_v25, %v11626_v5  ;;  %v5040_v23 = vsel %vm1989_vm7, %v5008_v41, %v11627_v46  ;;  %v11675_v7 = vpop.permute.xlu1 %11674  ;;  %v11647_v16 = vunpack.i.h.bf16 %v11645_v40  ;;  %v11646_v58 = vunpack.i.l.bf16 %v11645_v40 }
 0x7a6   : > { %v5086_v33 = vpack.c.bf16 %v5040_v23, %v5039_v6  ;;  %v11677_v44 = vunpack.i.h.bf16 %v11675_v7  ;;  %v11676_v45 = vunpack.i.l.bf16 %v11675_v7  ;;  %v4914_v50 = vsel %vm529_vm1, %v4882_v51, %v11672_v56 }
 0x7a7   : > { %v4978_v54 = vsel %vm386_vm0, %v14437_v32, %v11647_v16  ;;  %v4977_v61 = vsel %vm386_vm0, %v14442_v47, %v11646_v58  ;;  %v16587_v32 = vmov 0.0   ;;  %v10454_v47 = vpop.f32.mrf.mxu1 }
 0x7a8   : > { %v11650_v24 = vpop.permute.xlu0 %11649  ;;  %5436 = vmatprep.mubr.bf16.mxu0 %v5086_v33  ;;  %v4945_v57 = vsel %vm1989_vm7, %v4913_v42, %v11676_v45  ;;  %v4946_v9 = vsel %vm1989_vm7, %v4914_v50, %v11677_v44 }
 0x7a9   : > { %v11652_v59 = vunpack.i.h.bf16 %v11650_v24  ;;  %v11651_v15 = vunpack.i.l.bf16 %v11650_v24  ;;  %v5088_v12 = vpack.c.bf16 %v4946_v9, %v4945_v57  ;;  %v5487_v26 = vpop.f32.mrf.mxu1 }
 0x7ab   : > { %5437 = vmatmul.mubr.bf16.gmra.mxu0 %v5085_v35  ;;  %v5009_v30 = vsel %vm529_vm1, %v4977_v61, %v11651_v15  ;;  %v5010_v29 = vsel %vm529_vm1, %v4978_v54, %v11652_v59  ;;  %v10455_v13 = vpop.f32.mrf.mxu1 }
 0x7ac   : > { %v11655_v2 = vpop.permute.xlu0 %11654 }
 0x7ad   : > { %v11657_v8 = vunpack.i.h.bf16 %v11655_v2  ;;  %v11656_v37 = vunpack.i.l.bf16 %v11655_v2  ;;  %v5490_v41 = vpop.f32.mrf.mxu1 }
 0x7af   : > { %v5041_v3 = vsel %vm1989_vm7, %v5009_v30, %v11656_v37  ;;  %v5042_v52 = vsel %vm1989_vm7, %v5010_v29, %v11657_v8  ;;  %v10458_v10 = vpop.f32.mrf.mxu1 }
 0x7b0   : > { %v5089_v27 = vpack.c.bf16 %v5042_v52, %v5041_v3 }
 0x7b1   : > { %v5503_v45 = vpop.f32.mrf.mxu1 }
 0x7b2   : > { %5444 = vmatprep.mubr.bf16.mxu0 %v5089_v27 }
 0x7b3   : > { %5445 = vmatmul.mubr.bf16.gmra.mxu0 %v5088_v12  ;;  %v10459_v54 = vpop.f32.mrf.mxu1 }
 0x7b4   : > { %10528 = vmatprep.mubr.msk.bf16.mxu0 %vm12359_vm14, %v16587_v32 }
 0x7b5   : > { %v5506_v3 = vpop.f32.mrf.mxu1 }
 0x7c5   : > { %v9964_v14 = vpop.f32.mrf.mxu0 }
 0x7c7   : > { %v9965_v48 = vpop.f32.mrf.mxu0 }
 0x7c8   : > { %v9966_v46 = vadd.f32 %v9965_v48, %v9964_v14 }
 0x7c9   : > { %v9967_v5 = vpop.f32.mrf.mxu0 }
 0x7ca   : > { %v5327_v18 = vadd.f32 %v9966_v46, %v14798_v39 }
 0x7cb   : > { %v9968_v21 = vpop.f32.mrf.mxu0 }
 0x7cc   : > { %v5488_v38 = vadd.f32 %v5487_v26, %v5327_v18  ;;  %v9969_v40 = vadd.f32 %v9968_v21, %v9967_v5  ;;  %v10462_v21 = vpop.f32.mrf.mxu1 }
 0x7ce   : > { %v5330_v25 = vadd.f32 %v9969_v40, %v14798_v39  ;;  %v5646_v19 = vmul.f32 0.01, %v5488_v38  ;;  %vm5614_vm15 = vcmp.gt.f32.partialorder %v5488_v38, 0.0 }
 0x7d0   : > { %v5491_v55 = vadd.f32 %v5490_v41, %v5330_v25  ;;  %v5678_v23 = vsel %vm5614_vm15, %v5488_v38, %v5646_v19 }
 0x7d2   : > { %vm5615_vm2 = vcmp.gt.f32.partialorder %v5491_v55, 0.0  ;;  %v5647_v6 = vmul.f32 0.01, %v5491_v55 }
 0x7d4   : > { %v5679_v17 = vsel %vm5615_vm2, %v5491_v55, %v5647_v6  ;;  %v5519_v55 = vpop.f32.mrf.mxu1 }
 0x7d5   : > { %v5710_v36 = vpack.c.bf16 %v5679_v17, %v5678_v23 }
 0x7d7   : > { %v9970_v33 = vpop.f32.mrf.mxu0  ;;  %10488 = vmatprep.mubr.msk.bf16.mxu1 %vm386_vm0, %v5710_v36 }
 0x7d9   : > { %v9971_v31 = vpop.f32.mrf.mxu0 }
 0x7da   : > { %v9972_v60 = vadd.f32 %v9971_v31, %v9970_v33 }
 0x7db   : > { %v9973_v7 = vpop.f32.mrf.mxu0 }
 0x7dc   : > { %v5335_v56 = vadd.f32 %v9972_v60, %v14798_v39 }
 0x7dd   : > { %v9974_v24 = vpop.f32.mrf.mxu0 }
 0x7de   : > { %v5496_v16 = vadd.f32 %v10454_v47, %v5335_v56  ;;  %v9975_v58 = vadd.f32 %v9974_v24, %v9973_v7  ;;  %v10463_v7 = vpop.f32.mrf.mxu1 }
 0x7df   : > { %v9976_v35 = vpop.f32.mrf.mxu0 }
 0x7e0   : > { %v5338_v44 = vadd.f32 %v9975_v58, %v14798_v39  ;;  %v5648_v15 = vmul.f32 0.01, %v5496_v16  ;;  %vm5616_vm3 = vcmp.gt.f32.partialorder %v5496_v16, 0.0 }
 0x7e1   : > { %v9977_v59 = vpop.f32.mrf.mxu0 }
 0x7e2   : > { %v5499_v51 = vadd.f32 %v10455_v13, %v5338_v44  ;;  %v9978_v28 = vadd.f32 %v9977_v59, %v9976_v35  ;;  %v5680_v8 = vsel %vm5616_vm3, %v5496_v16, %v5648_v15 }
 0x7e3   : > { %v9979_v42 = vpop.f32.mrf.mxu0 }
 0x7e4   : > { %vm5617_vm4 = vcmp.gt.f32.partialorder %v5499_v51, 0.0  ;;  %v5649_v50 = vmul.f32 0.01, %v5499_v51  ;;  %v5343_v2 = vadd.f32 %v9978_v28, %v14798_v39 }
 0x7e5   : > { %v9980_v61 = vpop.f32.mrf.mxu0 }
 0x7e6   : > { %v5681_v37 = vsel %vm5617_vm4, %v5499_v51, %v5649_v50  ;;  %v5504_v57 = vadd.f32 %v5503_v45, %v5343_v2  ;;  %v9981_v9 = vadd.f32 %v9980_v61, %v9979_v42  ;;  %v5522_v45 = vpop.f32.mrf.mxu1 }
 0x7e7   : > { %v5711_v30 = vpack.c.bf16 %v5681_v37, %v5680_v8 }
 0x7e8   : > { %v5346_v29 = vadd.f32 %v9981_v9, %v14798_v39  ;;  %v5650_v52 = vmul.f32 0.01, %v5504_v57  ;;  %vm5618_vm5 = vcmp.gt.f32.partialorder %v5504_v57, 0.0 }
 0x7e9   : > { %10489 = vmatmul.mubr.msk.bf16.vlgmr.msra.gmra.mxu1 %vm386_vm0, %v5711_v30 }
 0x7ea   : > { %v5507_v27 = vadd.f32 %v5506_v3, %v5346_v29  ;;  %v5682_v47 = vsel %vm5618_vm5, %v5504_v57, %v5650_v52  ;;  %v10466_v57 = vpop.f32.mrf.mxu1 }
 0x7ec   : > { %vm5619_vm6 = vcmp.gt.f32.partialorder %v5507_v27, 0.0  ;;  %v5651_v12 = vmul.f32 0.01, %v5507_v27 }
 0x7ee   : > { %v5683_v14 = vsel %vm5619_vm6, %v5507_v27, %v5651_v12  ;;  %v5535_v27 = vpop.f32.mrf.mxu1 }
 0x7ef   : > { %v9982_v26 = vpop.f32.mrf.mxu0  ;;  %v5712_v48 = vpack.c.bf16 %v5683_v14, %v5682_v47 }
 0x7f1   : > { %v9983_v46 = vpop.f32.mrf.mxu0  ;;  %10492 = vmatprep.mubr.msk.bf16.mxu1 %vm386_vm0, %v5712_v48 }
 0x7f2   : > { %v9984_v5 = vadd.f32 %v9983_v46, %v9982_v26 }
 0x7f3   : > { %v9985_v18 = vpop.f32.mrf.mxu0 }
 0x7f4   : > { %v5351_v13 = vadd.f32 %v9984_v5, %v14798_v39 }
 0x7f5   : > { %v9986_v38 = vpop.f32.mrf.mxu0 }
 0x7f6   : > { %v5512_v40 = vadd.f32 %v10458_v10, %v5351_v13  ;;  %v9987_v25 = vadd.f32 %v9986_v38, %v9985_v18  ;;  %v10467_v18 = vpop.f32.mrf.mxu1 }
 0x7f7   : > { %v9988_v41 = vpop.f32.mrf.mxu0 }
 0x7f8   : > { %v5354_v19 = vadd.f32 %v9987_v25, %v14798_v39  ;;  %v5652_v23 = vmul.f32 0.01, %v5512_v40  ;;  %vm5620_vm8 = vcmp.gt.f32.partialorder %v5512_v40, 0.0 }
 0x7f9   : > { %v9989_v6 = vpop.f32.mrf.mxu0 }
 0x7fa   : > { %v5515_v17 = vadd.f32 %v10459_v54, %v5354_v19  ;;  %v9990_v36 = vadd.f32 %v9989_v6, %v9988_v41  ;;  %v5684_v24 = vsel %vm5620_vm8, %v5512_v40, %v5652_v23 }
 0x7fb   : > { %v9991_v33 = vpop.f32.mrf.mxu0 }
 0x7fc   : > { %vm5621_vm9 = vcmp.gt.f32.partialorder %v5515_v17, 0.0  ;;  %v5653_v31 = vmul.f32 0.01, %v5515_v17  ;;  %v5359_v60 = vadd.f32 %v9990_v36, %v14798_v39 }
 0x7fd   : > { %v9992_v56 = vpop.f32.mrf.mxu0 }
 0x7fe   : > { %v5685_v16 = vsel %vm5621_vm9, %v5515_v17, %v5653_v31  ;;  %v5520_v10 = vadd.f32 %v5519_v55, %v5359_v60  ;;  %v9993_v58 = vadd.f32 %v9992_v56, %v9991_v33  ;;  %v5538_v55 = vpop.f32.mrf.mxu1 }
 0x7ff   : > { %v5713_v35 = vpack.c.bf16 %v5685_v16, %v5684_v24 }
 0x800   : > { %v5362_v44 = vadd.f32 %v9993_v58, %v14798_v39  ;;  %v5654_v59 = vmul.f32 0.01, %v5520_v10  ;;  %vm5622_vm12 = vcmp.gt.f32.partialorder %v5520_v10, 0.0 }
 0x801   : > { %10493 = vmatmul.mubr.msk.bf16.gmra.mxu1 %vm386_vm0, %v5713_v35 }
 0x802   : > { %v5523_v15 = vadd.f32 %v5522_v45, %v5362_v44  ;;  %v5686_v28 = vsel %vm5622_vm12, %v5520_v10, %v5654_v59  ;;  %v10470_v10 = vpop.f32.mrf.mxu1 }
 0x804   : > { %vm5623_vm13 = vcmp.gt.f32.partialorder %v5523_v15, 0.0  ;;  %v5655_v51 = vmul.f32 0.01, %v5523_v15 }
 0x806   : > { %v5687_v42 = vsel %vm5623_vm13, %v5523_v15, %v5655_v51  ;;  %v5551_v15 = vpop.f32.mrf.mxu1 }
 0x807   : > { %v9994_v50 = vpop.f32.mrf.mxu0  ;;  %v5714_v2 = vpack.c.bf16 %v5687_v42, %v5686_v28 }
 0x809   : > { %v9995_v54 = vpop.f32.mrf.mxu0  ;;  %10496 = vmatprep.mubr.msk.bf16.mxu1 %vm386_vm0, %v5714_v2 }
 0x80a   : > { %v9996_v61 = vadd.f32 %v9995_v54, %v9994_v50 }
 0x80b   : > { %v9997_v8 = vpop.f32.mrf.mxu0 }
 0x80c   : > { %v5367_v37 = vadd.f32 %v9996_v61, %v14798_v39 }
 0x80d   : > { %v9998_v9 = vpop.f32.mrf.mxu0 }
 0x80e   : > { %v5528_v30 = vadd.f32 %v10462_v21, %v5367_v37  ;;  %v9999_v29 = vadd.f32 %v9998_v9, %v9997_v8  ;;  %v10471_v8 = vpop.f32.mrf.mxu1 }
 0x80f   : > { %v10000_v3 = vpop.f32.mrf.mxu0 }
 0x810   : > { %v5370_v52 = vadd.f32 %v9999_v29, %v14798_v39  ;;  %v5656_v47 = vmul.f32 0.01, %v5528_v30  ;;  %vm5624_vm15 = vcmp.gt.f32.partialorder %v5528_v30, 0.0 }
 0x811   : > { %v10001_v12 = vpop.f32.mrf.mxu0 }
 0x812   : > { %v5531_v14 = vadd.f32 %v10463_v7, %v5370_v52  ;;  %v10002_v26 = vadd.f32 %v10001_v12, %v10000_v3  ;;  %v5688_v38 = vsel %vm5624_vm15, %v5528_v30, %v5656_v47 }
 0x813   : > { %v10003_v48 = vpop.f32.mrf.mxu0 }
 0x814   : > { %vm5625_vm2 = vcmp.gt.f32.partialorder %v5531_v14, 0.0  ;;  %v5657_v46 = vmul.f32 0.01, %v5531_v14  ;;  %v5375_v5 = vadd.f32 %v10002_v26, %v14798_v39 }
 0x815   : > { %v10004_v13 = vpop.f32.mrf.mxu0 }
 0x816   : > { %v5689_v40 = vsel %vm5625_vm2, %v5531_v14, %v5657_v46  ;;  %v5536_v21 = vadd.f32 %v5535_v27, %v5375_v5  ;;  %v10005_v25 = vadd.f32 %v10004_v13, %v10003_v48  ;;  %v5554_v27 = vpop.f32.mrf.mxu1 }
 0x817   : > { %v5715_v41 = vpack.c.bf16 %v5689_v40, %v5688_v38 }
 0x818   : > { %v5378_v19 = vadd.f32 %v10005_v25, %v14798_v39  ;;  %v5658_v6 = vmul.f32 0.01, %v5536_v21  ;;  %vm5626_vm3 = vcmp.gt.f32.partialorder %v5536_v21, 0.0 }
 0x819   : > { %10497 = vmatmul.mubr.msk.bf16.gmra.mxu1 %vm386_vm0, %v5715_v41 }
 0x81a   : > { %v5539_v23 = vadd.f32 %v5538_v55, %v5378_v19  ;;  %v5690_v36 = vsel %vm5626_vm3, %v5536_v21, %v5658_v6  ;;  %v10474_v21 = vpop.f32.mrf.mxu1 }
 0x81c   : > { %vm5627_vm4 = vcmp.gt.f32.partialorder %v5539_v23, 0.0  ;;  %v5659_v17 = vmul.f32 0.01, %v5539_v23 }
 0x81e   : > { %v5691_v33 = vsel %vm5627_vm4, %v5539_v23, %v5659_v17  ;;  %v5567_v23 = vpop.f32.mrf.mxu1 }
 0x81f   : > { %v10006_v31 = vpop.f32.mrf.mxu0  ;;  %v5716_v60 = vpack.c.bf16 %v5691_v33, %v5690_v36 }
 0x821   : > { %v10007_v7 = vpop.f32.mrf.mxu0  ;;  %10500 = vmatprep.mubr.msk.bf16.mxu1 %vm386_vm0, %v5716_v60 }
 0x822   : > { %v10008_v56 = vadd.f32 %v10007_v7, %v10006_v31 }
 0x823   : > { %v10009_v24 = vpop.f32.mrf.mxu0 }
 0x824   : > { %v5383_v16 = vadd.f32 %v10008_v56, %v14798_v39 }
 0x825   : > { %v10010_v58 = vpop.f32.mrf.mxu0 }
 0x826   : > { %v5544_v35 = vadd.f32 %v10466_v57, %v5383_v16  ;;  %v10011_v44 = vadd.f32 %v10010_v58, %v10009_v24  ;;  %v10475_v24 = vpop.f32.mrf.mxu1 }
 0x827   : > { %v10012_v45 = vpop.f32.mrf.mxu0 }
 0x828   : > { %v5386_v59 = vadd.f32 %v10011_v44, %v14798_v39  ;;  %v5660_v28 = vmul.f32 0.01, %v5544_v35  ;;  %vm5628_vm5 = vcmp.gt.f32.partialorder %v5544_v35, 0.0 }
 0x829   : > { %v10013_v51 = vpop.f32.mrf.mxu0 }
 0x82a   : > { %v5547_v42 = vadd.f32 %v10467_v18, %v5386_v59  ;;  %v10014_v50 = vadd.f32 %v10013_v51, %v10012_v45  ;;  %v5692_v9 = vsel %vm5628_vm5, %v5544_v35, %v5660_v28 }
 0x82b   : > { %v10015_v2 = vpop.f32.mrf.mxu0 }
 0x82c   : > { %vm5629_vm6 = vcmp.gt.f32.partialorder %v5547_v42, 0.0  ;;  %v5661_v54 = vmul.f32 0.01, %v5547_v42  ;;  %v5391_v61 = vadd.f32 %v10014_v50, %v14798_v39 }
 0x82d   : > { %v10016_v37 = vpop.f32.mrf.mxu0 }
 0x82e   : > { %v5693_v30 = vsel %vm5629_vm6, %v5547_v42, %v5661_v54  ;;  %v5552_v57 = vadd.f32 %v5551_v15, %v5391_v61  ;;  %v10017_v29 = vadd.f32 %v10016_v37, %v10015_v2  ;;  %v5570_v15 = vpop.f32.mrf.mxu1 }
 0x82f   : > { %v5717_v3 = vpack.c.bf16 %v5693_v30, %v5692_v9 }
 0x830   : > { %v5394_v52 = vadd.f32 %v10017_v29, %v14798_v39  ;;  %v5662_v12 = vmul.f32 0.01, %v5552_v57  ;;  %vm5630_vm8 = vcmp.gt.f32.partialorder %v5552_v57, 0.0 }
 0x831   : > { %10501 = vmatmul.mubr.msk.bf16.gmra.mxu1 %vm386_vm0, %v5717_v3 }
 0x832   : > { %v5555_v47 = vadd.f32 %v5554_v27, %v5394_v52  ;;  %v5694_v26 = vsel %vm5630_vm8, %v5552_v57, %v5662_v12  ;;  %v10478_v57 = vpop.f32.mrf.mxu1 }
 0x834   : > { %vm5631_vm9 = vcmp.gt.f32.partialorder %v5555_v47, 0.0  ;;  %v5663_v14 = vmul.f32 0.01, %v5555_v47 }
 0x836   : > { %v5695_v48 = vsel %vm5631_vm9, %v5555_v47, %v5663_v14  ;;  %v5583_v47 = vpop.f32.mrf.mxu1 }
 0x837   : > { %v10018_v46 = vpop.f32.mrf.mxu0  ;;  %v5718_v5 = vpack.c.bf16 %v5695_v48, %v5694_v26 }
 0x839   : > { %v10019_v18 = vpop.f32.mrf.mxu0  ;;  %10504 = vmatprep.mubr.msk.bf16.mxu1 %vm386_vm0, %v5718_v5 }
 0x83a   : > { %v10020_v13 = vadd.f32 %v10019_v18, %v10018_v46 }
 0x83b   : > { %v10021_v38 = vpop.f32.mrf.mxu0 }
 0x83c   : > { %v5399_v40 = vadd.f32 %v10020_v13, %v14798_v39 }
 0x83d   : > { %v10022_v25 = vpop.f32.mrf.mxu0 }
 0x83e   : > { %v5560_v41 = vadd.f32 %v10470_v10, %v5399_v40  ;;  %v10023_v19 = vadd.f32 %v10022_v25, %v10021_v38  ;;  %v10479_v38 = vpop.f32.mrf.mxu1 }
 0x83f   : > { %v10024_v55 = vpop.f32.mrf.mxu0 }
 0x840   : > { %v5402_v6 = vadd.f32 %v10023_v19, %v14798_v39  ;;  %v5664_v36 = vmul.f32 0.01, %v5560_v41  ;;  %vm5632_vm12 = vcmp.gt.f32.partialorder %v5560_v41, 0.0 }
 0x841   : > { %v10025_v17 = vpop.f32.mrf.mxu0 }
 0x842   : > { %v5563_v33 = vadd.f32 %v10471_v8, %v5402_v6  ;;  %v10026_v31 = vadd.f32 %v10025_v17, %v10024_v55  ;;  %v5696_v58 = vsel %vm5632_vm12, %v5560_v41, %v5664_v36 }
 0x843   : > { %v10027_v60 = vpop.f32.mrf.mxu0 }
 0x844   : > { %vm5633_vm13 = vcmp.gt.f32.partialorder %v5563_v33, 0.0  ;;  %v5665_v7 = vmul.f32 0.01, %v5563_v33  ;;  %v5407_v56 = vadd.f32 %v10026_v31, %v14798_v39 }
 0x845   : > { %v10028_v16 = vpop.f32.mrf.mxu0 }
 0x846   : > { %v5697_v35 = vsel %vm5633_vm13, %v5563_v33, %v5665_v7  ;;  %v5568_v10 = vadd.f32 %v5567_v23, %v5407_v56  ;;  %v10029_v44 = vadd.f32 %v10028_v16, %v10027_v60  ;;  %v5586_v23 = vpop.f32.mrf.mxu1 }
 0x847   : > { %v5719_v45 = vpack.c.bf16 %v5697_v35, %v5696_v58 }
 0x848   : > { %v5410_v59 = vadd.f32 %v10029_v44, %v14798_v39  ;;  %v5666_v51 = vmul.f32 0.01, %v5568_v10  ;;  %vm5634_vm15 = vcmp.gt.f32.partialorder %v5568_v10, 0.0  ;;  %v10482_v35 = vpop.f32.mrf.mxu1  ;;  %v12210_v44 = vld [vmem:[%s16502_s7 + $0x38] sm:$0xff]  }
 0x849   : > { %10505 = vmatmul.mubr.msk.bf16.gmra.mxu1 %vm386_vm0, %v5719_v45  ;;  %10521 = vmatpush3.bf16.msra.mxu0 %v12210_v44 }
 0x84a   : > { %v5571_v28 = vadd.f32 %v5570_v15, %v5410_v59  ;;  %v5698_v50 = vsel %vm5634_vm15, %v5568_v10, %v5666_v51  ;;  %10522 = vmatprep.subr.bf16.mxu0 %v16587_v32 }
 0x84c   : > { %vm5635_vm2 = vcmp.gt.f32.partialorder %v5571_v28, 0.0  ;;  %v5667_v42 = vmul.f32 0.01, %v5571_v28 }
 0x84e   : > { %v5699_v2 = vsel %vm5635_vm2, %v5571_v28, %v5667_v42  ;;  %v5599_v28 = vpop.f32.mrf.mxu1 }
 0x84f   : > { %v10030_v54 = vpop.f32.mrf.mxu0  ;;  %v5720_v61 = vpack.c.bf16 %v5699_v2, %v5698_v50 }
 0x851   : > { %v10031_v8 = vpop.f32.mrf.mxu0  ;;  %10508 = vmatprep.mubr.msk.bf16.mxu1 %vm386_vm0, %v5720_v61 }
 0x852   : > { %v10032_v37 = vadd.f32 %v10031_v8, %v10030_v54 }
 0x853   : > { %v10033_v9 = vpop.f32.mrf.mxu0 }
 0x854   : > { %v5415_v30 = vadd.f32 %v10032_v37, %v14798_v39  ;;  %v10483_v37 = vpop.f32.mrf.mxu1 }
 0x855   : > { %v10034_v29 = vpop.f32.mrf.mxu0 }
 0x856   : > { %v5576_v3 = vadd.f32 %v10474_v21, %v5415_v30  ;;  %v10035_v52 = vadd.f32 %v10034_v29, %v10033_v9 }
 0x857   : > { %v10036_v27 = vpop.f32.mrf.mxu0 }
 0x858   : > { %v5418_v12 = vadd.f32 %v10035_v52, %v14798_v39  ;;  %v5668_v26 = vmul.f32 0.01, %v5576_v3  ;;  %vm5636_vm3 = vcmp.gt.f32.partialorder %v5576_v3, 0.0 }
 0x859   : > { %v10037_v14 = vpop.f32.mrf.mxu0 }
 0x85a   : > { %v5579_v48 = vadd.f32 %v10475_v24, %v5418_v12  ;;  %v10038_v46 = vadd.f32 %v10037_v14, %v10036_v27  ;;  %v5700_v25 = vsel %vm5636_vm3, %v5576_v3, %v5668_v26  ;;  %v5602_v14 = vpop.f32.mrf.mxu1 }
 0x85b   : > { %v10039_v5 = vpop.f32.mrf.mxu0 }
 0x85c   : > { %vm5637_vm4 = vcmp.gt.f32.partialorder %v5579_v48, 0.0  ;;  %v5669_v18 = vmul.f32 0.01, %v5579_v48  ;;  %v5423_v13 = vadd.f32 %v10038_v46, %v14798_v39 }
 0x85d   : > { %v10040_v40 = vpop.f32.mrf.mxu0 }
 0x85e   : > { %v5701_v41 = vsel %vm5637_vm4, %v5579_v48, %v5669_v18  ;;  %v5584_v21 = vadd.f32 %v5583_v47, %v5423_v13  ;;  %v10041_v19 = vadd.f32 %v10040_v40, %v10039_v5 }
 0x85f   : > { %v5721_v55 = vpack.c.bf16 %v5701_v41, %v5700_v25 }
 0x860   : > { %v5426_v6 = vadd.f32 %v10041_v19, %v14798_v39  ;;  %v5670_v17 = vmul.f32 0.01, %v5584_v21  ;;  %vm5638_vm5 = vcmp.gt.f32.partialorder %v5584_v21, 0.0 }
 0x861   : > { %10509 = vmatmul.mubr.msk.bf16.gmra.mxu1 %vm386_vm0, %v5721_v55 }
 0x862   : > { %v5587_v36 = vadd.f32 %v5586_v23, %v5426_v6  ;;  %v5702_v56 = vsel %vm5638_vm5, %v5584_v21, %v5670_v17 }
 0x863   : > { %v10042_v33 = vpop.f32.mrf.mxu0 }
 0x864   : > { %vm5639_vm6 = vcmp.gt.f32.partialorder %v5587_v36, 0.0  ;;  %v5671_v31 = vmul.f32 0.01, %v5587_v36 }
 0x865   : > { %v10043_v60 = vpop.f32.mrf.mxu0 }
 0x866   : > { %v10044_v7 = vadd.f32 %v10043_v60, %v10042_v33  ;;  %v5703_v24 = vsel %vm5639_vm6, %v5587_v36, %v5671_v31  ;;  %v12211_v31 = vld [vmem:[%s16502_s7 + $0x30] sm:$0xff]  }
 0x867   : > { %v10045_v16 = vpop.f32.mrf.mxu0  ;;  %v5722_v58 = vpack.c.bf16 %v5703_v24, %v5702_v56  ;;  %10523 = vmatpush3.bf16.msra.mxu0 %v12211_v31  ;;  %v12213_v24 = vld [vmem:[%s16502_s7 + $0x20] sm:$0xff]  }
 0x868   : > { %v5431_v10 = vadd.f32 %v10044_v7, %v14798_v39  ;;  %10524 = vmatprep.subr.bf16.mxu0 %v16587_v32 }
 0x869   : > { %v10046_v45 = vpop.f32.mrf.mxu0  ;;  %10512 = vmatprep.mubr.msk.bf16.mxu1 %vm386_vm0, %v5722_v58 }
 0x86a   : > { %v5592_v59 = vadd.f32 %v10478_v57, %v5431_v10  ;;  %v10047_v15 = vadd.f32 %v10046_v45, %v10045_v16 }
 0x86b   : > { %v10048_v51 = vpop.f32.mrf.mxu0 }
 0x86c   : > { %v5434_v42 = vadd.f32 %v10047_v15, %v14798_v39  ;;  %v5672_v2 = vmul.f32 0.01, %v5592_v59  ;;  %vm5640_vm8 = vcmp.gt.f32.partialorder %v5592_v59, 0.0 }
 0x86d   : > { %v10049_v50 = vpop.f32.mrf.mxu0 }
 0x86e   : > { %v5595_v54 = vadd.f32 %v10479_v38, %v5434_v42  ;;  %v10050_v61 = vadd.f32 %v10049_v50, %v10048_v51  ;;  %v5704_v29 = vsel %vm5640_vm8, %v5592_v59, %v5672_v2  ;;  %v14867_v59 = vld [vmem:[%s16501_s6 + $0x1] ss:$0 sm:$0xff] }
 0x86f   : > { %v10051_v8 = vpop.f32.mrf.mxu0 }
 0x870   : > { %vm5641_vm9 = vcmp.gt.f32.partialorder %v5595_v54, 0.0  ;;  %v5673_v9 = vmul.f32 0.01, %v5595_v54  ;;  %v5439_v30 = vadd.f32 %v10050_v61, %v14798_v39 }
 0x871   : > { %v10052_v57 = vpop.f32.mrf.mxu0 }
 0x872   : > { %v5705_v3 = vsel %vm5641_vm9, %v5595_v54, %v5673_v9  ;;  %v10053_v52 = vadd.f32 %v10052_v57, %v10051_v8  ;;  %v5600_v27 = vadd.f32 %v5599_v28, %v5439_v30 }
 0x873   : > { %v5723_v12 = vpack.c.bf16 %v5705_v3, %v5704_v29  ;;  %v10054_v47 = vpop.f32.mrf.mxu0 }
 0x874   : > { %v5442_v26 = vadd.f32 %v10053_v52, %v14798_v39  ;;  %v5674_v46 = vmul.f32 0.01, %v5600_v27  ;;  %vm5642_vm12 = vcmp.gt.f32.partialorder %v5600_v27, 0.0 }
 0x875   : > { %v10055_v48 = vpop.f32.mrf.mxu0  ;;  %10513 = vmatmul.mubr.msk.bf16.gmra.mxu1 %vm386_vm0, %v5723_v12 }
 0x876   : > { %v10056_v5 = vadd.f32 %v10055_v48, %v10054_v47  ;;  %v5603_v18 = vadd.f32 %v5602_v14, %v5442_v26  ;;  %v5706_v41 = vsel %vm5642_vm12, %v5600_v27, %v5674_v46 }
 0x877   : > { %v10057_v13 = vpop.f32.mrf.mxu0 }
 0x878   : > { %v5447_v38 = vadd.f32 %v10056_v5, %v14798_v39  ;;  %vm5643_vm13 = vcmp.gt.f32.partialorder %v5603_v18, 0.0  ;;  %v5675_v40 = vmul.f32 0.01, %v5603_v18 }
 0x879   : > { %v10058_v25 = vpop.f32.mrf.mxu0 }
 0x87a   : > { %v5608_v21 = vadd.f32 %v10482_v35, %v5447_v38  ;;  %v5707_v19 = vsel %vm5643_vm13, %v5603_v18, %v5675_v40  ;;  %v10059_v55 = vadd.f32 %v10058_v25, %v10057_v13 }
 0x87b   : > { %v5724_v6 = vpack.c.bf16 %v5707_v19, %v5706_v41 }
 0x87c   : > { %v5450_v23 = vadd.f32 %v10059_v55, %v14798_v39  ;;  %v5676_v17 = vmul.f32 0.01, %v5608_v21  ;;  %vm5644_vm15 = vcmp.gt.f32.partialorder %v5608_v21, 0.0  ;;  %v12212_v39 = vld [vmem:[%s16502_s7 + $0x28] sm:$0xff]  }
 0x87d   : > { %10516 = vmatprep.mubr.msk.bf16.mxu1 %vm386_vm0, %v5724_v6  ;;  %10525 = vmatpush3.bf16.msra.mxu0 %v12212_v39 }
 0x87e   : > { %v5611_v36 = vadd.f32 %v10483_v37, %v5450_v23  ;;  %v5708_v60 = vsel %vm5644_vm15, %v5608_v21, %v5676_v17  ;;  %10526 = vmatprep.subr.bf16.mxu0 %v16587_v32 }
 0x880   : > { %vm5645_vm2 = vcmp.gt.f32.partialorder %v5611_v36, 0.0  ;;  %v5677_v33 = vmul.f32 0.01, %v5611_v36 }
 0x881   : > { %10527 = vmatpush3.bf16.msra.mxu0 %v12213_v24 }
 0x882   : > { %v5709_v7 = vsel %vm5645_vm2, %v5611_v36, %v5677_v33  ;;  %10532 = vmatprep.subr.bf16.mxu0 %v16587_v32 }
 0x883   : > { %v5725_v56 = vpack.c.bf16 %v5709_v7, %v5708_v60 }
 0x885   : > { %10517 = vmatmul.mubr.msk.bf16.gmra.mxu1 %vm386_vm0, %v5725_v56 }
 0x8a9   : > { %v10490_v16 = vpop.f32.mrf.mxu1 }
 0x8aa   : > { %v5842_v54 = vadd.f32 %v10490_v16, %v14867_v59 }
 0x8ab   : > { %v5833_v58 = vpop.f32.mrf.mxu1 }
 0x8ac   : > { %v5834_v28 = vadd.f32 %v14867_v59, %v5833_v58  ;;  %v5994_v9 = vmul.f32 0.01, %v5842_v54  ;;  %vm5962_vm5 = vcmp.gt.f32.partialorder %v5842_v54, 0.0 }
 0x8ad   : > { %v10491_v35 = vpop.f32.mrf.mxu1 }
 0x8ae   : > { %v5992_v61 = vmul.f32 0.01, %v5834_v28  ;;  %vm5960_vm4 = vcmp.gt.f32.partialorder %v5834_v28, 0.0  ;;  %v5845_v57 = vadd.f32 %v10491_v35, %v14867_v59  ;;  %v14883_v47 = vsel %vm5962_vm5, %v5842_v54, %v5994_v9 }
 0x8af   : > { %v5836_v10 = vpop.f32.mrf.mxu1  ;;  %v6059_v5 = vsel %vm529_vm1, %v14883_v47, 0.0 }
 0x8b0   : > { %v5837_v51 = vadd.f32 %v14867_v59, %v5836_v10  ;;  %v14874_v30 = vsel %vm5960_vm4, %v5834_v28, %v5992_v61  ;;  %v5995_v14 = vmul.f32 0.01, %v5845_v57  ;;  %vm5963_vm6 = vcmp.gt.f32.partialorder %v5845_v57, 0.0 }
 0x8b1   : > { %v6056_v27 = vsel %vm529_vm1, %v14874_v30, 0.0 }
 0x8b2   : > { %v5993_v50 = vmul.f32 0.01, %v5837_v51  ;;  %vm5961_vm3 = vcmp.gt.f32.partialorder %v5837_v51, 0.0  ;;  %v14887_v13 = vsel %vm5963_vm6, %v5845_v57, %v5995_v14 }
 0x8b3   : > { %v6061_v19 = vsel %vm529_vm1, %v14887_v13, 0.0 }
 0x8b4   : > { %v14872_v8 = vsel %vm5961_vm3, %v5837_v51, %v5993_v50 }
 0x8b5   : > { %v6057_v3 = vsel %vm529_vm1, %v14872_v8, 0.0 }
 0x8b6   : > { %v6058_v26 = vadd.f32 %v6057_v3, %v6056_v27 }
 0x8b8   : > { %v6060_v38 = vadd.f32 %v6059_v5, %v6058_v26 }
 0x8ba   : > { %v6062_v23 = vadd.f32 %v6061_v19, %v6060_v38 }
 0x8c1   : > { %v10494_v44 = vpop.f32.mrf.mxu1 }
 0x8c2   : > { %v5858_v40 = vadd.f32 %v10494_v44, %v14867_v59 }
 0x8c3   : > { %v5849_v45 = vpop.f32.mrf.mxu1 }
 0x8c4   : > { %v5850_v29 = vadd.f32 %v14867_v59, %v5849_v45  ;;  %v5998_v6 = vmul.f32 0.01, %v5858_v40  ;;  %vm5966_vm12 = vcmp.gt.f32.partialorder %v5858_v40, 0.0 }
 0x8c5   : > { %v10495_v15 = vpop.f32.mrf.mxu1 }
 0x8c6   : > { %v5996_v48 = vmul.f32 0.01, %v5850_v29  ;;  %vm5964_vm8 = vcmp.gt.f32.partialorder %v5850_v29, 0.0  ;;  %v5861_v17 = vadd.f32 %v10495_v15, %v14867_v59  ;;  %v14903_v56 = vsel %vm5966_vm12, %v5858_v40, %v5998_v6 }
 0x8c7   : > { %v5852_v42 = vpop.f32.mrf.mxu1  ;;  %v6067_v10 = vsel %vm529_vm1, %v14903_v56, 0.0 }
 0x8c8   : > { %v5853_v52 = vadd.f32 %v14867_v59, %v5852_v42  ;;  %v14890_v25 = vsel %vm5964_vm8, %v5850_v29, %v5996_v48  ;;  %v5999_v39 = vmul.f32 0.01, %v5861_v17  ;;  %vm5967_vm13 = vcmp.gt.f32.partialorder %v5861_v17, 0.0 }
 0x8c9   : > { %v6063_v55 = vsel %vm529_vm1, %v14890_v25, 0.0 }
 0x8ca   : > { %v5997_v46 = vmul.f32 0.01, %v5853_v52  ;;  %vm5965_vm9 = vcmp.gt.f32.partialorder %v5853_v52, 0.0  ;;  %v6064_v60 = vadd.f32 %v6063_v55, %v6062_v23  ;;  %v14907_v44 = vsel %vm5967_vm13, %v5861_v17, %v5999_v39 }
 0x8cb   : > { %v6069_v50 = vsel %vm529_vm1, %v14907_v44, 0.0 }
 0x8cc   : > { %v14892_v21 = vsel %vm5965_vm9, %v5853_v52, %v5997_v46 }
 0x8cd   : > { %v6065_v33 = vsel %vm529_vm1, %v14892_v21, 0.0 }
 0x8ce   : > { %v6066_v24 = vadd.f32 %v6065_v33, %v6064_v60 }
 0x8d0   : > { %v6068_v45 = vadd.f32 %v6067_v10, %v6066_v24 }
 0x8d2   : > { %v6070_v9 = vadd.f32 %v6069_v50, %v6068_v45 }
 0x8d9   : > { %v10498_v2 = vpop.f32.mrf.mxu1 }
 0x8da   : > { %v5874_v15 = vadd.f32 %v10498_v2, %v14867_v59 }
 0x8db   : > { %v5865_v37 = vpop.f32.mrf.mxu1 }
 0x8dc   : > { %v5866_v36 = vadd.f32 %v14867_v59, %v5865_v37  ;;  %v6002_v37 = vmul.f32 0.01, %v5874_v15  ;;  %vm5970_vm3 = vcmp.gt.f32.partialorder %v5874_v15, 0.0 }
 0x8dd   : > { %v10499_v12 = vpop.f32.mrf.mxu1 }
 0x8de   : > { %v6000_v16 = vmul.f32 0.01, %v5866_v36  ;;  %vm5968_vm15 = vcmp.gt.f32.partialorder %v5866_v36, 0.0  ;;  %v5877_v57 = vadd.f32 %v10499_v12, %v14867_v59  ;;  %v14923_v14 = vsel %vm5970_vm3, %v5874_v15, %v6002_v37 }
 0x8df   : > { %v5868_v18 = vpop.f32.mrf.mxu1  ;;  %v6075_v12 = vsel %vm529_vm1, %v14923_v14, 0.0 }
 0x8e0   : > { %v5869_v7 = vadd.f32 %v14867_v59, %v5868_v18  ;;  %v14910_v51 = vsel %vm5968_vm15, %v5866_v36, %v6000_v16  ;;  %v6003_v26 = vmul.f32 0.01, %v5877_v57  ;;  %vm5971_vm4 = vcmp.gt.f32.partialorder %v5877_v57, 0.0 }
 0x8e1   : > { %v6071_v54 = vsel %vm529_vm1, %v14910_v51, 0.0 }
 0x8e2   : > { %v6001_v35 = vmul.f32 0.01, %v5869_v7  ;;  %vm5969_vm2 = vcmp.gt.f32.partialorder %v5869_v7, 0.0  ;;  %v6072_v3 = vadd.f32 %v6071_v54, %v6070_v9  ;;  %v14927_v38 = vsel %vm5971_vm4, %v5877_v57, %v6003_v26 }
 0x8e3   : > { %v6077_v23 = vsel %vm529_vm1, %v14927_v38, 0.0 }
 0x8e4   : > { %v14912_v42 = vsel %vm5969_vm2, %v5869_v7, %v6001_v35 }
 0x8e5   : > { %v6073_v2 = vsel %vm529_vm1, %v14912_v42, 0.0 }
 0x8e6   : > { %v6074_v48 = vadd.f32 %v6073_v2, %v6072_v3 }
 0x8e8   : > { %v6076_v40 = vadd.f32 %v6075_v12, %v6074_v48 }
 0x8f1   : > { %v10502_v41 = vpop.f32.mrf.mxu1 }
 0x8f2   : > { %v5890_v19 = vadd.f32 %v10502_v41, %v14867_v59 }
 0x8f3   : > { %v5881_v31 = vpop.f32.mrf.mxu1 }
 0x8f4   : > { %v5882_v29 = vadd.f32 %v14867_v59, %v5881_v31  ;;  %v6006_v33 = vmul.f32 0.01, %v5890_v19  ;;  %v6078_v31 = vadd.f32 %v6077_v23, %v6076_v40  ;;  %vm5974_vm8 = vcmp.gt.f32.partialorder %v5890_v19, 0.0 }
 0x8f5   : > { %v10503_v58 = vpop.f32.mrf.mxu1 }
 0x8f6   : > { %v6004_v46 = vmul.f32 0.01, %v5882_v29  ;;  %vm5972_vm5 = vcmp.gt.f32.partialorder %v5882_v29, 0.0  ;;  %v5893_v60 = vadd.f32 %v10503_v58, %v14867_v59  ;;  %v14943_v16 = vsel %vm5974_vm8, %v5890_v19, %v6006_v33 }
 0x8f7   : > { %v5884_v28 = vpop.f32.mrf.mxu1  ;;  %v6083_v58 = vsel %vm529_vm1, %v14943_v16, 0.0 }
 0x8f8   : > { %v5885_v52 = vadd.f32 %v14867_v59, %v5884_v28  ;;  %v14930_v55 = vsel %vm5972_vm5, %v5882_v29, %v6004_v46  ;;  %v6007_v35 = vmul.f32 0.01, %v5893_v60  ;;  %vm5975_vm9 = vcmp.gt.f32.partialorder %v5893_v60, 0.0 }
 0x8f9   : > { %v6079_v17 = vsel %vm529_vm1, %v14930_v55, 0.0 }
 0x8fa   : > { %v6005_v5 = vmul.f32 0.01, %v5885_v52  ;;  %vm5973_vm6 = vcmp.gt.f32.partialorder %v5885_v52, 0.0  ;;  %v6080_v39 = vadd.f32 %v6079_v17, %v6078_v31  ;;  %v14947_v54 = vsel %vm5975_vm9, %v5893_v60, %v6007_v35 }
 0x8fb   : > { %v6085_v3 = vsel %vm529_vm1, %v14947_v54, 0.0 }
 0x8fc   : > { %v14932_v6 = vsel %vm5973_vm6, %v5885_v52, %v6005_v5 }
 0x8fd   : > { %v6081_v41 = vsel %vm529_vm1, %v14932_v6, 0.0 }
 0x8fe   : > { %v6082_v10 = vadd.f32 %v6081_v41, %v6080_v39 }
 0x900   : > { %v6084_v37 = vadd.f32 %v6083_v58, %v6082_v10 }
 0x902   : > { %v6086_v48 = vadd.f32 %v6085_v3, %v6084_v37 }
 0x909   : > { %v10506_v61 = vpop.f32.mrf.mxu1 }
 0x90a   : > { %v5906_v9 = vadd.f32 %v10506_v61, %v14867_v59 }
 0x90b   : > { %v5897_v27 = vpop.f32.mrf.mxu1 }
 0x90c   : > { %v5898_v7 = vadd.f32 %v14867_v59, %v5897_v27  ;;  %v6010_v26 = vmul.f32 0.01, %v5906_v9  ;;  %vm5978_vm15 = vcmp.gt.f32.partialorder %v5906_v9, 0.0 }
 0x90d   : > { %v10507_v18 = vpop.f32.mrf.mxu1 }
 0x90e   : > { %v6008_v45 = vmul.f32 0.01, %v5898_v7  ;;  %vm5976_vm12 = vcmp.gt.f32.partialorder %v5898_v7, 0.0  ;;  %v5909_v46 = vadd.f32 %v10507_v18, %v14867_v59  ;;  %v14963_v19 = vsel %vm5978_vm15, %v5906_v9, %v6010_v26 }
 0x90f   : > { %v5900_v36 = vpop.f32.mrf.mxu1  ;;  %v6091_v18 = vsel %vm529_vm1, %v14963_v19, 0.0 }
 0x910   : > { %v5901_v24 = vadd.f32 %v14867_v59, %v5900_v36  ;;  %v14950_v57 = vsel %vm5976_vm12, %v5898_v7, %v6008_v45  ;;  %v6011_v23 = vmul.f32 0.01, %v5909_v46  ;;  %vm5979_vm2 = vcmp.gt.f32.partialorder %v5909_v46, 0.0 }
 0x911   : > { %v6087_v52 = vsel %vm529_vm1, %v14950_v57, 0.0 }
 0x912   : > { %v6009_v28 = vmul.f32 0.01, %v5901_v24  ;;  %vm5977_vm13 = vcmp.gt.f32.partialorder %v5901_v24, 0.0  ;;  %v6088_v12 = vadd.f32 %v6087_v52, %v6086_v48  ;;  %v14967_v31 = vsel %vm5979_vm2, %v5909_v46, %v6011_v23 }
 0x914   : > { %v14952_v2 = vsel %vm5977_vm13, %v5901_v24, %v6009_v28  ;;  %v6093_v24 = vsel %vm529_vm1, %v14967_v31, 0.0 }
 0x915   : > { %v6089_v61 = vsel %vm529_vm1, %v14952_v2, 0.0 }
 0x916   : > { %v6090_v17 = vadd.f32 %v6089_v61, %v6088_v12 }
 0x918   : > { %v6092_v60 = vadd.f32 %v6091_v18, %v6090_v17 }
 0x91a   : > { %v6094_v45 = vadd.f32 %v6093_v24, %v6092_v60 }
 0x921   : > { %v10510_v15 = vpop.f32.mrf.mxu1 }
 0x922   : > { %v5922_v7 = vadd.f32 %v10510_v15, %v14867_v59 }
 0x923   : > { %v5913_v50 = vpop.f32.mrf.mxu1 }
 0x924   : > { %v5914_v5 = vadd.f32 %v14867_v59, %v5913_v50  ;;  %v6014_v10 = vmul.f32 0.01, %v5922_v7  ;;  %vm5982_vm5 = vcmp.gt.f32.partialorder %v5922_v7, 0.0 }
 0x925   : > { %v10511_v29 = vpop.f32.mrf.mxu1 }
 0x926   : > { %v6012_v36 = vmul.f32 0.01, %v5914_v5  ;;  %vm5980_vm3 = vcmp.gt.f32.partialorder %v5914_v5, 0.0  ;;  %v5925_v28 = vadd.f32 %v10511_v29, %v14867_v59  ;;  %v14982_v3 = vsel %vm5982_vm5, %v5922_v7, %v6014_v10 }
 0x927   : > { %v5916_v27 = vpop.f32.mrf.mxu1  ;;  %v6099_v29 = vsel %vm529_vm1, %v14982_v3, 0.0 }
 0x928   : > { %v5917_v40 = vadd.f32 %v14867_v59, %v5916_v27  ;;  %v14970_v41 = vsel %vm5980_vm3, %v5914_v5, %v6012_v36  ;;  %v6015_v52 = vmul.f32 0.01, %v5925_v28  ;;  %vm5983_vm6 = vcmp.gt.f32.partialorder %v5925_v28, 0.0 }
 0x929   : > { %v6095_v35 = vsel %vm529_vm1, %v14970_v41, 0.0 }
 0x92a   : > { %v6013_v33 = vmul.f32 0.01, %v5917_v40  ;;  %vm5981_vm4 = vcmp.gt.f32.partialorder %v5917_v40, 0.0  ;;  %v6096_v15 = vadd.f32 %v6095_v35, %v6094_v45  ;;  %v14987_v61 = vsel %vm5983_vm6, %v5925_v28, %v6015_v52 }
 0x92c   : > { %v14972_v39 = vsel %vm5981_vm4, %v5917_v40, %v6013_v33  ;;  %v6101_v33 = vsel %vm529_vm1, %v14987_v61, 0.0 }
 0x92d   : > { %v6097_v58 = vsel %vm529_vm1, %v14972_v39, 0.0 }
 0x92e   : > { %v6098_v27 = vadd.f32 %v6097_v58, %v6096_v15 }
 0x930   : > { %v6100_v12 = vadd.f32 %v6099_v29, %v6098_v27 }
 0x932   : > { %v6102_v24 = vadd.f32 %v6101_v33, %v6100_v12 }
 0x935   : > { %v10514_v50 = vpop.f32.mrf.mxu1 }
 0x936   : > { %v5938_v40 = vadd.f32 %v10514_v50, %v14867_v59 }
 0x937   : > { %v5929_v37 = vpop.f32.mrf.mxu1 }
 0x938   : > { %v5930_v9 = vadd.f32 %v14867_v59, %v5929_v37  ;;  %v6018_v7 = vmul.f32 0.01, %v5938_v40  ;;  %vm5986_vm12 = vcmp.gt.f32.partialorder %v5938_v40, 0.0 }
 0x939   : > { %v10515_v26 = vpop.f32.mrf.mxu1 }
 0x93a   : > { %v6016_v48 = vmul.f32 0.01, %v5930_v9  ;;  %vm5984_vm8 = vcmp.gt.f32.partialorder %v5930_v9, 0.0  ;;  %v5941_v60 = vadd.f32 %v10515_v26, %v14867_v59  ;;  %v15001_v50 = vsel %vm5986_vm12, %v5938_v40, %v6018_v7 }
 0x93b   : > { %v5932_v46 = vpop.f32.mrf.mxu1  ;;  %v6107_v52 = vsel %vm529_vm1, %v15001_v50, 0.0 }
 0x93c   : > { %v5933_v5 = vadd.f32 %v14867_v59, %v5932_v46  ;;  %v14990_v23 = vsel %vm5984_vm8, %v5930_v9, %v6016_v48  ;;  %v6019_v45 = vmul.f32 0.01, %v5941_v60  ;;  %vm5987_vm13 = vcmp.gt.f32.partialorder %v5941_v60, 0.0 }
 0x93d   : > { %v6103_v18 = vsel %vm529_vm1, %v14990_v23, 0.0 }
 0x93e   : > { %vm5985_vm9 = vcmp.gt.f32.partialorder %v5933_v5, 0.0  ;;  %v6017_v17 = vmul.f32 0.01, %v5933_v5  ;;  %v6104_v10 = vadd.f32 %v6103_v18, %v6102_v24  ;;  %v15007_v27 = vsel %vm5987_vm13, %v5941_v60, %v6019_v45 }
 0x93f   : > { %v6109_v33 = vsel %vm529_vm1, %v15007_v27, 0.0 }
 0x940   : > { %v14992_v36 = vsel %vm5985_vm9, %v5933_v5, %v6017_v17 }
 0x941   : > { %v6105_v35 = vsel %vm529_vm1, %v14992_v36, 0.0 }
 0x942   : > { %v6106_v58 = vadd.f32 %v6105_v35, %v6104_v10 }
 0x944   : > { %v6108_v48 = vadd.f32 %v6107_v52, %v6106_v58 }
 0x945   : > { %v10518_v28 = vpop.f32.mrf.mxu1 }
 0x946   : > { %v5954_v37 = vadd.f32 %v10518_v28, %v14867_v59  ;;  %v6110_v60 = vadd.f32 %v6109_v33, %v6108_v48 }
 0x947   : > { %v5945_v15 = vpop.f32.mrf.mxu1 }
 0x948   : > { %v5946_v9 = vadd.f32 %v14867_v59, %v5945_v15  ;;  %v6022_v12 = vmul.f32 0.01, %v5954_v37  ;;  %vm5990_vm2 = vcmp.gt.f32.partialorder %v5954_v37, 0.0 }
 0x949   : > { %v10519_v26 = vpop.f32.mrf.mxu1 }
 0x94a   : > { %vm5988_vm15 = vcmp.gt.f32.partialorder %v5946_v9, 0.0  ;;  %v6020_v46 = vmul.f32 0.01, %v5946_v9  ;;  %v5957_v29 = vadd.f32 %v10519_v26, %v14867_v59  ;;  %v15017_v35 = vsel %vm5990_vm2, %v5954_v37, %v6022_v12 }
 0x94b   : > { %v5948_v5 = vpop.f32.mrf.mxu1  ;;  %v6115_v15 = vsel %vm529_vm1, %v15017_v35, 0.0 }
 0x94c   : > { %v15010_v40 = vsel %vm5988_vm15, %v5946_v9, %v6020_v46  ;;  %v5949_v17 = vadd.f32 %v14867_v59, %v5948_v5  ;;  %v6023_v7 = vmul.f32 0.01, %v5957_v29  ;;  %vm5991_vm4 = vcmp.gt.f32.partialorder %v5957_v29, 0.0 }
 0x94d   : > { %v6111_v18 = vsel %vm529_vm1, %v15010_v40, 0.0 }
 0x94e   : > { %vm5989_vm3 = vcmp.gt.f32.partialorder %v5949_v17, 0.0  ;;  %v6021_v24 = vmul.f32 0.01, %v5949_v17  ;;  %v6112_v10 = vadd.f32 %v6111_v18, %v6110_v60  ;;  %v15023_v28 = vsel %vm5991_vm4, %v5957_v29, %v6023_v7  ;;  %v9598_v29 = vld [vmem:[%s16504_s9 + $0x2] sm:$0x3] }
 0x94f   : > { %v6117_v52 = vsel %vm529_vm1, %v15023_v28, 0.0  ;;  %v6215_v60 = vsel %vm3283_vm10, %v9598_v29, 0  ;;  %v9592_v7 = vld [vmem:[%s16503_s8 + $0x1] sm:$0x1] }
 0x950   : > { %v15019_v45 = vsel %vm5989_vm3, %v5949_v17, %v6021_v24 }
 0x951   : > { %v6113_v59 = vsel %vm529_vm1, %v15019_v45, 0.0 }
 0x952   : > { %v6114_v58 = vadd.f32 %v6113_v59, %v6112_v10 }
 0x954   : > { %v6116_v9 = vadd.f32 %v6115_v15, %v6114_v58 }
 0x956   : > { %v6118_v26 = vadd.f32 %v6117_v52, %v6116_v9 }
 0x958   : > { %v6119_v48 = vrot.slane %v6118_v26, 4 }
 0x95a   : > { %v6120_v37 = vadd.f32 %v6119_v48, %v6118_v26  ;;  %v12214_v26 = vld [vmem:[%s16561_s1 + $0x58] sm:$0xff]   ;;  %v12215_v48 = vld [vmem:[%s16561_s1 + $0x50] sm:$0xff]  }
 0x95c   : > { %v6121_v46 = vrot.slane %v6120_v37, 2 }
 0x95e   : > { %v6122_v5 = vadd.f32 %v6121_v46, %v6120_v37  ;;  %v12216_v37 = vld [vmem:[%s16561_s1 + $0x48] sm:$0xff]   ;;  %v12217_v46 = vld [vmem:[%s16561_s1 + $0x40] sm:$0xff]   ;;  %s16455_s1 = scalar_lea.sflag [#allocation4], %s377_s25 }
 0x960   : > { %v6123_v12 = vrot.slane %v6122_v5, 1 }
 0x962   : > { %v6124_v17 = vadd.f32 %v6123_v12, %v6122_v5  ;;  %v9599_v5 = vld [vmem:[%s16505_s10 + $0x1] sm:$0x1] }
 0x964   : > { %v6125_v33 = vmul.f32 0.00390625, %v6124_v17 }
 0x966   : > { %v6126_v18 = vpack.c.bf16 %v6125_v33, %v6125_v33 }
 0x968   : > { %10529 = vmatmul.mubr.msk.bf16.vlgmr.msra.gmra.mxu0 %vm529_vm1, %v6126_v18 }
 0x969   : > { %10533 = vmatpush3.bf16.msra.mxu0 %v6215_v60  ;;  %10534 = vmatprep.mubr.msk.bf16.mxu0 %vm12359_vm14, %v16587_v32 }
 0x96a   : > { %10538 = vmatprep.subr.bf16.mxu0 %v12214_v26 }
 0xa28   : > { %v6199_v24 = vpop.f32.mrf.mxu0 }
 0xa29   : > { %v6200_v10 = vadd.f32 %v9592_v7, %v6199_v24 }
 0xa2a   : > { %v10530_v59 = vpop.f32.mrf.mxu0 }
 0xa2b   : > { %v6205_v58 = vmax.f32 %v6200_v10, 0.0 }
 0xa2c   : > { %v6202_v15 = vpop.f32.mrf.mxu0 }
 0xa2d   : > { %v6206_v9 = vpack.c.bf16 %v6205_v58, %v6205_v58 }
 0xa2e   : > { %v10531_v52 = vpop.f32.mrf.mxu0 }
 0xa2f   : > { %10535 = vmatmul.mubr.msk.bf16.vlgmr.msra.gmra.mxu0 %vm3279_vm11, %v6206_v9 }
 0xa30   : > { %10539 = vmatpush3.bf16.msra.mxu0 %v12214_v26 }
 0xa31   : > { %10540 = vmatprep.subr.bf16.mxu0 %v12215_v48 }
 0xa34   : > { %10541 = vmatpush3.bf16.msra.mxu0 %v12215_v48 }
 0xa35   : > { %10542 = vmatprep.subr.bf16.mxu0 %v12216_v37 }
 0xa38   : > { %10543 = vmatpush3.bf16.msra.mxu0 %v12216_v37 }
 0xa39   : > { %10544 = vmatprep.subr.bf16.mxu0 %v12217_v46 }
 0xa3c   : > { %10545 = vmatpush3.bf16.msra.mxu0 %v12217_v46 }
 0xaef   : > { %v6251_v12 = vpop.f32.mrf.mxu0 }
 0xaf0   : > { %v6252_v17 = vadd.f32 %v9599_v5, %v6251_v12 }
 0xaf1   : > { %v10536_v29 = vpop.f32.mrf.mxu0 }
 0xaf2   : > { %v9601_v33 = vmul.f32 -1.442695, %v6252_v17  ;;  %v16589_v17 = vld [vmem:[#allocation8_spill] sm:$0xff] }
 0xaf3   : > { %v6254_v18 = vpop.f32.mrf.mxu0 }
 0xaf4   : > { %12246 = vpow2.f32 %v9601_v33 }
 0xaf5   : > { %v10537_v60 = vpop.f32.mrf.mxu0 }
 0xb01   : > { %v12247_v7 = vpop.eup %12246 }
 0xb02   : > { %v6260_v24 = vadd.f32 1.0, %v12247_v7 }
 0xb04   : > { %12248 = vrcp.f32 %v6260_v24 }
 0xb11   : > { %v12249_v10 = vpop.eup %12248 }
 0xb12   : > { %v15056_v59 = vrot.slane %v12249_v10, %v13748_v22 }
 0xb14   : > { %v6269_v58 = vmul.f32 %v15056_v59, %v14883_v47  ;;  %v6270_v15 = vmul.f32 %v15056_v59, %v14887_v13  ;;  %v6267_v9 = vmul.f32 %v15056_v59, %v14874_v30  ;;  %v6268_v52 = vmul.f32 %v15056_v59, %v14872_v8 }
 0xb15   : > { %v6271_v26 = vmul.f32 %v15056_v59, %v14890_v25  ;;  %v6272_v48 = vmul.f32 %v15056_v59, %v14892_v21  ;;  %v6277_v46 = vmul.f32 %v15056_v59, %v14923_v14  ;;  %v6278_v5 = vmul.f32 %v15056_v59, %v14927_v38  ;;  %v16588_v14 = vld [vmem:[#allocation7_spill] sm:$0xff] }
 0xb16   : > { %v15071_v37 = vadd.f32 %v6269_v58, %v13772_v49  ;;  %v15074_v47 = vadd.f32 %v6270_v15, %v13775_v34  ;;  %v15077_v13 = vadd.f32 %v6267_v9, %v13766_v43  ;;  %v15080_v30 = vadd.f32 %v6268_v52, %v13769_v63  ;;  %v16597_v15 = vld [vmem:[#allocation12_spill] sm:$0xff] }
 0xb17   : > { %v15083_v8 = vadd.f32 %v6271_v26, %v13778_v0  ;;  %v15086_v25 = vadd.f32 %v6272_v48, %v13781_v62  ;;  %v6273_v34 = vmul.f32 %v15056_v59, %v14903_v56  ;;  %v6274_v43 = vmul.f32 %v15056_v59, %v14907_v44 }
 0xb18   : > { %v6332_v21 = vpack.c.bf16 %v15074_v47, %v15071_v37  ;;  %v6331_v49 = vpack.c.bf16 %v15080_v30, %v15077_v13  ;;  %v6275_v63 = vmul.f32 %v15056_v59, %v14910_v51  ;;  %v6276_v0 = vmul.f32 %v15056_v59, %v14912_v42 }
 0xb19   : > { %v6333_v62 = vpack.c.bf16 %v15086_v25, %v15083_v8  ;;  %v15106_v56 = vadd.f32 %v6273_v34, %v13801_v11  ;;  %v15109_v44 = vadd.f32 %v6274_v43, %v13804_v20  ;;  %v6279_v11 = vmul.f32 %v15056_v59, %v14930_v55  ;;  %v16591_v55 = vld [vmem:[#allocation9_spill] sm:$0xff] }
 0xb1a   : > { %10546 = vmatprep.mubr.msk.bf16.mxu0 %vm529_vm1, %v6331_v49  ;;  %v15112_v51 = vadd.f32 %v6275_v63, %v13807_v53  ;;  %v15115_v42 = vadd.f32 %v6276_v0, %v13810_v1  ;;  %v6280_v20 = vmul.f32 %v15056_v59, %v14932_v6  ;;  %v15132_v1 = vadd.f32 %v6277_v46, %v13827_v4  ;;  %v16605_v0 = vld [vmem:[#allocation16_spill] sm:$0xff] }
 0xb1b   : > { %10547 = vmatmul.mubr.msk.bf16.vlgmr.msra.gmra.mxu0 %vm529_vm1, %v6332_v21  ;;  %v6334_v12 = vpack.c.bf16 %v15109_v44, %v15106_v56  ;;  %v15135_v38 = vadd.f32 %v6278_v5, %v16588_v14  ;;  %v15138_v29 = vadd.f32 %v6279_v11, %v16589_v17  ;;  %v6281_v6 = vmul.f32 %v15056_v59, %v14943_v16  ;;  %v16593_v16 = vld [vmem:[#allocation10_spill] sm:$0xff] }
 0xb1c   : > { %10550 = vmatprep.mubr.msk.bf16.mxu0 %vm529_vm1, %v6333_v62  ;;  %v6335_v53 = vpack.c.bf16 %v15115_v42, %v15112_v51  ;;  %v15141_v33 = vadd.f32 %v6280_v20, %v16591_v55  ;;  %v6282_v18 = vmul.f32 %v15056_v59, %v14947_v54  ;;  %v6283_v4 = vmul.f32 %v15056_v59, %v14950_v57  ;;  %v16595_v54 = vld [vmem:[#allocation11_spill] sm:$0xff]  ;;  %v16599_v57 = vld [vmem:[#allocation13_spill] sm:$0xff]  ;;  %v16613_v55 = vld [vmem:[#allocation20_spill] sm:$0xff] }
 0xb1d   : > { %16590 = vst [vmem:[#allocation7_spill] sm:$0xff] %v15138_v29  ;;  %v6336_v60 = vpack.c.bf16 %v15135_v38, %v15132_v1  ;;  %v6284_v7 = vmul.f32 %v15056_v59, %v14952_v2  ;;  %v15158_v10 = vadd.f32 %v6281_v6, %v16593_v16  ;;  %v6285_v2 = vmul.f32 %v15056_v59, %v14963_v19  ;;  %v16601_v19 = vld [vmem:[#allocation14_spill] sm:$0xff] }
 0xb1e   : > { %16592 = vst [vmem:[#allocation8_spill] sm:$0xff] %v15141_v33  ;;  %v6337_v24 = vpack.c.bf16 %v15141_v33, %v15138_v29  ;;  %v15161_v58 = vadd.f32 %v6282_v18, %v16595_v54  ;;  %v15164_v9 = vadd.f32 %v6283_v4, %v16597_v15  ;;  %v6286_v26 = vmul.f32 %v15056_v59, %v14967_v31  ;;  %v16603_v31 = vld [vmem:[#allocation15_spill] sm:$0xff] }
 0xb1f   : > { %16594 = vst [vmem:[#allocation9_spill] sm:$0xff] %v15158_v10  ;;  %v15167_v52 = vadd.f32 %v6284_v7, %v16599_v57  ;;  %v6287_v21 = vmul.f32 %v15056_v59, %v14970_v41  ;;  %v6288_v49 = vmul.f32 %v15056_v59, %v14972_v39  ;;  %v15184_v43 = vadd.f32 %v6285_v2, %v16601_v19  ;;  %v16607_v41 = vld [vmem:[#allocation17_spill] sm:$0xff]  ;;  %v16621_v57 = vld [vmem:[#allocation24_spill] sm:$0xff] }
 0xb20   : > { %16596 = vst [vmem:[#allocation10_spill] sm:$0xff] %v15161_v58  ;;  %16598 = vst [vmem:[#allocation11_spill] sm:$0xff] %v15164_v9  ;;  %v6338_v48 = vpack.c.bf16 %v15161_v58, %v15158_v10  ;;  %v15187_v63 = vadd.f32 %v6286_v26, %v16603_v31  ;;  %v6289_v39 = vmul.f32 %v15056_v59, %v14982_v3  ;;  %v16609_v3 = vld [vmem:[#allocation18_spill] sm:$0xff]  ;;  %v16627_v31 = vld [vmem:[#allocation27_spill] sm:$0xff] }
 0xb21   : > { %16600 = vst [vmem:[#allocation12_spill] sm:$0xff] %v15167_v52  ;;  %v6339_v34 = vpack.c.bf16 %v15167_v52, %v15164_v9  ;;  %16602 = vst [vmem:[#allocation13_spill] sm:$0xff] %v15184_v43  ;;  %v15190_v62 = vadd.f32 %v6287_v21, %v16605_v0  ;;  %v15193_v46 = vadd.f32 %v6288_v49, %v16607_v41 }
 0xb22   : > { %16604 = vst [vmem:[#allocation14_spill] sm:$0xff] %v15187_v63  ;;  %v6290_v5 = vmul.f32 %v15056_v59, %v14987_v61  ;;  %v6291_v11 = vmul.f32 %v15056_v59, %v14990_v23  ;;  %v6292_v20 = vmul.f32 %v15056_v59, %v14992_v36  ;;  %v15210_v14 = vadd.f32 %v6289_v39, %v16609_v3  ;;  %v16611_v61 = vld [vmem:[#allocation19_spill] sm:$0xff]  ;;  %v16615_v23 = vld [vmem:[#allocation21_spill] sm:$0xff]  ;;  %v12221_v3 = vld [vmem:[%s16498_s3 + $0x158] sm:$0xff]  }
 0xb23   : > { %10551 = vmatmul.mubr.msk.bf16.gmra.mxu0 %vm529_vm1, %v6334_v12  ;;  %16606 = vst [vmem:[#allocation15_spill] sm:$0xff] %v15190_v62  ;;  %16608 = vst [vmem:[#allocation16_spill] sm:$0xff] %v15193_v46  ;;  %v6340_v12 = vpack.c.bf16 %v15187_v63, %v15184_v43  ;;  %v6293_v36 = vmul.f32 %v15056_v59, %v15001_v50  ;;  %v6295_v7 = vmul.f32 %v15056_v59, %v15010_v40  ;;  %v16617_v50 = vld [vmem:[#allocation22_spill] sm:$0xff]  ;;  %v16623_v40 = vld [vmem:[#allocation25_spill] sm:$0xff] }
 0xb24   : > { %10554 = vmatprep.mubr.msk.bf16.mxu0 %vm529_vm1, %v6335_v53  ;;  %v6341_v53 = vpack.c.bf16 %v15193_v46, %v15190_v62  ;;  %16610 = vst [vmem:[#allocation17_spill] sm:$0xff] %v15210_v14  ;;  %v15213_v17 = vadd.f32 %v6290_v5, %v16611_v61  ;;  %v15216_v6 = vadd.f32 %v6291_v11, %v16613_v55  ;;  %v6789_v39 = vld [vmem:[#allocation2 + $0x2] sm:$0xff]  ;;  %v6790_v5 = vld [vmem:[#allocation2 + $0xa] sm:$0xff] }
 0xb25   : > { %v15219_v18 = vadd.f32 %v6292_v20, %v16615_v23  ;;  %v15236_v54 = vadd.f32 %v6293_v36, %v16617_v50  ;;  %v15242_v2 = vadd.f32 %v6295_v7, %v16621_v57  ;;  %v12218_v11 = vld [vmem:[%s16498_s3 + $0x1a8] sm:$0xff]   ;;  %v12219_v20 = vld [vmem:[%s16498_s3 + $0x1a0] sm:$0xff]   ;;  %v12222_v61 = vld [vmem:[%s16498_s3 + $0x190] sm:$0xff]  }
 0xb26   : > { %16612 = vst [vmem:[#allocation18_spill] sm:$0xff] %v15213_v17  ;;  %16614 = vst [vmem:[#allocation19_spill] sm:$0xff] %v15216_v6  ;;  %v6342_v4 = vpack.c.bf16 %v15213_v17, %v15210_v14  ;;  %10578 = vmatprep.subr.bf16.mxu0 %v12218_v11  ;;  %v15286_v55 = vld [vmem:[%s16497_s2 + $0x2] ss:$0 sm:$0xff]  ;;  %v12223_v23 = vld [vmem:[%s16498_s3 + $0x150] sm:$0xff]  }
 0xb27   : > { %16616 = vst [vmem:[#allocation20_spill] sm:$0xff] %v15219_v18  ;;  %v6343_v16 = vpack.c.bf16 %v15219_v18, %v15216_v6  ;;  %16618 = vst [vmem:[#allocation21_spill] sm:$0xff] %v15236_v54  ;;  %10579 = vmatpush3.bf16.msra.mxu0 %v12218_v11  ;;  %v12225_v7 = vld [vmem:[%s16498_s3 + $0x148] sm:$0xff]  }
 0xb28   : > { %10580 = vmatprep.subr.bf16.mxu0 %v12219_v20 }
 0xb2b   : > { %10555 = vmatmul.mubr.msk.bf16.gmra.mxu0 %vm529_vm1, %v6336_v60  ;;  %v6294_v60 = vmul.f32 %v15056_v59, %v15007_v27  ;;  %v16619_v27 = vld [vmem:[#allocation23_spill] sm:$0xff] }
 0xb2c   : > { %10558 = vmatprep.mubr.msk.bf16.mxu0 %vm529_vm1, %v6337_v24  ;;  %v6296_v24 = vmul.f32 %v15056_v59, %v15019_v45  ;;  %16622 = vst [vmem:[#allocation23_spill] sm:$0xff] %v15242_v2  ;;  %v6297_v45 = vmul.f32 %v15056_v59, %v15017_v35  ;;  %10581 = vmatpush3.bf16.msra.mxu0 %v12219_v20 }
 0xb2d   : > { %v15239_v15 = vadd.f32 %v6294_v60, %v16619_v27 }
 0xb2e   : > { %v15245_v26 = vadd.f32 %v6296_v24, %v16623_v40 }
 0xb2f   : > { %16620 = vst [vmem:[#allocation22_spill] sm:$0xff] %v15239_v15  ;;  %v6344_v21 = vpack.c.bf16 %v15239_v15, %v15236_v54 }
 0xb30   : > { %16624 = vst [vmem:[#allocation24_spill] sm:$0xff] %v15245_v26  ;;  %v6345_v49 = vpack.c.bf16 %v15245_v26, %v15242_v2 }
 0xb33   : > { %10559 = vmatmul.mubr.msk.bf16.gmra.mxu0 %vm529_vm1, %v6338_v48  ;;  %v6298_v48 = vmul.f32 %v15056_v59, %v15023_v28  ;;  %v6757_v28 = vld [vmem:[#allocation2 + $0x1] sm:$0xff]  ;;  %v6758_v59 = vld [vmem:[#allocation2 + $0x9] sm:$0xff] }
 0xb34   : > { %10562 = vmatprep.mubr.msk.bf16.mxu0 %vm529_vm1, %v6339_v34  ;;  %v16625_v34 = vld [vmem:[#allocation26_spill] sm:$0xff]  ;;  %v11678_v41 = vpack.i.bf16 %v6758_v59, %v6757_v28  ;;  %v12227_v28 = vld [vmem:[%s16498_s3 + $0x140] sm:$0xff]  }
 0xb35   : > { %v15258_v19 = vadd.f32 %v6297_v45, %v16625_v34  ;;  %v15261_v0 = vadd.f32 %v6298_v48, %v16627_v31  ;;  %v12226_v31 = vld [vmem:[%s16498_s3 + $0x180] sm:$0xff]  }
 0xb36   : > { %11679 = vrot.lane.b32.xlu1 %v11678_v41, %s16564_s22 }
 0xb37   : > { %16626 = vst [vmem:[#allocation25_spill] sm:$0xff] %v15258_v19  ;;  %16628 = vst [vmem:[#allocation26_spill] sm:$0xff] %v15261_v0  ;;  %v6346_v35 = vpack.c.bf16 %v15261_v0, %v15258_v19 }
 0xb3b   : > { %10563 = vmatmul.mubr.msk.bf16.gmra.mxu0 %vm529_vm1, %v6340_v12  ;;  %v11683_v12 = vpack.i.bf16 %v6790_v5, %v6789_v39 }
 0xb3c   : > { %10566 = vmatprep.mubr.msk.bf16.mxu0 %vm529_vm1, %v6341_v53  ;;  %v12220_v53 = vld [vmem:[%s16498_s3 + $0x198] sm:$0xff]  }
 0xb3d   : > { %11684 = vrot.lane.b32.xlu1 %v11683_v12, %s16563_s15  ;;  %10123 = vmatprep.subr.bf16.mxu1 %v12220_v53  ;;  %v12228_v53 = vld [vmem:[%s16498_s3 + $0x178] sm:$0xff]  }
 0xb3e   : > { %10124 = vmatpush3.bf16.msra.mxu1 %v12221_v3 }
 0xb3f   : > { %10125 = vmatprep.subr.bf16.mxu1 %v12222_v61  ;;  %v12229_v61 = vld [vmem:[%s16498_s3 + $0x138] sm:$0xff]  }
 0xb42   : > { %10126 = vmatpush3.bf16.msra.mxu1 %v12223_v23 }
 0xb43   : > { %10567 = vmatmul.mubr.msk.bf16.gmra.mxu0 %vm529_vm1, %v6342_v4  ;;  %v12224_v4 = vld [vmem:[%s16498_s3 + $0x188] sm:$0xff]  }
 0xb44   : > { %10570 = vmatprep.mubr.msk.bf16.mxu0 %vm529_vm1, %v6343_v16  ;;  %10127 = vmatprep.subr.bf16.mxu1 %v12224_v4 }
 0xb46   : > { %10128 = vmatpush3.bf16.msra.mxu1 %v12225_v7 }
 0xb47   : > { %10129 = vmatprep.subr.bf16.mxu1 %v12226_v31 }
 0xb4a   : > { %10130 = vmatpush3.bf16.msra.mxu1 %v12227_v28 }
 0xb4b   : > { %10571 = vmatmul.mubr.msk.bf16.gmra.mxu0 %vm529_vm1, %v6344_v21  ;;  %10131 = vmatprep.subr.bf16.mxu1 %v12228_v53  ;;  %v12233_v53 = vld [vmem:[%s16498_s3 + $0x128] sm:$0xff]  }
 0xb4c   : > { %10574 = vmatprep.mubr.msk.bf16.mxu0 %vm529_vm1, %v6345_v49 }
 0xb4e   : > { %10132 = vmatpush3.bf16.msra.mxu1 %v12229_v61 }
 0xb53   : > { %10575 = vmatmul.mubr.msk.bf16.gmra.mxu0 %vm529_vm1, %v6346_v35 }
 0xbdb   : > { %v10548_v36 = vpop.f32.mrf.mxu0 }
 0xbdc   : > { %v6479_v60 = vadd.f32 %v10548_v36, %v15286_v55 }
 0xbdd   : > { %v6470_v24 = vpop.f32.mrf.mxu0 }
 0xbde   : > { %vm6599_vm5 = vcmp.gt.f32.partialorder %v6479_v60, 0.0  ;;  %v6631_v16 = vmul.f32 0.01, %v6479_v60  ;;  %v6471_v50 = vadd.f32 %v15286_v55, %v6470_v24 }
 0xbdf   : > { %v10549_v27 = vpop.f32.mrf.mxu0 }
 0xbe0   : > { %v6663_v57 = vsel %vm6599_vm5, %v6479_v60, %v6631_v16  ;;  %vm6597_vm6 = vcmp.gt.f32.partialorder %v6471_v50, 0.0  ;;  %v6629_v40 = vmul.f32 0.01, %v6471_v50  ;;  %v6482_v45 = vadd.f32 %v10549_v27, %v15286_v55 }
 0xbe1   : > { %6695 = vst.msk [vmem:[#allocation2 + $0x31] sm:$0xff] %vm386_vm0, %v6663_v57  ;;  %v6473_v48 = vpop.f32.mrf.mxu0 }
 0xbe2   : > { %v6661_v21 = vsel %vm6597_vm6, %v6471_v50, %v6629_v40  ;;  %vm6600_vm8 = vcmp.gt.f32.partialorder %v6482_v45, 0.0  ;;  %v6632_v49 = vmul.f32 0.01, %v6482_v45  ;;  %v6474_v34 = vadd.f32 %v15286_v55, %v6473_v48  ;;  %v12230_v50 = vld [vmem:[%s16498_s3 + $0x170] sm:$0xff]  }
 0xbe3   : > { %6693 = vst.msk [vmem:[#allocation2 + $0x19] sm:$0xff] %vm386_vm0, %v6661_v21  ;;  %v10552_v35 = vpop.f32.mrf.mxu0  ;;  %v12231_v40 = vld [vmem:[%s16498_s3 + $0x130] sm:$0xff]   ;;  %10133 = vmatprep.subr.bf16.mxu1 %v12230_v50  ;;  %v12234_v50 = vld [vmem:[%s16498_s3 + $0x160] sm:$0xff]  }
 0xbe4   : > { %v6664_v59 = vsel %vm6600_vm8, %v6482_v45, %v6632_v49  ;;  %vm6598_vm9 = vcmp.gt.f32.partialorder %v6474_v34, 0.0  ;;  %v6630_v41 = vmul.f32 0.01, %v6474_v34  ;;  %v6495_v39 = vadd.f32 %v10552_v35, %v15286_v55  ;;  %10134 = vmatpush3.bf16.msra.mxu1 %v12231_v40  ;;  %v12235_v40 = vld [vmem:[%s16498_s3 + $0x120] sm:$0xff]  }
 0xbe5   : > { %6696 = vst.msk [vmem:[#allocation2 + $0x39] sm:$0xff] %vm386_vm0, %v6664_v59  ;;  %v6486_v5 = vpop.f32.mrf.mxu0 }
 0xbe6   : > { %v6662_v12 = vsel %vm6598_vm9, %v6474_v34, %v6630_v41  ;;  %vm6603_vm12 = vcmp.gt.f32.partialorder %v6495_v39, 0.0  ;;  %v6635_v11 = vmul.f32 0.01, %v6495_v39  ;;  %v6487_v20 = vadd.f32 %v15286_v55, %v6486_v5 }
 0xbe7   : > { %6694 = vst.msk [vmem:[#allocation2 + $0x21] sm:$0xff] %vm386_vm0, %v6662_v12  ;;  %v10553_v3 = vpop.f32.mrf.mxu0 }
 0xbe8   : > { %v6667_v23 = vsel %vm6603_vm12, %v6495_v39, %v6635_v11  ;;  %vm6601_vm13 = vcmp.gt.f32.partialorder %v6487_v20, 0.0  ;;  %v6633_v36 = vmul.f32 0.01, %v6487_v20  ;;  %v6498_v60 = vadd.f32 %v10553_v3, %v15286_v55  ;;  %v15326_v57 = vld [vmem:[#allocation2 + $0x30] sm:$0xff] }
 0xbe9   : > { %6699 = vst.msk [vmem:[#allocation2 + $0x61] sm:$0xff] %vm386_vm0, %v6667_v23  ;;  %v6489_v4 = vpop.f32.mrf.mxu0 }
 0xbea   : > { %v6665_v7 = vsel %vm6601_vm13, %v6487_v20, %v6633_v36  ;;  %vm6604_vm15 = vcmp.gt.f32.partialorder %v6498_v60, 0.0  ;;  %v6636_v24 = vmul.f32 0.01, %v6498_v60  ;;  %v6490_v16 = vadd.f32 %v15286_v55, %v6489_v4  ;;  %v12232_v20 = vld [vmem:[%s16498_s3 + $0x168] sm:$0xff]   ;;  %v15351_v36 = vld [vmem:[#allocation2 + $0x31] sm:$0xff] }
 0xbeb   : > { %6697 = vst.msk [vmem:[#allocation2 + $0x49] sm:$0xff] %vm386_vm0, %v6665_v7  ;;  %v10556_v27 = vpop.f32.mrf.mxu0  ;;  %10135 = vmatprep.subr.bf16.mxu1 %v12232_v20 }
 0xbec   : > { %v6668_v45 = vsel %vm6604_vm15, %v6498_v60, %v6636_v24  ;;  %vm6602_vm2 = vcmp.gt.f32.partialorder %v6490_v16, 0.0  ;;  %v6634_v48 = vmul.f32 0.01, %v6490_v16  ;;  %v6511_v21 = vadd.f32 %v10556_v27, %v15286_v55  ;;  %v6981_v49 = vld [vmem:[#allocation2 + $0x32] sm:$0xff]  ;;  %v6982_v34 = vld [vmem:[#allocation2 + $0x3a] sm:$0xff]  ;;  %10136 = vmatpush3.bf16.msra.mxu1 %v12233_v53 }
 0xbed   : > { %v15332_v31 = vld [vmem:[#allocation2 + $0x38] sm:$0xff]  ;;  %6700 = vst.msk [vmem:[#allocation2 + $0x69] sm:$0xff] %vm386_vm0, %v6668_v45  ;;  %v6502_v35 = vpop.f32.mrf.mxu0  ;;  %v7975_v28 = vpack.c.bf16 %v6982_v34, %v6981_v49  ;;  %10137 = vmatprep.subr.bf16.mxu1 %v12234_v50 }
 0xbee   : > { %v11688_v59 = vpack.i.bf16 %v15332_v31, %v15326_v57  ;;  %v6666_v41 = vsel %vm6602_vm2, %v6490_v16, %v6634_v48  ;;  %vm6607_vm3 = vcmp.gt.f32.partialorder %v6511_v21, 0.0  ;;  %v6639_v39 = vmul.f32 0.01, %v6511_v21  ;;  %v15338_v12 = vld [vmem:[#allocation2 + $0x39] sm:$0xff] }
 0xbef   : > { %v6503_v5 = vadd.f32 %v15286_v55, %v6502_v35  ;;  %6698 = vst.msk [vmem:[#allocation2 + $0x51] sm:$0xff] %vm386_vm0, %v6666_v41  ;;  %10582 = vmatprep.mubr.msk.bf16.mxu0 %vm386_vm0, %v7975_v28  ;;  %v10557_v11 = vpop.f32.mrf.mxu0  ;;  %v11693_v4 = vpack.i.bf16 %v15338_v12, %v15351_v36  ;;  %v11698_v41 = vpack.i.bf16 %v6982_v34, %v6981_v49 }
 0xbf0   : > { %11689 = vrot.lane.b32.xlu0 %v11688_v59, %s16563_s15  ;;  %v6671_v3 = vsel %vm6607_vm3, %v6511_v21, %v6639_v39  ;;  %11704 = vrot.lane.b32.xlu1 %v11688_v59, %s16586_s29  ;;  %v6514_v23 = vadd.f32 %v10557_v11, %v15286_v55  ;;  %v6885_v39 = vld [vmem:[#allocation2 + $0x1a] sm:$0xff] }
 0xbf1   : > { %vm6605_vm4 = vcmp.gt.f32.partialorder %v6503_v5, 0.0  ;;  %v6637_v61 = vmul.f32 0.01, %v6503_v5  ;;  %6703 = vst.msk [vmem:[#allocation2 + $0x91] sm:$0xff] %vm386_vm0, %v6671_v3  ;;  %v6505_v60 = vpop.f32.mrf.mxu0  ;;  %10138 = vmatpush3.bf16.msra.mxu1 %v12235_v40 }
 0xbf2   : > { %vm6608_vm5 = vcmp.gt.f32.partialorder %v6514_v23, 0.0  ;;  %v6640_v24 = vmul.f32 0.01, %v6514_v23  ;;  %v6506_v16 = vadd.f32 %v15286_v55, %v6505_v60  ;;  %10650 = vmatprep.subr.bf16.mxu1 %v16587_v32 }
 0xbf3   : > { %v6669_v7 = vsel %vm6605_vm4, %v6503_v5, %v6637_v61  ;;  %v10560_v27 = vpop.f32.mrf.mxu0  ;;  %v6886_v5 = vld [vmem:[#allocation2 + $0x22] sm:$0xff] }
 0xbf4   : > { %6701 = vst.msk [vmem:[#allocation2 + $0x79] sm:$0xff] %vm386_vm0, %v6669_v7  ;;  %11694 = vrot.lane.b32.xlu0 %v11693_v4, %s16586_s29  ;;  %v6672_v45 = vsel %vm6608_vm5, %v6514_v23, %v6640_v24  ;;  %vm6606_vm6 = vcmp.gt.f32.partialorder %v6506_v16, 0.0  ;;  %v6638_v48 = vmul.f32 0.01, %v6506_v16  ;;  %11709 = vrot.lane.b32.xlu1 %v11693_v4, %s16564_s22  ;;  %v6527_v21 = vadd.f32 %v10560_v27, %v15286_v55  ;;  %v15367_v35 = vld [vmem:[#allocation2 + $0x62] sm:$0xff]  ;;  %v15369_v28 = vld [vmem:[#allocation2 + $0x6a] sm:$0xff] }
 0xbf5   : > { %6704 = vst.msk [vmem:[#allocation2 + $0x99] sm:$0xff] %vm386_vm0, %v6672_v45  ;;  %v6518_v59 = vpop.f32.mrf.mxu0  ;;  %v15377_v23 = vld [vmem:[#allocation2 + $0x20] sm:$0xff]  ;;  %v7981_v34 = vpack.c.bf16 %v15369_v28, %v15367_v35  ;;  %v11718_v27 = vpack.i.bf16 %v6886_v5, %v6885_v39  ;;  %v15416_v0 = vld [vmem:[#allocation2 + $0x69] sm:$0xff] }
 0xbf6   : > { %v6670_v11 = vsel %vm6606_vm6, %v6506_v16, %v6638_v48  ;;  %vm6611_vm8 = vcmp.gt.f32.partialorder %v6527_v21, 0.0  ;;  %v6643_v20 = vmul.f32 0.01, %v6527_v21  ;;  %v6519_v53 = vadd.f32 %v15286_v55, %v6518_v59  ;;  %v15373_v3 = vld [vmem:[#allocation2 + $0x4a] sm:$0xff]  ;;  %v15375_v61 = vld [vmem:[#allocation2 + $0x52] sm:$0xff] }
 0xbf7   : > { %6702 = vst.msk [vmem:[#allocation2 + $0x81] sm:$0xff] %vm386_vm0, %v6670_v11  ;;  %v10561_v60 = vpop.f32.mrf.mxu0  ;;  %v7978_v49 = vpack.c.bf16 %v15375_v61, %v15373_v3  ;;  %v15387_v16 = vld [vmem:[#allocation2 + $0x18] sm:$0xff]  ;;  %v6922_v59 = vld [vmem:[#allocation2 + $0x68] sm:$0xff] }
 0xbf8   : > { %11699 = vrot.lane.b32.xlu0 %v11698_v41, %s16564_s22  ;;  %v6675_v4 = vsel %vm6611_vm8, %v6527_v21, %v6643_v20  ;;  %vm6609_vm9 = vcmp.gt.f32.partialorder %v6519_v53, 0.0  ;;  %v6641_v7 = vmul.f32 0.01, %v6519_v53  ;;  %11714 = vrot.lane.b32.xlu1 %v11698_v41, %s16563_s15  ;;  %v6530_v24 = vadd.f32 %v10561_v60, %v15286_v55  ;;  %v15396_v41 = vld [vmem:[#allocation2 + $0x21] sm:$0xff]  ;;  %v15400_v20 = vld [vmem:[#allocation2 + $0x19] sm:$0xff] }
 0xbf9   : > { %6707 = vst.msk [vmem:[#allocation2 + $0xc1] sm:$0xff] %vm386_vm0, %v6675_v4  ;;  %v6521_v50 = vpop.f32.mrf.mxu0  ;;  %10583 = vmatmul.mubr.msk.bf16.vlgmr.msra.gmra.mxu0 %vm386_vm0, %v7978_v49  ;;  %v11723_v40 = vpack.i.bf16 %v15377_v23, %v15387_v16  ;;  %v6921_v60 = vld [vmem:[#allocation2 + $0x60] sm:$0xff] }
 0xbfa   : > { %v6673_v45 = vsel %vm6609_vm9, %v6519_v53, %v6641_v7  ;;  %vm6612_vm12 = vcmp.gt.f32.partialorder %v6530_v24, 0.0  ;;  %v6644_v48 = vmul.f32 0.01, %v6530_v24  ;;  %v6522_v21 = vadd.f32 %v15286_v55, %v6521_v50  ;;  %10586 = vmatprep.mubr.msk.bf16.mxu0 %vm386_vm0, %v7981_v34 }
 0xbfb   : > { %6705 = vst.msk [vmem:[#allocation2 + $0xa9] sm:$0xff] %vm386_vm0, %v6673_v45  ;;  %v10564_v11 = vpop.f32.mrf.mxu0  ;;  %v11738_v7 = vpack.i.bf16 %v6922_v59, %v6921_v60  ;;  %v11728_v50 = vpack.i.bf16 %v15396_v41, %v15400_v20 }
 0xbfc   : > { %11719 = vrot.lane.b32.xlu0 %v11718_v27, %s16564_s22  ;;  %v6676_v39 = vsel %vm6612_vm12, %v6530_v24, %v6644_v48  ;;  %vm6610_vm13 = vcmp.gt.f32.partialorder %v6522_v21, 0.0  ;;  %v6642_v5 = vmul.f32 0.01, %v6522_v21  ;;  %v6543_v53 = vadd.f32 %v10564_v11, %v15286_v55  ;;  %11724 = vrot.lane.b32.xlu1 %v11723_v40, %s16586_s29  ;;  %v15404_v49 = vld [vmem:[#allocation2 + $0x92] sm:$0xff]  ;;  %v15406_v34 = vld [vmem:[#allocation2 + $0x9a] sm:$0xff] }
 0xbfd   : > { %6708 = vst.msk [vmem:[#allocation2 + $0xc9] sm:$0xff] %vm386_vm0, %v6676_v39  ;;  %v6534_v4 = vpop.f32.mrf.mxu0  ;;  %v15500_v52 = vld [vmem:[#allocation2 + $0x99] sm:$0xff] }
 0xbfe   : > { %v6674_v45 = vsel %vm6610_vm13, %v6522_v21, %v6642_v5  ;;  %vm6615_vm15 = vcmp.gt.f32.partialorder %v6543_v53, 0.0  ;;  %v6647_v24 = vmul.f32 0.01, %v6543_v53  ;;  %v6535_v48 = vadd.f32 %v15286_v55, %v6534_v4  ;;  %v15412_v11 = vld [vmem:[#allocation2 + $0x7a] sm:$0xff]  ;;  %v15414_v40 = vld [vmem:[#allocation2 + $0x82] sm:$0xff] }
 0xbff   : > { %6706 = vst.msk [vmem:[#allocation2 + $0xb1] sm:$0xff] %vm386_vm0, %v6674_v45  ;;  %v10565_v19 = vpop.f32.mrf.mxu0  ;;  %v7984_v59 = vpack.c.bf16 %v15414_v40, %v15412_v11  ;;  %v7987_v21 = vpack.c.bf16 %v15406_v34, %v15404_v49  ;;  %v15426_v4 = vld [vmem:[#allocation2 + $0x61] sm:$0xff] }
 0xc00   : > { %11739 = vrot.lane.b32.xlu0 %v11738_v7, %s16563_s15  ;;  %v6679_v39 = vsel %vm6615_vm15, %v6543_v53, %v6647_v24  ;;  %vm6613_vm2 = vcmp.gt.f32.partialorder %v6535_v48, 0.0  ;;  %v6645_v5 = vmul.f32 0.01, %v6535_v48  ;;  %v6546_v60 = vadd.f32 %v10565_v19, %v15286_v55  ;;  %11729 = vrot.lane.b32.xlu1 %v11728_v50, %s16564_s22 }
 0xc01   : > { %6711 = vst.msk [vmem:[#allocation2 + $0xf1] sm:$0xff] %vm386_vm0, %v6679_v39  ;;  %v6537_v45 = vpop.f32.mrf.mxu0  ;;  %10587 = vmatmul.mubr.msk.bf16.gmra.mxu0 %vm386_vm0, %v7984_v59  ;;  %v11743_v26 = vpack.i.bf16 %v15416_v0, %v15426_v4 }
 0xc02   : > { %v6677_v2 = vsel %vm6613_vm2, %v6535_v48, %v6645_v5  ;;  %vm6616_vm3 = vcmp.gt.f32.partialorder %v6546_v60, 0.0  ;;  %v6648_v15 = vmul.f32 0.01, %v6546_v60  ;;  %v6538_v53 = vadd.f32 %v15286_v55, %v6537_v45  ;;  %10590 = vmatprep.mubr.msk.bf16.mxu0 %vm386_vm0, %v7987_v21 }
 0xc03   : > { %6709 = vst.msk [vmem:[#allocation2 + $0xd9] sm:$0xff] %vm386_vm0, %v6677_v2  ;;  %v10568_v19 = vpop.f32.mrf.mxu0  ;;  %v11748_v2 = vpack.i.bf16 %v15369_v28, %v15367_v35 }
 0xc04   : > { %11744 = vrot.lane.b32.xlu0 %v11743_v26, %s16586_s29  ;;  %v6680_v50 = vsel %vm6616_vm3, %v6546_v60, %v6648_v15  ;;  %vm6614_vm4 = vcmp.gt.f32.partialorder %v6538_v53, 0.0  ;;  %v6646_v24 = vmul.f32 0.01, %v6538_v53  ;;  %v6559_v59 = vadd.f32 %v10568_v19, %v15286_v55  ;;  %11734 = vrot.lane.b32.xlu1 %v11718_v27, %s16563_s15  ;;  %v15438_v39 = vld [vmem:[#allocation2 + $0xc2] sm:$0xff]  ;;  %v15440_v48 = vld [vmem:[#allocation2 + $0xca] sm:$0xff] }
 0xc05   : > { %6712 = vst.msk [vmem:[#allocation2 + $0xf9] sm:$0xff] %vm386_vm0, %v6680_v50  ;;  %v6550_v5 = vpop.f32.mrf.mxu0  ;;  %v6920_v27 = vld [vmem:[#allocation2 + $0x50] sm:$0xff]  ;;  %v7993_v35 = vpack.c.bf16 %v15440_v48, %v15438_v39 }
 0xc06   : > { %v6678_v21 = vsel %vm6614_vm4, %v6538_v53, %v6646_v24  ;;  %vm6619_vm5 = vcmp.gt.f32.partialorder %v6559_v59, 0.0  ;;  %v6651_v45 = vmul.f32 0.01, %v6559_v59  ;;  %v6551_v15 = vadd.f32 %v15286_v55, %v6550_v5  ;;  %v15446_v60 = vld [vmem:[#allocation2 + $0xaa] sm:$0xff]  ;;  %v15448_v19 = vld [vmem:[#allocation2 + $0xb2] sm:$0xff] }
 0xc07   : > { %6710 = vst.msk [vmem:[#allocation2 + $0xe1] sm:$0xff] %vm386_vm0, %v6678_v21  ;;  %v10569_v54 = vpop.f32.mrf.mxu0  ;;  %v7990_v50 = vpack.c.bf16 %v15448_v19, %v15446_v60  ;;  %v6919_v5 = vld [vmem:[#allocation2 + $0x48] sm:$0xff] }
 0xc08   : > { %11749 = vrot.lane.b32.xlu0 %v11748_v2, %s16564_s22  ;;  %v6683_v28 = vsel %vm6619_vm5, %v6559_v59, %v6651_v45  ;;  %vm6617_vm6 = vcmp.gt.f32.partialorder %v6551_v15, 0.0  ;;  %v6649_v53 = vmul.f32 0.01, %v6551_v15  ;;  %v6562_v24 = vadd.f32 %v10569_v54, %v15286_v55  ;;  %11754 = vrot.lane.b32.xlu1 %v11738_v7, %s16586_s29  ;;  %v15462_v59 = vld [vmem:[#allocation2 + $0x51] sm:$0xff] }
 0xc09   : > { %6715 = vst.msk [vmem:[#allocation2 + $0x121] sm:$0xff] %vm386_vm0, %v6683_v28  ;;  %v6553_v21 = vpop.f32.mrf.mxu0  ;;  %10591 = vmatmul.mubr.msk.bf16.gmra.mxu0 %vm386_vm0, %v7990_v50  ;;  %v11768_v18 = vpack.i.bf16 %v6920_v27, %v6919_v5 }
 0xc0a   : > { %v6681_v6 = vsel %vm6617_vm6, %v6551_v15, %v6649_v53  ;;  %vm6620_vm8 = vcmp.gt.f32.partialorder %v6562_v24, 0.0  ;;  %v6652_v17 = vmul.f32 0.01, %v6562_v24  ;;  %v6554_v14 = vadd.f32 %v15286_v55, %v6553_v21  ;;  %10594 = vmatprep.mubr.msk.bf16.mxu0 %vm386_vm0, %v7993_v35  ;;  %v15468_v15 = vld [vmem:[#allocation2 + $0x49] sm:$0xff] }
 0xc0b   : > { %6713 = vst.msk [vmem:[#allocation2 + $0x109] sm:$0xff] %vm386_vm0, %v6681_v6  ;;  %v10572_v54 = vpop.f32.mrf.mxu0  ;;  %v11773_v6 = vpack.i.bf16 %v15462_v59, %v15468_v15 }
 0xc0c   : > { %11769 = vrot.lane.b32.xlu0 %v11768_v18, %s16563_s15  ;;  %v6684_v7 = vsel %vm6620_vm8, %v6562_v24, %v6652_v17  ;;  %vm6618_vm9 = vcmp.gt.f32.partialorder %v6554_v14, 0.0  ;;  %v6650_v45 = vmul.f32 0.01, %v6554_v14  ;;  %v6575_v50 = vadd.f32 %v10572_v54, %v15286_v55  ;;  %11759 = vrot.lane.b32.xlu1 %v11743_v26, %s16564_s22  ;;  %v15470_v27 = vld [vmem:[#allocation2 + $0xf2] sm:$0xff]  ;;  %v15472_v28 = vld [vmem:[#allocation2 + $0xfa] sm:$0xff] }
 0xc0d   : > { %6716 = vst.msk [vmem:[#allocation2 + $0x129] sm:$0xff] %vm386_vm0, %v6684_v7  ;;  %v6566_v35 = vpop.f32.mrf.mxu0  ;;  %v7999_v7 = vpack.c.bf16 %v15472_v28, %v15470_v27 }
 0xc0e   : > { %v6682_v53 = vsel %vm6618_vm9, %v6554_v14, %v6650_v45  ;;  %vm6623_vm12 = vcmp.gt.f32.partialorder %v6575_v50, 0.0  ;;  %v6655_v17 = vmul.f32 0.01, %v6575_v50  ;;  %v6567_v24 = vadd.f32 %v15286_v55, %v6566_v35  ;;  %v6995_v5 = vld [vmem:[#allocation2 + $0xda] sm:$0xff]  ;;  %v6996_v21 = vld [vmem:[#allocation2 + $0xe2] sm:$0xff] }
 0xc0f   : > { %6714 = vst.msk [vmem:[#allocation2 + $0x111] sm:$0xff] %vm386_vm0, %v6682_v53  ;;  %v10573_v26 = vpop.f32.mrf.mxu0  ;;  %v7996_v54 = vpack.c.bf16 %v6996_v21, %v6995_v5  ;;  %v15482_v46 = vpack.i.bf16 %v6996_v21, %v6995_v5  ;;  %v11778_v53 = vpack.i.bf16 %v15375_v61, %v15373_v3  ;;  %v6925_v3 = vld [vmem:[#allocation2 + $0x90] sm:$0xff] }
 0xc10   : > { %11774 = vrot.lane.b32.xlu0 %v11773_v6, %s16586_s29  ;;  %v6687_v62 = vsel %vm6623_vm12, %v6575_v50, %v6655_v17  ;;  %vm6621_vm13 = vcmp.gt.f32.partialorder %v6567_v24, 0.0  ;;  %v6653_v14 = vmul.f32 0.01, %v6567_v24  ;;  %v6578_v45 = vadd.f32 %v10573_v26, %v15286_v55  ;;  %11764 = vrot.lane.b32.xlu1 %v11748_v2, %s16563_s15  ;;  %v6926_v50 = vld [vmem:[#allocation2 + $0x98] sm:$0xff] }
 0xc11   : > { %6719 = vst.msk [vmem:[#allocation2 + $0x151] sm:$0xff] %vm386_vm0, %v6687_v62  ;;  %v6569_v35 = vpop.f32.mrf.mxu0  ;;  %10595 = vmatmul.mubr.msk.bf16.gmra.mxu0 %vm386_vm0, %v7996_v54  ;;  %v11798_v54 = vpack.i.bf16 %v6926_v50, %v6925_v3  ;;  %v15508_v3 = vld [vmem:[#allocation2 + $0x91] sm:$0xff] }
 0xc12   : > { %v6685_v63 = vsel %vm6621_vm13, %v6567_v24, %v6653_v14  ;;  %vm6624_vm15 = vcmp.gt.f32.partialorder %v6578_v45, 0.0  ;;  %v6656_v43 = vmul.f32 0.01, %v6578_v45  ;;  %v6570_v5 = vadd.f32 %v15286_v55, %v6569_v35  ;;  %10598 = vmatprep.mubr.msk.bf16.mxu0 %vm386_vm0, %v7999_v7 }
 0xc13   : > { %6717 = vst.msk [vmem:[#allocation2 + $0x139] sm:$0xff] %vm386_vm0, %v6685_v63  ;;  %v10576_v17 = vpop.f32.mrf.mxu0 }
 0xc14   : > { %11779 = vrot.lane.b32.xlu0 %v11778_v53, %s16564_s22  ;;  %v6688_v62 = vsel %vm6624_vm15, %v6578_v45, %v6656_v43  ;;  %vm6622_vm2 = vcmp.gt.f32.partialorder %v6570_v5, 0.0  ;;  %v6654_v2 = vmul.f32 0.01, %v6570_v5  ;;  %v6591_v21 = vadd.f32 %v10576_v17, %v15286_v55  ;;  %11784 = vrot.lane.b32.xlu1 %v11768_v18, %s16586_s29  ;;  %v7001_v61 = vld [vmem:[#allocation2 + $0x122] sm:$0xff]  ;;  %v7002_v24 = vld [vmem:[#allocation2 + $0x12a] sm:$0xff] }
 0xc15   : > { %6720 = vst.msk [vmem:[#allocation2 + $0x159] sm:$0xff] %vm386_vm0, %v6688_v62  ;;  %v6582_v26 = vpop.f32.mrf.mxu0  ;;  %v15497_v7 = vpack.i.bf16 %v7002_v24, %v7001_v61  ;;  %v8005_v62 = vpack.c.bf16 %v7002_v24, %v7001_v61 }
 0xc16   : > { %v6686_v63 = vsel %vm6622_vm2, %v6570_v5, %v6654_v2  ;;  %vm6627_vm3 = vcmp.gt.f32.partialorder %v6591_v21, 0.0  ;;  %v6659_v14 = vmul.f32 0.01, %v6591_v21  ;;  %v6583_v43 = vadd.f32 %v15286_v55, %v6582_v26  ;;  %v6999_v45 = vld [vmem:[#allocation2 + $0x10a] sm:$0xff]  ;;  %v7000_v35 = vld [vmem:[#allocation2 + $0x112] sm:$0xff] }
 0xc17   : > { %6718 = vst.msk [vmem:[#allocation2 + $0x141] sm:$0xff] %vm386_vm0, %v6686_v63  ;;  %v10577_v18 = vpop.f32.mrf.mxu0  ;;  %v8002_v17 = vpack.c.bf16 %v7000_v35, %v6999_v45  ;;  %v15504_v9 = vpack.i.bf16 %v7000_v35, %v6999_v45  ;;  %v11803_v63 = vpack.i.bf16 %v15500_v52, %v15508_v3 }
 0xc18   : > { %11799 = vrot.lane.b32.xlu0 %v11798_v54, %s16563_s15  ;;  %v6691_v50 = vsel %vm6627_vm3, %v6591_v21, %v6659_v14  ;;  %vm6625_vm4 = vcmp.gt.f32.partialorder %v6583_v43, 0.0  ;;  %v6657_v5 = vmul.f32 0.01, %v6583_v43  ;;  %v6594_v2 = vadd.f32 %v10577_v18, %v15286_v55  ;;  %11789 = vrot.lane.b32.xlu1 %v11773_v6, %s16564_s22 }
 0xc19   : > { %6723 = vst.msk [vmem:[#allocation2 + $0x181] sm:$0xff] %vm386_vm0, %v6691_v50  ;;  %v6585_v26 = vpop.f32.mrf.mxu0  ;;  %10599 = vmatmul.mubr.msk.bf16.gmra.mxu0 %vm386_vm0, %v8002_v17  ;;  %v6924_v50 = vld [vmem:[#allocation2 + $0x80] sm:$0xff] }
 0xc1a   : > { %v6689_v61 = vsel %vm6625_vm4, %v6583_v43, %v6657_v5  ;;  %vm6628_vm5 = vcmp.gt.f32.partialorder %v6594_v2, 0.0  ;;  %v6660_v24 = vmul.f32 0.01, %v6594_v2  ;;  %v6586_v21 = vadd.f32 %v15286_v55, %v6585_v26  ;;  %10602 = vmatprep.mubr.msk.bf16.mxu0 %vm386_vm0, %v8005_v62  ;;  %v6923_v26 = vld [vmem:[#allocation2 + $0x78] sm:$0xff] }
 0xc1b   : > { %6721 = vst.msk [vmem:[#allocation2 + $0x169] sm:$0xff] %vm386_vm0, %v6689_v61  ;;  %v11808_v43 = vpack.i.bf16 %v15406_v34, %v15404_v49  ;;  %v11828_v49 = vpack.i.bf16 %v6924_v50, %v6923_v26  ;;  %v15531_v34 = vld [vmem:[#allocation2 + $0x81] sm:$0xff]  ;;  %v15535_v61 = vld [vmem:[#allocation2 + $0x79] sm:$0xff] }
 0xc1c   : > { %11804 = vrot.lane.b32.xlu0 %v11803_v63, %s16586_s29  ;;  %v6692_v6 = vsel %vm6628_vm5, %v6594_v2, %v6660_v24  ;;  %vm6626_vm6 = vcmp.gt.f32.partialorder %v6586_v21, 0.0  ;;  %v6658_v14 = vmul.f32 0.01, %v6586_v21  ;;  %11794 = vrot.lane.b32.xlu1 %v11778_v53, %s16563_s15  ;;  %v7005_v45 = vld [vmem:[#allocation2 + $0x152] sm:$0xff]  ;;  %v7006_v35 = vld [vmem:[#allocation2 + $0x15a] sm:$0xff]  ;;  %v11833_v24 = vpack.i.bf16 %v15531_v34, %v15535_v61  ;;  %v6927_v26 = vld [vmem:[#allocation2 + $0xa8] sm:$0xff] }
 0xc1d   : > { %6724 = vst.msk [vmem:[#allocation2 + $0x189] sm:$0xff] %vm386_vm0, %v6692_v6  ;;  %v15522_v18 = vpack.i.bf16 %v7006_v35, %v7005_v45  ;;  %v8011_v53 = vpack.c.bf16 %v7006_v35, %v7005_v45 }
 0xc1e   : > { %v6690_v55 = vsel %vm6626_vm6, %v6586_v21, %v6658_v14  ;;  %v7003_v17 = vld [vmem:[#allocation2 + $0x13a] sm:$0xff]  ;;  %v7004_v62 = vld [vmem:[#allocation2 + $0x142] sm:$0xff] }
 0xc1f   : > { %6722 = vst.msk [vmem:[#allocation2 + $0x171] sm:$0xff] %vm386_vm0, %v6690_v55  ;;  %v8008_v5 = vpack.c.bf16 %v7004_v62, %v7003_v17  ;;  %v15526_v2 = vpack.i.bf16 %v7004_v62, %v7003_v17  ;;  %v6930_v17 = vld [vmem:[#allocation2 + $0xc8] sm:$0xff]  ;;  %v6929_v62 = vld [vmem:[#allocation2 + $0xc0] sm:$0xff] }
 0xc20   : > { %11809 = vrot.lane.b32.xlu0 %v11808_v43, %s16564_s22  ;;  %11814 = vrot.lane.b32.xlu1 %v11798_v54, %s16586_s29  ;;  %v11858_v50 = vpack.i.bf16 %v6930_v17, %v6929_v62  ;;  %v6931_v17 = vld [vmem:[#allocation2 + $0xd8] sm:$0xff] }
 0xc21   : > { %10603 = vmatmul.mubr.msk.bf16.gmra.mxu0 %vm386_vm0, %v8008_v5  ;;  %v6962_v5 = vld [vmem:[#allocation2 + $0xc9] sm:$0xff] }
 0xc22   : > { %10606 = vmatprep.mubr.msk.bf16.mxu0 %vm386_vm0, %v8011_v53 }
 0xc24   : > { %11829 = vrot.lane.b32.xlu0 %v11828_v49, %s16563_s15  ;;  %11819 = vrot.lane.b32.xlu1 %v11803_v63, %s16564_s22  ;;  %v7009_v21 = vld [vmem:[#allocation2 + $0x182] sm:$0xff]  ;;  %v7010_v54 = vld [vmem:[#allocation2 + $0x18a] sm:$0xff]  ;;  %v11838_v63 = vpack.i.bf16 %v15414_v40, %v15412_v11  ;;  %v11868_v11 = vpack.i.bf16 %v15440_v48, %v15438_v39  ;;  %v11898_v39 = vpack.i.bf16 %v15448_v19, %v15446_v60  ;;  %v6934_v48 = vld [vmem:[#allocation2 + $0xf8] sm:$0xff] }
 0xc25   : > { %v8017_v55 = vpack.c.bf16 %v7010_v54, %v7009_v21  ;;  %v6928_v40 = vld [vmem:[#allocation2 + $0xb0] sm:$0xff]  ;;  %v11928_v60 = vpack.i.bf16 %v15472_v28, %v15470_v27  ;;  %v6932_v19 = vld [vmem:[#allocation2 + $0xe0] sm:$0xff]  ;;  %v6938_v27 = vld [vmem:[#allocation2 + $0x128] sm:$0xff] }
 0xc26   : > { %v7007_v6 = vld [vmem:[#allocation2 + $0x16a] sm:$0xff]  ;;  %v7008_v14 = vld [vmem:[#allocation2 + $0x172] sm:$0xff]  ;;  %v11948_v62 = vpack.i.bf16 %v6932_v19, %v6931_v17 }
 0xc27   : > { %v8014_v45 = vpack.c.bf16 %v7008_v14, %v7007_v6  ;;  %v15540_v35 = vpack.i.bf16 %v7008_v14, %v7007_v6  ;;  %v6960_v21 = vld [vmem:[#allocation2 + $0xb1] sm:$0xff] }
 0xc28   : > { %11834 = vrot.lane.b32.xlu0 %v11833_v24, %s16586_s29  ;;  %11824 = vrot.lane.b32.xlu1 %v11808_v43, %s16563_s15  ;;  %v6961_v43 = vld [vmem:[#allocation2 + $0xc1] sm:$0xff]  ;;  %v6933_v6 = vld [vmem:[#allocation2 + $0xf0] sm:$0xff] }
 0xc29   : > { %10607 = vmatmul.mubr.msk.bf16.gmra.mxu0 %vm386_vm0, %v8014_v45  ;;  %v11863_v53 = vpack.i.bf16 %v6962_v5, %v6961_v43  ;;  %v11918_v14 = vpack.i.bf16 %v6934_v48, %v6933_v6  ;;  %v6966_v45 = vld [vmem:[#allocation2 + $0xf9] sm:$0xff]  ;;  %v6936_v6 = vld [vmem:[#allocation2 + $0x110] sm:$0xff] }
 0xc2a   : > { %10610 = vmatprep.mubr.msk.bf16.mxu0 %vm386_vm0, %v8017_v55  ;;  %v6965_v55 = vld [vmem:[#allocation2 + $0xf1] sm:$0xff]  ;;  %v6963_v5 = vld [vmem:[#allocation2 + $0xd9] sm:$0xff] }
 0xc2c   : > { %11839 = vrot.lane.b32.xlu0 %v11838_v63, %s16564_s22  ;;  %11844 = vrot.lane.b32.xlu1 %v11828_v49, %s16586_s29  ;;  %v11888_v49 = vpack.i.bf16 %v6928_v40, %v6927_v26  ;;  %v6970_v26 = vld [vmem:[#allocation2 + $0x129] sm:$0xff] }
 0xc30   : > { %11859 = vrot.lane.b32.xlu0 %v11858_v50, %s16563_s15  ;;  %11849 = vrot.lane.b32.xlu1 %v11833_v24, %s16564_s22  ;;  %v6959_v24 = vld [vmem:[#allocation2 + $0xa9] sm:$0xff] }
 0xc31   : > { %v11893_v54 = vpack.i.bf16 %v6960_v21, %v6959_v24 }
 0xc34   : > { %11864 = vrot.lane.b32.xlu0 %v11863_v53, %s16586_s29  ;;  %11854 = vrot.lane.b32.xlu1 %v11838_v63, %s16563_s15  ;;  %v11923_v63 = vpack.i.bf16 %v6966_v45, %v6965_v55 }
 0xc38   : > { %11869 = vrot.lane.b32.xlu0 %v11868_v11, %s16564_s22  ;;  %11874 = vrot.lane.b32.xlu1 %v11858_v50, %s16586_s29  ;;  %v6964_v50 = vld [vmem:[#allocation2 + $0xe1] sm:$0xff] }
 0xc39   : > { %v11953_v43 = vpack.i.bf16 %v6964_v50, %v6963_v5  ;;  %v15600_v5 = vld [vmem:[#allocation2 + $0x109] sm:$0xff] }
 0xc3c   : > { %11889 = vrot.lane.b32.xlu0 %v11888_v49, %s16563_s15  ;;  %11879 = vrot.lane.b32.xlu1 %v11863_v53, %s16564_s22  ;;  %v11680_v53 = vpop.permute.xlu1 %11679 }
 0xc3d   : > { %v11681_v45 = vunpack.i.l.bf16 %v11680_v53  ;;  %v11682_v19 = vunpack.i.h.bf16 %v11680_v53 }
 0xc40   : > { %11894 = vrot.lane.b32.xlu0 %v11893_v54, %s16586_s29  ;;  %11884 = vrot.lane.b32.xlu1 %v11868_v11, %s16563_s15  ;;  %v11685_v28 = vpop.permute.xlu1 %11684  ;;  %v6937_v11 = vld [vmem:[#allocation2 + $0x120] sm:$0xff] }
 0xc41   : > { %v11978_v40 = vpack.i.bf16 %v6938_v27, %v6937_v11  ;;  %v11686_v50 = vunpack.i.l.bf16 %v11685_v28  ;;  %v11687_v27 = vunpack.i.h.bf16 %v11685_v28 }
 0xc44   : > { %11899 = vrot.lane.b32.xlu0 %v11898_v39, %s16564_s22  ;;  %11904 = vrot.lane.b32.xlu1 %v11888_v49, %s16586_s29  ;;  %v6969_v49 = vld [vmem:[#allocation2 + $0x121] sm:$0xff] }
 0xc45   : > { %v11983_v24 = vpack.i.bf16 %v6970_v26, %v6969_v49 }
 0xc48   : > { %11919 = vrot.lane.b32.xlu0 %v11918_v14, %s16563_s15  ;;  %11909 = vrot.lane.b32.xlu1 %v11893_v54, %s16564_s22 }
 0xc4c   : > { %11924 = vrot.lane.b32.xlu0 %v11923_v63, %s16586_s29  ;;  %11914 = vrot.lane.b32.xlu1 %v11898_v39, %s16563_s15 }
 0xc50   : > { %11929 = vrot.lane.b32.xlu0 %v11928_v60, %s16564_s22  ;;  %11934 = vrot.lane.b32.xlu1 %v11918_v14, %s16586_s29  ;;  %v6935_v14 = vld [vmem:[#allocation2 + $0x108] sm:$0xff] }
 0xc54   : > { %11949 = vrot.lane.b32.xlu0 %v11948_v62, %s16563_s15  ;;  %11939 = vrot.lane.b32.xlu1 %v11923_v63, %s16564_s22  ;;  %v12008_v63 = vpack.i.bf16 %v6936_v6, %v6935_v14 }
 0xc58   : > { %11954 = vrot.lane.b32.xlu0 %v11953_v43, %s16586_s29  ;;  %11944 = vrot.lane.b32.xlu1 %v11928_v60, %s16563_s15  ;;  %v6725_v60 = vld [vmem:[#allocation2] sm:$0xff] }
 0xc5c   : > { %11959 = vrot.lane.b32.xlu0 %v15482_v46, %s16564_s22  ;;  %11964 = vrot.lane.b32.xlu1 %v11948_v62, %s16586_s29  ;;  %v15596_v62 = vld [vmem:[#allocation2 + $0x111] sm:$0xff] }
 0xc60   : > { %11979 = vrot.lane.b32.xlu0 %v11978_v40, %s16563_s15  ;;  %11969 = vrot.lane.b32.xlu1 %v11953_v43, %s16564_s22  ;;  %v7781_v43 = vsel %vm386_vm0, %v6725_v60, %v11681_v45 }
 0xc62   : > { %v11690_v21 = vpop.permute.xlu0 %11689  ;;  %v15582_v54 = vpop.permute.xlu1 %11704 }
 0xc63   : > { %v11692_v14 = vunpack.i.h.bf16 %v11690_v21  ;;  %v11691_v58 = vunpack.i.l.bf16 %v11690_v21 }
 0xc64   : > { %11984 = vrot.lane.b32.xlu0 %v11983_v24, %s16586_s29  ;;  %11974 = vrot.lane.b32.xlu1 %v15482_v46, %s16563_s15  ;;  %v6726_v46 = vld [vmem:[#allocation2 + $0x8] sm:$0xff] }
 0xc65   : > { %v7782_v53 = vsel %vm386_vm0, %v6726_v46, %v11682_v19 }
 0xc66   : > { %v11695_v39 = vpop.permute.xlu0 %11694  ;;  %v15587_v48 = vpop.permute.xlu1 %11709  ;;  %v7814_v60 = vsel %vm529_vm1, %v7782_v53, %v11687_v27  ;;  %v6941_v27 = vld [vmem:[#allocation2 + $0x150] sm:$0xff] }
 0xc67   : > { %v11696_v29 = vunpack.i.l.bf16 %v11695_v39  ;;  %v11697_v19 = vunpack.i.h.bf16 %v11695_v39 }
 0xc68   : > { %11989 = vrot.lane.b32.xlu0 %v15497_v7, %s16564_s22  ;;  %11994 = vrot.lane.b32.xlu1 %v11978_v40, %s16586_s29  ;;  %v12013_v40 = vpack.i.bf16 %v15596_v62, %v15600_v5 }
 0xc6a   : > { %v15592_v55 = vpop.permute.xlu0 %11699  ;;  %v15594_v17 = vpop.permute.xlu1 %11714 }
 0xc6c   : > { %12009 = vrot.lane.b32.xlu0 %v12008_v63, %s16563_s15  ;;  %11999 = vrot.lane.b32.xlu1 %v11983_v24, %s16564_s22  ;;  %v7813_v24 = vsel %vm529_vm1, %v7781_v43, %v11686_v50 }
 0xc6e   : > { %v11720_v11 = vpop.permute.xlu0 %11719  ;;  %v11725_v6 = vpop.permute.xlu1 %11724 }
 0xc6f   : > { %v11722_v26 = vunpack.i.h.bf16 %v11720_v11  ;;  %v11721_v49 = vunpack.i.l.bf16 %v11720_v11  ;;  %v11727_v10 = vunpack.i.h.bf16 %v11725_v6  ;;  %v11726_v33 = vunpack.i.l.bf16 %v11725_v6 }
 0xc70   : > { %12014 = vrot.lane.b32.xlu0 %v12013_v40, %s16586_s29  ;;  %12004 = vrot.lane.b32.xlu1 %v15497_v7, %s16563_s15 }
 0xc71   : > { %v7878_v28 = vsel %vm386_vm0, %v15396_v41, %v11722_v26  ;;  %v7877_v45 = vsel %vm386_vm0, %v15400_v20, %v11721_v49  ;;  %v7846_v50 = vsel %vm1989_vm7, %v7814_v60, %v11727_v10  ;;  %v7845_v43 = vsel %vm1989_vm7, %v7813_v24, %v11726_v33  ;;  %v6942_v20 = vld [vmem:[#allocation2 + $0x158] sm:$0xff] }
 0xc72   : > { %v15615_v21 = vpop.permute.xlu0 %11739  ;;  %v7909_v46 = vsel %vm529_vm1, %v7877_v45, %v11691_v58  ;;  %v7910_v11 = vsel %vm529_vm1, %v7878_v28, %v11692_v14  ;;  %v11730_v41 = vpop.permute.xlu1 %11729  ;;  %v7973_v58 = vpack.c.bf16 %v7846_v50, %v7845_v43  ;;  %v12038_v49 = vpack.i.bf16 %v6942_v20, %v6941_v27  ;;  %v6974_v33 = vld [vmem:[#allocation2 + $0x159] sm:$0xff] }
 0xc73   : > { %v7941_v26 = vsel %vm1989_vm7, %v7909_v46, %v11696_v29  ;;  %v7942_v7 = vsel %vm1989_vm7, %v7910_v11, %v11697_v19  ;;  %v6973_v29 = vld [vmem:[#allocation2 + $0x151] sm:$0xff]  ;;  %v11731_v28 = vunpack.i.l.bf16 %v11730_v41  ;;  %v11702_v46 = vunpack.i.h.bf16 %v15592_v55  ;;  %v15641_v50 = vld [vmem:[#allocation2 + $0x140] sm:$0xff] }
 0xc74   : > { %12019 = vrot.lane.b32.xlu0 %v15504_v9, %s16564_s22  ;;  %12024 = vrot.lane.b32.xlu1 %v12008_v63, %s16586_s29  ;;  %v7974_v39 = vpack.c.bf16 %v7942_v7, %v7941_v26  ;;  %v12043_v14 = vpack.i.bf16 %v6974_v33, %v6973_v29  ;;  %v11732_v63 = vunpack.i.h.bf16 %v11730_v41 }
 0xc75   : > { %v7783_v43 = vsel %vm386_vm0, %v15387_v16, %v11731_v28  ;;  %v11706_v16 = vunpack.i.l.bf16 %v15582_v54 }
 0xc76   : > { %v15626_v53 = vpop.permute.xlu0 %11744  ;;  %8254 = vmatprep.mubr.bf16.mxu1 %v7974_v39  ;;  %v11735_v10 = vpop.permute.xlu1 %11734  ;;  %v7784_v41 = vsel %vm386_vm0, %v15377_v23, %v11732_v63  ;;  %v11707_v39 = vunpack.i.h.bf16 %v15582_v54 }
 0xc77   : > { %8255 = vmatmul.mubr.bf16.vlgmr.msra.gmra.mxu1 %v7973_v58  ;;  %v11737_v45 = vunpack.i.h.bf16 %v11735_v10  ;;  %v11736_v60 = vunpack.i.l.bf16 %v11735_v10  ;;  %v7880_v10 = vsel %vm386_vm0, %v15338_v12, %v11702_v46  ;;  %v15673_v12 = vld [vmem:[#allocation2 + $0x139] sm:$0xff] }
 0xc78   : > { %12039 = vrot.lane.b32.xlu0 %v12038_v49, %s16563_s15  ;;  %12029 = vrot.lane.b32.xlu1 %v12013_v40, %s16564_s22  ;;  %v11701_v40 = vunpack.i.l.bf16 %v15592_v55  ;;  %v15652_v55 = vld [vmem:[#allocation2 + $0x138] sm:$0xff] }
 0xc79   : > { %v7816_v7 = vsel %vm529_vm1, %v7784_v41, %v11737_v45  ;;  %v12063_v23 = vpack.i.bf16 %v15641_v50, %v15652_v55 }
 0xc7a   : > { %v15630_v6 = vpop.permute.xlu0 %11749  ;;  %v15632_v24 = vpop.permute.xlu1 %11754  ;;  %v7879_v58 = vsel %vm386_vm0, %v15351_v36, %v11701_v40  ;;  %v11711_v36 = vunpack.i.l.bf16 %v15587_v48  ;;  %v11712_v40 = vunpack.i.h.bf16 %v15587_v48 }
 0xc7c   : > { %12044 = vrot.lane.b32.xlu0 %v12043_v14, %s16586_s29  ;;  %12034 = vrot.lane.b32.xlu1 %v15504_v9, %s16563_s15  ;;  %v7815_v9 = vsel %vm529_vm1, %v7783_v43, %v11736_v60  ;;  %v7848_v60 = vsel %vm1989_vm7, %v7816_v7, %v11707_v39  ;;  %v11717_v43 = vunpack.i.h.bf16 %v15594_v17  ;;  %v7785_v48 = vsel %vm386_vm0, %v15326_v57, %v11711_v36 }
 0xc7d   : > { %v7847_v45 = vsel %vm1989_vm7, %v7815_v9, %v11706_v16  ;;  %v11716_v9 = vunpack.i.l.bf16 %v15594_v17 }
 0xc7e   : > { %v11770_v19 = vpop.permute.xlu0 %11769  ;;  %v15639_v11 = vpop.permute.xlu1 %11759  ;;  %v7976_v16 = vpack.c.bf16 %v7848_v60, %v7847_v45 }
 0xc7f   : > { %v11772_v26 = vunpack.i.h.bf16 %v11770_v19  ;;  %v11771_v20 = vunpack.i.l.bf16 %v11770_v19  ;;  %v7817_v36 = vsel %vm529_vm1, %v7785_v48, %v11716_v9 }
 0xc80   : > { %12049 = vrot.lane.b32.xlu0 %v15522_v18, %s16564_s22  ;;  %12054 = vrot.lane.b32.xlu1 %v12038_v49, %s16586_s29  ;;  %v15664_v49 = vld [vmem:[#allocation2 + $0x141] sm:$0xff] }
 0xc81   : > { %v7912_v28 = vsel %vm529_vm1, %v7880_v10, %v11772_v26  ;;  %v7911_v54 = vsel %vm529_vm1, %v7879_v58, %v11771_v20  ;;  %v12068_v26 = vpack.i.bf16 %v15664_v49, %v15673_v12  ;;  %v11741_v58 = vunpack.i.l.bf16 %v15615_v21 }
 0xc82   : > { %v11775_v27 = vpop.permute.xlu0 %11774  ;;  %v15662_v63 = vpop.permute.xlu1 %11764 }
 0xc83   : > { %v11777_v33 = vunpack.i.h.bf16 %v11775_v27  ;;  %v11776_v29 = vunpack.i.l.bf16 %v11775_v27  ;;  %v11742_v27 = vunpack.i.h.bf16 %v15615_v21  ;;  %v7786_v21 = vsel %vm386_vm0, %v15332_v31, %v11712_v40 }
 0xc84   : > { %12064 = vrot.lane.b32.xlu0 %v12063_v23, %s16563_s15  ;;  %12059 = vrot.lane.b32.xlu1 %v12043_v14, %s16564_s22 }
 0xc85   : > { %v7943_v19 = vsel %vm1989_vm7, %v7911_v54, %v11776_v29  ;;  %v7944_v46 = vsel %vm1989_vm7, %v7912_v28, %v11777_v33  ;;  %v11746_v29 = vunpack.i.l.bf16 %v15626_v53  ;;  %v11747_v54 = vunpack.i.h.bf16 %v15626_v53 }
 0xc86   : > { %v11780_v41 = vpop.permute.xlu0 %11779  ;;  %v7977_v20 = vpack.c.bf16 %v7944_v46, %v7943_v19  ;;  %v11785_v14 = vpop.permute.xlu1 %11784 }
 0xc87   : > { %v11782_v7 = vunpack.i.h.bf16 %v11780_v41  ;;  %v11781_v39 = vunpack.i.l.bf16 %v11780_v41  ;;  %v11787_v10 = vunpack.i.h.bf16 %v11785_v14  ;;  %v11786_v33 = vunpack.i.l.bf16 %v11785_v14  ;;  %v6945_v41 = vld [vmem:[#allocation2 + $0x180] sm:$0xff] }
 0xc88   : > { %12069 = vrot.lane.b32.xlu0 %v12068_v26, %s16586_s29  ;;  %8262 = vmatprep.mubr.bf16.mxu1 %v7977_v20  ;;  %v15719_v14 = vld [vmem:[#allocation2 + $0x181] sm:$0xff] }
 0xc89   : > { %v7882_v17 = vsel %vm386_vm0, %v15462_v59, %v11782_v7  ;;  %v7881_v28 = vsel %vm386_vm0, %v15468_v15, %v11781_v39  ;;  %12079 = vrot.lane.b32.xlu1 %v12063_v23, %s16586_s29  ;;  %8263 = vmatmul.mubr.bf16.gmra.mxu1 %v7976_v16  ;;  %v7818_v59 = vsel %vm529_vm1, %v7786_v21, %v11717_v43  ;;  %v6946_v23 = vld [vmem:[#allocation2 + $0x188] sm:$0xff]  ;;  %v11752_v21 = vunpack.i.h.bf16 %v15630_v6 }
 0xc8a   : > { %v15696_v45 = vpop.permute.xlu0 %11799  ;;  %v7913_v57 = vsel %vm529_vm1, %v7881_v28, %v11741_v58  ;;  %v7914_v60 = vsel %vm529_vm1, %v7882_v17, %v11742_v27  ;;  %v11790_v19 = vpop.permute.xlu1 %11789  ;;  %v7850_v46 = vsel %vm1989_vm7, %v7818_v59, %v11787_v10  ;;  %v7849_v31 = vsel %vm1989_vm7, %v7817_v36, %v11786_v33  ;;  %v15713_v39 = vld [vmem:[#allocation2 + $0x189] sm:$0xff]  ;;  %v15740_v59 = vld [vmem:[#allocation2 + $0x171] sm:$0xff] }
 0xc8b   : > { %v7945_v15 = vsel %vm1989_vm7, %v7913_v57, %v11746_v29  ;;  %v7946_v53 = vsel %vm1989_vm7, %v7914_v60, %v11747_v54  ;;  %v15711_v43 = vpack.i.bf16 %v6946_v23, %v6945_v41  ;;  %v7979_v9 = vpack.c.bf16 %v7850_v46, %v7849_v31  ;;  %v15727_v58 = vld [vmem:[#allocation2 + $0x170] sm:$0xff]  ;;  %v6731_v57 = vld [vmem:[#allocation2 + $0x48] sm:$0xff] }
 0xc8c   : > { %12074 = vrot.lane.b32.xlu0 %v15526_v2, %s16564_s22  ;;  %v7980_v40 = vpack.c.bf16 %v7946_v53, %v7945_v15  ;;  %v12103_v16 = vpack.i.bf16 %v15713_v39, %v15719_v14  ;;  %v11792_v10 = vunpack.i.h.bf16 %v11790_v19  ;;  %v11791_v33 = vunpack.i.l.bf16 %v11790_v19  ;;  %v6732_v60 = vld [vmem:[#allocation2 + $0x50] sm:$0xff] }
 0xc8d   : > { %12084 = vrot.lane.b32.xlu1 %v12068_v26, %s16564_s22  ;;  %v11751_v54 = vunpack.i.l.bf16 %v15630_v6  ;;  %v15748_v6 = vld [vmem:[#allocation2 + $0x169] sm:$0xff]  ;;  %v11757_v53 = vunpack.i.h.bf16 %v15632_v24 }
 0xc8e   : > { %v15709_v20 = vpop.permute.xlu0 %11804  ;;  %v11795_v7 = vpop.permute.xlu1 %11794  ;;  %8270 = vmatprep.mubr.bf16.mxu1 %v7980_v40  ;;  %v7788_v19 = vsel %vm386_vm0, %v6732_v60, %v11792_v10  ;;  %v11756_v40 = vunpack.i.l.bf16 %v15632_v24  ;;  %v7884_v10 = vsel %vm386_vm0, %v15416_v0, %v11752_v21 }
 0xc8f   : > { %v11797_v48 = vunpack.i.h.bf16 %v11795_v7  ;;  %v11796_v29 = vunpack.i.l.bf16 %v11795_v7  ;;  %v6915_v7 = vld [vmem:[#allocation2 + $0x182] sm:$0xff] }
 0xc90   : > { %12099 = vrot.lane.b32.xlu0 %v15711_v43, %s16563_s15 }
 0xc91   : > { %12089 = vrot.lane.b32.xlu1 %v15526_v2, %s16563_s15  ;;  %8271 = vmatmul.mubr.bf16.gmra.mxu1 %v7979_v9  ;;  %v15732_v2 = vld [vmem:[#allocation2 + $0x168] sm:$0xff]  ;;  %v7820_v31 = vsel %vm529_vm1, %v7788_v19, %v11797_v48  ;;  %v12113_v9 = vpack.i.bf16 %v15740_v59, %v15748_v6  ;;  %v11762_v19 = vunpack.i.h.bf16 %v15639_v11 }
 0xc92   : > { %v15721_v26 = vpop.permute.xlu0 %11809  ;;  %v15725_v27 = vpop.permute.xlu1 %11814  ;;  %v12108_v28 = vpack.i.bf16 %v15727_v58, %v15732_v2  ;;  %v7852_v60 = vsel %vm1989_vm7, %v7820_v31, %v11757_v53 }
 0xc94   : > { %12104 = vrot.lane.b32.xlu0 %v12103_v16, %s16586_s29  ;;  %v6916_v16 = vld [vmem:[#allocation2 + $0x18a] sm:$0xff] }
 0xc95   : > { %12094 = vrot.lane.b32.xlu1 %v15522_v18, %s16563_s15  ;;  %v7787_v18 = vsel %vm386_vm0, %v6731_v57, %v11791_v33  ;;  %v7883_v33 = vsel %vm386_vm0, %v15426_v4, %v11751_v54  ;;  %v12123_v21 = vpack.i.bf16 %v6916_v16, %v6915_v7  ;;  %v11761_v54 = vunpack.i.l.bf16 %v15639_v11 }
 0xc96   : > { %v11830_v17 = vpop.permute.xlu0 %11829  ;;  %v15738_v36 = vpop.permute.xlu1 %11819  ;;  %v7819_v46 = vsel %vm529_vm1, %v7787_v18, %v11796_v29  ;;  %v11767_v18 = vunpack.i.h.bf16 %v15662_v63 }
 0xc97   : > { %v11832_v15 = vunpack.i.h.bf16 %v11830_v17  ;;  %v11831_v23 = vunpack.i.l.bf16 %v11830_v17  ;;  %v7851_v57 = vsel %vm1989_vm7, %v7819_v46, %v11756_v40  ;;  %v11802_v46 = vunpack.i.h.bf16 %v15696_v45 }
 0xc98   : > { %12109 = vrot.lane.b32.xlu0 %v12108_v28, %s16563_s15 }
 0xc99   : > { %12134 = vrot.lane.b32.xlu1 %v12108_v28, %s16586_s29  ;;  %v7915_v28 = vsel %vm529_vm1, %v7883_v33, %v11831_v23  ;;  %v7916_v24 = vsel %vm529_vm1, %v7884_v10, %v11832_v15  ;;  %v11766_v15 = vunpack.i.l.bf16 %v15662_v63  ;;  %v7982_v10 = vpack.c.bf16 %v7852_v60, %v7851_v57  ;;  %v7012_v33 = vld [vmem:[#allocation2 + $0x1a2] sm:$0xff] }
 0xc9a   : > { %v11835_v41 = vpop.permute.xlu0 %11834  ;;  %v15758_v17 = vpop.permute.xlu1 %11824  ;;  %v6733_v63 = vld [vmem:[#allocation2 + $0x60] sm:$0xff] }
 0xc9b   : > { %v11837_v48 = vunpack.i.h.bf16 %v11835_v41  ;;  %v11836_v29 = vunpack.i.l.bf16 %v11835_v41 }
 0xc9c   : > { %12114 = vrot.lane.b32.xlu0 %v12113_v9, %s16586_s29 }
 0xc9d   : > { %12139 = vrot.lane.b32.xlu1 %v12113_v9, %s16564_s22  ;;  %v7947_v0 = vsel %vm1989_vm7, %v7915_v28, %v11836_v29  ;;  %v7948_v4 = vsel %vm1989_vm7, %v7916_v24, %v11837_v48  ;;  %v7011_v9 = vld [vmem:[#allocation2 + $0x19a] sm:$0xff]  ;;  %v6734_v29 = vld [vmem:[#allocation2 + $0x68] sm:$0xff]  ;;  %v11801_v48 = vunpack.i.l.bf16 %v15696_v45  ;;  %v11806_v24 = vunpack.i.l.bf16 %v15709_v20 }
 0xc9e   : > { %v11840_v23 = vpop.permute.xlu0 %11839  ;;  %v7983_v41 = vpack.c.bf16 %v7948_v4, %v7947_v0  ;;  %v11845_v40 = vpop.permute.xlu1 %11844  ;;  %v8020_v11 = vpack.c.bf16 %v7012_v33, %v7011_v9  ;;  %v7790_v28 = vsel %vm386_vm0, %v6734_v29, %v11762_v19  ;;  %v6947_v45 = vld [vmem:[#allocation2 + $0x198] sm:$0xff]  ;;  %v6948_v0 = vld [vmem:[#allocation2 + $0x1a0] sm:$0xff]  ;;  %v7789_v4 = vsel %vm386_vm0, %v6733_v63, %v11761_v54 }
 0xc9f   : > { %v11842_v31 = vunpack.i.h.bf16 %v11840_v23  ;;  %v11841_v53 = vunpack.i.l.bf16 %v11840_v23  ;;  %v11847_v7 = vunpack.i.h.bf16 %v11845_v40  ;;  %v11846_v16 = vunpack.i.l.bf16 %v11845_v40  ;;  %v6979_v9 = vld [vmem:[#allocation2 + $0x199] sm:$0xff] }
 0xca0   : > { %12119 = vrot.lane.b32.xlu0 %v15540_v35, %s16564_s22  ;;  %8278 = vmatprep.mubr.bf16.mxu1 %v7983_v41  ;;  %v11807_v23 = vunpack.i.h.bf16 %v15709_v20 }
 0xca1   : > { %v7886_v57 = vsel %vm386_vm0, %v15531_v34, %v11842_v31  ;;  %v7885_v60 = vsel %vm386_vm0, %v15535_v61, %v11841_v53  ;;  %12144 = vrot.lane.b32.xlu1 %v15540_v35, %s16563_s15  ;;  %8279 = vmatmul.mubr.bf16.gmra.mxu1 %v7982_v10  ;;  %v7821_v34 = vsel %vm529_vm1, %v7789_v4, %v11766_v15  ;;  %v6980_v15 = vld [vmem:[#allocation2 + $0x1a1] sm:$0xff] }
 0xca2   : > { %v15786_v41 = vpop.permute.xlu0 %11859  ;;  %v7917_v19 = vsel %vm529_vm1, %v7885_v60, %v11801_v48  ;;  %v7918_v40 = vsel %vm529_vm1, %v7886_v57, %v11802_v46  ;;  %10611 = vmatmul.mubr.msk.bf16.gmra.mxu0 %vm386_vm0, %v8020_v11  ;;  %v7822_v61 = vsel %vm529_vm1, %v7790_v28, %v11767_v18  ;;  %v11850_v35 = vpop.permute.xlu1 %11849  ;;  %v7853_v53 = vsel %vm1989_vm7, %v7821_v34, %v11846_v16  ;;  %v6735_v60 = vld [vmem:[#allocation2 + $0x78] sm:$0xff] }
 0xca3   : > { %v7949_v31 = vsel %vm1989_vm7, %v7917_v19, %v11806_v24  ;;  %v7854_v54 = vsel %vm1989_vm7, %v7822_v61, %v11847_v7  ;;  %v7950_v20 = vsel %vm1989_vm7, %v7918_v40, %v11807_v23  ;;  %v12128_v10 = vpack.i.bf16 %v6948_v0, %v6947_v45  ;;  %v6736_v45 = vld [vmem:[#allocation2 + $0x80] sm:$0xff] }
 0xca4   : > { %12124 = vrot.lane.b32.xlu0 %v12123_v21, %s16564_s22  ;;  %v7986_v46 = vpack.c.bf16 %v7950_v20, %v7949_v31  ;;  %v7985_v18 = vpack.c.bf16 %v7854_v54, %v7853_v53  ;;  %v12148_v48 = vpack.i.bf16 %v6980_v15, %v6979_v9  ;;  %v11852_v16 = vunpack.i.h.bf16 %v11850_v35 }
 0xca5   : > { %12154 = vrot.lane.b32.xlu1 %v15711_v43, %s16586_s29  ;;  %v11851_v11 = vunpack.i.l.bf16 %v11850_v35  ;;  %v11812_v24 = vunpack.i.h.bf16 %v15721_v26  ;;  %v11811_v57 = vunpack.i.l.bf16 %v15721_v26  ;;  %v11817_v35 = vunpack.i.h.bf16 %v15725_v27 }
 0xca6   : > { %v15800_v33 = vpop.permute.xlu0 %11864  ;;  %v11855_v29 = vpop.permute.xlu1 %11854  ;;  %8286 = vmatprep.mubr.bf16.mxu1 %v7986_v46  ;;  %v7792_v4 = vsel %vm386_vm0, %v6736_v45, %v11852_v16  ;;  %v11816_v31 = vunpack.i.l.bf16 %v15725_v27  ;;  %v11822_v27 = vunpack.i.h.bf16 %v15738_v36  ;;  %v11827_v16 = vunpack.i.h.bf16 %v15758_v17  ;;  %v6738_v45 = vld [vmem:[#allocation2 + $0x98] sm:$0xff] }
 0xca7   : > { %v11857_v43 = vunpack.i.h.bf16 %v11855_v29  ;;  %v11856_v63 = vunpack.i.l.bf16 %v11855_v29  ;;  %v7791_v23 = vsel %vm386_vm0, %v6735_v60, %v11851_v11  ;;  %v7888_v26 = vsel %vm386_vm0, %v15500_v52, %v11812_v24 }
 0xca8   : > { %12129 = vrot.lane.b32.xlu0 %v12128_v10, %s16563_s15  ;;  %v7887_v54 = vsel %vm386_vm0, %v15508_v3, %v11811_v57  ;;  %v11821_v3 = vunpack.i.l.bf16 %v15738_v36  ;;  %v6737_v36 = vld [vmem:[#allocation2 + $0x90] sm:$0xff]  ;;  %s9307_s15 = sshll.u32 %s16358_s30, 4  ;;  %s16423_s15 = int_to_ptr.vmem [resolvable:$true] %s9307_s15 }
 0xca9   : > { %8287 = vmatmul.mubr.bf16.gmra.mxu1 %v7985_v18  ;;  %v7823_v34 = vsel %vm529_vm1, %v7791_v23, %v11856_v63  ;;  %v7824_v61 = vsel %vm529_vm1, %v7792_v4, %v11857_v43  ;;  %v11826_v63 = vunpack.i.l.bf16 %v15758_v17  ;;  %v11862_v4 = vunpack.i.h.bf16 %v15786_v41  ;;  %s12293_s24 = scalar_lea.vmem %s16423_s15, 4096  ;;  %p12300_p0 = scmp.lt.s32.totalorder %s16423_s15, %s12298_s14 }
 0xcaa   : > { %v15803_v7 = vpop.permute.xlu0 %11869  ;;  %v15805_v21 = vpop.permute.xlu1 %11874  ;;  %v7855_v18 = vsel %vm1989_vm7, %v7823_v34, %v11816_v31  ;;  %v7856_v29 = vsel %vm1989_vm7, %v7824_v61, %v11817_v35  ;;  %v11861_v23 = vunpack.i.l.bf16 %v15786_v41  ;;  %v7794_v35 = vsel %vm386_vm0, %v6738_v45, %v11822_v27  ;;  %p12294_p11 = scmp.ne.s32.totalorder %s16423_s15, %s12293_s24  ;;  %p12301_p1 = scmp.lt.s32.totalorder %s12299_s13, %s12293_s24 }
 0xcab   : > { %v7988_v60 = vpack.c.bf16 %v7856_v29, %v7855_v18  ;;  %v11866_v31 = vunpack.i.l.bf16 %v15800_v33 }
 0xcac   : > { %12149 = vrot.lane.b32.xlu0 %v12148_v48, %s16586_s29  ;;  %s16421_s29 = scalar_lea.hbm %s16506_s11, %s9752_s0  ;;  %p12295_p12 = pnand %p12294_p11, %p12461_p5 }
 0xcad   : > { %p12302_p2 = por %p12301_p1, %p12300_p0 }
 0xcae   : > { %v11890_v28 = vpop.permute.xlu0 %11889  ;;  %v15810_v0 = vpop.permute.xlu1 %11879  ;;  %p12296_p13 = pneg %p12295_p12 }
 0xcaf   : > { %v11892_v19 = vunpack.i.h.bf16 %v11890_v28  ;;  %v11891_v40 = vunpack.i.l.bf16 %v11890_v28 }
 0xcb0   : > { %p12303_p3 = pnand %p12302_p2, %p12296_p13 }
 0xcb1   : > { %v7919_v9 = vsel %vm529_vm1, %v7887_v54, %v11891_v40  ;;  %v7920_v15 = vsel %vm529_vm1, %v7888_v26, %v11892_v19  ;;  %v6865_v19 = vld [vmem:[#allocation2 + $0xa9] sm:$0xff]  ;;  %v6866_v40 = vld [vmem:[#allocation2 + $0xb1] sm:$0xff]  ;;  %v7793_v26 = vsel %vm386_vm0, %v6737_v36, %v11821_v3  ;;  %v11867_v54 = vunpack.i.h.bf16 %v15800_v33 }
 0xcb2   : > { %v11895_v53 = vpop.permute.xlu0 %11894  ;;  %v15822_v46 = vpop.permute.xlu1 %11884 }
 0xcb3   : > { %v11897_v20 = vunpack.i.h.bf16 %v11895_v53  ;;  %v11896_v10 = vunpack.i.l.bf16 %v11895_v53 }
 0xcb5   : > { %v7951_v48 = vsel %vm1989_vm7, %v7919_v9, %v11896_v10  ;;  %v7952_v52 = vsel %vm1989_vm7, %v7920_v15, %v11897_v20  ;;  %v7825_v9 = vsel %vm529_vm1, %v7793_v26, %v11826_v63  ;;  %v7826_v15 = vsel %vm529_vm1, %v7794_v35, %v11827_v16  ;;  %v6867_v26 = vld [vmem:[#allocation2 + $0xc1] sm:$0xff] }
 0xcb6   : > { %v11900_v11 = vpop.permute.xlu0 %11899  ;;  %v7989_v43 = vpack.c.bf16 %v7952_v52, %v7951_v48  ;;  %v11905_v57 = vpop.permute.xlu1 %11904 }
 0xcb7   : > { %v11902_v28 = vunpack.i.h.bf16 %v11900_v11  ;;  %v11901_v24 = vunpack.i.l.bf16 %v11900_v11  ;;  %v11907_v34 = vunpack.i.h.bf16 %v11905_v57  ;;  %v11906_v61 = vunpack.i.l.bf16 %v11905_v57 }
 0xcb8   : > { %8294 = vmatprep.mubr.bf16.mxu1 %v7989_v43 }
 0xcb9   : > { %v7890_v17 = vsel %vm386_vm0, %v6866_v40, %v11902_v28  ;;  %v7889_v53 = vsel %vm386_vm0, %v6865_v19, %v11901_v24  ;;  %8295 = vmatmul.mubr.bf16.gmra.mxu1 %v7988_v60  ;;  %v7857_v27 = vsel %vm1989_vm7, %v7825_v9, %v11906_v61  ;;  %v7858_v48 = vsel %vm1989_vm7, %v7826_v15, %v11907_v34  ;;  %v6739_v19 = vld [vmem:[#allocation2 + $0xa8] sm:$0xff]  ;;  %v6740_v40 = vld [vmem:[#allocation2 + $0xb0] sm:$0xff] }
 0xcba   : > { %v15842_v41 = vpop.permute.xlu0 %11919  ;;  %v7921_v20 = vsel %vm529_vm1, %v7889_v53, %v11861_v23  ;;  %v7922_v10 = vsel %vm529_vm1, %v7890_v17, %v11862_v4  ;;  %v11910_v18 = vpop.permute.xlu1 %11909  ;;  %v7991_v11 = vpack.c.bf16 %v7858_v48, %v7857_v27  ;;  %v11872_v4 = vunpack.i.h.bf16 %v15803_v7 }
 0xcbb   : > { %v7953_v29 = vsel %vm1989_vm7, %v7921_v20, %v11866_v31  ;;  %v7954_v52 = vsel %vm1989_vm7, %v7922_v10, %v11867_v54  ;;  %v11912_v16 = vunpack.i.h.bf16 %v11910_v18  ;;  %v11911_v24 = vunpack.i.l.bf16 %v11910_v18  ;;  %v6868_v54 = vld [vmem:[#allocation2 + $0xc9] sm:$0xff] }
 0xcbc   : > { %v7992_v33 = vpack.c.bf16 %v7954_v52, %v7953_v29  ;;  %v11871_v23 = vunpack.i.l.bf16 %v15803_v7  ;;  %v11877_v20 = vunpack.i.h.bf16 %v15805_v21  ;;  %v11876_v7 = vunpack.i.l.bf16 %v15805_v21 }
 0xcbd   : > { %v7796_v61 = vsel %vm386_vm0, %v6740_v40, %v11912_v16  ;;  %v7795_v36 = vsel %vm386_vm0, %v6739_v19, %v11911_v24  ;;  %v7892_v9 = vsel %vm386_vm0, %v6868_v54, %v11872_v4  ;;  %v11881_v24 = vunpack.i.l.bf16 %v15810_v0 }
 0xcbe   : > { %v15852_v3 = vpop.permute.xlu0 %11924  ;;  %v11915_v43 = vpop.permute.xlu1 %11914  ;;  %8302 = vmatprep.mubr.bf16.mxu1 %v7992_v33  ;;  %v7891_v15 = vsel %vm386_vm0, %v6867_v26, %v11871_v23  ;;  %v11886_v4 = vunpack.i.l.bf16 %v15822_v46 }
 0xcbf   : > { %v11917_v57 = vunpack.i.h.bf16 %v11915_v43  ;;  %v11916_v60 = vunpack.i.l.bf16 %v11915_v43  ;;  %v11882_v43 = vunpack.i.h.bf16 %v15810_v0  ;;  %v6741_v0 = vld [vmem:[#allocation2 + $0xc0] sm:$0xff] }
 0xcc1   : > { %8303 = vmatmul.mubr.bf16.gmra.mxu1 %v7991_v11  ;;  %v7827_v17 = vsel %vm529_vm1, %v7795_v36, %v11916_v60  ;;  %v7828_v53 = vsel %vm529_vm1, %v7796_v61, %v11917_v57  ;;  %v11887_v57 = vunpack.i.h.bf16 %v15822_v46  ;;  %v6742_v36 = vld [vmem:[#allocation2 + $0xc8] sm:$0xff] }
 0xcc2   : > { %v15854_v28 = vpop.permute.xlu0 %11929  ;;  %v15856_v63 = vpop.permute.xlu1 %11934  ;;  %v7859_v33 = vsel %vm1989_vm7, %v7827_v17, %v11876_v7  ;;  %v7860_v11 = vsel %vm1989_vm7, %v7828_v53, %v11877_v20  ;;  %v6869_v17 = vld [vmem:[#allocation2 + $0xd9] sm:$0xff]  ;;  %v6870_v53 = vld [vmem:[#allocation2 + $0xe1] sm:$0xff]  ;;  %v7798_v20 = vsel %vm386_vm0, %v6742_v36, %v11882_v43  ;;  %v11926_v7 = vunpack.i.l.bf16 %v15852_v3 }
 0xcc3   : > { %v7994_v61 = vpack.c.bf16 %v7860_v11, %v7859_v33  ;;  %v12236_v43 = vld [vmem:[%s16500_s5 + $0x28] sm:$0xff]  }
 0xcc4   : > { %10614 = vmatprep.subr.bf16.mxu0 %v12236_v43 }
 0xcc5   : > { %10615 = vmatpush3.bf16.msra.mxu0 %v12236_v43 }
 0xcc6   : > { %v11950_v45 = vpop.permute.xlu0 %11949  ;;  %v15860_v34 = vpop.permute.xlu1 %11939 }
 0xcc7   : > { %v11952_v35 = vunpack.i.h.bf16 %v11950_v45  ;;  %v11951_v31 = vunpack.i.l.bf16 %v11950_v45 }
 0xcc9   : > { %v7923_v48 = vsel %vm529_vm1, %v7891_v15, %v11951_v31  ;;  %v7924_v52 = vsel %vm529_vm1, %v7892_v9, %v11952_v35  ;;  %v11922_v35 = vunpack.i.h.bf16 %v15842_v41  ;;  %v11921_v31 = vunpack.i.l.bf16 %v15842_v41 }
 0xcca   : > { %v11955_v10 = vpop.permute.xlu0 %11954  ;;  %v15870_v27 = vpop.permute.xlu1 %11944  ;;  %v7797_v9 = vsel %vm386_vm0, %v6741_v0, %v11881_v24  ;;  %v11927_v15 = vunpack.i.h.bf16 %v15852_v3 }
 0xccb   : > { %v11957_v18 = vunpack.i.h.bf16 %v11955_v10  ;;  %v11956_v29 = vunpack.i.l.bf16 %v11955_v10 }
 0xccd   : > { %v7955_v21 = vsel %vm1989_vm7, %v7923_v48, %v11956_v29  ;;  %v7956_v16 = vsel %vm1989_vm7, %v7924_v52, %v11957_v18  ;;  %v7829_v48 = vsel %vm529_vm1, %v7797_v9, %v11886_v4  ;;  %v7830_v52 = vsel %vm529_vm1, %v7798_v20, %v11887_v57  ;;  %v12237_v4 = vld [vmem:[%s16500_s5 + $0x20] sm:$0xff]  }
 0xcce   : > { %v11960_v60 = vpop.permute.xlu0 %11959  ;;  %v7995_v45 = vpack.c.bf16 %v7956_v16, %v7955_v21  ;;  %v11965_v40 = vpop.permute.xlu1 %11964  ;;  %10616 = vmatprep.subr.bf16.mxu0 %v12237_v4 }
 0xccf   : > { %v11962_v23 = vunpack.i.h.bf16 %v11960_v60  ;;  %v11961_v19 = vunpack.i.l.bf16 %v11960_v60  ;;  %v11967_v26 = vunpack.i.h.bf16 %v11965_v40  ;;  %v11966_v54 = vunpack.i.l.bf16 %v11965_v40  ;;  %10617 = vmatpush3.bf16.msra.mxu0 %v12237_v4 }
 0xcd0   : > { %8310 = vmatprep.mubr.bf16.mxu1 %v7995_v45  ;;  %v11942_v4 = vunpack.i.h.bf16 %v15860_v34 }
 0xcd1   : > { %v7894_v46 = vsel %vm386_vm0, %v6870_v53, %v11962_v23  ;;  %v7893_v10 = vsel %vm386_vm0, %v6869_v17, %v11961_v19  ;;  %8311 = vmatmul.mubr.bf16.gmra.mxu1 %v7994_v61  ;;  %v7861_v21 = vsel %vm1989_vm7, %v7829_v48, %v11966_v54  ;;  %v7862_v3 = vsel %vm1989_vm7, %v7830_v52, %v11967_v26  ;;  %v6743_v26 = vld [vmem:[#allocation2 + $0xd8] sm:$0xff]  ;;  %v6744_v54 = vld [vmem:[#allocation2 + $0xe0] sm:$0xff] }
 0xcd2   : > { %v15890_v41 = vpop.permute.xlu0 %11979  ;;  %v7925_v18 = vsel %vm529_vm1, %v7893_v10, %v11921_v31  ;;  %v7926_v29 = vsel %vm529_vm1, %v7894_v46, %v11922_v35  ;;  %v11970_v33 = vpop.permute.xlu1 %11969  ;;  %v7997_v45 = vpack.c.bf16 %v7862_v3, %v7861_v21  ;;  %v11932_v17 = vunpack.i.h.bf16 %v15854_v28 }
 0xcd3   : > { %v7957_v11 = vsel %vm1989_vm7, %v7925_v18, %v11926_v7  ;;  %v7958_v16 = vsel %vm1989_vm7, %v7926_v29, %v11927_v15  ;;  %v11972_v40 = vunpack.i.h.bf16 %v11970_v33  ;;  %v11971_v61 = vunpack.i.l.bf16 %v11970_v33  ;;  %v6871_v18 = vld [vmem:[#allocation2 + $0xf1] sm:$0xff]  ;;  %v6872_v29 = vld [vmem:[#allocation2 + $0xf9] sm:$0xff] }
 0xcd4   : > { %v7998_v24 = vpack.c.bf16 %v7958_v16, %v7957_v11  ;;  %v11931_v53 = vunpack.i.l.bf16 %v15854_v28  ;;  %v11937_v48 = vunpack.i.h.bf16 %v15856_v63  ;;  %v11936_v28 = vunpack.i.l.bf16 %v15856_v63 }
 0xcd5   : > { %v7800_v20 = vsel %vm386_vm0, %v6744_v54, %v11972_v40  ;;  %v7799_v7 = vsel %vm386_vm0, %v6743_v26, %v11971_v61  ;;  %v7896_v33 = vsel %vm386_vm0, %v6872_v29, %v11932_v17  ;;  %v11941_v61 = vunpack.i.l.bf16 %v15860_v34 }
 0xcd6   : > { %v15903_v60 = vpop.permute.xlu0 %11984  ;;  %v11975_v57 = vpop.permute.xlu1 %11974  ;;  %8318 = vmatprep.mubr.bf16.mxu1 %v7998_v24  ;;  %v7895_v11 = vsel %vm386_vm0, %v6871_v18, %v11931_v53  ;;  %v11946_v17 = vunpack.i.l.bf16 %v15870_v27  ;;  %v6745_v18 = vld [vmem:[#allocation2 + $0xf0] sm:$0xff] }
 0xcd7   : > { %v11977_v36 = vunpack.i.h.bf16 %v11975_v57  ;;  %v11976_v35 = vunpack.i.l.bf16 %v11975_v57  ;;  %v11986_v29 = vunpack.i.l.bf16 %v15903_v60 }
 0xcd9   : > { %8319 = vmatmul.mubr.bf16.gmra.mxu1 %v7997_v45  ;;  %v7831_v9 = vsel %vm529_vm1, %v7799_v7, %v11976_v35  ;;  %v7832_v15 = vsel %vm529_vm1, %v7800_v20, %v11977_v36  ;;  %v11947_v36 = vunpack.i.h.bf16 %v15870_v27  ;;  %v6746_v7 = vld [vmem:[#allocation2 + $0xf8] sm:$0xff] }
 0xcda   : > { %v15908_v23 = vpop.permute.xlu0 %11989  ;;  %v15910_v19 = vpop.permute.xlu1 %11994  ;;  %v7863_v45 = vsel %vm1989_vm7, %v7831_v9, %v11936_v28  ;;  %v7864_v57 = vsel %vm1989_vm7, %v7832_v15, %v11937_v48  ;;  %v7802_v34 = vsel %vm386_vm0, %v6746_v7, %v11942_v4  ;;  %v7801_v28 = vsel %vm386_vm0, %v6745_v18, %v11941_v61  ;;  %v6748_v7 = vld [vmem:[#allocation2 + $0x110] sm:$0xff] }
 0xcdb   : > { %v8000_v20 = vpack.c.bf16 %v7864_v57, %v7863_v45 }
 0xcde   : > { %v12010_v31 = vpop.permute.xlu0 %12009  ;;  %v15914_v0 = vpop.permute.xlu1 %11999 }
 0xcdf   : > { %v12012_v46 = vunpack.i.h.bf16 %v12010_v31  ;;  %v12011_v10 = vunpack.i.l.bf16 %v12010_v31 }
 0xce1   : > { %v7927_v16 = vsel %vm529_vm1, %v7895_v11, %v12011_v10  ;;  %v7928_v24 = vsel %vm529_vm1, %v7896_v33, %v12012_v46  ;;  %v11982_v46 = vunpack.i.h.bf16 %v15890_v41  ;;  %v11981_v10 = vunpack.i.l.bf16 %v15890_v41 }
 0xce2   : > { %v12015_v52 = vpop.permute.xlu0 %12014  ;;  %v15924_v3 = vpop.permute.xlu1 %12004 }
 0xce3   : > { %v12017_v43 = vunpack.i.h.bf16 %v12015_v52  ;;  %v12016_v21 = vunpack.i.l.bf16 %v12015_v52  ;;  %v11987_v52 = vunpack.i.h.bf16 %v15903_v60 }
 0xce5   : > { %v7959_v63 = vsel %vm1989_vm7, %v7927_v16, %v12016_v21  ;;  %v7960_v40 = vsel %vm1989_vm7, %v7928_v24, %v12017_v43  ;;  %v7833_v43 = vsel %vm529_vm1, %v7801_v28, %v11946_v17  ;;  %v7834_v21 = vsel %vm529_vm1, %v7802_v34, %v11947_v36 }
 0xce6   : > { %v12020_v35 = vpop.permute.xlu0 %12019  ;;  %v8001_v31 = vpack.c.bf16 %v7960_v40, %v7959_v63  ;;  %v12025_v54 = vpop.permute.xlu1 %12024  ;;  %v11997_v28 = vunpack.i.h.bf16 %v15910_v19 }
 0xce7   : > { %v12022_v53 = vunpack.i.h.bf16 %v12020_v35  ;;  %v12021_v26 = vunpack.i.l.bf16 %v12020_v35  ;;  %v12027_v9 = vunpack.i.h.bf16 %v12025_v54  ;;  %v12026_v15 = vunpack.i.l.bf16 %v12025_v54 }
 0xce8   : > { %8326 = vmatprep.mubr.bf16.mxu1 %v8001_v31  ;;  %v11991_v54 = vunpack.i.l.bf16 %v15908_v23 }
 0xce9   : > { %v7898_v27 = vsel %vm386_vm0, %v15596_v62, %v12022_v53  ;;  %v7897_v48 = vsel %vm386_vm0, %v15600_v5, %v12021_v26  ;;  %8327 = vmatmul.mubr.bf16.gmra.mxu1 %v8000_v20  ;;  %v7865_v5 = vsel %vm1989_vm7, %v7833_v43, %v12026_v15  ;;  %v7866_v24 = vsel %vm1989_vm7, %v7834_v21, %v12027_v9  ;;  %v6747_v20 = vld [vmem:[#allocation2 + $0x108] sm:$0xff] }
 0xcea   : > { %v15946_v41 = vpop.permute.xlu0 %12039  ;;  %v7929_v33 = vsel %vm529_vm1, %v7897_v48, %v11981_v10  ;;  %v7930_v11 = vsel %vm529_vm1, %v7898_v27, %v11982_v46  ;;  %v12030_v16 = vpop.permute.xlu1 %12029  ;;  %v8003_v4 = vpack.c.bf16 %v7866_v24, %v7865_v5  ;;  %v11992_v26 = vunpack.i.h.bf16 %v15908_v23  ;;  %v6875_v27 = vld [vmem:[#allocation2 + $0x121] sm:$0xff]  ;;  %v6876_v48 = vld [vmem:[#allocation2 + $0x129] sm:$0xff] }
 0xceb   : > { %v7961_v62 = vsel %vm1989_vm7, %v7929_v33, %v11986_v29  ;;  %v7962_v45 = vsel %vm1989_vm7, %v7930_v11, %v11987_v52  ;;  %v12032_v36 = vunpack.i.h.bf16 %v12030_v16  ;;  %v12031_v35 = vunpack.i.l.bf16 %v12030_v16 }
 0xcec   : > { %v8004_v60 = vpack.c.bf16 %v7962_v45, %v7961_v62  ;;  %v11996_v23 = vunpack.i.l.bf16 %v15910_v19  ;;  %v7900_v33 = vsel %vm386_vm0, %v6876_v48, %v11992_v26  ;;  %v7899_v11 = vsel %vm386_vm0, %v6875_v27, %v11991_v54 }
 0xced   : > { %v7804_v10 = vsel %vm386_vm0, %v6748_v7, %v12032_v36  ;;  %v7803_v9 = vsel %vm386_vm0, %v6747_v20, %v12031_v35  ;;  %v12007_v36 = vunpack.i.h.bf16 %v15924_v3  ;;  %v12042_v7 = vunpack.i.h.bf16 %v15946_v41 }
 0xcee   : > { %v15956_v57 = vpop.permute.xlu0 %12044  ;;  %v12035_v63 = vpop.permute.xlu1 %12034  ;;  %8334 = vmatprep.mubr.bf16.mxu1 %v8004_v60 }
 0xcef   : > { %v12037_v31 = vunpack.i.h.bf16 %v12035_v63  ;;  %v12036_v17 = vunpack.i.l.bf16 %v12035_v63  ;;  %v12001_v63 = vunpack.i.l.bf16 %v15914_v0 }
 0xcf1   : > { %8335 = vmatmul.mubr.bf16.gmra.mxu1 %v8003_v4  ;;  %v7835_v34 = vsel %vm529_vm1, %v7803_v9, %v12036_v17  ;;  %v7836_v29 = vsel %vm529_vm1, %v7804_v10, %v12037_v31  ;;  %v12002_v4 = vunpack.i.h.bf16 %v15914_v0  ;;  %v12006_v17 = vunpack.i.l.bf16 %v15924_v3 }
 0xcf2   : > { %v15958_v40 = vpop.permute.xlu0 %12049  ;;  %v15960_v61 = vpop.permute.xlu1 %12054  ;;  %v7867_v24 = vsel %vm1989_vm7, %v7835_v34, %v11996_v23  ;;  %v7868_v45 = vsel %vm1989_vm7, %v7836_v29, %v11997_v28  ;;  %v12041_v10 = vunpack.i.l.bf16 %v15946_v41  ;;  %v6750_v34 = vld [vmem:[#allocation2 + $0x128] sm:$0xff]  ;;  %v12047_v0 = vunpack.i.h.bf16 %v15956_v57 }
 0xcf3   : > { %v8006_v20 = vpack.c.bf16 %v7868_v45, %v7867_v24  ;;  %v12046_v29 = vunpack.i.l.bf16 %v15956_v57  ;;  %v7806_v48 = vsel %vm386_vm0, %v6750_v34, %v12002_v4  ;;  %v12292_v34 = vld [vmem:[#allocation2 + $0x151] sm:$0xff] }
 0xcf4   : > { %v7838_v57 = vsel %vm529_vm1, %v7806_v48, %v12007_v36  ;;  %v12052_v36 = vunpack.i.h.bf16 %v15958_v40 }
 0xcf6   : > { %v12065_v53 = vpop.permute.xlu0 %12064  ;;  %v15964_v46 = vpop.permute.xlu1 %12059 }
 0xcf7   : > { %v12067_v15 = vunpack.i.h.bf16 %v12065_v53  ;;  %v12066_v18 = vunpack.i.l.bf16 %v12065_v53 }
 0xcf9   : > { %v7931_v62 = vsel %vm529_vm1, %v7899_v11, %v12066_v18  ;;  %v7932_v5 = vsel %vm529_vm1, %v7900_v33, %v12067_v15  ;;  %v6749_v18 = vld [vmem:[#allocation2 + $0x120] sm:$0xff] }
 0xcfa   : > { %v12070_v52 = vpop.permute.xlu0 %12069  ;;  %v7805_v41 = vsel %vm386_vm0, %v6749_v18, %v12001_v63  ;;  %v12291_v18 = vld [vmem:[#allocation2 + $0x159] sm:$0xff] }
 0xcfb   : > { %v12072_v43 = vunpack.i.h.bf16 %v12070_v52  ;;  %v12071_v21 = vunpack.i.l.bf16 %v12070_v52  ;;  %v12080_v16 = vpop.permute.xlu1 %12079  ;;  %v7837_v33 = vsel %vm529_vm1, %v7805_v41, %v12006_v17 }
 0xcfc   : > { %v12082_v9 = vunpack.i.h.bf16 %v12080_v16  ;;  %v12081_v15 = vunpack.i.l.bf16 %v12080_v16 }
 0xcfd   : > { %v7963_v60 = vsel %vm1989_vm7, %v7931_v62, %v12071_v21  ;;  %v7964_v19 = vsel %vm1989_vm7, %v7932_v5, %v12072_v43 }
 0xcfe   : > { %v12075_v35 = vpop.permute.xlu0 %12074  ;;  %v8007_v31 = vpack.c.bf16 %v7964_v19, %v7963_v60  ;;  %v7869_v43 = vsel %vm1989_vm7, %v7837_v33, %v12081_v15  ;;  %v7870_v21 = vsel %vm1989_vm7, %v7838_v57, %v12082_v9  ;;  %v12056_v9 = vunpack.i.l.bf16 %v15960_v61 }
 0xcff   : > { %v12077_v53 = vunpack.i.h.bf16 %v12075_v35  ;;  %v12076_v26 = vunpack.i.l.bf16 %v12075_v35  ;;  %v12085_v54 = vpop.permute.xlu1 %12084  ;;  %v8009_v5 = vpack.c.bf16 %v7870_v21, %v7869_v43  ;;  %v12051_v35 = vunpack.i.l.bf16 %v15958_v40 }
 0xd00   : > { %8342 = vmatprep.mubr.bf16.mxu1 %v8007_v31  ;;  %v12087_v45 = vunpack.i.h.bf16 %v12085_v54  ;;  %v12086_v60 = vunpack.i.l.bf16 %v12085_v54  ;;  %v7904_v40 = vsel %vm386_vm0, %v12291_v18, %v12052_v36  ;;  %v12061_v33 = vunpack.i.l.bf16 %v15964_v46  ;;  %v6754_v36 = vld [vmem:[#allocation2 + $0x158] sm:$0xff] }
 0xd01   : > { %v7902_v3 = vsel %vm386_vm0, %v15664_v49, %v12077_v53  ;;  %v7901_v27 = vsel %vm386_vm0, %v15673_v12, %v12076_v26  ;;  %8343 = vmatmul.mubr.bf16.gmra.mxu1 %v8006_v20 }
 0xd02   : > { %v15994_v28 = vpop.permute.xlu0 %12099  ;;  %v7933_v23 = vsel %vm529_vm1, %v7901_v27, %v12041_v10  ;;  %v7934_v52 = vsel %vm529_vm1, %v7902_v3, %v12042_v7  ;;  %v7808_v17 = vsel %vm386_vm0, %v15641_v50, %v12087_v45  ;;  %v7807_v53 = vsel %vm386_vm0, %v15652_v55, %v12086_v60 }
 0xd03   : > { %v12090_v11 = vpop.permute.xlu1 %12089  ;;  %v7965_v49 = vsel %vm1989_vm7, %v7933_v23, %v12046_v29  ;;  %v7966_v12 = vsel %vm1989_vm7, %v7934_v52, %v12047_v0  ;;  %v12057_v10 = vunpack.i.h.bf16 %v15960_v61  ;;  %v7903_v50 = vsel %vm386_vm0, %v12292_v34, %v12051_v35 }
 0xd04   : > { %v8010_v16 = vpack.c.bf16 %v7966_v12, %v7965_v49  ;;  %v12092_v19 = vunpack.i.h.bf16 %v12090_v11  ;;  %v12091_v4 = vunpack.i.l.bf16 %v12090_v11  ;;  %v12062_v52 = vunpack.i.h.bf16 %v15964_v46 }
 0xd05   : > { %v12102_v45 = vunpack.i.h.bf16 %v15994_v28  ;;  %v12101_v60 = vunpack.i.l.bf16 %v15994_v28 }
 0xd06   : > { %v16004_v62 = vpop.permute.xlu0 %12104  ;;  %8350 = vmatprep.mubr.bf16.mxu1 %v8010_v16  ;;  %v7839_v7 = vsel %vm529_vm1, %v7807_v53, %v12091_v4  ;;  %v7840_v54 = vsel %vm529_vm1, %v7808_v17, %v12092_v19  ;;  %v7810_v53 = vsel %vm386_vm0, %v6754_v36, %v12062_v52  ;;  %v16065_v36 = vld [vmem:[%s16499_s4 + $0x2] ss:$0 sm:$0xff] }
 0xd07   : > { %v12095_v24 = vpop.permute.xlu1 %12094  ;;  %v7871_v48 = vsel %vm1989_vm7, %v7839_v7, %v12056_v9  ;;  %v7872_v41 = vsel %vm1989_vm7, %v7840_v54, %v12057_v10  ;;  %v12107_v35 = vunpack.i.h.bf16 %v16004_v62  ;;  %v12106_v46 = vunpack.i.l.bf16 %v16004_v62 }
 0xd08   : > { %v12097_v57 = vunpack.i.h.bf16 %v12095_v24  ;;  %v12096_v12 = vunpack.i.l.bf16 %v12095_v24 }
 0xd09   : > { %8351 = vmatmul.mubr.bf16.gmra.mxu1 %v8009_v5  ;;  %v8012_v5 = vpack.c.bf16 %v7872_v41, %v7871_v48 }
 0xd0a   : > { %v12110_v63 = vpop.permute.xlu0 %12109  ;;  %v7842_v62 = vsel %vm529_vm1, %v7810_v53, %v12097_v57 }
 0xd0b   : > { %v12135_v31 = vpop.permute.xlu1 %12134  ;;  %v12112_v26 = vunpack.i.h.bf16 %v12110_v63  ;;  %v12111_v20 = vunpack.i.l.bf16 %v12110_v63  ;;  %v6753_v63 = vld [vmem:[#allocation2 + $0x150] sm:$0xff] }
 0xd0c   : > { %v12137_v19 = vunpack.i.h.bf16 %v12135_v31  ;;  %v12136_v4 = vunpack.i.l.bf16 %v12135_v31  ;;  %v7809_v28 = vsel %vm386_vm0, %v6753_v63, %v12061_v33 }
 0xd0d   : > { %v7935_v3 = vsel %vm529_vm1, %v7903_v50, %v12111_v20  ;;  %v7936_v27 = vsel %vm529_vm1, %v7904_v40, %v12112_v26  ;;  %v7841_v7 = vsel %vm529_vm1, %v7809_v28, %v12096_v12 }
 0xd0e   : > { %v12115_v15 = vpop.permute.xlu0 %12114  ;;  %v7874_v10 = vsel %vm1989_vm7, %v7842_v62, %v12137_v19 }
 0xd0f   : > { %v12117_v0 = vunpack.i.h.bf16 %v12115_v15  ;;  %v12116_v29 = vunpack.i.l.bf16 %v12115_v15  ;;  %v12140_v55 = vpop.permute.xlu1 %12139 }
 0xd10   : > { %v12142_v15 = vunpack.i.h.bf16 %v12140_v55  ;;  %v12141_v18 = vunpack.i.l.bf16 %v12140_v55 }
 0xd11   : > { %v7967_v61 = vsel %vm1989_vm7, %v7935_v3, %v12116_v29  ;;  %v7968_v23 = vsel %vm1989_vm7, %v7936_v27, %v12117_v0 }
 0xd12   : > { %v12120_v11 = vpop.permute.xlu0 %12119  ;;  %v8013_v49 = vpack.c.bf16 %v7968_v23, %v7967_v61  ;;  %v7812_v52 = vsel %vm386_vm0, %v15727_v58, %v12142_v15  ;;  %v7811_v33 = vsel %vm386_vm0, %v15732_v2, %v12141_v18 }
 0xd13   : > { %v12122_v43 = vunpack.i.h.bf16 %v12120_v11  ;;  %v12121_v21 = vunpack.i.l.bf16 %v12120_v11  ;;  %v12145_v16 = vpop.permute.xlu1 %12144 }
 0xd14   : > { %8358 = vmatprep.mubr.bf16.mxu1 %v8013_v49  ;;  %v12147_v34 = vunpack.i.h.bf16 %v12145_v16  ;;  %v12146_v50 = vunpack.i.l.bf16 %v12145_v16 }
 0xd15   : > { %v7906_v24 = vsel %vm386_vm0, %v15740_v59, %v12122_v43  ;;  %v7905_v17 = vsel %vm386_vm0, %v15748_v6, %v12121_v21  ;;  %8359 = vmatmul.mubr.bf16.gmra.mxu1 %v8012_v5  ;;  %v7873_v6 = vsel %vm1989_vm7, %v7841_v7, %v12136_v4 }
 0xd16   : > { %v12125_v26 = vpop.permute.xlu0 %12124  ;;  %v7937_v31 = vsel %vm529_vm1, %v7905_v17, %v12101_v60  ;;  %v7938_v20 = vsel %vm529_vm1, %v7906_v24, %v12102_v45  ;;  %v8015_v29 = vpack.c.bf16 %v7874_v10, %v7873_v6  ;;  %v7843_v55 = vsel %vm529_vm1, %v7811_v33, %v12146_v50 }
 0xd17   : > { %v7969_v54 = vsel %vm1989_vm7, %v7937_v31, %v12106_v46  ;;  %v7970_v59 = vsel %vm1989_vm7, %v7938_v20, %v12107_v35  ;;  %v12155_v40 = vpop.permute.xlu1 %12154  ;;  %v12127_v3 = vunpack.i.h.bf16 %v12125_v26  ;;  %v12126_v27 = vunpack.i.l.bf16 %v12125_v26 }
 0xd18   : > { %v8016_v9 = vpack.c.bf16 %v7970_v59, %v7969_v54  ;;  %v12157_v48 = vunpack.i.h.bf16 %v12155_v40  ;;  %v12156_v41 = vunpack.i.l.bf16 %v12155_v40  ;;  %v7844_v57 = vsel %vm529_vm1, %v7812_v52, %v12147_v34 }
 0xd19   : > { %v7908_v49 = vsel %vm386_vm0, %v15713_v39, %v12127_v3  ;;  %v7907_v12 = vsel %vm386_vm0, %v15719_v14, %v12126_v27  ;;  %v10584_v39 = vpop.f32.mrf.mxu0 }
 0xd1a   : > { %v12130_v0 = vpop.permute.xlu0 %12129  ;;  %8366 = vmatprep.mubr.bf16.mxu1 %v8016_v9  ;;  %v7875_v16 = vsel %vm1989_vm7, %v7843_v55, %v12156_v41  ;;  %v7876_v58 = vsel %vm1989_vm7, %v7844_v57, %v12157_v48 }
 0xd1b   : > { %v12132_v61 = vunpack.i.h.bf16 %v12130_v0  ;;  %v12131_v23 = vunpack.i.l.bf16 %v12130_v0  ;;  %v8018_v4 = vpack.c.bf16 %v7876_v58, %v7875_v16  ;;  %v8417_v63 = vpop.f32.mrf.mxu0 }
 0xd1d   : > { %8367 = vmatmul.mubr.bf16.gmra.mxu1 %v8015_v29  ;;  %v7939_v2 = vsel %vm529_vm1, %v7907_v12, %v12131_v23  ;;  %v7940_v5 = vsel %vm529_vm1, %v7908_v49, %v12132_v61  ;;  %v10585_v53 = vpop.f32.mrf.mxu0 }
 0xd1e   : > { %v12150_v11 = vpop.permute.xlu0 %12149 }
 0xd1f   : > { %v12152_v43 = vunpack.i.h.bf16 %v12150_v11  ;;  %v12151_v21 = vunpack.i.l.bf16 %v12150_v11  ;;  %v8420_v7 = vpop.f32.mrf.mxu0 }
 0xd21   : > { %v7971_v45 = vsel %vm1989_vm7, %v7939_v2, %v12151_v21  ;;  %v7972_v60 = vsel %vm1989_vm7, %v7940_v5, %v12152_v43  ;;  %v10588_v0 = vpop.f32.mrf.mxu0 }
 0xd22   : > { %v8019_v19 = vpack.c.bf16 %v7972_v60, %v7971_v45 }
 0xd23   : > { %v8433_v61 = vpop.f32.mrf.mxu0 }
 0xd24   : > { %8374 = vmatprep.mubr.bf16.mxu1 %v8019_v19 }
 0xd25   : > { %8375 = vmatmul.mubr.bf16.gmra.mxu1 %v8018_v4  ;;  %v10589_v12 = vpop.f32.mrf.mxu0 }
 0xd26   : > { %10658 = vmatprep.mubr.msk.bf16.mxu1 %vm12359_vm14, %v16587_v32 }
 0xd27   : > { %v8436_v60 = vpop.f32.mrf.mxu0 }
 0xd37   : > { %v10139_v14 = vpop.f32.mrf.mxu1 }
 0xd39   : > { %v10140_v35 = vpop.f32.mrf.mxu1 }
 0xd3a   : > { %v10141_v46 = vadd.f32 %v10140_v35, %v10139_v14 }
 0xd3b   : > { %v10142_v24 = vpop.f32.mrf.mxu1 }
 0xd3c   : > { %v8257_v17 = vadd.f32 %v10141_v46, %v16065_v36 }
 0xd3d   : > { %v10143_v28 = vpop.f32.mrf.mxu1 }
 0xd3e   : > { %v8418_v26 = vadd.f32 %v8417_v63, %v8257_v17  ;;  %v10144_v31 = vadd.f32 %v10143_v28, %v10142_v24 }
 0xd40   : > { %v8260_v20 = vadd.f32 %v10144_v31, %v16065_v36  ;;  %v8576_v62 = vmul.f32 0.01, %v8418_v26  ;;  %vm8544_vm7 = vcmp.gt.f32.partialorder %v8418_v26, 0.0 }
 0xd42   : > { %v8421_v54 = vadd.f32 %v8420_v7, %v8260_v20  ;;  %v8608_v6 = vsel %vm8544_vm7, %v8418_v26, %v8576_v62  ;;  %v10592_v26 = vpop.f32.mrf.mxu0 }
 0xd44   : > { %vm8545_vm8 = vcmp.gt.f32.partialorder %v8421_v54, 0.0  ;;  %v8577_v59 = vmul.f32 0.01, %v8421_v54 }
 0xd46   : > { %v8609_v10 = vsel %vm8545_vm8, %v8421_v54, %v8577_v59  ;;  %v8449_v59 = vpop.f32.mrf.mxu0 }
 0xd47   : > { %v8640_v9 = vpack.c.bf16 %v8609_v10, %v8608_v6 }
 0xd49   : > { %v10145_v15 = vpop.f32.mrf.mxu1  ;;  %10618 = vmatprep.mubr.msk.bf16.mxu0 %vm386_vm0, %v8640_v9 }
 0xd4b   : > { %v10146_v18 = vpop.f32.mrf.mxu1 }
 0xd4c   : > { %v10147_v40 = vadd.f32 %v10146_v18, %v10145_v15 }
 0xd4d   : > { %v10148_v34 = vpop.f32.mrf.mxu1 }
 0xd4e   : > { %v8265_v50 = vadd.f32 %v10147_v40, %v16065_v36 }
 0xd4f   : > { %v10149_v29 = vpop.f32.mrf.mxu1 }
 0xd50   : > { %v8426_v3 = vadd.f32 %v10584_v39, %v8265_v50  ;;  %v10150_v27 = vadd.f32 %v10149_v29, %v10148_v34  ;;  %v10593_v50 = vpop.f32.mrf.mxu0 }
 0xd51   : > { %v10151_v48 = vpop.f32.mrf.mxu1 }
 0xd52   : > { %v8268_v41 = vadd.f32 %v10150_v27, %v16065_v36  ;;  %v8578_v52 = vmul.f32 0.01, %v8426_v3  ;;  %vm8546_vm9 = vcmp.gt.f32.partialorder %v8426_v3, 0.0 }
 0xd53   : > { %v10152_v23 = vpop.f32.mrf.mxu1 }
 0xd54   : > { %v8429_v33 = vadd.f32 %v10585_v53, %v8268_v41  ;;  %v10153_v55 = vadd.f32 %v10152_v23, %v10151_v48  ;;  %v8610_v21 = vsel %vm8546_vm9, %v8426_v3, %v8578_v52  ;;  %v8452_v23 = vpop.f32.mrf.mxu0 }
 0xd55   : > { %v10154_v57 = vpop.f32.mrf.mxu1 }
 0xd56   : > { %vm8547_vm12 = vcmp.gt.f32.partialorder %v8429_v33, 0.0  ;;  %v8579_v11 = vmul.f32 0.01, %v8429_v33  ;;  %v8273_v49 = vadd.f32 %v10153_v55, %v16065_v36 }
 0xd57   : > { %v10155_v43 = vpop.f32.mrf.mxu1 }
 0xd58   : > { %v8611_v16 = vsel %vm8547_vm12, %v8429_v33, %v8579_v11  ;;  %v8434_v58 = vadd.f32 %v8433_v61, %v8273_v49  ;;  %v10156_v2 = vadd.f32 %v10155_v43, %v10154_v57 }
 0xd59   : > { %v8641_v5 = vpack.c.bf16 %v8611_v16, %v8610_v21 }
 0xd5a   : > { %v8276_v45 = vadd.f32 %v10156_v2, %v16065_v36  ;;  %v8580_v19 = vmul.f32 0.01, %v8434_v58  ;;  %vm8548_vm13 = vcmp.gt.f32.partialorder %v8434_v58, 0.0  ;;  %v10596_v2 = vpop.f32.mrf.mxu0 }
 0xd5b   : > { %10619 = vmatmul.mubr.msk.bf16.vlgmr.msra.gmra.mxu0 %vm386_vm0, %v8641_v5 }
 0xd5c   : > { %v8437_v4 = vadd.f32 %v8436_v60, %v8276_v45  ;;  %v8612_v14 = vsel %vm8548_vm13, %v8434_v58, %v8580_v19 }
 0xd5e   : > { %vm8549_vm15 = vcmp.gt.f32.partialorder %v8437_v4, 0.0  ;;  %v8581_v39 = vmul.f32 0.01, %v8437_v4 }
 0xd60   : > { %v8613_v63 = vsel %vm8549_vm15, %v8437_v4, %v8581_v39  ;;  %v8465_v39 = vpop.f32.mrf.mxu0 }
 0xd61   : > { %v10157_v35 = vpop.f32.mrf.mxu1  ;;  %v8642_v46 = vpack.c.bf16 %v8613_v63, %v8612_v14 }
 0xd63   : > { %v10158_v24 = vpop.f32.mrf.mxu1  ;;  %10622 = vmatprep.mubr.msk.bf16.mxu0 %vm386_vm0, %v8642_v46 }
 0xd64   : > { %v10159_v17 = vadd.f32 %v10158_v24, %v10157_v35 }
 0xd65   : > { %v10160_v53 = vpop.f32.mrf.mxu1 }
 0xd66   : > { %v8281_v28 = vadd.f32 %v10159_v17, %v16065_v36 }
 0xd67   : > { %v10161_v31 = vpop.f32.mrf.mxu1 }
 0xd68   : > { %v8442_v20 = vadd.f32 %v10588_v0, %v8281_v28  ;;  %v10162_v7 = vadd.f32 %v10161_v31, %v10160_v53  ;;  %v10597_v28 = vpop.f32.mrf.mxu0 }
 0xd69   : > { %v10163_v62 = vpop.f32.mrf.mxu1 }
 0xd6a   : > { %v8284_v54 = vadd.f32 %v10162_v7, %v16065_v36  ;;  %v8582_v10 = vmul.f32 0.01, %v8442_v20  ;;  %vm8550_vm2 = vcmp.gt.f32.partialorder %v8442_v20, 0.0 }
 0xd6b   : > { %v10164_v6 = vpop.f32.mrf.mxu1 }
 0xd6c   : > { %v8445_v9 = vadd.f32 %v10589_v12, %v8284_v54  ;;  %v10165_v15 = vadd.f32 %v10164_v6, %v10163_v62  ;;  %v8614_v3 = vsel %vm8550_vm2, %v8442_v20, %v8582_v10  ;;  %v8468_v6 = vpop.f32.mrf.mxu0 }
 0xd6d   : > { %v10166_v18 = vpop.f32.mrf.mxu1 }
 0xd6e   : > { %vm8551_vm3 = vcmp.gt.f32.partialorder %v8445_v9, 0.0  ;;  %v8583_v40 = vmul.f32 0.01, %v8445_v9  ;;  %v8289_v34 = vadd.f32 %v10165_v15, %v16065_v36 }
 0xd6f   : > { %v10167_v29 = vpop.f32.mrf.mxu1 }
 0xd70   : > { %v8615_v27 = vsel %vm8551_vm3, %v8445_v9, %v8583_v40  ;;  %v8450_v0 = vadd.f32 %v8449_v59, %v8289_v34  ;;  %v10168_v48 = vadd.f32 %v10167_v29, %v10166_v18 }
 0xd71   : > { %v8643_v41 = vpack.c.bf16 %v8615_v27, %v8614_v3 }
 0xd72   : > { %v8292_v61 = vadd.f32 %v10168_v48, %v16065_v36  ;;  %v8584_v52 = vmul.f32 0.01, %v8450_v0  ;;  %vm8552_vm4 = vcmp.gt.f32.partialorder %v8450_v0, 0.0  ;;  %v10600_v48 = vpop.f32.mrf.mxu0 }
 0xd73   : > { %10623 = vmatmul.mubr.msk.bf16.gmra.mxu0 %vm386_vm0, %v8643_v41 }
 0xd74   : > { %v8453_v33 = vadd.f32 %v8452_v23, %v8292_v61  ;;  %v8616_v57 = vsel %vm8552_vm4, %v8450_v0, %v8584_v52 }
 0xd76   : > { %vm8553_vm5 = vcmp.gt.f32.partialorder %v8453_v33, 0.0  ;;  %v8585_v55 = vmul.f32 0.01, %v8453_v33 }
 0xd78   : > { %v8617_v11 = vsel %vm8553_vm5, %v8453_v33, %v8585_v55  ;;  %v8481_v55 = vpop.f32.mrf.mxu0 }
 0xd79   : > { %v10169_v49 = vpop.f32.mrf.mxu1  ;;  %v8644_v12 = vpack.c.bf16 %v8617_v11, %v8616_v57 }
 0xd7b   : > { %v10170_v43 = vpop.f32.mrf.mxu1  ;;  %10626 = vmatprep.mubr.msk.bf16.mxu0 %vm386_vm0, %v8644_v12 }
 0xd7c   : > { %v10171_v21 = vadd.f32 %v10170_v43, %v10169_v49 }
 0xd7d   : > { %v10172_v16 = vpop.f32.mrf.mxu1 }
 0xd7e   : > { %v8297_v58 = vadd.f32 %v10171_v21, %v16065_v36 }
 0xd7f   : > { %v10173_v5 = vpop.f32.mrf.mxu1 }
 0xd80   : > { %v8458_v45 = vadd.f32 %v10592_v26, %v8297_v58  ;;  %v10174_v60 = vadd.f32 %v10173_v5, %v10172_v16  ;;  %v10601_v58 = vpop.f32.mrf.mxu0 }
 0xd81   : > { %v10175_v19 = vpop.f32.mrf.mxu1 }
 0xd82   : > { %v8300_v4 = vadd.f32 %v10174_v60, %v16065_v36  ;;  %v8586_v63 = vmul.f32 0.01, %v8458_v45  ;;  %vm8554_vm6 = vcmp.gt.f32.partialorder %v8458_v45, 0.0 }
 0xd83   : > { %v10176_v14 = vpop.f32.mrf.mxu1 }
 0xd84   : > { %v8461_v35 = vadd.f32 %v10593_v50, %v8300_v4  ;;  %v10177_v46 = vadd.f32 %v10176_v14, %v10175_v19  ;;  %v8618_v20 = vsel %vm8554_vm6, %v8458_v45, %v8586_v63  ;;  %v8484_v14 = vpop.f32.mrf.mxu0 }
 0xd85   : > { %v10178_v24 = vpop.f32.mrf.mxu1 }
 0xd86   : > { %vm8555_vm7 = vcmp.gt.f32.partialorder %v8461_v35, 0.0  ;;  %v8587_v17 = vmul.f32 0.01, %v8461_v35  ;;  %v8305_v53 = vadd.f32 %v10177_v46, %v16065_v36 }
 0xd87   : > { %v10179_v31 = vpop.f32.mrf.mxu1 }
 0xd88   : > { %v8619_v7 = vsel %vm8555_vm7, %v8461_v35, %v8587_v17  ;;  %v8466_v26 = vadd.f32 %v8465_v39, %v8305_v53  ;;  %v10180_v62 = vadd.f32 %v10179_v31, %v10178_v24 }
 0xd89   : > { %v8645_v54 = vpack.c.bf16 %v8619_v7, %v8618_v20 }
 0xd8a   : > { %v8308_v59 = vadd.f32 %v10180_v62, %v16065_v36  ;;  %v8588_v10 = vmul.f32 0.01, %v8466_v26  ;;  %vm8556_vm8 = vcmp.gt.f32.partialorder %v8466_v26, 0.0  ;;  %v10604_v62 = vpop.f32.mrf.mxu0 }
 0xd8b   : > { %10627 = vmatmul.mubr.msk.bf16.gmra.mxu0 %vm386_vm0, %v8645_v54 }
 0xd8c   : > { %v8469_v9 = vadd.f32 %v8468_v6, %v8308_v59  ;;  %v8620_v18 = vsel %vm8556_vm8, %v8466_v26, %v8588_v10 }
 0xd8e   : > { %vm8557_vm9 = vcmp.gt.f32.partialorder %v8469_v9, 0.0  ;;  %v8589_v15 = vmul.f32 0.01, %v8469_v9 }
 0xd90   : > { %v8621_v40 = vsel %vm8557_vm9, %v8469_v9, %v8589_v15  ;;  %v8497_v15 = vpop.f32.mrf.mxu0 }
 0xd91   : > { %v10181_v34 = vpop.f32.mrf.mxu1  ;;  %v8646_v50 = vpack.c.bf16 %v8621_v40, %v8620_v18 }
 0xd93   : > { %v10182_v29 = vpop.f32.mrf.mxu1  ;;  %10630 = vmatprep.mubr.msk.bf16.mxu0 %vm386_vm0, %v8646_v50 }
 0xd94   : > { %v10183_v3 = vadd.f32 %v10182_v29, %v10181_v34 }
 0xd95   : > { %v10184_v27 = vpop.f32.mrf.mxu1 }
 0xd96   : > { %v8313_v0 = vadd.f32 %v10183_v3, %v16065_v36 }
 0xd97   : > { %v10185_v41 = vpop.f32.mrf.mxu1 }
 0xd98   : > { %v8474_v61 = vadd.f32 %v10596_v2, %v8313_v0  ;;  %v10186_v23 = vadd.f32 %v10185_v41, %v10184_v27  ;;  %v10605_v0 = vpop.f32.mrf.mxu0 }
 0xd99   : > { %v10187_v52 = vpop.f32.mrf.mxu1 }
 0xd9a   : > { %v8316_v33 = vadd.f32 %v10186_v23, %v16065_v36  ;;  %v8590_v11 = vmul.f32 0.01, %v8474_v61  ;;  %vm8558_vm12 = vcmp.gt.f32.partialorder %v8474_v61, 0.0 }
 0xd9b   : > { %v10188_v57 = vpop.f32.mrf.mxu1 }
 0xd9c   : > { %v8477_v49 = vadd.f32 %v10597_v28, %v8316_v33  ;;  %v10189_v12 = vadd.f32 %v10188_v57, %v10187_v52  ;;  %v8622_v45 = vsel %vm8558_vm12, %v8474_v61, %v8590_v11  ;;  %v8500_v57 = vpop.f32.mrf.mxu0 }
 0xd9d   : > { %v10190_v43 = vpop.f32.mrf.mxu1 }
 0xd9e   : > { %vm8559_vm13 = vcmp.gt.f32.partialorder %v8477_v49, 0.0  ;;  %v8591_v21 = vmul.f32 0.01, %v8477_v49  ;;  %v8321_v16 = vadd.f32 %v10189_v12, %v16065_v36 }
 0xd9f   : > { %v10191_v5 = vpop.f32.mrf.mxu1 }
 0xda0   : > { %v8623_v60 = vsel %vm8559_vm13, %v8477_v49, %v8591_v21  ;;  %v8482_v2 = vadd.f32 %v8481_v55, %v8321_v16  ;;  %v10192_v19 = vadd.f32 %v10191_v5, %v10190_v43 }
 0xda1   : > { %v8647_v4 = vpack.c.bf16 %v8623_v60, %v8622_v45 }
 0xda2   : > { %v8324_v39 = vadd.f32 %v10192_v19, %v16065_v36  ;;  %v8592_v63 = vmul.f32 0.01, %v8482_v2  ;;  %vm8560_vm15 = vcmp.gt.f32.partialorder %v8482_v2, 0.0  ;;  %v10608_v19 = vpop.f32.mrf.mxu0 }
 0xda3   : > { %10631 = vmatmul.mubr.msk.bf16.gmra.mxu0 %vm386_vm0, %v8647_v4 }
 0xda4   : > { %v8485_v35 = vadd.f32 %v8484_v14, %v8324_v39  ;;  %v8624_v24 = vsel %vm8560_vm15, %v8482_v2, %v8592_v63 }
 0xda6   : > { %vm8561_vm2 = vcmp.gt.f32.partialorder %v8485_v35, 0.0  ;;  %v8593_v46 = vmul.f32 0.01, %v8485_v35 }
 0xda8   : > { %v8625_v17 = vsel %vm8561_vm2, %v8485_v35, %v8593_v46  ;;  %v8513_v46 = vpop.f32.mrf.mxu0 }
 0xda9   : > { %v10193_v53 = vpop.f32.mrf.mxu1  ;;  %v8648_v28 = vpack.c.bf16 %v8625_v17, %v8624_v24 }
 0xdab   : > { %v10194_v31 = vpop.f32.mrf.mxu1  ;;  %10634 = vmatprep.mubr.msk.bf16.mxu0 %vm386_vm0, %v8648_v28 }
 0xdac   : > { %v10195_v20 = vadd.f32 %v10194_v31, %v10193_v53 }
 0xdad   : > { %v10196_v7 = vpop.f32.mrf.mxu1 }
 0xdae   : > { %v8329_v26 = vadd.f32 %v10195_v20, %v16065_v36 }
 0xdaf   : > { %v10197_v54 = vpop.f32.mrf.mxu1 }
 0xdb0   : > { %v8490_v59 = vadd.f32 %v10600_v48, %v8329_v26  ;;  %v10198_v6 = vadd.f32 %v10197_v54, %v10196_v7  ;;  %v10609_v26 = vpop.f32.mrf.mxu0 }
 0xdb1   : > { %v10199_v10 = vpop.f32.mrf.mxu1 }
 0xdb2   : > { %v8332_v9 = vadd.f32 %v10198_v6, %v16065_v36  ;;  %v8594_v40 = vmul.f32 0.01, %v8490_v59  ;;  %vm8562_vm3 = vcmp.gt.f32.partialorder %v8490_v59, 0.0 }
 0xdb3   : > { %v10200_v18 = vpop.f32.mrf.mxu1 }
 0xdb4   : > { %v8493_v34 = vadd.f32 %v10601_v58, %v8332_v9  ;;  %v10201_v50 = vadd.f32 %v10200_v18, %v10199_v10  ;;  %v8626_v61 = vsel %vm8562_vm3, %v8490_v59, %v8594_v40  ;;  %v8516_v18 = vpop.f32.mrf.mxu0 }
 0xdb5   : > { %v10202_v29 = vpop.f32.mrf.mxu1 }
 0xdb6   : > { %vm8563_vm4 = vcmp.gt.f32.partialorder %v8493_v34, 0.0  ;;  %v8595_v3 = vmul.f32 0.01, %v8493_v34  ;;  %v8337_v27 = vadd.f32 %v10201_v50, %v16065_v36 }
 0xdb7   : > { %v10203_v41 = vpop.f32.mrf.mxu1 }
 0xdb8   : > { %v8627_v23 = vsel %vm8563_vm4, %v8493_v34, %v8595_v3  ;;  %v8498_v48 = vadd.f32 %v8497_v15, %v8337_v27  ;;  %v10204_v52 = vadd.f32 %v10203_v41, %v10202_v29 }
 0xdb9   : > { %v8649_v33 = vpack.c.bf16 %v8627_v23, %v8626_v61 }
 0xdba   : > { %v8340_v55 = vadd.f32 %v10204_v52, %v16065_v36  ;;  %v8596_v11 = vmul.f32 0.01, %v8498_v48  ;;  %vm8564_vm5 = vcmp.gt.f32.partialorder %v8498_v48, 0.0 }
 0xdbb   : > { %10635 = vmatmul.mubr.msk.bf16.gmra.mxu0 %vm386_vm0, %v8649_v33  ;;  %v12238_v33 = vld [vmem:[%s16502_s7 + $0x58] sm:$0xff]  }
 0xdbc   : > { %v8501_v49 = vadd.f32 %v8500_v57, %v8340_v55  ;;  %v8628_v43 = vsel %vm8564_vm5, %v8498_v48, %v8596_v11  ;;  %v10612_v48 = vpop.f32.mrf.mxu0  ;;  %10651 = vmatpush3.bf16.msra.mxu1 %v12238_v33 }
 0xdbd   : > { %10652 = vmatprep.subr.bf16.mxu1 %v16587_v32 }
 0xdbe   : > { %vm8565_vm6 = vcmp.gt.f32.partialorder %v8501_v49, 0.0  ;;  %v8597_v12 = vmul.f32 0.01, %v8501_v49 }
 0xdc0   : > { %v8629_v21 = vsel %vm8565_vm6, %v8501_v49, %v8597_v12  ;;  %v8529_v12 = vpop.f32.mrf.mxu0 }
 0xdc1   : > { %v10205_v16 = vpop.f32.mrf.mxu1  ;;  %v8650_v58 = vpack.c.bf16 %v8629_v21, %v8628_v43 }
 0xdc3   : > { %v10206_v5 = vpop.f32.mrf.mxu1  ;;  %10638 = vmatprep.mubr.msk.bf16.mxu0 %vm386_vm0, %v8650_v58 }
 0xdc4   : > { %v10207_v45 = vadd.f32 %v10206_v5, %v10205_v16 }
 0xdc5   : > { %v10208_v60 = vpop.f32.mrf.mxu1 }
 0xdc6   : > { %v8345_v2 = vadd.f32 %v10207_v45, %v16065_v36 }
 0xdc7   : > { %v10209_v4 = vpop.f32.mrf.mxu1 }
 0xdc8   : > { %v8506_v39 = vadd.f32 %v10604_v62, %v8345_v2  ;;  %v10210_v14 = vadd.f32 %v10209_v4, %v10208_v60  ;;  %v10613_v60 = vpop.f32.mrf.mxu0 }
 0xdc9   : > { %v10211_v63 = vpop.f32.mrf.mxu1 }
 0xdca   : > { %v8348_v35 = vadd.f32 %v10210_v14, %v16065_v36  ;;  %v8598_v17 = vmul.f32 0.01, %v8506_v39  ;;  %vm8566_vm7 = vcmp.gt.f32.partialorder %v8506_v39, 0.0 }
 0xdcb   : > { %v10212_v24 = vpop.f32.mrf.mxu1 }
 0xdcc   : > { %v8509_v53 = vadd.f32 %v10605_v0, %v8348_v35  ;;  %v10213_v28 = vadd.f32 %v10212_v24, %v10211_v63  ;;  %v8630_v59 = vsel %vm8566_vm7, %v8506_v39, %v8598_v17  ;;  %v8532_v17 = vpop.f32.mrf.mxu0 }
 0xdcd   : > { %v10214_v31 = vpop.f32.mrf.mxu1 }
 0xdce   : > { %vm8567_vm8 = vcmp.gt.f32.partialorder %v8509_v53, 0.0  ;;  %v8599_v20 = vmul.f32 0.01, %v8509_v53  ;;  %v8353_v7 = vadd.f32 %v10213_v28, %v16065_v36 }
 0xdcf   : > { %v10215_v54 = vpop.f32.mrf.mxu1 }
 0xdd0   : > { %v8631_v6 = vsel %vm8567_vm8, %v8509_v53, %v8599_v20  ;;  %v8514_v62 = vadd.f32 %v8513_v46, %v8353_v7  ;;  %v10216_v10 = vadd.f32 %v10215_v54, %v10214_v31 }
 0xdd1   : > { %v8651_v9 = vpack.c.bf16 %v8631_v6, %v8630_v59 }
 0xdd2   : > { %v8356_v15 = vadd.f32 %v10216_v10, %v16065_v36  ;;  %v8600_v40 = vmul.f32 0.01, %v8514_v62  ;;  %vm8568_vm9 = vcmp.gt.f32.partialorder %v8514_v62, 0.0 }
 0xdd3   : > { %10639 = vmatmul.mubr.msk.bf16.gmra.mxu0 %vm386_vm0, %v8651_v9 }
 0xdd4   : > { %v8517_v34 = vadd.f32 %v8516_v18, %v8356_v15  ;;  %v8632_v0 = vsel %vm8568_vm9, %v8514_v62, %v8600_v40 }
 0xdd5   : > { %v10217_v50 = vpop.f32.mrf.mxu1 }
 0xdd6   : > { %vm8569_vm12 = vcmp.gt.f32.partialorder %v8517_v34, 0.0  ;;  %v8601_v29 = vmul.f32 0.01, %v8517_v34 }
 0xdd7   : > { %v10218_v3 = vpop.f32.mrf.mxu1 }
 0xdd8   : > { %v10219_v27 = vadd.f32 %v10218_v3, %v10217_v50  ;;  %v8633_v41 = vsel %vm8569_vm12, %v8517_v34, %v8601_v29  ;;  %v12239_v3 = vld [vmem:[%s16502_s7 + $0x50] sm:$0xff]  }
 0xdd9   : > { %v10220_v61 = vpop.f32.mrf.mxu1  ;;  %v8652_v23 = vpack.c.bf16 %v8633_v41, %v8632_v0  ;;  %10653 = vmatpush3.bf16.msra.mxu1 %v12239_v3 }
 0xdda   : > { %v8361_v52 = vadd.f32 %v10219_v27, %v16065_v36  ;;  %10654 = vmatprep.subr.bf16.mxu1 %v16587_v32 }
 0xddb   : > { %v10221_v55 = vpop.f32.mrf.mxu1  ;;  %10642 = vmatprep.mubr.msk.bf16.mxu0 %vm386_vm0, %v8652_v23 }
 0xddc   : > { %v8522_v57 = vadd.f32 %v10608_v19, %v8361_v52  ;;  %v10222_v11 = vadd.f32 %v10221_v55, %v10220_v61  ;;  %v12241_v61 = vld [vmem:[%s16502_s7 + $0x40] sm:$0xff]  }
 0xddd   : > { %v10223_v49 = vpop.f32.mrf.mxu1 }
 0xdde   : > { %v8364_v43 = vadd.f32 %v10222_v11, %v16065_v36  ;;  %v8602_v16 = vmul.f32 0.01, %v8522_v57  ;;  %vm8570_vm13 = vcmp.gt.f32.partialorder %v8522_v57, 0.0  ;;  %v16134_v11 = vld [vmem:[%s16501_s6 + $0x2] ss:$0 sm:$0xff] }
 0xddf   : > { %v10224_v21 = vpop.f32.mrf.mxu1 }
 0xde0   : > { %v8525_v58 = vadd.f32 %v10609_v26, %v8364_v43  ;;  %v10225_v5 = vadd.f32 %v10224_v21, %v10223_v49  ;;  %v8634_v39 = vsel %vm8570_vm13, %v8522_v57, %v8602_v16 }
 0xde1   : > { %v10226_v45 = vpop.f32.mrf.mxu1 }
 0xde2   : > { %vm8571_vm15 = vcmp.gt.f32.partialorder %v8525_v58, 0.0  ;;  %v8603_v2 = vmul.f32 0.01, %v8525_v58  ;;  %v8369_v4 = vadd.f32 %v10225_v5, %v16065_v36 }
 0xde3   : > { %v10227_v19 = vpop.f32.mrf.mxu1 }
 0xde4   : > { %v8635_v14 = vsel %vm8571_vm15, %v8525_v58, %v8603_v2  ;;  %v10228_v63 = vadd.f32 %v10227_v19, %v10226_v45  ;;  %v8530_v35 = vadd.f32 %v8529_v12, %v8369_v4 }
 0xde5   : > { %v8653_v46 = vpack.c.bf16 %v8635_v14, %v8634_v39  ;;  %v10229_v24 = vpop.f32.mrf.mxu1 }
 0xde6   : > { %v8372_v53 = vadd.f32 %v10228_v63, %v16065_v36  ;;  %v8604_v31 = vmul.f32 0.01, %v8530_v35  ;;  %vm8572_vm2 = vcmp.gt.f32.partialorder %v8530_v35, 0.0 }
 0xde7   : > { %v10230_v28 = vpop.f32.mrf.mxu1  ;;  %10643 = vmatmul.mubr.msk.bf16.gmra.mxu0 %vm386_vm0, %v8653_v46 }
 0xde8   : > { %v10231_v20 = vadd.f32 %v10230_v28, %v10229_v24  ;;  %v8533_v7 = vadd.f32 %v8532_v17, %v8372_v53  ;;  %v8636_v62 = vsel %vm8572_vm2, %v8530_v35, %v8604_v31 }
 0xde9   : > { %v10232_v26 = vpop.f32.mrf.mxu1 }
 0xdea   : > { %v8377_v54 = vadd.f32 %v10231_v20, %v16065_v36  ;;  %vm8573_vm3 = vcmp.gt.f32.partialorder %v8533_v7, 0.0  ;;  %v8605_v59 = vmul.f32 0.01, %v8533_v7 }
 0xdeb   : > { %v10233_v6 = vpop.f32.mrf.mxu1 }
 0xdec   : > { %v8538_v10 = vadd.f32 %v10612_v48, %v8377_v54  ;;  %v8637_v9 = vsel %vm8573_vm3, %v8533_v7, %v8605_v59  ;;  %v10234_v15 = vadd.f32 %v10233_v6, %v10232_v26 }
 0xded   : > { %v8654_v18 = vpack.c.bf16 %v8637_v9, %v8636_v62 }
 0xdee   : > { %v8380_v40 = vadd.f32 %v10234_v15, %v16065_v36  ;;  %v8606_v34 = vmul.f32 0.01, %v8538_v10  ;;  %vm8574_vm4 = vcmp.gt.f32.partialorder %v8538_v10, 0.0  ;;  %v12240_v36 = vld [vmem:[%s16502_s7 + $0x48] sm:$0xff]  }
 0xdef   : > { %10646 = vmatprep.mubr.msk.bf16.mxu0 %vm386_vm0, %v8654_v18  ;;  %10655 = vmatpush3.bf16.msra.mxu1 %v12240_v36 }
 0xdf0   : > { %v8541_v50 = vadd.f32 %v10613_v60, %v8380_v40  ;;  %v8638_v27 = vsel %vm8574_vm4, %v8538_v10, %v8606_v34  ;;  %10656 = vmatprep.subr.bf16.mxu1 %v16587_v32 }
 0xdf2   : > { %vm8575_vm5 = vcmp.gt.f32.partialorder %v8541_v50, 0.0  ;;  %v8607_v29 = vmul.f32 0.01, %v8541_v50 }
 0xdf3   : > { %10657 = vmatpush3.bf16.msra.mxu1 %v12241_v61 }
 0xdf4   : > { %v8639_v0 = vsel %vm8575_vm5, %v8541_v50, %v8607_v29  ;;  %10662 = vmatprep.subr.bf16.mxu1 %v16587_v32 }
 0xdf5   : > { %v8655_v41 = vpack.c.bf16 %v8639_v0, %v8638_v27 }
 0xdf7   : > { %10647 = vmatmul.mubr.msk.bf16.gmra.mxu0 %vm386_vm0, %v8655_v41 }
 0xe1b   : > { %v10620_v23 = vpop.f32.mrf.mxu0 }
 0xe1c   : > { %v8772_v5 = vadd.f32 %v10620_v23, %v16134_v11 }
 0xe1d   : > { %v8763_v48 = vpop.f32.mrf.mxu0 }
 0xe1e   : > { %v8764_v43 = vadd.f32 %v16134_v11, %v8763_v48  ;;  %v8924_v4 = vmul.f32 0.01, %v8772_v5  ;;  %vm8892_vm7 = vcmp.gt.f32.partialorder %v8772_v5, 0.0 }
 0xe1f   : > { %v10621_v52 = vpop.f32.mrf.mxu0 }
 0xe20   : > { %v8922_v45 = vmul.f32 0.01, %v8764_v43  ;;  %vm8890_vm6 = vcmp.gt.f32.partialorder %v8764_v43, 0.0  ;;  %v8775_v39 = vadd.f32 %v10621_v52, %v16134_v11  ;;  %v16150_v17 = vsel %vm8892_vm7, %v8772_v5, %v8924_v4 }
 0xe21   : > { %v8766_v33 = vpop.f32.mrf.mxu0  ;;  %v8989_v7 = vsel %vm529_vm1, %v16150_v17, 0.0 }
 0xe22   : > { %v8767_v12 = vadd.f32 %v16134_v11, %v8766_v33  ;;  %v16141_v19 = vsel %vm8890_vm6, %v8764_v43, %v8922_v45  ;;  %v8925_v53 = vmul.f32 0.01, %v8775_v39  ;;  %vm8893_vm8 = vcmp.gt.f32.partialorder %v8775_v39, 0.0 }
 0xe23   : > { %v8986_v46 = vsel %vm529_vm1, %v16141_v19, 0.0 }
 0xe24   : > { %v8923_v16 = vmul.f32 0.01, %v8767_v12  ;;  %vm8891_vm0 = vcmp.gt.f32.partialorder %v8767_v12, 0.0  ;;  %v16154_v54 = vsel %vm8893_vm8, %v8775_v39, %v8925_v53 }
 0xe25   : > { %v8991_v15 = vsel %vm529_vm1, %v16154_v54, 0.0 }
 0xe26   : > { %v16139_v60 = vsel %vm8891_vm0, %v8767_v12, %v8923_v16 }
 0xe27   : > { %v8987_v63 = vsel %vm529_vm1, %v16139_v60, 0.0 }
 0xe28   : > { %v8988_v28 = vadd.f32 %v8987_v63, %v8986_v46 }
 0xe2a   : > { %v8990_v59 = vadd.f32 %v8989_v7, %v8988_v28 }
 0xe2c   : > { %v8992_v34 = vadd.f32 %v8991_v15, %v8990_v59 }
 0xe33   : > { %v10624_v55 = vpop.f32.mrf.mxu0 }
 0xe34   : > { %v8788_v6 = vadd.f32 %v10624_v55, %v16134_v11 }
 0xe35   : > { %v8779_v57 = vpop.f32.mrf.mxu0 }
 0xe36   : > { %v8780_v14 = vadd.f32 %v16134_v11, %v8779_v57  ;;  %v8928_v40 = vmul.f32 0.01, %v8788_v6  ;;  %vm8896_vm13 = vcmp.gt.f32.partialorder %v8788_v6, 0.0 }
 0xe37   : > { %v10625_v49 = vpop.f32.mrf.mxu0 }
 0xe38   : > { %v8926_v31 = vmul.f32 0.01, %v8780_v14  ;;  %vm8894_vm9 = vcmp.gt.f32.partialorder %v8780_v14, 0.0  ;;  %v8791_v50 = vadd.f32 %v10625_v49, %v16134_v11  ;;  %v16170_v36 = vsel %vm8896_vm13, %v8788_v6, %v8928_v40 }
 0xe39   : > { %v8782_v21 = vpop.f32.mrf.mxu0  ;;  %v8997_v55 = vsel %vm529_vm1, %v16170_v36, 0.0 }
 0xe3a   : > { %v8783_v35 = vadd.f32 %v16134_v11, %v8782_v21  ;;  %v16157_v62 = vsel %vm8894_vm9, %v8780_v14, %v8926_v31  ;;  %v8929_v61 = vmul.f32 0.01, %v8791_v50  ;;  %vm8897_vm15 = vcmp.gt.f32.partialorder %v8791_v50, 0.0 }
 0xe3b   : > { %v8993_v18 = vsel %vm529_vm1, %v16157_v62, 0.0 }
 0xe3c   : > { %v8927_v20 = vmul.f32 0.01, %v8783_v35  ;;  %vm8895_vm12 = vcmp.gt.f32.partialorder %v8783_v35, 0.0  ;;  %v8994_v0 = vadd.f32 %v8993_v18, %v8992_v34  ;;  %v16174_v57 = vsel %vm8897_vm15, %v8791_v50, %v8929_v61 }
 0xe3d   : > { %v8999_v5 = vsel %vm529_vm1, %v16174_v57, 0.0 }
 0xe3e   : > { %v16159_v9 = vsel %vm8895_vm12, %v8783_v35, %v8927_v20 }
 0xe3f   : > { %v8995_v3 = vsel %vm529_vm1, %v16159_v9, 0.0 }
 0xe40   : > { %v8996_v23 = vadd.f32 %v8995_v3, %v8994_v0 }
 0xe42   : > { %v8998_v49 = vadd.f32 %v8997_v55, %v8996_v23 }
 0xe44   : > { %v9000_v39 = vadd.f32 %v8999_v5, %v8998_v49 }
 0xe4b   : > { %v10628_v58 = vpop.f32.mrf.mxu0 }
 0xe4c   : > { %v8804_v12 = vadd.f32 %v10628_v58, %v16134_v11 }
 0xe4d   : > { %v8795_v2 = vpop.f32.mrf.mxu0 }
 0xe4e   : > { %v8796_v29 = vadd.f32 %v16134_v11, %v8795_v2  ;;  %v8932_v4 = vmul.f32 0.01, %v8804_v12  ;;  %vm8900_vm4 = vcmp.gt.f32.partialorder %v8804_v12, 0.0 }
 0xe4f   : > { %v10629_v24 = vpop.f32.mrf.mxu0 }
 0xe50   : > { %v8930_v48 = vmul.f32 0.01, %v8796_v29  ;;  %vm8898_vm2 = vcmp.gt.f32.partialorder %v8796_v29, 0.0  ;;  %v8807_v14 = vadd.f32 %v10629_v24, %v16134_v11  ;;  %v16190_v28 = vsel %vm8900_vm4, %v8804_v12, %v8932_v4 }
 0xe51   : > { %v8798_v26 = vpop.f32.mrf.mxu0  ;;  %v9005_v24 = vsel %vm529_vm1, %v16190_v28, 0.0 }
 0xe52   : > { %v8799_v41 = vadd.f32 %v16134_v11, %v8798_v26  ;;  %v16177_v43 = vsel %vm8898_vm2, %v8796_v29, %v8930_v48  ;;  %v8933_v31 = vmul.f32 0.01, %v8807_v14  ;;  %vm8901_vm5 = vcmp.gt.f32.partialorder %v8807_v14, 0.0 }
 0xe53   : > { %v9001_v45 = vsel %vm529_vm1, %v16177_v43, 0.0 }
 0xe54   : > { %v8931_v33 = vmul.f32 0.01, %v8799_v41  ;;  %vm8899_vm3 = vcmp.gt.f32.partialorder %v8799_v41, 0.0  ;;  %v9002_v35 = vadd.f32 %v9001_v45, %v9000_v39  ;;  %v16194_v6 = vsel %vm8901_vm5, %v8807_v14, %v8933_v31 }
 0xe55   : > { %v9007_v50 = vsel %vm529_vm1, %v16194_v6, 0.0 }
 0xe56   : > { %v16179_v16 = vsel %vm8899_vm3, %v8799_v41, %v8931_v33 }
 0xe57   : > { %v9003_v58 = vsel %vm529_vm1, %v16179_v16, 0.0 }
 0xe58   : > { %v9004_v20 = vadd.f32 %v9003_v58, %v9002_v35 }
 0xe5a   : > { %v9006_v15 = vadd.f32 %v9005_v24, %v9004_v20 }
 0xe5c   : > { %v9008_v0 = vadd.f32 %v9007_v50, %v9006_v15 }
 0xe63   : > { %v10632_v10 = vpop.f32.mrf.mxu0 }
 0xe64   : > { %v8820_v18 = vadd.f32 %v10632_v10, %v16134_v11 }
 0xe65   : > { %v8811_v27 = vpop.f32.mrf.mxu0 }
 0xe66   : > { %v8812_v63 = vadd.f32 %v16134_v11, %v8811_v27  ;;  %v8936_v27 = vmul.f32 0.01, %v8820_v18  ;;  %vm8904_vm7 = vcmp.gt.f32.partialorder %v8820_v18, 0.0 }
 0xe67   : > { %v10633_v52 = vpop.f32.mrf.mxu0 }
 0xe68   : > { %v8934_v7 = vmul.f32 0.01, %v8812_v63  ;;  %vm8902_vm0 = vcmp.gt.f32.partialorder %v8812_v63, 0.0  ;;  %v8823_v41 = vadd.f32 %v10633_v52, %v16134_v11  ;;  %v16210_v33 = vsel %vm8904_vm7, %v8820_v18, %v8936_v27 }
 0xe69   : > { %v8814_v21 = vpop.f32.mrf.mxu0  ;;  %v9013_v52 = vsel %vm529_vm1, %v16210_v33, 0.0 }
 0xe6a   : > { %v8815_v46 = vadd.f32 %v16134_v11, %v8814_v21  ;;  %v16197_v40 = vsel %vm8902_vm0, %v8812_v63, %v8934_v7  ;;  %v8937_v55 = vmul.f32 0.01, %v8823_v41  ;;  %vm8905_vm8 = vcmp.gt.f32.partialorder %v8823_v41, 0.0 }
 0xe6b   : > { %v9009_v29 = vsel %vm529_vm1, %v16197_v40, 0.0 }
 0xe6c   : > { %v8935_v26 = vmul.f32 0.01, %v8815_v46  ;;  %vm8903_vm6 = vcmp.gt.f32.partialorder %v8815_v46, 0.0  ;;  %v9010_v23 = vadd.f32 %v9009_v29, %v9008_v0  ;;  %v16214_v4 = vsel %vm8905_vm8, %v8823_v41, %v8937_v55 }
 0xe6e   : > { %v16199_v34 = vsel %vm8903_vm6, %v8815_v46, %v8935_v26  ;;  %v9015_v46 = vsel %vm529_vm1, %v16214_v4, 0.0 }
 0xe6f   : > { %v9011_v10 = vsel %vm529_vm1, %v16199_v34, 0.0 }
 0xe70   : > { %v9012_v49 = vadd.f32 %v9011_v10, %v9010_v23 }
 0xe72   : > { %v9014_v39 = vadd.f32 %v9013_v52, %v9012_v49 }
 0xe74   : > { %v9016_v7 = vadd.f32 %v9015_v46, %v9014_v39 }
 0xe7b   : > { %v10636_v2 = vpop.f32.mrf.mxu0 }
 0xe7c   : > { %v8836_v14 = vadd.f32 %v10636_v2, %v16134_v11 }
 0xe7d   : > { %v8827_v53 = vpop.f32.mrf.mxu0 }
 0xe7e   : > { %v8828_v61 = vadd.f32 %v16134_v11, %v8827_v53  ;;  %v8940_v20 = vmul.f32 0.01, %v8836_v14  ;;  %vm8908_vm13 = vcmp.gt.f32.partialorder %v8836_v14, 0.0 }
 0xe7f   : > { %v10637_v59 = vpop.f32.mrf.mxu0 }
 0xe80   : > { %v8938_v12 = vmul.f32 0.01, %v8828_v61  ;;  %vm8906_vm9 = vcmp.gt.f32.partialorder %v8828_v61, 0.0  ;;  %v8839_v26 = vadd.f32 %v10637_v59, %v16134_v11  ;;  %v16230_v50 = vsel %vm8908_vm13, %v8836_v14, %v8940_v20 }
 0xe81   : > { %v8830_v3 = vpop.f32.mrf.mxu0  ;;  %v9021_v59 = vsel %vm529_vm1, %v16230_v50, 0.0 }
 0xe82   : > { %v8831_v48 = vadd.f32 %v16134_v11, %v8830_v3  ;;  %v16217_v63 = vsel %vm8906_vm9, %v8828_v61, %v8938_v12  ;;  %v8941_v29 = vmul.f32 0.01, %v8839_v26  ;;  %vm8909_vm15 = vcmp.gt.f32.partialorder %v8839_v26, 0.0 }
 0xe83   : > { %v9017_v53 = vsel %vm529_vm1, %v16217_v63, 0.0 }
 0xe84   : > { %v8939_v5 = vmul.f32 0.01, %v8831_v48  ;;  %vm8907_vm12 = vcmp.gt.f32.partialorder %v8831_v48, 0.0  ;;  %v9018_v15 = vadd.f32 %v9017_v53, %v9016_v7  ;;  %v16234_v41 = vsel %vm8909_vm15, %v8839_v26, %v8941_v29 }
 0xe85   : > { %v9023_v55 = vsel %vm529_vm1, %v16234_v41, 0.0 }
 0xe86   : > { %v16219_v35 = vsel %vm8907_vm12, %v8831_v48, %v8939_v5 }
 0xe87   : > { %v9019_v2 = vsel %vm529_vm1, %v16219_v35, 0.0 }
 0xe88   : > { %v9020_v3 = vadd.f32 %v9019_v2, %v9018_v15 }
 0xe8a   : > { %v9022_v61 = vadd.f32 %v9021_v59, %v9020_v3 }
 0xe8c   : > { %v9024_v5 = vadd.f32 %v9023_v55, %v9022_v61 }
 0xe93   : > { %v10640_v21 = vpop.f32.mrf.mxu0 }
 0xe94   : > { %v8852_v10 = vadd.f32 %v10640_v21, %v16134_v11 }
 0xe95   : > { %v8843_v45 = vpop.f32.mrf.mxu0 }
 0xe96   : > { %v8844_v24 = vadd.f32 %v16134_v11, %v8843_v45  ;;  %v8944_v12 = vmul.f32 0.01, %v8852_v10  ;;  %vm8912_vm4 = vcmp.gt.f32.partialorder %v8852_v10, 0.0 }
 0xe97   : > { %v10641_v58 = vpop.f32.mrf.mxu0 }
 0xe98   : > { %v8942_v27 = vmul.f32 0.01, %v8844_v24  ;;  %vm8910_vm2 = vcmp.gt.f32.partialorder %v8844_v24, 0.0  ;;  %v8855_v45 = vadd.f32 %v10641_v58, %v16134_v11  ;;  %v16249_v53 = vsel %vm8912_vm4, %v8852_v10, %v8944_v12 }
 0xe99   : > { %v8846_v31 = vpop.f32.mrf.mxu0  ;;  %v9029_v58 = vsel %vm529_vm1, %v16249_v53, 0.0 }
 0xe9a   : > { %v8847_v18 = vadd.f32 %v16134_v11, %v8846_v31  ;;  %v16237_v23 = vsel %vm8910_vm2, %v8844_v24, %v8942_v27  ;;  %v8945_v31 = vmul.f32 0.01, %v8855_v45  ;;  %vm8913_vm5 = vcmp.gt.f32.partialorder %v8855_v45, 0.0 }
 0xe9b   : > { %v9025_v49 = vsel %vm529_vm1, %v16237_v23, 0.0 }
 0xe9c   : > { %v8943_v0 = vmul.f32 0.01, %v8847_v18  ;;  %vm8911_vm3 = vcmp.gt.f32.partialorder %v8847_v18, 0.0  ;;  %v9026_v21 = vadd.f32 %v9025_v49, %v9024_v5  ;;  %v16254_v15 = vsel %vm8913_vm5, %v8855_v45, %v8945_v31 }
 0xe9d   : > { %v9031_v59 = vsel %vm529_vm1, %v16254_v15, 0.0 }
 0xe9e   : > { %v16239_v48 = vsel %vm8911_vm3, %v8847_v18, %v8943_v0 }
 0xe9f   : > { %v9027_v39 = vsel %vm529_vm1, %v16239_v48, 0.0 }
 0xea0   : > { %v9028_v20 = vadd.f32 %v9027_v39, %v9026_v21 }
 0xea2   : > { %v9030_v18 = vadd.f32 %v9029_v58, %v9028_v20 }
 0xea4   : > { %v9032_v49 = vadd.f32 %v9031_v59, %v9030_v18 }
 0xea7   : > { %v10644_v52 = vpop.f32.mrf.mxu0 }
 0xea8   : > { %v8868_v29 = vadd.f32 %v10644_v52, %v16134_v11 }
 0xea9   : > { %v8859_v14 = vpop.f32.mrf.mxu0 }
 0xeaa   : > { %v8860_v46 = vadd.f32 %v16134_v11, %v8859_v14  ;;  %v8948_v55 = vmul.f32 0.01, %v8868_v29  ;;  %vm8916_vm7 = vcmp.gt.f32.partialorder %v8868_v29, 0.0 }
 0xeab   : > { %v10645_v7 = vpop.f32.mrf.mxu0 }
 0xeac   : > { %v8946_v26 = vmul.f32 0.01, %v8860_v46  ;;  %vm8914_vm0 = vcmp.gt.f32.partialorder %v8860_v46, 0.0  ;;  %v8871_v10 = vadd.f32 %v10645_v7, %v16134_v11  ;;  %v16268_v39 = vsel %vm8916_vm7, %v8868_v29, %v8948_v55 }
 0xead   : > { %v8862_v24 = vpop.f32.mrf.mxu0  ;;  %v9037_v20 = vsel %vm529_vm1, %v16268_v39, 0.0 }
 0xeae   : > { %v8863_v2 = vadd.f32 %v16134_v11, %v8862_v24  ;;  %v16257_v3 = vsel %vm8914_vm0, %v8860_v46, %v8946_v26  ;;  %v8949_v45 = vmul.f32 0.01, %v8871_v10  ;;  %vm8917_vm8 = vcmp.gt.f32.partialorder %v8871_v10, 0.0 }
 0xeaf   : > { %v9033_v61 = vsel %vm529_vm1, %v16257_v3, 0.0 }
 0xeb0   : > { %vm8915_vm6 = vcmp.gt.f32.partialorder %v8863_v2, 0.0  ;;  %v8947_v27 = vmul.f32 0.01, %v8863_v2  ;;  %v9034_v5 = vadd.f32 %v9033_v61, %v9032_v49  ;;  %v16274_v7 = vsel %vm8917_vm8, %v8871_v10, %v8949_v45 }
 0xeb1   : > { %v9039_v61 = vsel %vm529_vm1, %v16274_v7, 0.0 }
 0xeb2   : > { %v16259_v0 = vsel %vm8915_vm6, %v8863_v2, %v8947_v27 }
 0xeb3   : > { %v9035_v12 = vsel %vm529_vm1, %v16259_v0, 0.0 }
 0xeb4   : > { %v9036_v21 = vadd.f32 %v9035_v12, %v9034_v5 }
 0xeb6   : > { %v9038_v24 = vadd.f32 %v9037_v20, %v9036_v21 }
 0xeb7   : > { %v10648_v52 = vpop.f32.mrf.mxu0 }
 0xeb8   : > { %v8884_v46 = vadd.f32 %v10648_v52, %v16134_v11  ;;  %v9040_v55 = vadd.f32 %v9039_v61, %v9038_v24 }
 0xeb9   : > { %v8875_v14 = vpop.f32.mrf.mxu0 }
 0xeba   : > { %v8876_v31 = vadd.f32 %v16134_v11, %v8875_v14  ;;  %v8952_v29 = vmul.f32 0.01, %v8884_v46  ;;  %vm8920_vm12 = vcmp.gt.f32.partialorder %v8884_v46, 0.0 }
 0xebb   : > { %v10649_v26 = vpop.f32.mrf.mxu0 }
 0xebc   : > { %vm8918_vm9 = vcmp.gt.f32.partialorder %v8876_v31, 0.0  ;;  %v8950_v58 = vmul.f32 0.01, %v8876_v31  ;;  %v8887_v2 = vadd.f32 %v10649_v26, %v16134_v11  ;;  %v16284_v5 = vsel %vm8920_vm12, %v8884_v46, %v8952_v29 }
 0xebd   : > { %v8878_v18 = vpop.f32.mrf.mxu0 }
 0xebe   : > { %v16277_v27 = vsel %vm8918_vm9, %v8876_v31, %v8950_v58  ;;  %v8879_v59 = vadd.f32 %v16134_v11, %v8878_v18  ;;  %v8953_v49 = vmul.f32 0.01, %v8887_v2  ;;  %vm8921_vm15 = vcmp.gt.f32.partialorder %v8887_v2, 0.0 }
 0xebf   : > { %v9041_v10 = vsel %vm529_vm1, %v16277_v27, 0.0  ;;  %v9045_v31 = vsel %vm529_vm1, %v16284_v5, 0.0 }
 0xec0   : > { %vm8919_vm13 = vcmp.gt.f32.partialorder %v8879_v59, 0.0  ;;  %v8951_v12 = vmul.f32 0.01, %v8879_v59  ;;  %v9042_v45 = vadd.f32 %v9041_v10, %v9040_v55  ;;  %v16290_v21 = vsel %vm8921_vm15, %v8887_v2, %v8953_v49  ;;  %v9742_v2 = vld [vmem:[%s16504_s9 + $0x4] sm:$0x3] }
 0xec1   : > { %v9047_v26 = vsel %vm529_vm1, %v16290_v21, 0.0  ;;  %v9145_v49 = vsel %vm3283_vm10, %v9742_v2, 0 }
 0xec2   : > { %v16286_v52 = vsel %vm8919_vm13, %v8879_v59, %v8951_v12  ;;  %v9736_v12 = vld [vmem:[%s16503_s8 + $0x2] sm:$0x1] }
 0xec3   : > { %v9043_v11 = vsel %vm529_vm1, %v16286_v52, 0.0 }
 0xec4   : > { %v9044_v14 = vadd.f32 %v9043_v11, %v9042_v45 }
 0xec6   : > { %v9046_v20 = vadd.f32 %v9045_v31, %v9044_v14 }
 0xec8   : > { %v9048_v24 = vadd.f32 %v9047_v26, %v9046_v20 }
 0xeca   : > { %v9049_v58 = vrot.slane %v9048_v24, 4 }
 0xecc   : > { %v9050_v46 = vadd.f32 %v9049_v58, %v9048_v24  ;;  %v9743_v58 = vld [vmem:[%s16505_s10 + $0x2] sm:$0x1] }
 0xece   : > { %v9051_v18 = vrot.slane %v9050_v46, 2 }
 0xed0   : > { %v9052_v29 = vadd.f32 %v9051_v18, %v9050_v46 }
 0xed2   : > { %v9053_v59 = vrot.slane %v9052_v29, 1 }
 0xed4   : > { %v9054_v61 = vadd.f32 %v9053_v59, %v9052_v29 }
 0xed6   : > { %v9055_v10 = vmul.f32 0.00390625, %v9054_v61 }
 0xed8   : > { %v9056_v55 = vpack.c.bf16 %v9055_v10, %v9055_v10 }
 0xeda   : > { %10659 = vmatmul.mubr.msk.bf16.vlgmr.msra.gmra.mxu1 %vm529_vm1, %v9056_v55 }
 0xedb   : > { %10663 = vmatpush3.bf16.msra.mxu1 %v9145_v49  ;;  %10664 = vmatprep.mubr.msk.bf16.mxu1 %vm12359_vm14, %v16587_v32 }
 0xf9a   : > { %v9129_v45 = vpop.f32.mrf.mxu1 }
 0xf9b   : > { %v9130_v11 = vadd.f32 %v9736_v12, %v9129_v45 }
 0xf9c   : > { %v10660_v14 = vpop.f32.mrf.mxu1 }
 0xf9d   : > { %v9135_v31 = vmax.f32 %v9130_v11, 0.0 }
 0xf9e   : > { %v9132_v20 = vpop.f32.mrf.mxu1 }
 0xf9f   : > { %v9136_v26 = vpack.c.bf16 %v9135_v31, %v9135_v31 }
 0xfa0   : > { %v10661_v24 = vpop.f32.mrf.mxu1 }
 0xfa1   : > { %10665 = vmatmul.mubr.msk.bf16.vlgmr.msra.gmra.mxu1 %vm3279_vm11, %v9136_v26 }
0x1061   : > { %v9181_v46 = vpop.f32.mrf.mxu1 }
0x1062   : > { %v9182_v32 = vadd.f32 %v9743_v58, %v9181_v46  ;;  %v16634_v46 = vld [vmem:[#allocation12_spill] sm:$0xff] }
0x1063   : > { %v10666_v18 = vpop.f32.mrf.mxu1 }
0x1064   : > { %v9745_v29 = vmul.f32 -1.442695, %v9182_v32  ;;  %v16635_v18 = vld [vmem:[#allocation13_spill] sm:$0xff] }
0x1065   : > { %v9184_v59 = vpop.f32.mrf.mxu1 }
0x1066   : > { %12250 = vpow2.f32 %v9745_v29  ;;  %v16636_v59 = vld [vmem:[#allocation14_spill] sm:$0xff] }
0x1067   : > { %v10667_v61 = vpop.f32.mrf.mxu1 }
0x1073   : > { %v12251_v2 = vpop.eup %12250 }
0x1074   : > { %v9190_v10 = vadd.f32 1.0, %v12251_v2  ;;  %v16637_v2 = vld [vmem:[#allocation15_spill] sm:$0xff] }
0x1076   : > { %12252 = vrcp.f32 %v9190_v10 }
0x1083   : > { %v12253_v55 = vpop.eup %12252 }
0x1084   : > { %v9196_v49 = vrot.slane %v12253_v55, %v13748_v22  ;;  %v16638_v55 = vld [vmem:[#allocation16_spill] sm:$0xff] }
0x1086   : > { %v9197_v12 = vmul.f32 %v9196_v49, %v16141_v19  ;;  %v9198_v45 = vmul.f32 %v9196_v49, %v16139_v60  ;;  %v9199_v11 = vmul.f32 %v9196_v49, %v16150_v17  ;;  %v9200_v14 = vmul.f32 %v9196_v49, %v16154_v54 }
0x1087   : > { %v9201_v31 = vmul.f32 %v9196_v49, %v16157_v62  ;;  %v9202_v20 = vmul.f32 %v9196_v49, %v16159_v9  ;;  %v9203_v26 = vmul.f32 %v9196_v49, %v16170_v36  ;;  %v9204_v24 = vmul.f32 %v9196_v49, %v16174_v57 }
0x1088   : > { %v9205_v22 = vmul.f32 %v9196_v49, %v16177_v43  ;;  %v9206_v19 = vmul.f32 %v9196_v49, %v16179_v16  ;;  %v9207_v60 = vmul.f32 %v9196_v49, %v16190_v28  ;;  %v9208_v58 = vmul.f32 %v9196_v49, %v16194_v6 }
0x1089   : > { %v9209_v17 = vmul.f32 %v9196_v49, %v16197_v40  ;;  %v9210_v54 = vmul.f32 %v9196_v49, %v16199_v34  ;;  %v9211_v62 = vmul.f32 %v9196_v49, %v16210_v33  ;;  %v9212_v9 = vmul.f32 %v9196_v49, %v16214_v4 }
0x108a   : > { %v9213_v36 = vmul.f32 %v9196_v49, %v16217_v63  ;;  %v9214_v57 = vmul.f32 %v9196_v49, %v16219_v35  ;;  %v9215_v43 = vmul.f32 %v9196_v49, %v16230_v50  ;;  %v9216_v16 = vmul.f32 %v9196_v49, %v16234_v41 }
0x108b   : > { %v9217_v28 = vmul.f32 %v9196_v49, %v16237_v23  ;;  %v9218_v6 = vmul.f32 %v9196_v49, %v16239_v48  ;;  %v9219_v40 = vmul.f32 %v9196_v49, %v16249_v53  ;;  %v9220_v34 = vmul.f32 %v9196_v49, %v16254_v15 }
0x108c   : > { %v9221_v33 = vmul.f32 %v9196_v49, %v16257_v3  ;;  %v9222_v4 = vmul.f32 %v9196_v49, %v16259_v0  ;;  %v9223_v63 = vmul.f32 %v9196_v49, %v16268_v39  ;;  %v9224_v35 = vmul.f32 %v9196_v49, %v16274_v7 }
0x108d   : > { %v9225_v50 = vmul.f32 %v9196_v49, %v16277_v27  ;;  %v9226_v41 = vmul.f32 %v9196_v49, %v16286_v52  ;;  %v9227_v23 = vmul.f32 %v9196_v49, %v16284_v5  ;;  %v9228_v48 = vmul.f32 %v9196_v49, %v16290_v21 }
0x108e   : > { %v9229_v53 = vadd.f32 %v9197_v12, %v15077_v13  ;;  %v9230_v15 = vadd.f32 %v9198_v45, %v15080_v30  ;;  %v9231_v3 = vadd.f32 %v9199_v11, %v15071_v37  ;;  %v9232_v0 = vadd.f32 %v9200_v14, %v15074_v47  ;;  %v16629_v37 = vld [vmem:[#allocation7_spill] sm:$0xff]  ;;  %v16639_v12 = vld [vmem:[#allocation17_spill] sm:$0xff]  ;;  %v16640_v11 = vld [vmem:[#allocation18_spill] sm:$0xff] }
0x108f   : > { %v9233_v39 = vadd.f32 %v9201_v31, %v15083_v8  ;;  %v9234_v7 = vadd.f32 %v9202_v20, %v15086_v25  ;;  %v9235_v27 = vadd.f32 %v9203_v26, %v15106_v56  ;;  %v9236_v52 = vadd.f32 %v9204_v24, %v15109_v44  ;;  %v16630_v8 = vld [vmem:[#allocation8_spill] sm:$0xff]  ;;  %v16631_v56 = vld [vmem:[#allocation9_spill] sm:$0xff]  ;;  %v16641_v31 = vld [vmem:[#allocation19_spill] sm:$0xff] }
0x1090   : > { %v9237_v5 = vadd.f32 %v9205_v22, %v15112_v51  ;;  %v9238_v21 = vadd.f32 %v9206_v19, %v15115_v42  ;;  %v9239_v13 = vadd.f32 %v9207_v60, %v15132_v1  ;;  %v9240_v30 = vadd.f32 %v9208_v58, %v15135_v38  ;;  %9261 = vst.msk [vmem:[%s16358_s30] sm:$0xff] %vm529_vm1, %v9229_v53  ;;  %v16632_v51 = vld [vmem:[#allocation10_spill] sm:$0xff]  ;;  %v16633_v1 = vld [vmem:[#allocation11_spill] sm:$0xff]  ;;  %v16642_v26 = vld [vmem:[#allocation20_spill] sm:$0xff] }
0x1091   : > { %9262 = vst.msk [vmem:[%s16358_s30 + $0x8] sm:$0xff] %vm529_vm1, %v9230_v15  ;;  %9263 = vst.msk [vmem:[%s16358_s30 + $0x10] sm:$0xff] %vm529_vm1, %v9231_v3  ;;  %v9241_v47 = vadd.f32 %v9209_v17, %v16629_v37  ;;  %v9242_v25 = vadd.f32 %v9210_v54, %v16630_v8  ;;  %v9243_v44 = vadd.f32 %v9211_v62, %v16631_v56  ;;  %v16643_v22 = vld [vmem:[#allocation21_spill] sm:$0xff]  ;;  %v16644_v60 = vld [vmem:[#allocation22_spill] sm:$0xff] }
0x1092   : > { %9264 = vst.msk [vmem:[%s16358_s30 + $0x18] sm:$0xff] %vm529_vm1, %v9232_v0  ;;  %v9244_v42 = vadd.f32 %v9212_v9, %v16632_v51  ;;  %9265 = vst.msk [vmem:[%s16358_s30 + $0x20] sm:$0xff] %vm529_vm1, %v9233_v39  ;;  %v9245_v38 = vadd.f32 %v9213_v36, %v16633_v1  ;;  %v9246_v32 = vadd.f32 %v9214_v57, %v16634_v46  ;;  %v16645_v17 = vld [vmem:[#allocation23_spill] sm:$0xff]  ;;  %v16646_v62 = vld [vmem:[#allocation24_spill] sm:$0xff] }
0x1093   : > { %9266 = vst.msk [vmem:[%s16358_s30 + $0x28] sm:$0xff] %vm529_vm1, %v9234_v7  ;;  %9267 = vst.msk [vmem:[%s16358_s30 + $0x30] sm:$0xff] %vm529_vm1, %v9235_v27  ;;  %v9247_v29 = vadd.f32 %v9215_v43, %v16635_v18  ;;  %v9248_v61 = vadd.f32 %v9216_v16, %v16636_v59  ;;  %v9249_v10 = vadd.f32 %v9217_v28, %v16637_v2  ;;  %v16647_v36 = vld [vmem:[#allocation25_spill] sm:$0xff]  ;;  %v16648_v43 = vld [vmem:[#allocation26_spill] sm:$0xff] }
0x1094   : > { %9268 = vst.msk [vmem:[%s16358_s30 + $0x38] sm:$0xff] %vm529_vm1, %v9236_v52  ;;  %9269 = vst.msk [vmem:[%s16358_s30 + $0x40] sm:$0xff] %vm529_vm1, %v9237_v5  ;;  %v9250_v49 = vadd.f32 %v9218_v6, %v16638_v55  ;;  %v9251_v45 = vadd.f32 %v9219_v40, %v16639_v12  ;;  %v9252_v14 = vadd.f32 %v9220_v34, %v16640_v11 }
0x1095   : > { %9270 = vst.msk [vmem:[%s16358_s30 + $0x48] sm:$0xff] %vm529_vm1, %v9238_v21  ;;  %9271 = vst.msk [vmem:[%s16358_s30 + $0x50] sm:$0xff] %vm529_vm1, %v9239_v13  ;;  %v9253_v20 = vadd.f32 %v9221_v33, %v16641_v31  ;;  %v9254_v24 = vadd.f32 %v9222_v4, %v16642_v26  ;;  %v9255_v19 = vadd.f32 %v9223_v63, %v16643_v22 }
0x1096   : > { %9272 = vst.msk [vmem:[%s16358_s30 + $0x58] sm:$0xff] %vm529_vm1, %v9240_v30  ;;  %9273 = vst.msk [vmem:[%s16358_s30 + $0x60] sm:$0xff] %vm529_vm1, %v9241_v47  ;;  %v9256_v58 = vadd.f32 %v9224_v35, %v16644_v60  ;;  %v9257_v54 = vadd.f32 %v9225_v50, %v16645_v17  ;;  %v9258_v9 = vadd.f32 %v9226_v41, %v16646_v62 }
0x1097   : > { %9274 = vst.msk [vmem:[%s16358_s30 + $0x68] sm:$0xff] %vm529_vm1, %v9242_v25  ;;  %9275 = vst.msk [vmem:[%s16358_s30 + $0x70] sm:$0xff] %vm529_vm1, %v9243_v44  ;;  %v9259_v57 = vadd.f32 %v9227_v23, %v16647_v36  ;;  %v9260_v16 = vadd.f32 %v9228_v48, %v16648_v43 }
0x1098   : > { %9276 = vst.msk [vmem:[%s16358_s30 + $0x78] sm:$0xff] %vm529_vm1, %v9244_v42  ;;  %9277 = vst.msk [vmem:[%s16358_s30 + $0x80] sm:$0xff] %vm529_vm1, %v9245_v38 }
0x1099   : > { %9278 = vst.msk [vmem:[%s16358_s30 + $0x88] sm:$0xff] %vm529_vm1, %v9246_v32  ;;  %9279 = vst.msk [vmem:[%s16358_s30 + $0x90] sm:$0xff] %vm529_vm1, %v9247_v29 }
0x109a   : > { %9280 = vst.msk [vmem:[%s16358_s30 + $0x98] sm:$0xff] %vm529_vm1, %v9248_v61  ;;  %9281 = vst.msk [vmem:[%s16358_s30 + $0xa0] sm:$0xff] %vm529_vm1, %v9249_v10 }
0x109b   : > { %9282 = vst.msk [vmem:[%s16358_s30 + $0xa8] sm:$0xff] %vm529_vm1, %v9250_v49  ;;  %9283 = vst.msk [vmem:[%s16358_s30 + $0xb0] sm:$0xff] %vm529_vm1, %v9251_v45 }
0x109c   : > { %9284 = vst.msk [vmem:[%s16358_s30 + $0xb8] sm:$0xff] %vm529_vm1, %v9252_v14  ;;  %9285 = vst.msk [vmem:[%s16358_s30 + $0xc0] sm:$0xff] %vm529_vm1, %v9253_v20 }
0x109d   : > { %9286 = vst.msk [vmem:[%s16358_s30 + $0xc8] sm:$0xff] %vm529_vm1, %v9254_v24  ;;  %9287 = vst.msk [vmem:[%s16358_s30 + $0xd0] sm:$0xff] %vm529_vm1, %v9255_v19 }
0x109e   : > { %9288 = vst.msk [vmem:[%s16358_s30 + $0xd8] sm:$0xff] %vm529_vm1, %v9256_v58  ;;  %9289 = vst.msk [vmem:[%s16358_s30 + $0xe0] sm:$0xff] %vm529_vm1, %v9257_v54 }
0x109f   : > { %9290 = vst.msk [vmem:[%s16358_s30 + $0xe8] sm:$0xff] %vm529_vm1, %v9258_v9  ;;  %9291 = vst.msk [vmem:[%s16358_s30 + $0xf0] sm:$0xff] %vm529_vm1, %v9259_v57 }
0x10a0   : > { %9292 = vst.msk [vmem:[%s16358_s30 + $0xf8] sm:$0xff] %vm529_vm1, %v9260_v16 }
0x10a1   : > { %12306 = shalt.err (!%p12303_p3)
}
0x10a2   : > { %s12307_s16 = scalar_lea.hbm %s16421_s29, 4096  ;;  %s12311_s30 = scalar_lea.hbm %s16506_s11, 8192 }
0x10a3   : > { %p12308_p4 = scmp.ne.s32.totalorder %s16421_s29, %s12307_s16  ;;  %p12312_p9 = scmp.lt.s32.totalorder %s16421_s29, %s16506_s11 }
0x10a4   : > { %p12313_p10 = scmp.lt.s32.totalorder %s12311_s30, %s12307_s16 }
0x10a5   : > { %p12309_p7 = pnand %p12308_p4, %p12461_p5 }
0x10a6   : > { %p12314_p11 = por %p12313_p10, %p12312_p9 }
0x10a7   : > { %p12310_p8 = pneg %p12309_p7 }
0x10a9   : > { %p12315_p12 = pnand %p12314_p11, %p12310_p8 }
0x10ab   : > { %12318 = shalt.err (!%p12315_p12)
}
0x10ac   : > { %s12361_s22 = smov 128   ;;  %s12362_s24 = smov 8  }
0x10ad   : > { %10672 = dma.vmem_to_hbm [thread:$0]  (%p12461_p5), %s16423_s15, 4096, %s16421_s29, %s16455_s1, %s12361_s22, %s12361_s22, %s12362_s24  }
0x10ae PF: > { %p10678_p13 = scmp.ge.s32.totalorder %s12353_s20, 2  ;;  %s9322_s12 = sand.u32 1, %s12341_s17  }
0x10af   : > { %s9323_s14 = scalar_lea.sflag [#allocation4], %s9322_s12 }
0x10b0   : > { %p10675_p0 = pnand %p10678_p13, %p12465_p6 }
0x10b2   : > { %p10676_p1 = pneg %p10675_p0 }
0x10b4   : > { %12336 = dma.done.wait (%p10676_p1), %s9323_s14, 4096  }
0x10b5   : > { %12338 = vsyncadd (%p10676_p1), %s9323_s14, 4294963200  ;;  %s16649_s13 = sld [smem:[#allocation6_spill]]  ;;  %p21_p2 = scmp.ge.s32.totalorder %s12448_s23, 4  }
0x10b6   : > { %s16650_s17 = smov %s12345_s18  ;;  %s16651_s18 = smov %s12349_s19 }
0x10b7   : > { %s16653_s20 = smov %s12448_s23  ;;  %23 = sbr.rel (!%p21_p2) target bundleno = 6 (0x6), region = 121 }
0x10bb   : > { %s16652_s19 = smov %s16649_s13 }
0x10bc   :  { %9328 = vsyncpa [#allocation4], 1 }
0x10bd   :  { %9330 = vsyncpa [#allocation4 + $0x1], 1 }

</bundles_post_ra>
